<compile_context>
chip_gen: v6e
topology: v6e:2x2x1
jax: 0.10.0
libtpu: 0.0.40
codegen_flags: <defaults>
</compile_context>

<pallas_src>
import functools

import jax
import jax.numpy as jnp
from jax import lax
from jax.experimental import pallas as pl
from jax.experimental.pallas import tpu as pltpu

EPS = 1e-5


def conv1x1_bn_kernel(x_ref, w_ref, gamma_ref, beta_ref, o_ref, *, m_true):
    # x_ref:     (Cin, M)    batch*spatial on the lane axis (M = N*H*W)
    # w_ref:     (Cout, Cin) native (squeezed OIHW) weight layout
    # gamma_ref: (Cout, 1)
    # beta_ref:  (Cout, 1)
    # o_ref:     (Cout, M)   channel-major; reshapes directly to NCHW for N==1
    x = x_ref[...]
    w = w_ref[...]

    # 1x1 convolution == plain matmul on the MXU: (Cout, Cin) @ (Cin, M).
    y = lax.dot_general(
        w, x, (((1,), (0,)), ((), ())), preferred_element_type=jnp.float32
    )  # (Cout, M)

    inv_m = 1.0 / m_true

    # Per-channel mean via the otherwise-idle MXU: since the conv is linear,
    # sum_j y[:, j] == w @ (sum_j x[:, j]).  Only a tiny (Cin, 1) cross-lane
    # reduction runs on the XLU instead of a (Cout, M) one.
    sum_x = jnp.sum(x, axis=1, keepdims=True)                       # (Cin, 1)
    mean = (
        lax.dot_general(
            w, sum_x, (((1,), (0,)), ((), ())),
            preferred_element_type=jnp.float32,
        )
        * inv_m
    )                                                               # (Cout, 1)

    # Mean-subtracted (two-pass style) biased variance: numerically stable,
    # and `d` is reused for the normalization itself.
    d = y - mean                                                    # lane-broadcast
    var = jnp.sum(d * d, axis=1, keepdims=True) * inv_m             # (Cout, 1)

    inv_std = lax.rsqrt(var + EPS)                                  # EUP
    scale = gamma_ref[...] * inv_std                                # (Cout, 1)
    o_ref[...] = (d * scale + beta_ref[...]).astype(o_ref.dtype)


def conv1x1_bn(x_nchw, w_oihw, gamma, beta):
    """x_nchw: (N, Cin, H, W); w_oihw: (Cout, Cin, 1, 1); gamma/beta: (Cout,)."""
    n, cin, h, w = x_nchw.shape
    cout = w_oihw.shape[0]
    m = n * h * w

    # NCHW -> (Cin, N*H*W). For n == 1 (the module's shape) the transpose only
    # moves a size-1 axis, so XLA folds it into a reshape: no data movement.
    x_cm = jnp.transpose(x_nchw.reshape(n, cin, h * w), (1, 0, 2)).reshape(cin, m)

    # Native weight layout -- pure squeeze of the trailing 1x1, no transpose.
    w_mat = w_oihw.reshape(cout, cin)                    # (Cout, Cin)
    gamma2d = gamma.reshape(cout, 1)
    beta2d = beta.reshape(cout, 1)

    kernel = functools.partial(conv1x1_bn_kernel, m_true=m)
    y_cm = pl.pallas_call(
        kernel,
        out_shape=jax.ShapeDtypeStruct((cout, m), x_nchw.dtype),
        in_specs=[
            pl.BlockSpec(memory_space=pltpu.VMEM),
            pl.BlockSpec(memory_space=pltpu.VMEM),
            pl.BlockSpec(memory_space=pltpu.VMEM),
            pl.BlockSpec(memory_space=pltpu.VMEM),
        ],
        out_specs=pl.BlockSpec(memory_space=pltpu.VMEM),
    )(x_cm, w_mat, gamma2d, beta2d)

    # (Cout, N*H*W) -> (N, Cout, H, W).  Columns are ordered (n, h, w), so for
    # n == 1 this is a pure reshape (the transpose of a size-1 axis folds away).
    return jnp.transpose(y_cm.reshape(cout, n, h, w), (1, 0, 2, 3))


def reference(x_nchw, w_oihw, gamma, beta):
    # Pure-JAX reference (two-pass BN, f32) matching PyTorch training-mode BN.
    n, cin, h, w = x_nchw.shape
    cout = w_oihw.shape[0]
    x_rows = jnp.transpose(x_nchw, (0, 2, 3, 1)).reshape(-1, cin)
    y = x_rows @ jnp.transpose(w_oihw[:, :, 0, 0], (1, 0))
    mean = jnp.mean(y, axis=0, keepdims=True)
    var = jnp.mean((y - mean) ** 2, axis=0, keepdims=True)
    out = (y - mean) / jnp.sqrt(var + EPS) * gamma[None, :] + beta[None, :]
    return jnp.transpose(out.reshape(n, h, w, cout), (0, 3, 1, 2))


if __name__ == "__main__":
    key = jax.random.PRNGKey(0)
    k_x, k_w, k_g, k_b = jax.random.split(key, 4)

    N, CIN, H, W = 1, 192, 7, 7   # matches the module's x190 = [1, 192, 7, 7]
    COUT = 1152

    x = jax.random.normal(k_x, (N, CIN, H, W), dtype=jnp.float32)
    # Deterministic synthetic parameters (not a checkpoint load).
    w = jax.random.normal(k_w, (COUT, CIN, 1, 1), dtype=jnp.float32) * 0.05
    gamma = 1.0 + 0.1 * jax.random.normal(k_g, (COUT,), dtype=jnp.float32)
    beta = 0.1 * jax.random.normal(k_b, (COUT,), dtype=jnp.float32)

    conv = jax.jit(conv1x1_bn)
    out = jax.block_until_ready(conv(x, w, gamma, beta))

    ref = reference(x, w, gamma, beta)
    assert out.shape == (N, COUT, H, W)
    assert jnp.allclose(out, ref, atol=1e-3, rtol=1e-3), float(
        jnp.max(jnp.abs(out - ref))
    )

    print("KERNEL_OK")
</pallas_src>

<mosaic_0001>
module attributes {stable_mosaic.version = 11 : i64} {
  func.func @conv1x1_bn_kernel(%arg0: memref<192x49xf32, #tpu.memory_space<vmem>>, %arg1: memref<1152x192xf32, #tpu.memory_space<vmem>>, %arg2: memref<1152x1xf32, #tpu.memory_space<vmem>>, %arg3: memref<1152x1xf32, #tpu.memory_space<vmem>>, %arg4: memref<1152x49xf32, #tpu.memory_space<vmem>>) attributes {dimension_semantics = [], scalar_prefetch = 0 : i64, scratch_operands = 0 : i64, tpu.core_type = #tpu.core_type<tc>} {
    %c0 = arith.constant 0 : index
    %c0_0 = arith.constant 0 : index
    %0 = vector.load %arg0[%c0, %c0_0] : memref<192x49xf32, #tpu.memory_space<vmem>>, vector<192x49xf32>
    %c0_1 = arith.constant 0 : index
    %c0_2 = arith.constant 0 : index
    %1 = vector.load %arg1[%c0_1, %c0_2] : memref<1152x192xf32, #tpu.memory_space<vmem>>, vector<1152x192xf32>
    %cst = arith.constant dense<0.000000e+00> : vector<1152x49xf32>
    %2 = tpu.matmul %1, %0, %cst {dimension_numbers = #tpu.dot_dimension_numbers<[1], [0], [0], [1], [0, 0, 1, 1], [], []>} : vector<1152x192xf32>, vector<192x49xf32>, vector<1152x49xf32> -> vector<1152x49xf32>
    %cst_3 = arith.constant dense<0.000000e+00> : vector<192xf32>
    %3 = vector.multi_reduction <add>, %0, %cst_3 [1] : vector<192x49xf32> to vector<192xf32>
    %4 = vector.shape_cast %3 : vector<192xf32> to vector<192x1xf32>
    %cst_4 = arith.constant dense<0.000000e+00> : vector<1152x1xf32>
    %5 = tpu.matmul %1, %4, %cst_4 {dimension_numbers = #tpu.dot_dimension_numbers<[1], [0], [0], [1], [0, 0, 1, 1], [], []>} : vector<1152x192xf32>, vector<192x1xf32>, vector<1152x1xf32> -> vector<1152x1xf32>
    %cst_5 = arith.constant 0.0204081628 : f32
    %6 = vector.broadcast %cst_5 : f32 to vector<1152x1xf32>
    %7 = arith.mulf %5, %6 : vector<1152x1xf32>
    %8 = vector.broadcast %7 : vector<1152x1xf32> to vector<1152x49xf32>
    %9 = arith.subf %2, %8 : vector<1152x49xf32>
    %10 = arith.mulf %9, %9 : vector<1152x49xf32>
    %cst_6 = arith.constant dense<0.000000e+00> : vector<1152xf32>
    %11 = vector.multi_reduction <add>, %10, %cst_6 [1] : vector<1152x49xf32> to vector<1152xf32>
    %12 = vector.shape_cast %11 : vector<1152xf32> to vector<1152x1xf32>
    %cst_7 = arith.constant 0.0204081628 : f32
    %13 = vector.broadcast %cst_7 : f32 to vector<1152x1xf32>
    %14 = arith.mulf %12, %13 : vector<1152x1xf32>
    %cst_8 = arith.constant 9.99999974E-6 : f32
    %15 = vector.broadcast %cst_8 : f32 to vector<1152x1xf32>
    %16 = arith.addf %14, %15 : vector<1152x1xf32>
    %17 = math.rsqrt %16 : vector<1152x1xf32>
    %c0_9 = arith.constant 0 : index
    %c0_10 = arith.constant 0 : index
    %18 = vector.load %arg2[%c0_9, %c0_10] : memref<1152x1xf32, #tpu.memory_space<vmem>>, vector<1152x1xf32>
    %19 = arith.mulf %18, %17 : vector<1152x1xf32>
    %20 = vector.broadcast %19 : vector<1152x1xf32> to vector<1152x49xf32>
    %21 = arith.mulf %9, %20 : vector<1152x49xf32>
    %c0_11 = arith.constant 0 : index
    %c0_12 = arith.constant 0 : index
    %22 = vector.load %arg3[%c0_11, %c0_12] : memref<1152x1xf32, #tpu.memory_space<vmem>>, vector<1152x1xf32>
    %23 = vector.broadcast %22 : vector<1152x1xf32> to vector<1152x49xf32>
    %24 = arith.addf %21, %23 : vector<1152x49xf32>
    %c0_13 = arith.constant 0 : index
    %c0_14 = arith.constant 0 : index
    %25 = vector.load %arg4[%c0_13, %c0_14] : memref<1152x49xf32, #tpu.memory_space<vmem>>, vector<1152x49xf32>
    tpu.vector_store %arg4[%c0_13, %c0_14], %24 {strides = array<i32>} : memref<1152x49xf32, #tpu.memory_space<vmem>>, vector<1152x49xf32>,
    return
  }
}

</mosaic_0001>

<bundles_post_ra>
// kernel: conv1x1_bn.1
= control target key start
LH: loop header
LB: loop body
LE: loop exit
PB: predicated region body
PF: predicated region fallthrough
CT: control target
= control target key end

     0   :  { %vm1547_vm0 = vcmask 400384   ;;  %v7309_v3 = vmov 0   ;;  %v7310_v43 = vmov 0.0   ;;  %vm329_vm1 = vcmask 523264   ;;  %s13192_s0 = inlined_call_operand.vmem [shape: f32[192,49], index: 0, kind: input, shape index: {}]   ;;  %s13193_s3 = inlined_call_operand.vmem [shape: f32[1152,1], index: 3, kind: input, shape index: {}]   ;;  %s13194_s1 = inlined_call_operand.vmem [shape: f32[1152,192], index: 1, kind: input, shape index: {}]   ;;  %s13195_s2 = inlined_call_operand.vmem [shape: f32[1152,1], index: 2, kind: input, shape index: {}]   ;;  %s13196_s4 = inlined_call_operand.vmem [shape: f32[1152,49], index: 4, kind: output, shape index: {}]  }
   0x1   :  { %v7339_v0 = vld [vmem:[%s13192_s0 + $0x10] sm:$0xff]  ;;  %v7344_v1 = vld [vmem:[%s13192_s0] sm:$0xff]  ;;  %v7349_v2 = vld [vmem:[%s13192_s0 + $0x18] sm:$0xff]  ;;  %7020 = vset.pattern.permute.xlu0 %v7309_v3  ;;  %7019 = vset.pattern.permute.xlu1 %v7309_v3 }
   0x2   :  { %v1554_v4 = vsel %vm1547_vm0, %v7339_v0, 0.0  ;;  %v1548_v5 = vsel %vm1547_vm0, %v7344_v1, 0.0  ;;  %v7358_v6 = vld [vmem:[%s13192_s0 + $0x8] sm:$0xff]  ;;  %v1557_v7 = vsel %vm1547_vm0, %v7349_v2, 0.0  ;;  %v7372_v10 = vld [vmem:[%s13192_s0 + $0x20] sm:$0xff]  ;;  %v7381_v13 = vld [vmem:[%s13192_s0 + $0x38] sm:$0xff]  ;;  %1620 = vmatprep.subr.mxu1 %v7310_v43  ;;  %762 = vmatprep.subr.mxu0 %v7310_v43 }
   0x3   :  { %1555 = vadd.xlane.f32.xlu1 %v1554_v4  ;;  %1549 = vadd.xlane.f32.xlu0 %v1548_v5  ;;  %v1551_v8 = vsel %vm1547_vm0, %v7358_v6, 0.0  ;;  %v7367_v9 = vld [vmem:[%s13192_s0 + $0x28] sm:$0xff]  ;;  %v1560_v12 = vsel %vm1547_vm0, %v7372_v10, 0.0  ;;  %v7386_v14 = vld [vmem:[%s13192_s0 + $0x30] sm:$0xff]  ;;  %v1569_v15 = vsel %vm1547_vm0, %v7381_v13, 0.0  ;;  %v7400_v18 = vld [vmem:[%s13192_s0 + $0x40] sm:$0xff] }
   0x4   :  { %v1563_v11 = vsel %vm1547_vm0, %v7367_v9, 0.0  ;;  %v1566_v16 = vsel %vm1547_vm0, %v7386_v14, 0.0  ;;  %v7395_v17 = vld [vmem:[%s13192_s0 + $0x48] sm:$0xff]  ;;  %v1572_v20 = vsel %vm1547_vm0, %v7400_v18, 0.0  ;;  %v28_v21 = vld [vmem:[%s13192_s0 + $0x58] sm:$0xff]  ;;  %v27_v22 = vld [vmem:[%s13192_s0 + $0x50] sm:$0xff] }
   0x5   :  { %v1575_v19 = vsel %vm1547_vm0, %v7395_v17, 0.0  ;;  %v1581_v23 = vsel %vm1547_vm0, %v28_v21, 0.0  ;;  %v1578_v24 = vsel %vm1547_vm0, %v27_v22, 0.0  ;;  %v30_v25 = vld [vmem:[%s13192_s0 + $0x68] sm:$0xff]  ;;  %v29_v26 = vld [vmem:[%s13192_s0 + $0x60] sm:$0xff]  ;;  %v32_v29 = vld [vmem:[%s13192_s0 + $0x78] sm:$0xff] }
   0x6   :  { %v1587_v27 = vsel %vm1547_vm0, %v30_v25, 0.0  ;;  %v1584_v28 = vsel %vm1547_vm0, %v29_v26, 0.0  ;;  %v31_v30 = vld [vmem:[%s13192_s0 + $0x70] sm:$0xff]  ;;  %v1593_v31 = vsel %vm1547_vm0, %v32_v29, 0.0  ;;  %v7433_v33 = vld [vmem:[%s13192_s0 + $0x88] sm:$0xff]  ;;  %v7438_v34 = vld [vmem:[%s13192_s0 + $0x80] sm:$0xff]  ;;  %763 = vmatpush1.msra.mxu0 %v32_v29 }
   0x7   :  { %1558 = vadd.xlane.f32.xlu1 %v1557_v7  ;;  %1552 = vadd.xlane.f32.xlu0 %v1551_v8  ;;  %v1590_v32 = vsel %vm1547_vm0, %v31_v30, 0.0  ;;  %v1599_v35 = vsel %vm1547_vm0, %v7433_v33, 0.0  ;;  %v1596_v36 = vsel %vm1547_vm0, %v7438_v34, 0.0  ;;  %v7447_v37 = vld [vmem:[%s13192_s0 + $0x98] sm:$0xff]  ;;  %v7452_v38 = vld [vmem:[%s13192_s0 + $0x90] sm:$0xff]  ;;  %v7461_v41 = vld [vmem:[%s13192_s0 + $0xa8] sm:$0xff] }
   0x8   :  { %v1605_v39 = vsel %vm1547_vm0, %v7447_v37, 0.0  ;;  %v1602_v40 = vsel %vm1547_vm0, %v7452_v38, 0.0  ;;  %v7466_v42 = vld [vmem:[%s13192_s0 + $0xa0] sm:$0xff]  ;;  %v1611_v44 = vsel %vm1547_vm0, %v7461_v41, 0.0  ;;  %764 = vmatprep.subr.mxu0 %v7310_v43  ;;  %v40_v46 = vld [vmem:[%s13192_s0 + $0xb8] sm:$0xff]  ;;  %v39_v47 = vld [vmem:[%s13192_s0 + $0xb0] sm:$0xff] }
   0x9   :  { %v1608_v45 = vsel %vm1547_vm0, %v7466_v42, 0.0  ;;  %765 = vmatpush1.msra.mxu0 %v31_v30  ;;  %v1617_v48 = vsel %vm1547_vm0, %v40_v46, 0.0  ;;  %v1614_v49 = vsel %vm1547_vm0, %v39_v47, 0.0  ;;  %v5573_v50 = vld [vmem:[%s13193_s3] sm:$0xff]  ;;  %v5575_v51 = vld [vmem:[%s13193_s3 + $0x10] sm:$0xff]  ;;  %v5574_v52 = vld [vmem:[%s13193_s3 + $0x8] sm:$0xff] }
   0xa   :  { %766 = vmatprep.subr.mxu0 %v7310_v43  ;;  %v5577_v53 = vld [vmem:[%s13193_s3 + $0x20] sm:$0xff]  ;;  %v5576_v54 = vld [vmem:[%s13193_s3 + $0x18] sm:$0xff]  ;;  %v5579_v55 = vld [vmem:[%s13193_s3 + $0x30] sm:$0xff] }
   0xb   :  { %1564 = vadd.xlane.f32.xlu1 %v1563_v11  ;;  %1561 = vadd.xlane.f32.xlu0 %v1560_v12  ;;  %v5578_v56 = vld [vmem:[%s13193_s3 + $0x28] sm:$0xff]  ;;  %v5581_v57 = vld [vmem:[%s13193_s3 + $0x40] sm:$0xff]  ;;  %v5580_v58 = vld [vmem:[%s13193_s3 + $0x38] sm:$0xff] }
   0xc   :  { %767 = vmatpush1.msra.mxu0 %v30_v25  ;;  %v5583_v59 = vld [vmem:[%s13193_s3 + $0x50] sm:$0xff]  ;;  %v5582_v60 = vld [vmem:[%s13193_s3 + $0x48] sm:$0xff]  ;;  %v5585_v61 = vld [vmem:[%s13193_s3 + $0x60] sm:$0xff] }
   0xd   :  { %768 = vmatprep.subr.mxu0 %v7310_v43  ;;  %v5584_v62 = vld [vmem:[%s13193_s3 + $0x58] sm:$0xff]  ;;  %v42_v63 = vld [vmem:[%s13194_s1 + $0x8] sm:$0xff]  ;;  %v7587_v4 = vld [vmem:[%s13194_s1 + $0x10] sm:$0xff] }
   0xe   :  { %769 = vmatpush1.msra.mxu0 %v29_v26  ;;  %6873 = vmatprep.mubr.msk.f32.mxu1 %vm329_vm1, %v42_v63  ;;  %v5586_v3 = vld [vmem:[%s13193_s3 + $0x68] sm:$0xff]  ;;  %v5589_v5 = vld [vmem:[%s13193_s3 + $0x80] sm:$0xff]  ;;  %v5588_v7 = vld [vmem:[%s13193_s3 + $0x78] sm:$0xff] }
   0xf   :  { %1570 = vadd.xlane.f32.xlu1 %v1569_v15  ;;  %1567 = vadd.xlane.f32.xlu0 %v1566_v16  ;;  %v7606_v8 = vld [vmem:[%s13194_s1 + $0x20] sm:$0xff]  ;;  %v5590_v11 = vld [vmem:[%s13193_s3 + $0x88] sm:$0xff]  ;;  %v7625_v12 = vld [vmem:[%s13194_s1 + $0x30] sm:$0xff] }
  0x10   :  { %770 = vmatprep.subr.mxu0 %v7310_v43  ;;  %6729 = vmatprep.mubr.msk.f32.mxu0 %vm329_vm1, %v42_v63  ;;  %v5592_v15 = vld [vmem:[%s13193_s3 + $0x98] sm:$0xff]  ;;  %v7644_v16 = vld [vmem:[%s13194_s1 + $0x40] sm:$0xff]  ;;  %v5599_v25 = vld [vmem:[%s13193_s3 + $0xd0] sm:$0xff] }
  0x11   :  { %771 = vmatpush1.msra.mxu0 %v28_v21  ;;  %v5597_v21 = vld [vmem:[%s13193_s3 + $0xc0] sm:$0xff]  ;;  %v7690_v26 = vld [vmem:[%s13194_s1 + $0x78] sm:$0xff]  ;;  %v7709_v30 = vld [vmem:[%s13194_s1 + $0x88] sm:$0xff] }
  0x12   :  { %772 = vmatprep.subr.mxu0 %v7310_v43  ;;  %v5601_v29 = vld [vmem:[%s13193_s3 + $0xe0] sm:$0xff]  ;;  %v7850_v63 = vld [vmem:[%s13194_s1 + $0xf8] sm:$0xff] }
  0x13   :  { %1576 = vadd.xlane.f32.xlu1 %v1575_v19  ;;  %1573 = vadd.xlane.f32.xlu0 %v1572_v20  ;;  %v5594_v19 = vld [vmem:[%s13193_s3 + $0xa8] sm:$0xff]  ;;  %v7663_v20 = vld [vmem:[%s13194_s1 + $0x50] sm:$0xff] }
  0x14   :  { %773 = vmatpush1.msra.mxu0 %v27_v22  ;;  %v7671_v22 = vld [vmem:[%s13194_s1 + $0x68] sm:$0xff] }
  0x15   :  { %774 = vmatprep.subr.mxu0 %v7310_v43 }
  0x16   :  { %775 = vmatpush1.msra.mxu0 %v7395_v17  ;;  %v5595_v17 = vld [vmem:[%s13193_s3 + $0xb0] sm:$0xff] }
  0x17   :  { %1582 = vadd.xlane.f32.xlu1 %v1581_v23  ;;  %1579 = vadd.xlane.f32.xlu0 %v1578_v24  ;;  %v5596_v23 = vld [vmem:[%s13193_s3 + $0xb8] sm:$0xff]  ;;  %v7682_v24 = vld [vmem:[%s13194_s1 + $0x60] sm:$0xff] }
  0x18   :  { %776 = vmatprep.subr.mxu0 %v7310_v43 }
  0x19   :  { %777 = vmatpush1.msra.mxu0 %v7400_v18  ;;  %v7652_v18 = vld [vmem:[%s13194_s1 + $0x58] sm:$0xff] }
  0x1a   :  { %778 = vmatprep.subr.mxu0 %v7310_v43 }
  0x1b   :  { %1588 = vadd.xlane.f32.xlu1 %v1587_v27  ;;  %1585 = vadd.xlane.f32.xlu0 %v1584_v28  ;;  %v5598_v27 = vld [vmem:[%s13193_s3 + $0xc8] sm:$0xff]  ;;  %v7701_v28 = vld [vmem:[%s13194_s1 + $0x70] sm:$0xff] }
  0x1c   :  { %779 = vmatpush1.msra.mxu0 %v7381_v13  ;;  %v5593_v13 = vld [vmem:[%s13193_s3 + $0xa0] sm:$0xff] }
  0x1d   :  { %780 = vmatprep.subr.mxu0 %v7310_v43 }
  0x1e   :  { %781 = vmatpush1.msra.mxu0 %v7386_v14  ;;  %v7633_v14 = vld [vmem:[%s13194_s1 + $0x48] sm:$0xff] }
  0x1f   :  { %1594 = vadd.xlane.f32.xlu1 %v1593_v31  ;;  %1591 = vadd.xlane.f32.xlu0 %v1590_v32  ;;  %v5600_v31 = vld [vmem:[%s13193_s3 + $0xd8] sm:$0xff]  ;;  %v7720_v32 = vld [vmem:[%s13194_s1 + $0x80] sm:$0xff] }
  0x20   :  { %782 = vmatprep.subr.mxu0 %v7310_v43 }
  0x21   :  { %783 = vmatpush1.msra.mxu0 %v7367_v9  ;;  %v5591_v9 = vld [vmem:[%s13193_s3 + $0x90] sm:$0xff] }
  0x22   :  { %784 = vmatprep.subr.mxu0 %v7310_v43 }
  0x23   :  { %1600 = vadd.xlane.f32.xlu1 %v1599_v35  ;;  %1597 = vadd.xlane.f32.xlu0 %v1596_v36  ;;  %v5602_v35 = vld [vmem:[%s13193_s3 + $0xe8] sm:$0xff]  ;;  %v7739_v36 = vld [vmem:[%s13194_s1 + $0x90] sm:$0xff] }
  0x24   :  { %785 = vmatpush1.msra.mxu0 %v7372_v10  ;;  %v7614_v10 = vld [vmem:[%s13194_s1 + $0x38] sm:$0xff] }
  0x25   :  { %786 = vmatprep.subr.mxu0 %v7310_v43 }
  0x26   :  { %787 = vmatpush1.msra.mxu0 %v7349_v2  ;;  %v7576_v2 = vld [vmem:[%s13194_s1 + $0x18] sm:$0xff] }
  0x27   :  { %1606 = vadd.xlane.f32.xlu1 %v1605_v39  ;;  %1603 = vadd.xlane.f32.xlu0 %v1602_v40  ;;  %v5604_v39 = vld [vmem:[%s13193_s3 + $0xf8] sm:$0xff]  ;;  %v7758_v40 = vld [vmem:[%s13194_s1 + $0xa0] sm:$0xff] }
  0x28   :  { %788 = vmatprep.subr.mxu0 %v7310_v43 }
  0x29   :  { %789 = vmatpush1.msra.mxu0 %v7339_v0  ;;  %v7567_v0 = vld [vmem:[%s13194_s1] sm:$0xff] }
  0x2a   :  { %790 = vmatprep.subr.mxu0 %v7310_v43 }
  0x2b   :  { %1612 = vadd.xlane.f32.xlu1 %v1611_v44  ;;  %1609 = vadd.xlane.f32.xlu0 %v1608_v45  ;;  %v5606_v44 = vld [vmem:[%s13193_s3 + $0x108] sm:$0xff]  ;;  %v7777_v45 = vld [vmem:[%s13194_s1 + $0xb0] sm:$0xff] }
  0x2c   :  { %791 = vmatpush1.msra.mxu0 %v7358_v6  ;;  %v7595_v6 = vld [vmem:[%s13194_s1 + $0x28] sm:$0xff] }
  0x2d   :  { %792 = vmatprep.subr.mxu0 %v7310_v43 }
  0x2e   :  { %793 = vmatpush1.msra.mxu0 %v7344_v1  ;;  %v5587_v1 = vld [vmem:[%s13193_s3 + $0x70] sm:$0xff] }
  0x2f   :  { %1618 = vadd.xlane.f32.xlu1 %v1617_v48  ;;  %1615 = vadd.xlane.f32.xlu0 %v1614_v49  ;;  %v5608_v48 = vld [vmem:[%s13193_s3 + $0x118] sm:$0xff]  ;;  %v7796_v49 = vld [vmem:[%s13194_s1 + $0xc0] sm:$0xff] }
  0x30   :  { %810 = vmatprep.subr.mxu0 %v7310_v43 }
  0x31   :  { %811 = vmatpush2.msra.mxu0 %v40_v46  ;;  %v5609_v46 = vld [vmem:[%s13193_s3 + $0x120] sm:$0xff] }
  0x32   :  { %812 = vmatprep.subr.mxu0 %v7310_v43 }
  0x33   :  { %813 = vmatpush2.msra.mxu0 %v39_v47  ;;  %v7785_v47 = vld [vmem:[%s13194_s1 + $0xc8] sm:$0xff] }
  0x34   :  { %814 = vmatprep.subr.mxu0 %v7310_v43 }
  0x35   :  { %815 = vmatpush2.msra.mxu0 %v7461_v41  ;;  %v5607_v41 = vld [vmem:[%s13193_s3 + $0x110] sm:$0xff] }
  0x36   :  { %816 = vmatprep.subr.mxu0 %v7310_v43 }
  0x37   :  { %817 = vmatpush2.msra.mxu0 %v7466_v42  ;;  %v7766_v42 = vld [vmem:[%s13194_s1 + $0xb8] sm:$0xff] }
  0x38   :  { %818 = vmatprep.subr.mxu0 %v7310_v43 }
  0x39   :  { %819 = vmatpush2.msra.mxu0 %v7447_v37  ;;  %v5605_v37 = vld [vmem:[%s13193_s3 + $0x100] sm:$0xff] }
  0x3a   :  { %820 = vmatprep.subr.mxu0 %v7310_v43 }
  0x3b   :  { %821 = vmatpush2.msra.mxu0 %v7452_v38  ;;  %v7747_v38 = vld [vmem:[%s13194_s1 + $0xa8] sm:$0xff] }
  0x3c   :  { %822 = vmatprep.subr.mxu0 %v7310_v43 }
  0x3d   :  { %823 = vmatpush2.msra.mxu0 %v7433_v33  ;;  %v5603_v33 = vld [vmem:[%s13193_s3 + $0xf0] sm:$0xff] }
  0x3e   :  { %824 = vmatprep.subr.mxu0 %v7310_v43 }
  0x3f   :  { %825 = vmatpush2.msra.mxu0 %v7438_v34  ;;  %v7728_v34 = vld [vmem:[%s13194_s1 + $0x98] sm:$0xff] }
  0x40   :  { %5719 = vperm.xlu1 %7019, %v5573_v50   ;;  %827 = vmatmul.mubr.f32.vlgmr.msra.gmra.mxu0 %v7567_v0  ;;  %v5611_v50 = vld [vmem:[%s13193_s3 + $0x130] sm:$0xff] }
  0x41   :  { %6730 = vmatprep.mubr.msk.f32.mxu0 %vm329_vm1, %v7576_v2 }
  0x44   :  { %5729 = vperm.xlu1 %7019, %v5575_v51   ;;  %832 = vmatmul.mubr.f32.gmra.mxu0 %v7587_v4  ;;  %v7804_v51 = vld [vmem:[%s13194_s1 + $0xd8] sm:$0xff] }
  0x45   :  { %5724 = vperm.xlu0 %7020, %v5574_v52   ;;  %6731 = vmatprep.mubr.msk.f32.mxu0 %vm329_vm1, %v7595_v6  ;;  %v5610_v52 = vld [vmem:[%s13193_s3 + $0x128] sm:$0xff] }
  0x48   :  { %5739 = vperm.xlu1 %7019, %v5577_v53   ;;  %837 = vmatmul.mubr.f32.gmra.mxu0 %v7606_v8 }
  0x49   :  { %5734 = vperm.xlu0 %7020, %v5576_v54   ;;  %6732 = vmatprep.mubr.msk.f32.mxu0 %vm329_vm1, %v7614_v10 }
  0x4c   :  { %5749 = vperm.xlu1 %7019, %v5579_v55   ;;  %842 = vmatmul.mubr.f32.gmra.mxu0 %v7625_v12  ;;  %v7819_v55 = vld [vmem:[%s13194_s1 + $0xd0] sm:$0xff] }
  0x4d   :  { %5744 = vperm.xlu0 %7020, %v5578_v56   ;;  %6733 = vmatprep.mubr.msk.f32.mxu0 %vm329_vm1, %v7633_v14  ;;  %v5613_v56 = vld [vmem:[%s13193_s3 + $0x140] sm:$0xff] }
  0x50   :  { %5759 = vperm.xlu1 %7019, %v5581_v57   ;;  %847 = vmatmul.mubr.f32.gmra.mxu0 %v7644_v16  ;;  %v7827_v57 = vld [vmem:[%s13194_s1 + $0xe8] sm:$0xff] }
  0x51   :  { %5754 = vperm.xlu0 %7020, %v5580_v58   ;;  %6734 = vmatprep.mubr.msk.f32.mxu0 %vm329_vm1, %v7652_v18  ;;  %v5612_v58 = vld [vmem:[%s13193_s3 + $0x138] sm:$0xff] }
  0x54   :  { %5769 = vperm.xlu1 %7019, %v5583_v59   ;;  %852 = vmatmul.mubr.f32.gmra.mxu0 %v7663_v20 }
  0x55   :  { %5764 = vperm.xlu0 %7020, %v5582_v60   ;;  %6735 = vmatprep.mubr.msk.f32.mxu0 %vm329_vm1, %v7671_v22 }
  0x58   :  { %5779 = vperm.xlu1 %7019, %v5585_v61   ;;  %857 = vmatmul.mubr.f32.gmra.mxu0 %v7682_v24  ;;  %v7842_v61 = vld [vmem:[%s13194_s1 + $0xe0] sm:$0xff] }
  0x59   :  { %5774 = vperm.xlu0 %7020, %v5584_v62   ;;  %6736 = vmatprep.mubr.msk.f32.mxu0 %vm329_vm1, %v7690_v26  ;;  %v5615_v62 = vld [vmem:[%s13193_s3 + $0x150] sm:$0xff] }
  0x5c   :  { %5789 = vperm.xlu1 %7019, %v5587_v1   ;;  %862 = vmatmul.mubr.f32.gmra.mxu0 %v7701_v28  ;;  %v5614_v1 = vld [vmem:[%s13193_s3 + $0x148] sm:$0xff] }
  0x5d   :  { %5784 = vperm.xlu0 %7020, %v5586_v3   ;;  %6737 = vmatprep.mubr.msk.f32.mxu0 %vm329_vm1, %v7709_v30 }
  0x60   :  { %5799 = vperm.xlu1 %7019, %v5589_v5   ;;  %867 = vmatmul.mubr.f32.gmra.mxu0 %v7720_v32 }
  0x61   :  { %5794 = vperm.xlu0 %7020, %v5588_v7   ;;  %6738 = vmatprep.mubr.msk.f32.mxu0 %vm329_vm1, %v7728_v34  ;;  %v7865_v7 = vld [vmem:[%s13194_s1 + $0xf0] sm:$0xff] }
  0x64   :  { %5809 = vperm.xlu1 %7019, %v5591_v9   ;;  %872 = vmatmul.mubr.f32.gmra.mxu0 %v7739_v36  ;;  %v5617_v9 = vld [vmem:[%s13193_s3 + $0x160] sm:$0xff] }
  0x65   :  { %5804 = vperm.xlu0 %7020, %v5590_v11   ;;  %6739 = vmatprep.mubr.msk.f32.mxu0 %vm329_vm1, %v7747_v38  ;;  %v7873_v11 = vld [vmem:[%s13194_s1 + $0x108] sm:$0xff] }
  0x68   :  { %5819 = vperm.xlu1 %7019, %v5593_v13   ;;  %877 = vmatmul.mubr.f32.gmra.mxu0 %v7758_v40  ;;  %v5616_v13 = vld [vmem:[%s13193_s3 + $0x158] sm:$0xff] }
  0x69   :  { %5814 = vperm.xlu0 %7020, %v5592_v15   ;;  %6740 = vmatprep.mubr.msk.f32.mxu0 %vm329_vm1, %v7766_v42 }
  0x6c   :  { %5829 = vperm.xlu1 %7019, %v5595_v17   ;;  %882 = vmatmul.mubr.f32.gmra.mxu0 %v7777_v45 }
  0x6d   :  { %5824 = vperm.xlu0 %7020, %v5594_v19   ;;  %6741 = vmatprep.mubr.msk.f32.mxu0 %vm329_vm1, %v7785_v47  ;;  %v7888_v19 = vld [vmem:[%s13194_s1 + $0x100] sm:$0xff] }
  0x70   :  { %5839 = vperm.xlu1 %7019, %v5597_v21   ;;  %887 = vmatmul.mubr.f32.gmra.mxu0 %v7796_v49  ;;  %v5619_v21 = vld [vmem:[%s13193_s3 + $0x170] sm:$0xff] }
  0x71   :  { %5834 = vperm.xlu0 %7020, %v5596_v23   ;;  %6742 = vmatprep.mubr.msk.f32.mxu0 %vm329_vm1, %v7804_v51  ;;  %v7896_v23 = vld [vmem:[%s13194_s1 + $0x118] sm:$0xff] }
  0x74   :  { %5849 = vperm.xlu1 %7019, %v5599_v25   ;;  %892 = vmatmul.mubr.f32.gmra.mxu0 %v7819_v55  ;;  %v5618_v25 = vld [vmem:[%s13193_s3 + $0x168] sm:$0xff] }
  0x75   :  { %5844 = vperm.xlu0 %7020, %v5598_v27   ;;  %6743 = vmatprep.mubr.msk.f32.mxu0 %vm329_vm1, %v7827_v57 }
  0x78   :  { %5859 = vperm.xlu1 %7019, %v5601_v29   ;;  %897 = vmatmul.mubr.f32.gmra.mxu0 %v7842_v61 }
  0x79   :  { %5854 = vperm.xlu0 %7020, %v5600_v31   ;;  %6744 = vmatprep.mubr.msk.f32.mxu0 %vm329_vm1, %v7850_v63  ;;  %v7911_v31 = vld [vmem:[%s13194_s1 + $0x110] sm:$0xff] }
  0x7c   :  { %5869 = vperm.xlu1 %7019, %v5603_v33   ;;  %902 = vmatmul.mubr.f32.gmra.mxu0 %v7865_v7  ;;  %v5621_v33 = vld [vmem:[%s13193_s3 + $0x180] sm:$0xff] }
  0x7d   :  { %5864 = vperm.xlu0 %7020, %v5602_v35   ;;  %6745 = vmatprep.mubr.msk.f32.mxu0 %vm329_vm1, %v7873_v11  ;;  %v7919_v35 = vld [vmem:[%s13194_s1 + $0x128] sm:$0xff] }
  0x80   :  { %5879 = vperm.xlu1 %7019, %v5605_v37   ;;  %907 = vmatmul.mubr.f32.gmra.mxu0 %v7888_v19  ;;  %v5620_v37 = vld [vmem:[%s13193_s3 + $0x178] sm:$0xff] }
  0x81   :  { %5874 = vperm.xlu0 %7020, %v5604_v39   ;;  %6746 = vmatprep.mubr.msk.f32.mxu0 %vm329_vm1, %v7896_v23 }
  0x84   :  { %5889 = vperm.xlu1 %7019, %v5607_v41   ;;  %912 = vmatmul.mubr.f32.gmra.mxu0 %v7911_v31 }
  0x85   :  { %5884 = vperm.xlu0 %7020, %v5606_v44   ;;  %6747 = vmatprep.mubr.msk.f32.mxu0 %vm329_vm1, %v7919_v35  ;;  %v7930_v44 = vld [vmem:[%s13194_s1 + $0x120] sm:$0xff] }
  0x88   :  { %5899 = vperm.xlu1 %7019, %v5609_v46   ;;  %v5623_v46 = vld [vmem:[%s13193_s3 + $0x190] sm:$0xff]  ;;  %917 = vmatmul.mubr.f32.gmra.mxu0 %v7930_v44 }
  0x89   :  { %5894 = vperm.xlu0 %7020, %v5608_v48   ;;  %v7938_v48 = vld [vmem:[%s13194_s1 + $0x138] sm:$0xff] }
  0x8a   :  { %6748 = vmatprep.mubr.msk.f32.mxu0 %vm329_vm1, %v7938_v48 }
  0x8c   :  { %v7812_v53 = vpop.xlane.xlu1 %1555  ;;  %v7814_v54 = vpop.xlane.xlu0 %1549  ;;  %5909 = vperm.xlu1 %7019, %v5611_v50   ;;  %v5622_v50 = vld [vmem:[%s13193_s3 + $0x188] sm:$0xff] }
  0x8d   :  { %5904 = vperm.xlu0 %7020, %v5610_v52  }
  0x90   :  { %v7835_v59 = vpop.xlane.xlu1 %1558  ;;  %v7837_v60 = vpop.xlane.xlu0 %1552  ;;  %5919 = vperm.xlu1 %7019, %v5613_v56  }
  0x91   :  { %5914 = vperm.xlu0 %7020, %v5612_v58   ;;  %v7949_v58 = vld [vmem:[%s13194_s1 + $0x130] sm:$0xff] }
  0x92   :  { %922 = vmatmul.mubr.f32.gmra.mxu0 %v7949_v58 }
  0x94   :  { %v7858_v3 = vpop.xlane.xlu1 %1564  ;;  %v7860_v5 = vpop.xlane.xlu0 %1561  ;;  %5929 = vperm.xlu1 %7019, %v5615_v62   ;;  %v5625_v62 = vld [vmem:[%s13193_s3 + $0x1a0] sm:$0xff] }
  0x95   :  { %5924 = vperm.xlu0 %7020, %v5614_v1   ;;  %v7957_v1 = vld [vmem:[%s13194_s1 + $0x148] sm:$0xff] }
  0x96   :  { %6749 = vmatprep.mubr.msk.f32.mxu0 %vm329_vm1, %v7957_v1 }
  0x98   :  { %v7881_v15 = vpop.xlane.xlu1 %1570  ;;  %v7883_v17 = vpop.xlane.xlu0 %1567  ;;  %5939 = vperm.xlu1 %7019, %v5617_v9   ;;  %v5624_v9 = vld [vmem:[%s13193_s3 + $0x198] sm:$0xff] }
  0x99   :  { %5934 = vperm.xlu0 %7020, %v5616_v13  }
  0x9c   :  { %v7904_v27 = vpop.xlane.xlu1 %1576  ;;  %v7906_v29 = vpop.xlane.xlu0 %1573  ;;  %5949 = vperm.xlu1 %7019, %v5619_v21  }
  0x9d   :  { %5944 = vperm.xlu0 %7020, %v5618_v25   ;;  %v5627_v25 = vld [vmem:[%s13193_s3 + $0x1b0] sm:$0xff] }
  0xa0   :  { %v1583_v39 = vpop.xlane.xlu1 %1582  ;;  %v1580_v41 = vpop.xlane.xlu0 %1579  ;;  %5959 = vperm.xlu1 %7019, %v5621_v33   ;;  %v7971_v33 = vld [vmem:[%s13194_s1 + $0x140] sm:$0xff] }
  0xa1   :  { %5954 = vperm.xlu0 %7020, %v5620_v37   ;;  %v5626_v37 = vld [vmem:[%s13193_s3 + $0x1a8] sm:$0xff]  ;;  %927 = vmatmul.mubr.f32.gmra.mxu0 %v7971_v33 }
  0xa4   :  { %v1589_v52 = vpop.xlane.xlu1 %1588  ;;  %v1586_v56 = vpop.xlane.xlu0 %1585  ;;  %5969 = vperm.xlu1 %7019, %v5623_v46   ;;  %v7980_v46 = vld [vmem:[%s13194_s1 + $0x158] sm:$0xff] }
  0xa5   :  { %5964 = vperm.xlu0 %7020, %v5622_v50   ;;  %6750 = vmatprep.mubr.msk.f32.mxu0 %vm329_vm1, %v7980_v46  ;;  %v5629_v50 = vld [vmem:[%s13193_s3 + $0x1c0] sm:$0xff] }
  0xa8   :  { %v1595_v13 = vpop.xlane.xlu1 %1594  ;;  %v1592_v21 = vpop.xlane.xlu0 %1591  ;;  %5979 = vperm.xlu1 %7019, %v5625_v62   ;;  %v7992_v62 = vld [vmem:[%s13194_s1 + $0x150] sm:$0xff] }
  0xa9   :  { %1621 = vmatpush1.msra.mxu1 %v1595_v13  ;;  %5974 = vperm.xlu0 %7020, %v5624_v9   ;;  %v5628_v9 = vld [vmem:[%s13193_s3 + $0x1b8] sm:$0xff]  ;;  %v5631_v13 = vld [vmem:[%s13193_s3 + $0x1d0] sm:$0xff] }
  0xaa   :  { %1622 = vmatprep.subr.mxu1 %v7310_v43  ;;  %932 = vmatmul.mubr.f32.gmra.mxu0 %v7992_v62 }
  0xab   :  { %1623 = vmatpush1.msra.mxu1 %v1592_v21  ;;  %v8013_v21 = vld [vmem:[%s13194_s1 + $0x160] sm:$0xff] }
  0xac   :  { %1624 = vmatprep.subr.mxu1 %v7310_v43  ;;  %5989 = vperm.xlu1 %7019, %v5627_v25   ;;  %v8028_v25 = vpop.xlane.xlu1 %1600 }
  0xad   :  { %1625 = vmatpush1.msra.mxu1 %v1589_v52  ;;  %5984 = vperm.xlu0 %7020, %v5626_v37   ;;  %v8001_v52 = vld [vmem:[%s13194_s1 + $0x168] sm:$0xff]  ;;  %v5633_v37 = vld [vmem:[%s13193_s3 + $0x1e0] sm:$0xff] }
  0xae   :  { %1626 = vmatprep.subr.mxu1 %v7310_v43  ;;  %6751 = vmatprep.mubr.msk.f32.mxu0 %vm329_vm1, %v8001_v52 }
  0xaf   :  { %1627 = vmatpush1.msra.mxu1 %v1586_v56  ;;  %v5630_v56 = vld [vmem:[%s13193_s3 + $0x1c8] sm:$0xff]  ;;  %937 = vmatmul.mubr.f32.gmra.mxu0 %v8013_v21 }
  0xb0   :  { %1628 = vmatprep.subr.mxu1 %v7310_v43  ;;  %5999 = vperm.xlu1 %7019, %v5629_v50   ;;  %v8037_v50 = vld [vmem:[%s13194_s1 + $0x170] sm:$0xff] }
  0xb1   :  { %1629 = vmatpush1.msra.mxu1 %v1583_v39  ;;  %5994 = vperm.xlu0 %7020, %v5628_v9   ;;  %v8022_v39 = vld [vmem:[%s13194_s1 + $0x178] sm:$0xff] }
  0xb2   :  { %1630 = vmatprep.subr.mxu1 %v7310_v43  ;;  %6752 = vmatprep.mubr.msk.f32.mxu0 %vm329_vm1, %v8022_v39  ;;  %v5632_v9 = vld [vmem:[%s13193_s3 + $0x1d8] sm:$0xff] }
  0xb3   :  { %1631 = vmatpush1.msra.mxu1 %v1580_v41  ;;  %v8040_v41 = vpop.xlane.xlu0 %1597  ;;  %942 = vmatmul.mubr.f32.gmra.mxu0 %v8037_v50 }
  0xb4   :  { %1632 = vmatprep.subr.mxu1 %v7310_v43  ;;  %6009 = vperm.xlu1 %7019, %v5631_v13   ;;  %v5635_v13 = vld [vmem:[%s13193_s3 + $0x1f0] sm:$0xff] }
  0xb5   :  { %1633 = vmatpush1.msra.mxu1 %v7904_v27  ;;  %6004 = vperm.xlu0 %7020, %v5630_v56   ;;  %v8048_v27 = vld [vmem:[%s13194_s1 + $0x188] sm:$0xff]  ;;  %v8062_v56 = vld [vmem:[%s13194_s1 + $0x180] sm:$0xff] }
  0xb6   :  { %1634 = vmatprep.subr.mxu1 %v7310_v43  ;;  %13321 = vst [vmem:[#allocation2_spill] sm:$0xff] %v8048_v27  ;;  %6753 = vmatprep.mubr.msk.f32.mxu0 %vm329_vm1, %v8048_v27  ;;  %13322 = vst [vmem:[#allocation3_spill] sm:$0xff] %v8062_v56  ;;  %v5637_v27 = vld [vmem:[%s13193_s3 + $0x200] sm:$0xff] }
  0xb7   :  { %1635 = vmatpush1.msra.mxu1 %v7906_v29  ;;  %v8065_v29 = vpop.xlane.xlu1 %1606  ;;  %947 = vmatmul.mubr.f32.gmra.mxu0 %v8062_v56  ;;  %v8089_v56 = vld [vmem:[%s13194_s1 + $0x190] sm:$0xff] }
  0xb8   :  { %1636 = vmatprep.subr.mxu1 %v7310_v43  ;;  %6019 = vperm.xlu1 %7019, %v5633_v37   ;;  %v5634_v37 = vld [vmem:[%s13193_s3 + $0x1e8] sm:$0xff]  ;;  %13323 = vst [vmem:[#allocation4_spill] sm:$0xff] %v8089_v56 }
  0xb9   :  { %1637 = vmatpush1.msra.mxu1 %v7881_v15  ;;  %6014 = vperm.xlu0 %7020, %v5632_v9   ;;  %v8073_v15 = vld [vmem:[%s13194_s1 + $0x198] sm:$0xff]  ;;  %v8080_v9 = vpop.xlane.xlu0 %1603 }
  0xba   :  { %1638 = vmatprep.subr.mxu1 %v7310_v43  ;;  %6754 = vmatprep.mubr.msk.f32.mxu0 %vm329_vm1, %v8073_v15 }
  0xbb   :  { %1639 = vmatpush1.msra.mxu1 %v7883_v17  ;;  %v5636_v17 = vld [vmem:[%s13193_s3 + $0x1f8] sm:$0xff]  ;;  %952 = vmatmul.mubr.f32.gmra.mxu0 %v8089_v56  ;;  %v8112_v56 = vld [vmem:[%s13194_s1 + $0x1a0] sm:$0xff] }
  0xbc   :  { %1640 = vmatprep.subr.mxu1 %v7310_v43  ;;  %6029 = vperm.xlu1 %7019, %v5635_v13   ;;  %v1613_v13 = vpop.xlane.xlu1 %1612  ;;  %13325 = vst [vmem:[#allocation6_spill] sm:$0xff] %v8112_v56 }
  0xbd   :  { %1641 = vmatpush1.msra.mxu1 %v7858_v3  ;;  %6024 = vperm.xlu0 %7020, %v5634_v37   ;;  %v8098_v3 = vld [vmem:[%s13194_s1 + $0x1a8] sm:$0xff]  ;;  %v5639_v37 = vld [vmem:[%s13193_s3 + $0x210] sm:$0xff] }
  0xbe   :  { %1642 = vmatprep.subr.mxu1 %v7310_v43  ;;  %13324 = vst [vmem:[#allocation5_spill] sm:$0xff] %v8098_v3  ;;  %6755 = vmatprep.mubr.msk.f32.mxu0 %vm329_vm1, %v8098_v3  ;;  %v5638_v3 = vld [vmem:[%s13193_s3 + $0x208] sm:$0xff] }
  0xbf   :  { %1643 = vmatpush1.msra.mxu1 %v7860_v5  ;;  %v1610_v5 = vpop.xlane.xlu0 %1609  ;;  %957 = vmatmul.mubr.f32.gmra.mxu0 %v8112_v56  ;;  %v8157_v56 = vld [vmem:[%s13194_s1 + $0x1c0] sm:$0xff] }
  0xc0   :  { %1644 = vmatprep.subr.mxu1 %v7310_v43  ;;  %6039 = vperm.xlu1 %7019, %v5637_v27   ;;  %v5641_v27 = vld [vmem:[%s13193_s3 + $0x220] sm:$0xff] }
  0xc1   :  { %1645 = vmatpush1.msra.mxu1 %v7835_v59  ;;  %6034 = vperm.xlu0 %7020, %v5636_v17   ;;  %v8121_v59 = vld [vmem:[%s13194_s1 + $0x1b8] sm:$0xff]  ;;  %v8135_v17 = vld [vmem:[%s13194_s1 + $0x1b0] sm:$0xff] }
  0xc2   :  { %1646 = vmatprep.subr.mxu1 %v7310_v43  ;;  %13326 = vst [vmem:[#allocation7_spill] sm:$0xff] %v8121_v59  ;;  %6756 = vmatprep.mubr.msk.f32.mxu0 %vm329_vm1, %v8121_v59  ;;  %v5640_v59 = vld [vmem:[%s13193_s3 + $0x218] sm:$0xff] }
  0xc3   :  { %1647 = vmatpush1.msra.mxu1 %v7812_v53  ;;  %v1619_v53 = vpop.xlane.xlu1 %1618  ;;  %962 = vmatmul.mubr.f32.gmra.mxu0 %v8135_v17 }
  0xc4   :  { %1648 = vmatprep.subr.mxu1 %v7310_v43  ;;  %6049 = vperm.xlu1 %7019, %v5639_v37   ;;  %v5643_v37 = vld [vmem:[%s13193_s3 + $0x230] sm:$0xff] }
  0xc5   :  { %1649 = vmatpush1.msra.mxu1 %v7837_v60  ;;  %6044 = vperm.xlu0 %7020, %v5638_v3   ;;  %v8144_v60 = vld [vmem:[%s13194_s1 + $0x1c8] sm:$0xff]  ;;  %v1616_v3 = vpop.xlane.xlu0 %1615 }
  0xc6   :  { %1650 = vmatprep.subr.mxu1 %v7310_v43  ;;  %6757 = vmatprep.mubr.msk.f32.mxu0 %vm329_vm1, %v8144_v60 }
  0xc7   :  { %1651 = vmatpush1.msra.mxu1 %v7814_v54  ;;  %v5642_v54 = vld [vmem:[%s13193_s3 + $0x228] sm:$0xff]  ;;  %967 = vmatmul.mubr.f32.gmra.mxu0 %v8157_v56 }
  0xc8   :  { %1668 = vmatprep.subr.mxu1 %v7310_v43  ;;  %6059 = vperm.xlu1 %7019, %v5641_v27   ;;  %v8166_v27 = vld [vmem:[%s13194_s1 + $0x1d8] sm:$0xff] }
  0xc9   :  { %1669 = vmatpush2.msra.mxu1 %v1619_v53  ;;  %6054 = vperm.xlu0 %7020, %v5640_v59   ;;  %v5645_v59 = vld [vmem:[%s13193_s3 + $0x240] sm:$0xff]  ;;  %v8178_v53 = vld [vmem:[%s13194_s1 + $0x1d0] sm:$0xff] }
  0xca   :  { %1670 = vmatprep.subr.mxu1 %v7310_v43  ;;  %6758 = vmatprep.mubr.msk.f32.mxu0 %vm329_vm1, %v8166_v27 }
  0xcb   :  { %1671 = vmatpush2.msra.mxu1 %v1616_v3  ;;  %v5644_v3 = vld [vmem:[%s13193_s3 + $0x238] sm:$0xff]  ;;  %972 = vmatmul.mubr.f32.gmra.mxu0 %v8178_v53 }
  0xcc   :  { %1672 = vmatprep.subr.mxu1 %v7310_v43  ;;  %6069 = vperm.xlu1 %7019, %v5643_v37   ;;  %v5647_v37 = vld [vmem:[%s13193_s3 + $0x250] sm:$0xff] }
  0xcd   :  { %1673 = vmatpush2.msra.mxu1 %v1613_v13  ;;  %6064 = vperm.xlu0 %7020, %v5642_v54   ;;  %v8187_v13 = vld [vmem:[%s13194_s1 + $0x1e8] sm:$0xff]  ;;  %v8200_v54 = vld [vmem:[%s13194_s1 + $0x1e0] sm:$0xff] }
  0xce   :  { %1674 = vmatprep.subr.mxu1 %v7310_v43  ;;  %6759 = vmatprep.mubr.msk.f32.mxu0 %vm329_vm1, %v8187_v13 }
  0xcf   :  { %1675 = vmatpush2.msra.mxu1 %v1610_v5  ;;  %v5646_v5 = vld [vmem:[%s13193_s3 + $0x248] sm:$0xff]  ;;  %977 = vmatmul.mubr.f32.gmra.mxu0 %v8200_v54 }
  0xd0   :  { %1676 = vmatprep.subr.mxu1 %v7310_v43  ;;  %6079 = vperm.xlu1 %7019, %v5645_v59   ;;  %v5649_v59 = vld [vmem:[%s13193_s3 + $0x260] sm:$0xff] }
  0xd1   :  { %1677 = vmatpush2.msra.mxu1 %v8065_v29  ;;  %6074 = vperm.xlu0 %7020, %v5644_v3   ;;  %v8209_v29 = vld [vmem:[%s13194_s1 + $0x1f8] sm:$0xff]  ;;  %v8223_v3 = vld [vmem:[%s13194_s1 + $0x1f0] sm:$0xff] }
  0xd2   :  { %1678 = vmatprep.subr.mxu1 %v7310_v43  ;;  %6760 = vmatprep.mubr.msk.f32.mxu0 %vm329_vm1, %v8209_v29 }
  0xd3   :  { %1679 = vmatpush2.msra.mxu1 %v8080_v9  ;;  %v5648_v9 = vld [vmem:[%s13193_s3 + $0x258] sm:$0xff]  ;;  %982 = vmatmul.mubr.f32.gmra.mxu0 %v8223_v3 }
  0xd4   :  { %1680 = vmatprep.subr.mxu1 %v7310_v43  ;;  %6089 = vperm.xlu1 %7019, %v5647_v37   ;;  %v8247_v37 = vld [vmem:[%s13194_s1 + $0x200] sm:$0xff] }
  0xd5   :  { %1681 = vmatpush2.msra.mxu1 %v8028_v25  ;;  %6084 = vperm.xlu0 %7020, %v5646_v5   ;;  %v8232_v25 = vld [vmem:[%s13194_s1 + $0x208] sm:$0xff]  ;;  %v8269_v5 = vld [vmem:[%s13194_s1 + $0x210] sm:$0xff] }
  0xd6   :  { %1682 = vmatprep.subr.mxu1 %v7310_v43  ;;  %6761 = vmatprep.mubr.msk.f32.mxu0 %vm329_vm1, %v8232_v25  ;;  %v5651_v43 = vld [vmem:[%s13193_s3 + $0x270] sm:$0xff] }
  0xd7   :  { %1683 = vmatpush2.msra.mxu1 %v8040_v41  ;;  %v5650_v41 = vld [vmem:[%s13193_s3 + $0x268] sm:$0xff]  ;;  %987 = vmatmul.mubr.f32.gmra.mxu0 %v8247_v37 }
  0xd8   :  { %1685 = vmatmul.mubr.f32.vlgmr.msra.gmra.mxu1 %v7567_v0  ;;  %6099 = vperm.xlu1 %7019, %v5649_v59   ;;  %v8255_v0 = vld [vmem:[%s13194_s1 + $0x218] sm:$0xff] }
  0xd9   :  { %6874 = vmatprep.mubr.msk.f32.mxu1 %vm329_vm1, %v7576_v2  ;;  %6094 = vperm.xlu0 %7020, %v5648_v9   ;;  %v5653_v2 = vld [vmem:[%s13193_s3 + $0x280] sm:$0xff]  ;;  %v5652_v59 = vld [vmem:[%s13193_s3 + $0x278] sm:$0xff]  ;;  %v5662_v9 = vld [vmem:[%s13193_s3 + $0x2c8] sm:$0xff] }
  0xda   :  { %6762 = vmatprep.mubr.msk.f32.mxu0 %vm329_vm1, %v8255_v0 }
  0xdb   :  { %992 = vmatmul.mubr.f32.gmra.mxu0 %v8269_v5 }
  0xdc   :  { %1690 = vmatmul.mubr.f32.gmra.mxu1 %v7587_v4  ;;  %6109 = vperm.xlu1 %7019, %v5651_v43   ;;  %v5655_v4 = vld [vmem:[%s13193_s3 + $0x290] sm:$0xff] }
  0xdd   :  { %6875 = vmatprep.mubr.msk.f32.mxu1 %vm329_vm1, %v7595_v6  ;;  %6104 = vperm.xlu0 %7020, %v5650_v41   ;;  %v5654_v6 = vld [vmem:[%s13193_s3 + $0x288] sm:$0xff]  ;;  %v8344_v43 = vld [vmem:[%s13194_s1 + $0x230] sm:$0xff] }
  0xde   :  { %v119_v41 = vld [vmem:[%s13194_s1 + $0x270] sm:$0xff] }
  0xe0   :  { %1695 = vmatmul.mubr.f32.gmra.mxu1 %v7606_v8  ;;  %6119 = vperm.xlu1 %7019, %v5653_v2   ;;  %v5657_v8 = vld [vmem:[%s13193_s3 + $0x2a0] sm:$0xff] }
  0xe1   :  { %6876 = vmatprep.mubr.msk.f32.mxu1 %vm329_vm1, %v7614_v10  ;;  %6114 = vperm.xlu0 %7020, %v5652_v59   ;;  %v5656_v10 = vld [vmem:[%s13193_s3 + $0x298] sm:$0xff] }
  0xe4   :  { %1700 = vmatmul.mubr.f32.gmra.mxu1 %v7625_v12  ;;  %6129 = vperm.xlu1 %7019, %v5655_v4   ;;  %v5659_v12 = vld [vmem:[%s13193_s3 + $0x2b0] sm:$0xff] }
  0xe5   :  { %6877 = vmatprep.mubr.msk.f32.mxu1 %vm329_vm1, %v7633_v14  ;;  %6124 = vperm.xlu0 %7020, %v5654_v6   ;;  %v5658_v14 = vld [vmem:[%s13193_s3 + $0x2a8] sm:$0xff] }
  0xe8   :  { %1705 = vmatmul.mubr.f32.gmra.mxu1 %v7644_v16  ;;  %6139 = vperm.xlu1 %7019, %v5657_v8   ;;  %v5661_v16 = vld [vmem:[%s13193_s3 + $0x2c0] sm:$0xff] }
  0xe9   :  { %6878 = vmatprep.mubr.msk.f32.mxu1 %vm329_vm1, %v7652_v18  ;;  %6134 = vperm.xlu0 %7020, %v5656_v10   ;;  %v5660_v18 = vld [vmem:[%s13193_s3 + $0x2b8] sm:$0xff] }
  0xec   :  { %1710 = vmatmul.mubr.f32.gmra.mxu1 %v7663_v20  ;;  %6149 = vperm.xlu1 %7019, %v5659_v12   ;;  %v5663_v20 = vld [vmem:[%s13193_s3 + $0x2d0] sm:$0xff] }
  0xed   :  { %6879 = vmatprep.mubr.msk.f32.mxu1 %vm329_vm1, %v7671_v22  ;;  %6144 = vperm.xlu0 %7020, %v5658_v14   ;;  %v8320_v22 = vld [vmem:[%s13194_s1 + $0x228] sm:$0xff] }
  0xee   :  { %6763 = vmatprep.mubr.msk.f32.mxu0 %vm329_vm1, %v8320_v22 }
  0xf0   :  { %1715 = vmatmul.mubr.f32.gmra.mxu1 %v7682_v24  ;;  %6159 = vperm.xlu1 %7019, %v5661_v16   ;;  %v8328_v24 = vld [vmem:[%s13194_s1 + $0x220] sm:$0xff] }
  0xf1   :  { %6880 = vmatprep.mubr.msk.f32.mxu1 %vm329_vm1, %v7690_v26  ;;  %6154 = vperm.xlu0 %7020, %v5660_v18   ;;  %v8339_v26 = vld [vmem:[%s13194_s1 + $0x238] sm:$0xff] }
  0xf2   :  { %997 = vmatmul.mubr.f32.gmra.mxu0 %v8328_v24 }
  0xf3   :  { %6764 = vmatprep.mubr.msk.f32.mxu0 %vm329_vm1, %v8339_v26 }
  0xf4   :  { %1720 = vmatmul.mubr.f32.gmra.mxu1 %v7701_v28  ;;  %6169 = vperm.xlu1 %7019, %v5663_v20   ;;  %v8377_v28 = vpop.permute.xlu1 %5719 }
  0xf5   :  { %6881 = vmatprep.mubr.msk.f32.mxu1 %vm329_vm1, %v7709_v30  ;;  %6164 = vperm.xlu0 %7020, %v5662_v9  }
  0xf6   :  { %1002 = vmatmul.mubr.f32.gmra.mxu0 %v8344_v43 }
  0xf8   :  { %1725 = vmatmul.mubr.f32.gmra.mxu1 %v7720_v32  ;;  %v8384_v30 = vpop.permute.xlu1 %5729  ;;  %v8389_v32 = vpop.permute.xlu0 %5724 }
  0xf9   :  { %6882 = vmatprep.mubr.msk.f32.mxu1 %vm329_vm1, %v7728_v34 }
  0xfc   :  { %1730 = vmatmul.mubr.f32.gmra.mxu1 %v7739_v36  ;;  %v8392_v34 = vpop.permute.xlu1 %5739  ;;  %v8397_v36 = vpop.permute.xlu0 %5734 }
  0xfd   :  { %6883 = vmatprep.mubr.msk.f32.mxu1 %vm329_vm1, %v7747_v38 }
 0x100   :  { %1735 = vmatmul.mubr.f32.gmra.mxu1 %v7758_v40  ;;  %v8401_v38 = vpop.permute.xlu1 %5749  ;;  %v8406_v40 = vpop.permute.xlu0 %5744 }
 0x101   :  { %6884 = vmatprep.mubr.msk.f32.mxu1 %vm329_vm1, %v7766_v42  ;;  %v8543_v12 = vpop.f32.mrf.mxu0 }
 0x103   :  { %v830_v16 = vpop.f32.mrf.mxu0 }
 0x104   :  { %1740 = vmatmul.mubr.f32.gmra.mxu1 %v7777_v45  ;;  %v8409_v42 = vpop.permute.xlu1 %5759  ;;  %v13328_v45 = vld [vmem:[#allocation2_spill] sm:$0xff] }
 0x105   :  { %6885 = vmatprep.mubr.msk.f32.mxu1 %vm329_vm1, %v7785_v47  ;;  %13327 = vst [vmem:[#allocation8_spill] sm:$0xff] %v8409_v42  ;;  %v13329_v47 = vld [vmem:[#allocation3_spill] sm:$0xff]  ;;  %v8547_v9 = vpop.f32.mrf.mxu0 }
 0x108   :  { %1745 = vmatmul.mubr.f32.gmra.mxu1 %v7796_v49  ;;  %v8414_v49 = vpop.permute.xlu0 %5754 }
 0x109   :  { %6886 = vmatprep.mubr.msk.f32.mxu1 %vm329_vm1, %v7804_v51  ;;  %v8418_v51 = vpop.permute.xlu1 %5769 }
 0x10a   :  { %13330 = vst [vmem:[#allocation2_spill] sm:$0xff] %v8418_v51 }
 0x10c   :  { %1750 = vmatmul.mubr.f32.gmra.mxu1 %v7819_v55  ;;  %v13331_v55 = vld [vmem:[#allocation4_spill] sm:$0xff] }
 0x10d   :  { %6887 = vmatprep.mubr.msk.f32.mxu1 %vm329_vm1, %v7827_v57  ;;  %v13332_v57 = vld [vmem:[#allocation5_spill] sm:$0xff] }
 0x110   :  { %1755 = vmatmul.mubr.f32.gmra.mxu1 %v7842_v61  ;;  %v114_v61 = vld [vmem:[%s13194_s1 + $0x248] sm:$0xff] }
 0x111   :  { %6888 = vmatprep.mubr.msk.f32.mxu1 %vm329_vm1, %v7850_v63  ;;  %v8426_v63 = vpop.permute.xlu0 %5764  ;;  %6765 = vmatprep.mubr.msk.f32.mxu0 %vm329_vm1, %v114_v61 }
 0x112   :  { %13333 = vst [vmem:[#allocation3_spill] sm:$0xff] %v8426_v63 }
 0x114   :  { %1760 = vmatmul.mubr.f32.gmra.mxu1 %v7865_v7  ;;  %v113_v7 = vld [vmem:[%s13194_s1 + $0x240] sm:$0xff] }
 0x115   :  { %6889 = vmatprep.mubr.msk.f32.mxu1 %vm329_vm1, %v7873_v11  ;;  %v13334_v11 = vld [vmem:[#allocation6_spill] sm:$0xff]  ;;  %1007 = vmatmul.mubr.f32.gmra.mxu0 %v113_v7 }
 0x118   :  { %1765 = vmatmul.mubr.f32.gmra.mxu1 %v7888_v19  ;;  %v8433_v19 = vpop.permute.xlu1 %5779 }
 0x119   :  { %6890 = vmatprep.mubr.msk.f32.mxu1 %vm329_vm1, %v7896_v23  ;;  %13335 = vst [vmem:[#allocation4_spill] sm:$0xff] %v8433_v19  ;;  %v13336_v23 = vld [vmem:[#allocation7_spill] sm:$0xff] }
 0x11c   :  { %1770 = vmatmul.mubr.f32.gmra.mxu1 %v7911_v31  ;;  %v8438_v31 = vpop.permute.xlu0 %5774 }
 0x11d   :  { %6891 = vmatprep.mubr.msk.f32.mxu1 %vm329_vm1, %v7919_v35  ;;  %13337 = vst [vmem:[#allocation5_spill] sm:$0xff] %v8438_v31  ;;  %v8442_v35 = vpop.permute.xlu1 %5789 }
 0x11e   :  { %13338 = vst [vmem:[#allocation6_spill] sm:$0xff] %v8442_v35 }
 0x120   :  { %1775 = vmatmul.mubr.f32.gmra.mxu1 %v7930_v44  ;;  %v116_v44 = vld [vmem:[%s13194_s1 + $0x258] sm:$0xff] }
 0x121   :  { %6892 = vmatprep.mubr.msk.f32.mxu1 %vm329_vm1, %v7938_v48  ;;  %v115_v48 = vld [vmem:[%s13194_s1 + $0x250] sm:$0xff]  ;;  %6766 = vmatprep.mubr.msk.f32.mxu0 %vm329_vm1, %v116_v44 }
 0x122   :  { %1012 = vmatmul.mubr.f32.gmra.mxu0 %v115_v48 }
 0x124   :  { %1780 = vmatmul.mubr.f32.gmra.mxu1 %v7949_v58  ;;  %v8454_v58 = vpop.permute.xlu0 %5784 }
 0x125   :  { %6893 = vmatprep.mubr.msk.f32.mxu1 %vm329_vm1, %v7957_v1  ;;  %13339 = vst [vmem:[#allocation7_spill] sm:$0xff] %v8454_v58  ;;  %v8457_v1 = vpop.permute.xlu1 %5799 }
 0x126   :  { %13340 = vst [vmem:[#allocation9_spill] sm:$0xff] %v8457_v1 }
 0x128   :  { %1785 = vmatmul.mubr.f32.gmra.mxu1 %v7971_v33  ;;  %v8462_v33 = vpop.permute.xlu0 %5794 }
 0x129   :  { %6894 = vmatprep.mubr.msk.f32.mxu1 %vm329_vm1, %v7980_v46  ;;  %13341 = vst [vmem:[#allocation10_spill] sm:$0xff] %v8462_v33  ;;  %v8466_v46 = vpop.permute.xlu1 %5809 }
 0x12a   :  { %13342 = vst [vmem:[#allocation11_spill] sm:$0xff] %v8466_v46 }
 0x12c   :  { %1790 = vmatmul.mubr.f32.gmra.mxu1 %v7992_v62  ;;  %v8471_v62 = vpop.permute.xlu0 %5804 }
 0x12d   :  { %6895 = vmatprep.mubr.msk.f32.mxu1 %vm329_vm1, %v8001_v52  ;;  %13343 = vst [vmem:[#allocation12_spill] sm:$0xff] %v8471_v62  ;;  %v8474_v52 = vpop.permute.xlu1 %5819 }
 0x12e   :  { %13344 = vst [vmem:[#allocation13_spill] sm:$0xff] %v8474_v52 }
 0x130   :  { %1795 = vmatmul.mubr.f32.gmra.mxu1 %v8013_v21  ;;  %v8479_v21 = vpop.permute.xlu0 %5814 }
 0x131   :  { %6896 = vmatprep.mubr.msk.f32.mxu1 %vm329_vm1, %v8022_v39  ;;  %13345 = vst [vmem:[#allocation14_spill] sm:$0xff] %v8479_v21  ;;  %v8483_v39 = vpop.permute.xlu1 %5829 }
 0x132   :  { %13346 = vst [vmem:[#allocation15_spill] sm:$0xff] %v8483_v39 }
 0x134   :  { %1800 = vmatmul.mubr.f32.gmra.mxu1 %v8037_v50  ;;  %v8488_v50 = vpop.permute.xlu0 %5824 }
 0x135   :  { %6897 = vmatprep.mubr.msk.f32.mxu1 %vm329_vm1, %v13328_v45  ;;  %13347 = vst [vmem:[#allocation16_spill] sm:$0xff] %v8488_v50 }
 0x138   :  { %1805 = vmatmul.mubr.f32.gmra.mxu1 %v13329_v47 }
 0x139   :  { %6898 = vmatprep.mubr.msk.f32.mxu1 %vm329_vm1, %v8073_v15  ;;  %v8494_v15 = vpop.permute.xlu0 %5834 }
 0x13a   :  { %13349 = vst [vmem:[#allocation18_spill] sm:$0xff] %v8494_v15 }
 0x13c   :  { %1810 = vmatmul.mubr.f32.gmra.mxu1 %v13331_v55 }
 0x13d   :  { %6899 = vmatprep.mubr.msk.f32.mxu1 %vm329_vm1, %v13332_v57 }
 0x140   :  { %1815 = vmatmul.mubr.f32.gmra.mxu1 %v13334_v11 }
 0x141   :  { %6900 = vmatprep.mubr.msk.f32.mxu1 %vm329_vm1, %v13336_v23 }
 0x144   :  { %1820 = vmatmul.mubr.f32.gmra.mxu1 %v8135_v17 }
 0x145   :  { %6901 = vmatprep.mubr.msk.f32.mxu1 %vm329_vm1, %v8144_v60  ;;  %v8499_v60 = vpop.permute.xlu0 %5844 }
 0x146   :  { %13351 = vst [vmem:[#allocation20_spill] sm:$0xff] %v8499_v60 }
 0x148   :  { %1825 = vmatmul.mubr.f32.gmra.mxu1 %v8157_v56  ;;  %v8491_v56 = vpop.permute.xlu1 %5839 }
 0x149   :  { %6902 = vmatprep.mubr.msk.f32.mxu1 %vm329_vm1, %v8166_v27  ;;  %13348 = vst [vmem:[#allocation17_spill] sm:$0xff] %v8491_v56 }
 0x14c   :  { %1830 = vmatmul.mubr.f32.gmra.mxu1 %v8178_v53  ;;  %v8497_v17 = vpop.permute.xlu1 %5849  ;;  %v118_v53 = vld [vmem:[%s13194_s1 + $0x268] sm:$0xff] }
 0x14d   :  { %6903 = vmatprep.mubr.msk.f32.mxu1 %vm329_vm1, %v8187_v13  ;;  %13350 = vst [vmem:[#allocation19_spill] sm:$0xff] %v8497_v17  ;;  %v117_v13 = vld [vmem:[%s13194_s1 + $0x260] sm:$0xff]  ;;  %6767 = vmatprep.mubr.msk.f32.mxu0 %vm329_vm1, %v118_v53 }
 0x14e   :  { %1017 = vmatmul.mubr.f32.gmra.mxu0 %v117_v13 }
 0x150   :  { %1835 = vmatmul.mubr.f32.gmra.mxu1 %v8200_v54  ;;  %v8501_v27 = vpop.permute.xlu1 %5859  ;;  %v8511_v54 = vpop.permute.xlu0 %5854 }
 0x151   :  { %6904 = vmatprep.mubr.msk.f32.mxu1 %vm329_vm1, %v8209_v29  ;;  %13352 = vst [vmem:[#allocation21_spill] sm:$0xff] %v8501_v27  ;;  %13353 = vst [vmem:[#allocation22_spill] sm:$0xff] %v8511_v54 }
 0x154   :  { %1840 = vmatmul.mubr.f32.gmra.mxu1 %v8223_v3  ;;  %v8513_v29 = vpop.permute.xlu1 %5869  ;;  %v8515_v3 = vpop.permute.xlu0 %5864 }
 0x155   :  { %6905 = vmatprep.mubr.msk.f32.mxu1 %vm329_vm1, %v8232_v25  ;;  %13354 = vst [vmem:[#allocation23_spill] sm:$0xff] %v8513_v29  ;;  %13355 = vst [vmem:[#allocation24_spill] sm:$0xff] %v8515_v3 }
 0x158   :  { %1845 = vmatmul.mubr.f32.gmra.mxu1 %v8247_v37  ;;  %v8517_v25 = vpop.permute.xlu1 %5879  ;;  %v120_v37 = vld [vmem:[%s13194_s1 + $0x278] sm:$0xff] }
 0x159   :  { %6906 = vmatprep.mubr.msk.f32.mxu1 %vm329_vm1, %v8255_v0  ;;  %13356 = vst [vmem:[#allocation25_spill] sm:$0xff] %v8517_v25  ;;  %6768 = vmatprep.mubr.msk.f32.mxu0 %vm329_vm1, %v120_v37  ;;  %v8527_v0 = vpop.permute.xlu0 %5874 }
 0x15a   :  { %1022 = vmatmul.mubr.f32.gmra.mxu0 %v119_v41  ;;  %13357 = vst [vmem:[#allocation26_spill] sm:$0xff] %v8527_v0 }
 0x15c   :  { %1850 = vmatmul.mubr.f32.gmra.mxu1 %v8269_v5  ;;  %v8529_v2 = vpop.permute.xlu1 %5889 }
 0x15d   :  { %6907 = vmatprep.mubr.msk.f32.mxu1 %vm329_vm1, %v8320_v22  ;;  %13358 = vst [vmem:[#allocation27_spill] sm:$0xff] %v8529_v2  ;;  %v8531_v5 = vpop.permute.xlu0 %5884 }
 0x15e   :  { %13359 = vst [vmem:[#allocation28_spill] sm:$0xff] %v8531_v5 }
 0x160   :  { %1855 = vmatmul.mubr.f32.gmra.mxu1 %v8328_v24  ;;  %v8533_v59 = vpop.permute.xlu1 %5899 }
 0x161   :  { %6908 = vmatprep.mubr.msk.f32.mxu1 %vm329_vm1, %v8339_v26  ;;  %13360 = vst [vmem:[#allocation29_spill] sm:$0xff] %v8533_v59  ;;  %v8535_v4 = vpop.permute.xlu0 %5894 }
 0x162   :  { %13361 = vst [vmem:[#allocation30_spill] sm:$0xff] %v8535_v4 }
 0x164   :  { %1860 = vmatmul.mubr.f32.gmra.mxu1 %v8344_v43  ;;  %v8537_v6 = vpop.permute.xlu1 %5909  ;;  %v835_v43 = vpop.f32.mrf.mxu0 }
 0x165   :  { %6909 = vmatprep.mubr.msk.f32.mxu1 %vm329_vm1, %v114_v61  ;;  %13362 = vst [vmem:[#allocation31_spill] sm:$0xff] %v8537_v6  ;;  %v8539_v8 = vpop.permute.xlu0 %5904  ;;  %v122_v43 = vld [vmem:[%s13194_s1 + $0x288] sm:$0xff] }
 0x166   :  { %13363 = vst [vmem:[#allocation32_spill] sm:$0xff] %v8539_v8  ;;  %v8551_v55 = vpop.f32.mrf.mxu0  ;;  %6769 = vmatprep.mubr.msk.f32.mxu0 %vm329_vm1, %v122_v43 }
 0x168   :  { %1865 = vmatmul.mubr.f32.gmra.mxu1 %v113_v7  ;;  %v8541_v10 = vpop.permute.xlu1 %5919  ;;  %v840_v7 = vpop.f32.mrf.mxu0 }
 0x169   :  { %6910 = vmatprep.mubr.msk.f32.mxu1 %vm329_vm1, %v116_v44  ;;  %13364 = vst [vmem:[#allocation33_spill] sm:$0xff] %v8541_v10  ;;  %v8545_v18 = vpop.permute.xlu0 %5914 }
 0x16a   :  { %13365 = vst [vmem:[#allocation34_spill] sm:$0xff] %v8545_v18 }
 0x16c   :  { %1870 = vmatmul.mubr.f32.gmra.mxu1 %v115_v48  ;;  %v8549_v24 = vpop.permute.xlu1 %5929  ;;  %v8557_v48 = vpop.f32.mrf.mxu0 }
 0x16d   :  { %6911 = vmatprep.mubr.msk.f32.mxu1 %vm329_vm1, %v118_v53  ;;  %13366 = vst [vmem:[#allocation35_spill] sm:$0xff] %v8549_v24  ;;  %v8553_v57 = vpop.permute.xlu0 %5924 }
 0x16e   :  { %13367 = vst [vmem:[#allocation36_spill] sm:$0xff] %v8553_v57 }
 0x170   :  { %1875 = vmatmul.mubr.f32.gmra.mxu1 %v117_v13  ;;  %v8555_v11 = vpop.permute.xlu1 %5939  ;;  %v845_v13 = vpop.f32.mrf.mxu0 }
 0x171   :  { %6912 = vmatprep.mubr.msk.f32.mxu1 %vm329_vm1, %v120_v37  ;;  %13368 = vst [vmem:[#allocation37_spill] sm:$0xff] %v8555_v11  ;;  %v8559_v37 = vpop.permute.xlu0 %5934 }
 0x172   :  { %13369 = vst [vmem:[#allocation38_spill] sm:$0xff] %v8559_v37  ;;  %v8561_v16 = vpop.f32.mrf.mxu0 }
 0x174   :  { %1880 = vmatmul.mubr.f32.gmra.mxu1 %v119_v41 }
 0x175   :  { %6913 = vmatprep.mubr.msk.f32.mxu1 %vm329_vm1, %v122_v43 }
 0x198   :  { %v1686_v14 = vpop.f32.mrf.mxu1 }
 0x199   :  { %v2405_v20 = vmul.f32 0.020408163, %v1686_v14 }
 0x19a   :  { %v1688_v22 = vpop.f32.mrf.mxu1 }
 0x19b   :  { %2551 = vperm.xlu0 %7020, %v2405_v20   ;;  %v8563_v20 = vpop.permute.xlu1 %5949 }
 0x19c   :  { %v1691_v26 = vpop.f32.mrf.mxu1  ;;  %13370 = vst [vmem:[#allocation39_spill] sm:$0xff] %v8563_v20 }
 0x19d   :  { %v2406_v45 = vmul.f32 0.020408163, %v1691_v26  ;;  %v850_v26 = vpop.f32.mrf.mxu0 }
 0x19e   :  { %v1693_v47 = vpop.f32.mrf.mxu1 }
 0x19f   :  { %2556 = vperm.xlu1 %7019, %v2406_v45   ;;  %v121_v47 = vld [vmem:[%s13194_s1 + $0x280] sm:$0xff]  ;;  %v8573_v7 = vpop.f32.mrf.mxu0  ;;  %v8577_v13 = vpop.permute.xlu1 %5959 }
 0x1a0   :  { %v1696_v61 = vpop.f32.mrf.mxu1  ;;  %1885 = vmatmul.mubr.f32.gmra.mxu1 %v121_v47  ;;  %1027 = vmatmul.mubr.f32.gmra.mxu0 %v121_v47  ;;  %13372 = vst [vmem:[#allocation41_spill] sm:$0xff] %v8577_v13 }
 0x1a1   :  { %v2407_v23 = vmul.f32 0.020408163, %v1696_v61 }
 0x1a2   :  { %v1698_v44 = vpop.f32.mrf.mxu1 }
 0x1a3   :  { %2561 = vperm.xlu1 %7019, %v2407_v23   ;;  %v8575_v23 = vpop.permute.xlu0 %5944  ;;  %v8588_v47 = vpop.permute.xlu1 %5969 }
 0x1a4   :  { %v1701_v53 = vpop.f32.mrf.mxu1  ;;  %13371 = vst [vmem:[#allocation40_spill] sm:$0xff] %v8575_v23  ;;  %13374 = vst [vmem:[#allocation43_spill] sm:$0xff] %v8588_v47 }
 0x1a5   :  { %v2408_v41 = vmul.f32 0.020408163, %v1701_v53  ;;  %v855_v53 = vpop.f32.mrf.mxu0 }
 0x1a6   :  { %v1703_v14 = vpop.f32.mrf.mxu1 }
 0x1a7   :  { %2566 = vperm.xlu1 %7019, %v2408_v41   ;;  %v8581_v43 = vpop.permute.xlu0 %5954  ;;  %v8599_v13 = vpop.permute.xlu1 %5979 }
 0x1a8   :  { %v1706_v22 = vpop.f32.mrf.mxu1  ;;  %13373 = vst [vmem:[#allocation42_spill] sm:$0xff] %v8581_v43  ;;  %13376 = vst [vmem:[#allocation45_spill] sm:$0xff] %v8599_v13 }
 0x1a9   :  { %v2409_v45 = vmul.f32 0.020408163, %v1706_v22  ;;  %v8579_v22 = vpop.f32.mrf.mxu0 }
 0x1aa   :  { %v1708_v61 = vpop.f32.mrf.mxu1 }
 0x1ab   :  { %2571 = vperm.xlu1 %7019, %v2409_v45   ;;  %v860_v20 = vpop.f32.mrf.mxu0  ;;  %v124_v45 = vld [vmem:[%s13194_s1 + $0x298] sm:$0xff]  ;;  %v8607_v10 = vpop.permute.xlu1 %5989 }
 0x1ac   :  { %v1711_v44 = vpop.f32.mrf.mxu1  ;;  %6914 = vmatprep.mubr.msk.f32.mxu1 %vm329_vm1, %v124_v45  ;;  %6770 = vmatprep.mubr.msk.f32.mxu0 %vm329_vm1, %v124_v45  ;;  %13378 = vst [vmem:[#allocation47_spill] sm:$0xff] %v8607_v10 }
 0x1ad   :  { %v2410_v41 = vmul.f32 0.020408163, %v1711_v44  ;;  %v8583_v37 = vpop.f32.mrf.mxu0  ;;  %v123_v44 = vld [vmem:[%s13194_s1 + $0x290] sm:$0xff] }
 0x1ae   :  { %v1713_v14 = vpop.f32.mrf.mxu1  ;;  %1890 = vmatmul.mubr.f32.gmra.mxu1 %v123_v44  ;;  %1032 = vmatmul.mubr.f32.gmra.mxu0 %v123_v44 }
 0x1af   :  { %2576 = vperm.xlu1 %7019, %v2410_v41   ;;  %v865_v53 = vpop.f32.mrf.mxu0  ;;  %v8613_v18 = vpop.permute.xlu1 %5999 }
 0x1b0   :  { %v1716_v26 = vpop.f32.mrf.mxu1  ;;  %13380 = vst [vmem:[#allocation49_spill] sm:$0xff] %v8613_v18 }
 0x1b1   :  { %v2411_v61 = vmul.f32 0.020408163, %v1716_v26  ;;  %v8595_v14 = vpop.f32.mrf.mxu0  ;;  %v8597_v26 = vpop.permute.xlu0 %5964 }
 0x1b2   :  { %v1718_v11 = vpop.f32.mrf.mxu1  ;;  %13375 = vst [vmem:[#allocation44_spill] sm:$0xff] %v8597_v26 }
 0x1b3   :  { %2581 = vperm.xlu1 %7019, %v2411_v61   ;;  %v870_v47 = vpop.f32.mrf.mxu0  ;;  %v8621_v8 = vpop.permute.xlu1 %6009 }
 0x1b4   :  { %v1721_v20 = vpop.f32.mrf.mxu1  ;;  %13382 = vst [vmem:[#allocation51_spill] sm:$0xff] %v8621_v8 }
 0x1b5   :  { %v2412_v11 = vmul.f32 0.020408163, %v1721_v20  ;;  %v8601_v24 = vpop.f32.mrf.mxu0  ;;  %v8603_v45 = vpop.permute.xlu0 %5974 }
 0x1b6   :  { %v1723_v41 = vpop.f32.mrf.mxu1  ;;  %13377 = vst [vmem:[#allocation46_spill] sm:$0xff] %v8603_v45 }
 0x1b7   :  { %2586 = vperm.xlu1 %7019, %v2412_v11   ;;  %v875_v57 = vpop.f32.mrf.mxu0  ;;  %v8627_v59 = vpop.permute.xlu1 %6019 }
 0x1b8   :  { %v1726_v61 = vpop.f32.mrf.mxu1  ;;  %13384 = vst [vmem:[#allocation53_spill] sm:$0xff] %v8627_v59 }
 0x1b9   :  { %v2413_v43 = vmul.f32 0.020408163, %v1726_v61  ;;  %v8605_v41 = vpop.f32.mrf.mxu0 }
 0x1ba   :  { %v1728_v23 = vpop.f32.mrf.mxu1 }
 0x1bb   :  { %2591 = vperm.xlu1 %7019, %v2413_v43   ;;  %v880_v47 = vpop.f32.mrf.mxu0  ;;  %v8611_v23 = vpop.permute.xlu0 %5984 }
 0x1bc   :  { %v1731_v53 = vpop.f32.mrf.mxu1  ;;  %13379 = vst [vmem:[#allocation48_spill] sm:$0xff] %v8611_v23  ;;  %v8635_v2 = vpop.permute.xlu1 %6029 }
 0x1bd   :  { %v2414_v44 = vmul.f32 0.020408163, %v1731_v53  ;;  %v8609_v61 = vpop.f32.mrf.mxu0  ;;  %13386 = vst [vmem:[#allocation55_spill] sm:$0xff] %v8635_v2 }
 0x1be   :  { %v1733_v20 = vpop.f32.mrf.mxu1 }
 0x1bf   :  { %2596 = vperm.xlu0 %7020, %v2414_v44   ;;  %v885_v57 = vpop.f32.mrf.mxu0  ;;  %v8617_v6 = vpop.permute.xlu0 %5994 }
 0x1c0   :  { %v1736_v11 = vpop.f32.mrf.mxu1  ;;  %13381 = vst [vmem:[#allocation50_spill] sm:$0xff] %v8617_v6  ;;  %v8641_v5 = vpop.permute.xlu1 %6039 }
 0x1c1   :  { %v2415_v26 = vmul.f32 0.020408163, %v1736_v11  ;;  %v8615_v45 = vpop.f32.mrf.mxu0  ;;  %13388 = vst [vmem:[#allocation57_spill] sm:$0xff] %v8641_v5 }
 0x1c2   :  { %v1738_v13 = vpop.f32.mrf.mxu1 }
 0x1c3   :  { %2601 = vperm.xlu1 %7019, %v2415_v26   ;;  %v890_v44 = vpop.f32.mrf.mxu0 }
 0x1c4   :  { %v1741_v43 = vpop.f32.mrf.mxu1  ;;  %v8657_v5 = vpop.permute.xlu1 %6049 }
 0x1c5   :  { %v2416_v53 = vmul.f32 0.020408163, %v1741_v43  ;;  %v8619_v47 = vpop.f32.mrf.mxu0  ;;  %13390 = vst [vmem:[#allocation59_spill] sm:$0xff] %v8657_v5 }
 0x1c6   :  { %v1743_v20 = vpop.f32.mrf.mxu1 }
 0x1c7   :  { %2606 = vperm.xlu0 %7020, %v2416_v53   ;;  %v895_v57 = vpop.f32.mrf.mxu0  ;;  %v8625_v20 = vpop.permute.xlu0 %6004 }
 0x1c8   :  { %v1746_v10 = vpop.f32.mrf.mxu1  ;;  %13383 = vst [vmem:[#allocation52_spill] sm:$0xff] %v8625_v20 }
 0x1c9   :  { %v2417_v11 = vmul.f32 0.020408163, %v1746_v10  ;;  %v8623_v43 = vpop.f32.mrf.mxu0 }
 0x1ca   :  { %v1748_v13 = vpop.f32.mrf.mxu1 }
 0x1cb   :  { %2611 = vperm.xlu1 %7019, %v2417_v11   ;;  %v900_v44 = vpop.f32.mrf.mxu0  ;;  %v8631_v4 = vpop.permute.xlu0 %6014 }
 0x1cc   :  { %v1751_v26 = vpop.f32.mrf.mxu1  ;;  %13385 = vst [vmem:[#allocation54_spill] sm:$0xff] %v8631_v4 }
 0x1cd   :  { %v2418_v23 = vmul.f32 0.020408163, %v1751_v26  ;;  %v8629_v6 = vpop.f32.mrf.mxu0 }
 0x1ce   :  { %v1753_v18 = vpop.f32.mrf.mxu1 }
 0x1cf   :  { %2616 = vperm.xlu0 %7020, %v2418_v23   ;;  %v905_v11 = vpop.f32.mrf.mxu0 }
 0x1d0   :  { %v1756_v53 = vpop.f32.mrf.mxu1 }
 0x1d1   :  { %v2419_v10 = vmul.f32 0.020408163, %v1756_v53  ;;  %v8633_v57 = vpop.f32.mrf.mxu0 }
 0x1d2   :  { %v1758_v13 = vpop.f32.mrf.mxu1 }
 0x1d3   :  { %2621 = vperm.xlu1 %7019, %v2419_v10   ;;  %v910_v44 = vpop.f32.mrf.mxu0  ;;  %v8639_v13 = vpop.permute.xlu0 %6024 }
 0x1d4   :  { %v1761_v8 = vpop.f32.mrf.mxu1  ;;  %13387 = vst [vmem:[#allocation56_spill] sm:$0xff] %v8639_v13 }
 0x1d5   :  { %v2420_v26 = vmul.f32 0.020408163, %v1761_v8  ;;  %v8637_v53 = vpop.f32.mrf.mxu0 }
 0x1d6   :  { %v1763_v18 = vpop.f32.mrf.mxu1 }
 0x1d7   :  { %2626 = vperm.xlu0 %7020, %v2420_v26   ;;  %v915_v11 = vpop.f32.mrf.mxu0  ;;  %v126_v18 = vld [vmem:[%s13194_s1 + $0x2a8] sm:$0xff]  ;;  %v8653_v44 = vpop.permute.xlu0 %6034 }
 0x1d8   :  { %v1766_v23 = vpop.f32.mrf.mxu1  ;;  %6915 = vmatprep.mubr.msk.f32.mxu1 %vm329_vm1, %v126_v18  ;;  %6771 = vmatprep.mubr.msk.f32.mxu0 %vm329_vm1, %v126_v18  ;;  %13389 = vst [vmem:[#allocation58_spill] sm:$0xff] %v8653_v44  ;;  %v128_v18 = vld [vmem:[%s13194_s1 + $0x2b8] sm:$0xff] }
 0x1d9   :  { %v2421_v20 = vmul.f32 0.020408163, %v1766_v23  ;;  %v8647_v26 = vpop.f32.mrf.mxu0 }
 0x1da   :  { %v1768_v59 = vpop.f32.mrf.mxu1 }
 0x1db   :  { %2631 = vperm.xlu1 %7019, %v2421_v20   ;;  %v125_v59 = vld [vmem:[%s13194_s1 + $0x2a0] sm:$0xff]  ;;  %v920_v23 = vpop.f32.mrf.mxu0 }
 0x1dc   :  { %v1771_v10 = vpop.f32.mrf.mxu1  ;;  %1895 = vmatmul.mubr.f32.gmra.mxu1 %v125_v59  ;;  %1037 = vmatmul.mubr.f32.gmra.mxu0 %v125_v59  ;;  %v127_v23 = vld [vmem:[%s13194_s1 + $0x2b0] sm:$0xff] }
 0x1dd   :  { %v2422_v8 = vmul.f32 0.020408163, %v1771_v10  ;;  %6916 = vmatprep.mubr.msk.f32.mxu1 %vm329_vm1, %v128_v18  ;;  %6772 = vmatprep.mubr.msk.f32.mxu0 %vm329_vm1, %v128_v18 }
 0x1de   :  { %v1773_v2 = vpop.f32.mrf.mxu1 }
 0x1df   :  { %2636 = vperm.xlu0 %7020, %v2422_v8   ;;  %v8655_v2 = vpop.f32.mrf.mxu0  ;;  %v8661_v8 = vpop.permute.xlu0 %6044 }
 0x1e0   :  { %v1776_v20 = vpop.f32.mrf.mxu1  ;;  %13391 = vst [vmem:[#allocation60_spill] sm:$0xff] %v8661_v8  ;;  %1900 = vmatmul.mubr.f32.gmra.mxu1 %v127_v23  ;;  %1042 = vmatmul.mubr.f32.gmra.mxu0 %v127_v23 }
 0x1e1   :  { %v2423_v10 = vmul.f32 0.020408163, %v1776_v20  ;;  %v925_v4 = vpop.f32.mrf.mxu0 }
 0x1e2   :  { %v1778_v11 = vpop.f32.mrf.mxu1 }
 0x1e3   :  { %2641 = vperm.xlu1 %7019, %v2423_v10   ;;  %v8659_v29 = vpop.f32.mrf.mxu0 }
 0x1e4   :  { %v1781_v13 = vpop.f32.mrf.mxu1 }
 0x1e5   :  { %v2424_v25 = vmul.f32 0.020408163, %v1781_v13  ;;  %v930_v20 = vpop.f32.mrf.mxu0 }
 0x1e6   :  { %v1783_v0 = vpop.f32.mrf.mxu1  ;;  %v8675_v20 = vpop.permute.xlu0 %6054 }
 0x1e7   :  { %2646 = vperm.xlu0 %7020, %v2424_v25   ;;  %v8671_v0 = vpop.permute.xlu1 %6059  ;;  %v8673_v13 = vpop.f32.mrf.mxu0  ;;  %13393 = vst [vmem:[#allocation62_spill] sm:$0xff] %v8675_v20 }
 0x1e8   :  { %v1786_v59 = vpop.f32.mrf.mxu1  ;;  %13392 = vst [vmem:[#allocation61_spill] sm:$0xff] %v8671_v0 }
 0x1e9   :  { %v2425_v4 = vmul.f32 0.020408163, %v1786_v59  ;;  %v935_v11 = vpop.f32.mrf.mxu0 }
 0x1ea   :  { %v1788_v25 = vpop.f32.mrf.mxu1 }
 0x1eb   :  { %2651 = vperm.xlu1 %7019, %v2425_v4   ;;  %v8677_v44 = vpop.f32.mrf.mxu0  ;;  %v8679_v3 = vpop.permute.xlu1 %6069 }
 0x1ec   :  { %v1791_v10 = vpop.f32.mrf.mxu1  ;;  %13394 = vst [vmem:[#allocation63_spill] sm:$0xff] %v8679_v3  ;;  %v8683_v25 = vpop.permute.xlu0 %6064 }
 0x1ed   :  { %v2426_v5 = vmul.f32 0.020408163, %v1791_v10  ;;  %v940_v0 = vpop.f32.mrf.mxu0  ;;  %13395 = vst [vmem:[#allocation64_spill] sm:$0xff] %v8683_v25 }
 0x1ee   :  { %v1793_v8 = vpop.f32.mrf.mxu1 }
 0x1ef   :  { %2656 = vperm.xlu0 %7020, %v2426_v5   ;;  %v8681_v23 = vpop.f32.mrf.mxu0  ;;  %v8685_v54 = vpop.permute.xlu1 %6079 }
 0x1f0   :  { %v1796_v18 = vpop.f32.mrf.mxu1  ;;  %13396 = vst [vmem:[#allocation65_spill] sm:$0xff] %v8685_v54  ;;  %v8689_v17 = vpop.permute.xlu0 %6074 }
 0x1f1   :  { %v2427_v59 = vmul.f32 0.020408163, %v1796_v18  ;;  %v945_v11 = vpop.f32.mrf.mxu0  ;;  %13397 = vst [vmem:[#allocation66_spill] sm:$0xff] %v8689_v17 }
 0x1f2   :  { %v1798_v27 = vpop.f32.mrf.mxu1 }
 0x1f3   :  { %2661 = vperm.xlu1 %7019, %v2427_v59   ;;  %v8687_v20 = vpop.f32.mrf.mxu0  ;;  %v8693_v60 = vpop.permute.xlu1 %6089 }
 0x1f4   :  { %v1801_v4 = vpop.f32.mrf.mxu1  ;;  %13398 = vst [vmem:[#allocation67_spill] sm:$0xff] %v8693_v60 }
 0x1f5   :  { %v2428_v10 = vmul.f32 0.020408163, %v1801_v4  ;;  %v950_v5 = vpop.f32.mrf.mxu0 }
 0x1f6   :  { %v1803_v8 = vpop.f32.mrf.mxu1 }
 0x1f7   :  { %2666 = vperm.xlu0 %7020, %v2428_v10   ;;  %v8691_v18 = vpop.f32.mrf.mxu0  ;;  %v8697_v8 = vpop.permute.xlu0 %6084 }
 0x1f8   :  { %v1806_v3 = vpop.f32.mrf.mxu1  ;;  %13399 = vst [vmem:[#allocation68_spill] sm:$0xff] %v8697_v8  ;;  %v8699_v56 = vpop.permute.xlu1 %6099 }
 0x1f9   :  { %v2429_v0 = vmul.f32 0.020408163, %v1806_v3  ;;  %v955_v11 = vpop.f32.mrf.mxu0  ;;  %13400 = vst [vmem:[#allocation69_spill] sm:$0xff] %v8699_v56 }
 0x1fa   :  { %v1808_v27 = vpop.f32.mrf.mxu1 }
 0x1fb   :  { %2671 = vperm.xlu1 %7019, %v2429_v0   ;;  %v8695_v4 = vpop.f32.mrf.mxu0  ;;  %v8703_v15 = vpop.permute.xlu0 %6094 }
 0x1fc   :  { %v1811_v59 = vpop.f32.mrf.mxu1  ;;  %13401 = vst [vmem:[#allocation70_spill] sm:$0xff] %v8703_v15  ;;  %v8707_v39 = vpop.permute.xlu1 %6109 }
 0x1fd   :  { %v2430_v25 = vmul.f32 0.020408163, %v1811_v59  ;;  %v960_v5 = vpop.f32.mrf.mxu0  ;;  %13402 = vst [vmem:[#allocation71_spill] sm:$0xff] %v8707_v39 }
 0x1fe   :  { %v1813_v54 = vpop.f32.mrf.mxu1 }
 0x1ff   :  { %2676 = vperm.xlu0 %7020, %v2430_v25   ;;  %v8701_v17 = vpop.f32.mrf.mxu0 }
 0x200   :  { %v1816_v10 = vpop.f32.mrf.mxu1  ;;  %v8713_v50 = vpop.permute.xlu1 %6119 }
 0x201   :  { %v2431_v3 = vmul.f32 0.020408163, %v1816_v10  ;;  %v965_v0 = vpop.f32.mrf.mxu0  ;;  %13404 = vst [vmem:[#allocation73_spill] sm:$0xff] %v8713_v50 }
 0x202   :  { %v1818_v27 = vpop.f32.mrf.mxu1 }
 0x203   :  { %2681 = vperm.xlu1 %7019, %v2431_v3   ;;  %v8705_v11 = vpop.f32.mrf.mxu0  ;;  %v8711_v27 = vpop.permute.xlu0 %6104 }
 0x204   :  { %v1821_v60 = vpop.f32.mrf.mxu1  ;;  %13403 = vst [vmem:[#allocation72_spill] sm:$0xff] %v8711_v27 }
 0x205   :  { %v2432_v59 = vmul.f32 0.020408163, %v1821_v60  ;;  %v970_v5 = vpop.f32.mrf.mxu0 }
 0x206   :  { %v1823_v54 = vpop.f32.mrf.mxu1 }
 0x207   :  { %2686 = vperm.xlu0 %7020, %v2432_v59   ;;  %v8709_v10 = vpop.f32.mrf.mxu0  ;;  %v8717_v52 = vpop.permute.xlu0 %6114 }
 0x208   :  { %v1826_v25 = vpop.f32.mrf.mxu1  ;;  %13405 = vst [vmem:[#allocation74_spill] sm:$0xff] %v8717_v52 }
 0x209   :  { %v2433_v8 = vmul.f32 0.020408163, %v1826_v25  ;;  %v975_v0 = vpop.f32.mrf.mxu0 }
 0x20a   :  { %v1828_v56 = vpop.f32.mrf.mxu1  ;;  %v8724_v0 = vpop.permute.xlu1 %6129 }
 0x20b   :  { %2691 = vperm.xlu1 %7019, %v2433_v8   ;;  %v8715_v15 = vpop.f32.mrf.mxu0  ;;  %v130_v8 = vld [vmem:[%s13194_s1 + $0x2c8] sm:$0xff]  ;;  %13406 = vst [vmem:[#allocation75_spill] sm:$0xff] %v8724_v0 }
 0x20c   :  { %v1831_v3 = vpop.f32.mrf.mxu1  ;;  %6917 = vmatprep.mubr.msk.f32.mxu1 %vm329_vm1, %v130_v8  ;;  %6773 = vmatprep.mubr.msk.f32.mxu0 %vm329_vm1, %v130_v8  ;;  %v132_v8 = vld [vmem:[%s13194_s1 + $0x2d8] sm:$0xff] }
 0x20d   :  { %v2434_v60 = vmul.f32 0.020408163, %v1831_v3  ;;  %v980_v59 = vpop.f32.mrf.mxu0  ;;  %v129_v3 = vld [vmem:[%s13194_s1 + $0x2c0] sm:$0xff] }
 0x20e   :  { %v1833_v54 = vpop.f32.mrf.mxu1  ;;  %1905 = vmatmul.mubr.f32.gmra.mxu1 %v129_v3  ;;  %1047 = vmatmul.mubr.f32.gmra.mxu0 %v129_v3  ;;  %v8735_v27 = vpop.permute.xlu1 %6139 }
 0x20f   :  { %2696 = vperm.xlu0 %7020, %v2434_v60   ;;  %v8719_v5 = vpop.f32.mrf.mxu0  ;;  %13408 = vst [vmem:[#allocation77_spill] sm:$0xff] %v8735_v27  ;;  %6918 = vmatprep.mubr.msk.f32.mxu1 %vm329_vm1, %v132_v8 }
 0x210   :  { %v1836_v39 = vpop.f32.mrf.mxu1  ;;  %6774 = vmatprep.mubr.msk.f32.mxu0 %vm329_vm1, %v132_v8 }
 0x211   :  { %v2435_v25 = vmul.f32 0.020408163, %v1836_v39  ;;  %v985_v54 = vpop.f32.mrf.mxu0 }
 0x212   :  { %v1838_v56 = vpop.f32.mrf.mxu1 }
 0x213   :  { %2701 = vperm.xlu1 %7019, %v2435_v25   ;;  %v8731_v56 = vpop.permute.xlu0 %6124  ;;  %v8733_v50 = vpop.f32.mrf.mxu0 }
 0x214   :  { %v1841_v60 = vpop.f32.mrf.mxu1  ;;  %13407 = vst [vmem:[#allocation76_spill] sm:$0xff] %v8731_v56 }
 0x215   :  { %v2436_v39 = vmul.f32 0.020408163, %v1841_v60  ;;  %v990_v52 = vpop.f32.mrf.mxu0 }
 0x216   :  { %v1843_v59 = vpop.f32.mrf.mxu1  ;;  %v131_v52 = vld [vmem:[%s13194_s1 + $0x2d0] sm:$0xff] }
 0x217   :  { %2706 = vperm.xlu0 %7020, %v2436_v39   ;;  %v8737_v46 = vpop.f32.mrf.mxu0  ;;  %v8742_v3 = vpop.permute.xlu0 %6134  ;;  %1910 = vmatmul.mubr.f32.gmra.mxu1 %v131_v52 }
 0x218   :  { %v1846_v25 = vpop.f32.mrf.mxu1  ;;  %13409 = vst [vmem:[#allocation78_spill] sm:$0xff] %v8742_v3  ;;  %1052 = vmatmul.mubr.f32.gmra.mxu0 %v131_v52 }
 0x219   :  { %v2437_v0 = vmul.f32 0.020408163, %v1846_v25  ;;  %v995_v39 = vpop.f32.mrf.mxu0 }
 0x21a   :  { %v1848_v21 = vpop.f32.mrf.mxu1 }
 0x21b   :  { %2711 = vperm.xlu1 %7019, %v2437_v0   ;;  %v8749_v0 = vpop.permute.xlu1 %6149  ;;  %v8751_v27 = vpop.permute.xlu0 %6144 }
 0x21c   :  { %v1851_v54 = vpop.f32.mrf.mxu1  ;;  %13410 = vst [vmem:[#allocation79_spill] sm:$0xff] %v8749_v0  ;;  %13411 = vst [vmem:[#allocation80_spill] sm:$0xff] %v8751_v27 }
 0x21d   :  { %v2438_v60 = vmul.f32 0.020408163, %v1851_v54 }
 0x21e   :  { %v1853_v21 = vpop.f32.mrf.mxu1 }
 0x21f   :  { %2716 = vperm.xlu0 %7020, %v2438_v60   ;;  %v8753_v3 = vpop.permute.xlu1 %6159  ;;  %v8757_v1 = vpop.permute.xlu0 %6154 }
 0x220   :  { %v1856_v59 = vpop.f32.mrf.mxu1  ;;  %13412 = vst [vmem:[#allocation81_spill] sm:$0xff] %v8753_v3  ;;  %13413 = vst [vmem:[#allocation82_spill] sm:$0xff] %v8757_v1 }
 0x222   :  { %v1858_v25 = vpop.f32.mrf.mxu1 }
 0x223   :  { %v8759_v8 = vpop.permute.xlu1 %6169  ;;  %v8763_v52 = vpop.permute.xlu0 %6164 }
 0x224   :  { %v1861_v54 = vpop.f32.mrf.mxu1  ;;  %13414 = vst [vmem:[#allocation83_spill] sm:$0xff] %v8759_v8  ;;  %13415 = vst [vmem:[#allocation84_spill] sm:$0xff] %v8763_v52 }
 0x226   :  { %v1863_v56 = vpop.f32.mrf.mxu1 }
 0x227   :  { %v2557_v0 = vpop.permute.xlu1 %2556  ;;  %v2552_v25 = vpop.permute.xlu0 %2551 }
 0x228   :  { %v8755_v62 = vpop.f32.mrf.mxu1  ;;  %v8766_v27 = vsub.f32 %v8547_v9, %v2557_v0  ;;  %v8771_v56 = vsub.f32 %v8543_v12, %v2552_v25 }
 0x22a   :  { %v1868_v39 = vpop.f32.mrf.mxu1 }
 0x22b   :  { %v2562_v3 = vpop.permute.xlu1 %2561  ;;  %v3414_v39 = vmul.f32 %v8766_v27, %v8766_v27 }
 0x22c   :  { %v8761_v21 = vpop.f32.mrf.mxu1  ;;  %v8776_v8 = vsub.f32 %v8551_v55, %v2562_v3  ;;  %v134_v55 = vld [vmem:[%s13194_s1 + $0x2e8] sm:$0xff]  ;;  %v133_v3 = vld [vmem:[%s13194_s1 + $0x2e0] sm:$0xff] }
 0x22d   :  { %v3560_v0 = vsel %vm1547_vm0, %v3414_v39, 0.0  ;;  %6919 = vmatprep.mubr.msk.f32.mxu1 %vm329_vm1, %v134_v55  ;;  %6775 = vmatprep.mubr.msk.f32.mxu0 %vm329_vm1, %v134_v55  ;;  %v2439_v39 = vmul.f32 0.020408163, %v1856_v59  ;;  %v2440_v59 = vmul.f32 0.020408163, %v1861_v54 }
 0x22e   :  { %v1873_v60 = vpop.f32.mrf.mxu1  ;;  %v3415_v9 = vmul.f32 %v8776_v8, %v8776_v8  ;;  %1915 = vmatmul.mubr.f32.gmra.mxu1 %v133_v3  ;;  %1057 = vmatmul.mubr.f32.gmra.mxu0 %v133_v3 }
 0x22f   :  { %v3413_v60 = vmul.f32 %v8771_v56, %v8771_v56  ;;  %v2567_v55 = vpop.permute.xlu1 %2566 }
 0x230   :  { %v8768_v33 = vpop.f32.mrf.mxu1 }
 0x231   :  { %v3557_v12 = vsel %vm1547_vm0, %v3413_v60, 0.0  ;;  %v8795_v60 = vpop.f32.mrf.mxu0 }
 0x232   :  { %v1878_v1 = vpop.f32.mrf.mxu1 }
 0x233   :  { %v3563_v1 = vsel %vm1547_vm0, %v3415_v9, 0.0  ;;  %v1000_v9 = vpop.f32.mrf.mxu0 }
 0x234   :  { %v8784_v25 = vpop.f32.mrf.mxu1  ;;  %v2572_v9 = vpop.permute.xlu1 %2571 }
 0x235   :  { %v8813_v58 = vsub.f32 %v8561_v16, %v2572_v9  ;;  %v137_v16 = vld [vmem:[%s13194_s1 + $0x300] sm:$0xff] }
 0x236   :  { %v1883_v52 = vpop.f32.mrf.mxu1 }
 0x237   :  { %v136_v52 = vld [vmem:[%s13194_s1 + $0x2f8] sm:$0xff] }
 0x238   :  { %6920 = vmatprep.mubr.msk.f32.mxu1 %vm329_vm1, %v136_v52  ;;  %6776 = vmatprep.mubr.msk.f32.mxu0 %vm329_vm1, %v136_v52 }
 0x23e   :  { %3561 = vadd.xlane.f32.xlu0 %v3560_v0  ;;  %v135_v0 = vld [vmem:[%s13194_s1 + $0x2f0] sm:$0xff] }
 0x23f   :  { %3558 = vadd.xlane.f32.xlu1 %v3557_v12  ;;  %1920 = vmatmul.mubr.f32.gmra.mxu1 %v135_v0  ;;  %v8805_v12 = vpop.f32.mrf.mxu0 }
 0x240   :  { %1062 = vmatmul.mubr.f32.gmra.mxu0 %v135_v0  ;;  %v3417_v0 = vmul.f32 %v8813_v58, %v8813_v58 }
 0x242   :  { %3564 = vadd.xlane.f32.xlu0 %v3563_v1  ;;  %v1005_v1 = vpop.f32.mrf.mxu0 }
 0x243   :  { %v3569_v1 = vsel %vm1547_vm0, %v3417_v0, 0.0  ;;  %v140_v0 = vld [vmem:[%s13194_s1 + $0x318] sm:$0xff] }
 0x244   :  { %v8832_v9 = vpop.f32.mrf.mxu0 }
 0x250   :  { %2721 = vperm.xlu1 %7019, %v2439_v39   ;;  %v8810_v39 = vsub.f32 %v8557_v48, %v2567_v55  ;;  %v2441_v55 = vmul.f32 0.020408163, %v8755_v62  ;;  %v2442_v62 = vmul.f32 0.020408163, %v8761_v21 }
 0x252   :  { %v3416_v52 = vmul.f32 %v8810_v39, %v8810_v39 }
 0x254   :  { %v3566_v54 = vsel %vm1547_vm0, %v3416_v52, 0.0  ;;  %v1010_v52 = vpop.f32.mrf.mxu0 }
 0x258   :  { %2726 = vperm.xlu0 %7020, %v2440_v59  }
 0x260   :  { %v8807_v3 = vpop.f32.mrf.mxu1 }
 0x262   :  { %v1888_v35 = vpop.f32.mrf.mxu1 }
 0x263   :  { %v138_v35 = vld [vmem:[%s13194_s1 + $0x308] sm:$0xff] }
 0x264   :  { %6921 = vmatprep.mubr.msk.f32.mxu1 %vm329_vm1, %v138_v35  ;;  %6777 = vmatprep.mubr.msk.f32.mxu0 %vm329_vm1, %v138_v35  ;;  %v2577_v35 = vpop.permute.xlu1 %2576 }
 0x265   :  { %1925 = vmatmul.mubr.f32.gmra.mxu1 %v137_v16  ;;  %1067 = vmatmul.mubr.f32.gmra.mxu0 %v137_v16 }
 0x266   :  { %6922 = vmatprep.mubr.msk.f32.mxu1 %vm329_vm1, %v140_v0  ;;  %6778 = vmatprep.mubr.msk.f32.mxu0 %vm329_vm1, %v140_v0 }
 0x268   :  { %v2582_v52 = vpop.permute.xlu1 %2581 }
 0x269   :  { %v8851_v31 = vsub.f32 %v8579_v22, %v2582_v52  ;;  %v141_v22 = vld [vmem:[%s13194_s1 + $0x320] sm:$0xff] }
 0x26e   :  { %v8820_v59 = vpop.f32.mrf.mxu1 }
 0x270   :  { %v1893_v48 = vpop.f32.mrf.mxu1 }
 0x274   :  { %3567 = vadd.xlane.f32.xlu1 %v3566_v54  ;;  %v139_v54 = vld [vmem:[%s13194_s1 + $0x310] sm:$0xff] }
 0x275   :  { %1930 = vmatmul.mubr.f32.gmra.mxu1 %v139_v54  ;;  %1072 = vmatmul.mubr.f32.gmra.mxu0 %v139_v54  ;;  %v3419_v54 = vmul.f32 %v8851_v31, %v8851_v31 }
 0x277   :  { %3570 = vadd.xlane.f32.xlu0 %v3569_v1  ;;  %v8842_v1 = vpop.f32.mrf.mxu0 }
 0x279   :  { %v1015_v48 = vpop.f32.mrf.mxu0 }
 0x27a   :  { %v3575_v48 = vsel %vm1547_vm0, %v3419_v54, 0.0  ;;  %v144_v54 = vld [vmem:[%s13194_s1 + $0x338] sm:$0xff] }
 0x27b   :  { %v8870_v52 = vpop.f32.mrf.mxu0 }
 0x285   :  { %2731 = vperm.xlu1 %7019, %v2441_v55   ;;  %v8848_v55 = vsub.f32 %v8573_v7, %v2577_v35  ;;  %v2443_v35 = vmul.f32 0.020408163, %v8768_v33  ;;  %v2444_v33 = vmul.f32 0.020408163, %v8784_v25 }
 0x287   :  { %v3418_v0 = vmul.f32 %v8848_v55, %v8848_v55 }
 0x289   :  { %v3572_v21 = vsel %vm1547_vm0, %v3418_v0, 0.0  ;;  %v1020_v0 = vpop.f32.mrf.mxu0 }
 0x28d   :  { %2736 = vperm.xlu0 %7020, %v2442_v62  }
 0x29c   :  { %v8845_v16 = vpop.f32.mrf.mxu1 }
 0x29e   :  { %v1898_v19 = vpop.f32.mrf.mxu1 }
 0x29f   :  { %v142_v19 = vld [vmem:[%s13194_s1 + $0x328] sm:$0xff] }
 0x2a0   :  { %v8858_v62 = vpop.f32.mrf.mxu1  ;;  %6923 = vmatprep.mubr.msk.f32.mxu1 %vm329_vm1, %v142_v19  ;;  %6779 = vmatprep.mubr.msk.f32.mxu0 %vm329_vm1, %v142_v19  ;;  %v2587_v19 = vpop.permute.xlu1 %2586 }
 0x2a1   :  { %1935 = vmatmul.mubr.f32.gmra.mxu1 %v141_v22  ;;  %1077 = vmatmul.mubr.f32.gmra.mxu0 %v141_v22 }
 0x2a2   :  { %v1903_v7 = vpop.f32.mrf.mxu1  ;;  %6924 = vmatprep.mubr.msk.f32.mxu1 %vm329_vm1, %v144_v54  ;;  %6780 = vmatprep.mubr.msk.f32.mxu0 %vm329_vm1, %v144_v54 }
 0x2a4   :  { %v2592_v0 = vpop.permute.xlu1 %2591 }
 0x2a5   :  { %v8889_v63 = vsub.f32 %v8595_v14, %v2592_v0  ;;  %v145_v14 = vld [vmem:[%s13194_s1 + $0x340] sm:$0xff] }
 0x2a7   :  { %13416 = vst [vmem:[#allocation85_spill] sm:$0xff] %v8889_v63 }
 0x2a9   :  { %3573 = vadd.xlane.f32.xlu1 %v3572_v21  ;;  %v143_v21 = vld [vmem:[%s13194_s1 + $0x330] sm:$0xff] }
 0x2aa   :  { %1940 = vmatmul.mubr.f32.gmra.mxu1 %v143_v21  ;;  %1082 = vmatmul.mubr.f32.gmra.mxu0 %v143_v21  ;;  %v3421_v21 = vmul.f32 %v8889_v63, %v8889_v63 }
 0x2ac   :  { %3576 = vadd.xlane.f32.xlu0 %v3575_v48  ;;  %v8880_v48 = vpop.f32.mrf.mxu0 }
 0x2ae   :  { %v1025_v7 = vpop.f32.mrf.mxu0 }
 0x2af   :  { %v3581_v7 = vsel %vm1547_vm0, %v3421_v21, 0.0  ;;  %v148_v21 = vld [vmem:[%s13194_s1 + $0x358] sm:$0xff] }
 0x2b0   :  { %v8908_v0 = vpop.f32.mrf.mxu0 }
 0x2ba   :  { %2741 = vperm.xlu1 %7019, %v2443_v35   ;;  %v8886_v35 = vsub.f32 %v8583_v37, %v2587_v19  ;;  %v2445_v19 = vmul.f32 0.020408163, %v8807_v3  ;;  %v2446_v3 = vmul.f32 0.020408163, %v8820_v59 }
 0x2bc   :  { %v3420_v54 = vmul.f32 %v8886_v35, %v8886_v35 }
 0x2be   :  { %v3578_v25 = vsel %vm1547_vm0, %v3420_v54, 0.0  ;;  %v1030_v54 = vpop.f32.mrf.mxu0 }
 0x2bf   :  { %v2602_v54 = vpop.permute.xlu1 %2601 }
 0x2c0   :  { %v8927_v63 = vsub.f32 %v8605_v41, %v2602_v54  ;;  %v149_v41 = vld [vmem:[%s13194_s1 + $0x360] sm:$0xff] }
 0x2c2   :  { %2746 = vperm.xlu0 %7020, %v2444_v33   ;;  %13418 = vst [vmem:[#allocation87_spill] sm:$0xff] %v8927_v63 }
 0x2ce   :  { %v8883_v22 = vpop.f32.mrf.mxu1 }
 0x2d0   :  { %v1908_v51 = vpop.f32.mrf.mxu1 }
 0x2d1   :  { %v146_v51 = vld [vmem:[%s13194_s1 + $0x348] sm:$0xff] }
 0x2d2   :  { %6925 = vmatprep.mubr.msk.f32.mxu1 %vm329_vm1, %v146_v51  ;;  %6781 = vmatprep.mubr.msk.f32.mxu0 %vm329_vm1, %v146_v51  ;;  %v2597_v51 = vpop.permute.xlu0 %2596 }
 0x2d3   :  { %1945 = vmatmul.mubr.f32.gmra.mxu1 %v145_v14  ;;  %1087 = vmatmul.mubr.f32.gmra.mxu0 %v145_v14 }
 0x2d4   :  { %6926 = vmatprep.mubr.msk.f32.mxu1 %vm329_vm1, %v148_v21  ;;  %6782 = vmatprep.mubr.msk.f32.mxu0 %vm329_vm1, %v148_v21 }
 0x2d7   :  { %v8896_v33 = vpop.f32.mrf.mxu1 }
 0x2d9   :  { %v1913_v37 = vpop.f32.mrf.mxu1 }
 0x2de   :  { %3579 = vadd.xlane.f32.xlu1 %v3578_v25  ;;  %v147_v25 = vld [vmem:[%s13194_s1 + $0x350] sm:$0xff] }
 0x2df   :  { %1950 = vmatmul.mubr.f32.gmra.mxu1 %v147_v25  ;;  %1092 = vmatmul.mubr.f32.gmra.mxu0 %v147_v25  ;;  %v3423_v25 = vmul.f32 %v8927_v63, %v8927_v63 }
 0x2e1   :  { %3582 = vadd.xlane.f32.xlu0 %v3581_v7  ;;  %v8918_v7 = vpop.f32.mrf.mxu0 }
 0x2e3   :  { %v1035_v37 = vpop.f32.mrf.mxu0 }
 0x2e5   :  { %v8946_v54 = vpop.f32.mrf.mxu0 }
 0x2ee   :  { %v8921_v14 = vpop.f32.mrf.mxu1 }
 0x2ef   :  { %2751 = vperm.xlu1 %7019, %v2445_v19   ;;  %v8924_v19 = vsub.f32 %v8601_v24, %v2597_v51  ;;  %v3587_v24 = vsel %vm1547_vm0, %v3423_v25, 0.0  ;;  %v2447_v51 = vmul.f32 0.020408163, %v8845_v16  ;;  %v152_v25 = vld [vmem:[%s13194_s1 + $0x378] sm:$0xff]  ;;  %v2448_v16 = vmul.f32 0.020408163, %v8858_v62 }
 0x2f0   :  { %v1918_v42 = vpop.f32.mrf.mxu1 }
 0x2f1   :  { %13417 = vst [vmem:[#allocation86_spill] sm:$0xff] %v8924_v19  ;;  %v3422_v21 = vmul.f32 %v8924_v19, %v8924_v19  ;;  %v150_v42 = vld [vmem:[%s13194_s1 + $0x368] sm:$0xff] }
 0x2f2   :  { %6927 = vmatprep.mubr.msk.f32.mxu1 %vm329_vm1, %v150_v42  ;;  %6783 = vmatprep.mubr.msk.f32.mxu0 %vm329_vm1, %v150_v42  ;;  %v2607_v42 = vpop.permute.xlu0 %2606 }
 0x2f3   :  { %v3584_v59 = vsel %vm1547_vm0, %v3422_v21, 0.0  ;;  %1955 = vmatmul.mubr.f32.gmra.mxu1 %v149_v41  ;;  %1097 = vmatmul.mubr.f32.gmra.mxu0 %v149_v41  ;;  %v1040_v21 = vpop.f32.mrf.mxu0 }
 0x2f4   :  { %6928 = vmatprep.mubr.msk.f32.mxu1 %vm329_vm1, %v152_v25  ;;  %6784 = vmatprep.mubr.msk.f32.mxu0 %vm329_vm1, %v152_v25  ;;  %v2612_v21 = vpop.permute.xlu1 %2611 }
 0x2f5   :  { %v8965_v19 = vsub.f32 %v8615_v45, %v2612_v21  ;;  %v153_v45 = vld [vmem:[%s13194_s1 + $0x380] sm:$0xff] }
 0x2f7   :  { %2756 = vperm.xlu0 %7020, %v2446_v3   ;;  %13420 = vst [vmem:[#allocation89_spill] sm:$0xff] %v8965_v19 }
 0x2ff   :  { %v8934_v3 = vpop.f32.mrf.mxu1 }
 0x301   :  { %v1923_v37 = vpop.f32.mrf.mxu1 }
 0x302   :  { %v8956_v37 = vpop.f32.mrf.mxu0 }
 0x313   :  { %3585 = vadd.xlane.f32.xlu1 %v3584_v59  ;;  %v151_v59 = vld [vmem:[%s13194_s1 + $0x370] sm:$0xff] }
 0x314   :  { %1960 = vmatmul.mubr.f32.gmra.mxu1 %v151_v59  ;;  %1102 = vmatmul.mubr.f32.gmra.mxu0 %v151_v59  ;;  %v3425_v59 = vmul.f32 %v8965_v19, %v8965_v19 }
 0x316   :  { %3588 = vadd.xlane.f32.xlu0 %v3587_v24  ;;  %v1045_v24 = vpop.f32.mrf.mxu0 }
 0x318   :  { %v8984_v21 = vpop.f32.mrf.mxu0 }
 0x324   :  { %2761 = vperm.xlu1 %7019, %v2447_v51   ;;  %v8962_v51 = vsub.f32 %v8609_v61, %v2607_v42  ;;  %v3593_v61 = vsel %vm1547_vm0, %v3425_v59, 0.0  ;;  %v2449_v42 = vmul.f32 0.020408163, %v8883_v22  ;;  %v156_v59 = vld [vmem:[%s13194_s1 + $0x398] sm:$0xff]  ;;  %v2450_v22 = vmul.f32 0.020408163, %v8896_v33 }
 0x325   :  { %v8959_v41 = vpop.f32.mrf.mxu1 }
 0x326   :  { %13419 = vst [vmem:[#allocation88_spill] sm:$0xff] %v8962_v51  ;;  %v3424_v25 = vmul.f32 %v8962_v51, %v8962_v51 }
 0x327   :  { %v1928_v63 = vpop.f32.mrf.mxu1 }
 0x328   :  { %v3590_v62 = vsel %vm1547_vm0, %v3424_v25, 0.0  ;;  %v154_v63 = vld [vmem:[%s13194_s1 + $0x388] sm:$0xff]  ;;  %v1050_v25 = vpop.f32.mrf.mxu0 }
 0x329   :  { %6929 = vmatprep.mubr.msk.f32.mxu1 %vm329_vm1, %v154_v63  ;;  %6785 = vmatprep.mubr.msk.f32.mxu0 %vm329_vm1, %v154_v63  ;;  %v2617_v63 = vpop.permute.xlu0 %2616  ;;  %v2622_v25 = vpop.permute.xlu1 %2621 }
 0x32a   :  { %1965 = vmatmul.mubr.f32.gmra.mxu1 %v153_v45  ;;  %1107 = vmatmul.mubr.f32.gmra.mxu0 %v153_v45  ;;  %v9003_v51 = vsub.f32 %v8623_v43, %v2622_v25  ;;  %v158_v43 = vld [vmem:[%s13194_s1 + $0x3a8] sm:$0xff] }
 0x32b   :  { %6930 = vmatprep.mubr.msk.f32.mxu1 %vm329_vm1, %v156_v59  ;;  %6786 = vmatprep.mubr.msk.f32.mxu0 %vm329_vm1, %v156_v59 }
 0x32c   :  { %2766 = vperm.xlu0 %7020, %v2448_v16   ;;  %13422 = vst [vmem:[#allocation91_spill] sm:$0xff] %v9003_v51 }
 0x335   :  { %v8972_v16 = vpop.f32.mrf.mxu1 }
 0x337   :  { %v1933_v24 = vpop.f32.mrf.mxu1 }
 0x338   :  { %v8994_v24 = vpop.f32.mrf.mxu0 }
 0x348   :  { %3591 = vadd.xlane.f32.xlu1 %v3590_v62  ;;  %v155_v62 = vld [vmem:[%s13194_s1 + $0x390] sm:$0xff] }
 0x349   :  { %1970 = vmatmul.mubr.f32.gmra.mxu1 %v155_v62  ;;  %1112 = vmatmul.mubr.f32.gmra.mxu0 %v155_v62  ;;  %v3427_v62 = vmul.f32 %v9003_v51, %v9003_v51 }
 0x34a   :  { %6931 = vmatprep.mubr.msk.f32.mxu1 %vm329_vm1, %v158_v43  ;;  %6787 = vmatprep.mubr.msk.f32.mxu0 %vm329_vm1, %v158_v43  ;;  %v2627_v43 = vpop.permute.xlu0 %2626 }
 0x34b   :  { %3594 = vadd.xlane.f32.xlu0 %v3593_v61  ;;  %v1055_v61 = vpop.f32.mrf.mxu0 }
 0x34d   :  { %v9022_v25 = vpop.f32.mrf.mxu0 }
 0x359   :  { %2771 = vperm.xlu1 %7019, %v2449_v42   ;;  %v9000_v42 = vsub.f32 %v8619_v47, %v2617_v63  ;;  %v3599_v47 = vsel %vm1547_vm0, %v3427_v62, 0.0  ;;  %v2451_v63 = vmul.f32 0.020408163, %v8921_v14  ;;  %v160_v62 = vld [vmem:[%s13194_s1 + $0x3b8] sm:$0xff]  ;;  %v2452_v14 = vmul.f32 0.020408163, %v8934_v3 }
 0x35b   :  { %13421 = vst [vmem:[#allocation90_spill] sm:$0xff] %v9000_v42  ;;  %v3426_v59 = vmul.f32 %v9000_v42, %v9000_v42 }
 0x35d   :  { %v3596_v33 = vsel %vm1547_vm0, %v3426_v59, 0.0  ;;  %v1060_v59 = vpop.f32.mrf.mxu0 }
 0x35e   :  { %v2632_v59 = vpop.permute.xlu1 %2631 }
 0x35f   :  { %v9041_v42 = vsub.f32 %v8633_v57, %v2632_v59  ;;  %v162_v57 = vld [vmem:[%s13194_s1 + $0x3c8] sm:$0xff] }
 0x361   :  { %2776 = vperm.xlu0 %7020, %v2450_v22   ;;  %v8997_v45 = vpop.f32.mrf.mxu1  ;;  %13424 = vst [vmem:[#allocation93_spill] sm:$0xff] %v9041_v42 }
 0x363   :  { %v1938_v19 = vpop.f32.mrf.mxu1 }
 0x364   :  { %v157_v19 = vld [vmem:[%s13194_s1 + $0x3a0] sm:$0xff] }
 0x365   :  { %1975 = vmatmul.mubr.f32.gmra.mxu1 %v157_v19  ;;  %1117 = vmatmul.mubr.f32.gmra.mxu0 %v157_v19 }
 0x366   :  { %6932 = vmatprep.mubr.msk.f32.mxu1 %vm329_vm1, %v160_v62  ;;  %6788 = vmatprep.mubr.msk.f32.mxu0 %vm329_vm1, %v160_v62 }
 0x36a   :  { %v9010_v22 = vpop.f32.mrf.mxu1 }
 0x36c   :  { %v1943_v61 = vpop.f32.mrf.mxu1 }
 0x36d   :  { %v9032_v61 = vpop.f32.mrf.mxu0 }
 0x37d   :  { %3597 = vadd.xlane.f32.xlu1 %v3596_v33  ;;  %v159_v33 = vld [vmem:[%s13194_s1 + $0x3b0] sm:$0xff] }
 0x37e   :  { %1980 = vmatmul.mubr.f32.gmra.mxu1 %v159_v33  ;;  %1122 = vmatmul.mubr.f32.gmra.mxu0 %v159_v33  ;;  %v3429_v33 = vmul.f32 %v9041_v42, %v9041_v42 }
 0x37f   :  { %6933 = vmatprep.mubr.msk.f32.mxu1 %vm329_vm1, %v162_v57  ;;  %6789 = vmatprep.mubr.msk.f32.mxu0 %vm329_vm1, %v162_v57  ;;  %v2637_v57 = vpop.permute.xlu0 %2636 }
 0x380   :  { %3600 = vadd.xlane.f32.xlu0 %v3599_v47  ;;  %v1065_v47 = vpop.f32.mrf.mxu0 }
 0x382   :  { %v9060_v59 = vpop.f32.mrf.mxu0 }
 0x38e   :  { %2781 = vperm.xlu1 %7019, %v2451_v63   ;;  %v9038_v63 = vsub.f32 %v8629_v6, %v2627_v43  ;;  %v3605_v6 = vsel %vm1547_vm0, %v3429_v33, 0.0  ;;  %v2453_v43 = vmul.f32 0.020408163, %v8959_v41  ;;  %v164_v33 = vld [vmem:[%s13194_s1 + $0x3d8] sm:$0xff]  ;;  %v2454_v41 = vmul.f32 0.020408163, %v8972_v16 }
 0x390   :  { %13423 = vst [vmem:[#allocation92_spill] sm:$0xff] %v9038_v63  ;;  %v3428_v62 = vmul.f32 %v9038_v63, %v9038_v63 }
 0x392   :  { %v3602_v3 = vsel %vm1547_vm0, %v3428_v62, 0.0  ;;  %v1070_v62 = vpop.f32.mrf.mxu0 }
 0x393   :  { %v9035_v19 = vpop.f32.mrf.mxu1  ;;  %v2642_v62 = vpop.permute.xlu1 %2641 }
 0x394   :  { %v9079_v63 = vsub.f32 %v8647_v26, %v2642_v62  ;;  %v166_v26 = vld [vmem:[%s13194_s1 + $0x3e8] sm:$0xff] }
 0x395   :  { %v1948_v51 = vpop.f32.mrf.mxu1 }
 0x396   :  { %2786 = vperm.xlu0 %7020, %v2452_v14   ;;  %v161_v51 = vld [vmem:[%s13194_s1 + $0x3c0] sm:$0xff]  ;;  %13426 = vst [vmem:[#allocation95_spill] sm:$0xff] %v9079_v63 }
 0x397   :  { %1985 = vmatmul.mubr.f32.gmra.mxu1 %v161_v51  ;;  %1127 = vmatmul.mubr.f32.gmra.mxu0 %v161_v51 }
 0x398   :  { %6934 = vmatprep.mubr.msk.f32.mxu1 %vm329_vm1, %v164_v33  ;;  %6790 = vmatprep.mubr.msk.f32.mxu0 %vm329_vm1, %v164_v33 }
 0x39f   :  { %v9048_v14 = vpop.f32.mrf.mxu1 }
 0x3a1   :  { %v1953_v47 = vpop.f32.mrf.mxu1 }
 0x3a2   :  { %v9070_v47 = vpop.f32.mrf.mxu0 }
 0x3b2   :  { %3603 = vadd.xlane.f32.xlu1 %v3602_v3  ;;  %v163_v3 = vld [vmem:[%s13194_s1 + $0x3d0] sm:$0xff] }
 0x3b3   :  { %1990 = vmatmul.mubr.f32.gmra.mxu1 %v163_v3  ;;  %1132 = vmatmul.mubr.f32.gmra.mxu0 %v163_v3  ;;  %v9073_v51 = vpop.f32.mrf.mxu1  ;;  %v3431_v3 = vmul.f32 %v9079_v63, %v9079_v63 }
 0x3b4   :  { %6935 = vmatprep.mubr.msk.f32.mxu1 %vm329_vm1, %v166_v26  ;;  %6791 = vmatprep.mubr.msk.f32.mxu0 %vm329_vm1, %v166_v26  ;;  %v2647_v26 = vpop.permute.xlu0 %2646 }
 0x3b5   :  { %3606 = vadd.xlane.f32.xlu0 %v3605_v6  ;;  %v1075_v6 = vpop.f32.mrf.mxu0  ;;  %v1958_v42 = vpop.f32.mrf.mxu1 }
 0x3b6   :  { %v165_v42 = vld [vmem:[%s13194_s1 + $0x3e0] sm:$0xff] }
 0x3b7   :  { %1995 = vmatmul.mubr.f32.gmra.mxu1 %v165_v42  ;;  %1137 = vmatmul.mubr.f32.gmra.mxu0 %v165_v42  ;;  %v9098_v62 = vpop.f32.mrf.mxu0 }
 0x3c3   :  { %2791 = vperm.xlu1 %7019, %v2453_v43   ;;  %v9076_v43 = vsub.f32 %v8637_v53, %v2637_v57  ;;  %v3611_v53 = vsel %vm1547_vm0, %v3431_v3, 0.0  ;;  %v2455_v57 = vmul.f32 0.020408163, %v8997_v45  ;;  %v168_v3 = vld [vmem:[%s13194_s1 + $0x3f8] sm:$0xff]  ;;  %v2456_v45 = vmul.f32 0.020408163, %v9010_v22 }
 0x3c4   :  { %6936 = vmatprep.mubr.msk.f32.mxu1 %vm329_vm1, %v168_v3  ;;  %6792 = vmatprep.mubr.msk.f32.mxu0 %vm329_vm1, %v168_v3 }
 0x3c5   :  { %13425 = vst [vmem:[#allocation94_spill] sm:$0xff] %v9076_v43  ;;  %v3430_v33 = vmul.f32 %v9076_v43, %v9076_v43 }
 0x3c7   :  { %v3608_v16 = vsel %vm1547_vm0, %v3430_v33, 0.0  ;;  %v1080_v33 = vpop.f32.mrf.mxu0 }
 0x3c8   :  { %v2652_v33 = vpop.permute.xlu1 %2651 }
 0x3c9   :  { %v9117_v43 = vsub.f32 %v8659_v29, %v2652_v33  ;;  %v170_v29 = vld [vmem:[%s13194_s1 + $0x408] sm:$0xff] }
 0x3cb   :  { %2796 = vperm.xlu0 %7020, %v2454_v41   ;;  %13428 = vst [vmem:[#allocation97_spill] sm:$0xff] %v9117_v43 }
 0x3d4   :  { %v9086_v41 = vpop.f32.mrf.mxu1 }
 0x3d6   :  { %v1963_v6 = vpop.f32.mrf.mxu1 }
 0x3d7   :  { %v9108_v6 = vpop.f32.mrf.mxu0 }
 0x3e7   :  { %3609 = vadd.xlane.f32.xlu1 %v3608_v16  ;;  %v167_v16 = vld [vmem:[%s13194_s1 + $0x3f0] sm:$0xff] }
 0x3e8   :  { %2000 = vmatmul.mubr.f32.gmra.mxu1 %v167_v16  ;;  %1142 = vmatmul.mubr.f32.gmra.mxu0 %v167_v16  ;;  %v3433_v16 = vmul.f32 %v9117_v43, %v9117_v43 }
 0x3e9   :  { %6937 = vmatprep.mubr.msk.f32.mxu1 %vm329_vm1, %v170_v29  ;;  %6793 = vmatprep.mubr.msk.f32.mxu0 %vm329_vm1, %v170_v29  ;;  %v2657_v29 = vpop.permute.xlu0 %2656 }
 0x3ea   :  { %3612 = vadd.xlane.f32.xlu0 %v3611_v53  ;;  %v1085_v53 = vpop.f32.mrf.mxu0  ;;  %v9111_v42 = vpop.f32.mrf.mxu1 }
 0x3ec   :  { %v1968_v63 = vpop.f32.mrf.mxu1  ;;  %v9136_v33 = vpop.f32.mrf.mxu0 }
 0x3ed   :  { %v169_v63 = vld [vmem:[%s13194_s1 + $0x400] sm:$0xff]  ;;  %13429 = vst [vmem:[#allocation98_spill] sm:$0xff] %v9136_v33 }
 0x3ee   :  { %2005 = vmatmul.mubr.f32.gmra.mxu1 %v169_v63  ;;  %1147 = vmatmul.mubr.f32.gmra.mxu0 %v169_v63 }
 0x3f8   :  { %2801 = vperm.xlu1 %7019, %v2455_v57   ;;  %v9114_v57 = vsub.f32 %v8655_v2, %v2647_v26  ;;  %v3617_v2 = vsel %vm1547_vm0, %v3433_v16, 0.0  ;;  %v2457_v26 = vmul.f32 0.020408163, %v9035_v19  ;;  %v172_v16 = vld [vmem:[%s13194_s1 + $0x418] sm:$0xff]  ;;  %v2458_v19 = vmul.f32 0.020408163, %v9048_v14 }
 0x3f9   :  { %6938 = vmatprep.mubr.msk.f32.mxu1 %vm329_vm1, %v172_v16  ;;  %6794 = vmatprep.mubr.msk.f32.mxu0 %vm329_vm1, %v172_v16 }
 0x3fa   :  { %13427 = vst [vmem:[#allocation96_spill] sm:$0xff] %v9114_v57  ;;  %v3432_v3 = vmul.f32 %v9114_v57, %v9114_v57 }
 0x3fc   :  { %v3614_v22 = vsel %vm1547_vm0, %v3432_v3, 0.0  ;;  %v1090_v3 = vpop.f32.mrf.mxu0 }
 0x3fd   :  { %v2662_v3 = vpop.permute.xlu1 %2661 }
 0x3fe   :  { %v9155_v57 = vsub.f32 %v8677_v44, %v2662_v3  ;;  %v174_v44 = vld [vmem:[%s13194_s1 + $0x428] sm:$0xff] }
 0x400   :  { %2806 = vperm.xlu0 %7020, %v2456_v45   ;;  %13432 = vst [vmem:[#allocation101_spill] sm:$0xff] %v9155_v57 }
 0x409   :  { %v9124_v45 = vpop.f32.mrf.mxu1 }
 0x40b   :  { %v1973_v53 = vpop.f32.mrf.mxu1 }
 0x40c   :  { %v9146_v53 = vpop.f32.mrf.mxu0 }
 0x40d   :  { %13430 = vst [vmem:[#allocation99_spill] sm:$0xff] %v9146_v53 }
 0x41c   :  { %3615 = vadd.xlane.f32.xlu1 %v3614_v22  ;;  %v171_v22 = vld [vmem:[%s13194_s1 + $0x410] sm:$0xff] }
 0x41d   :  { %2010 = vmatmul.mubr.f32.gmra.mxu1 %v171_v22  ;;  %1152 = vmatmul.mubr.f32.gmra.mxu0 %v171_v22  ;;  %v3435_v22 = vmul.f32 %v9155_v57, %v9155_v57 }
 0x41e   :  { %6939 = vmatprep.mubr.msk.f32.mxu1 %vm329_vm1, %v174_v44  ;;  %6795 = vmatprep.mubr.msk.f32.mxu0 %vm329_vm1, %v174_v44  ;;  %v2667_v44 = vpop.permute.xlu0 %2666 }
 0x41f   :  { %3618 = vadd.xlane.f32.xlu0 %v3617_v2  ;;  %v1095_v2 = vpop.f32.mrf.mxu0 }
 0x421   :  { %v9174_v3 = vpop.f32.mrf.mxu0 }
 0x422   :  { %13433 = vst [vmem:[#allocation102_spill] sm:$0xff] %v9174_v3 }
 0x425   :  { %v9149_v63 = vpop.f32.mrf.mxu1 }
 0x427   :  { %v1978_v43 = vpop.f32.mrf.mxu1 }
 0x428   :  { %v173_v43 = vld [vmem:[%s13194_s1 + $0x420] sm:$0xff] }
 0x429   :  { %2015 = vmatmul.mubr.f32.gmra.mxu1 %v173_v43  ;;  %1157 = vmatmul.mubr.f32.gmra.mxu0 %v173_v43 }
 0x42d   :  { %2811 = vperm.xlu1 %7019, %v2457_v26   ;;  %v9152_v26 = vsub.f32 %v8673_v13, %v2657_v29  ;;  %v3623_v13 = vsel %vm1547_vm0, %v3435_v22, 0.0  ;;  %v2459_v29 = vmul.f32 0.020408163, %v9073_v51  ;;  %v176_v22 = vld [vmem:[%s13194_s1 + $0x438] sm:$0xff]  ;;  %v2460_v51 = vmul.f32 0.020408163, %v9086_v41 }
 0x42e   :  { %6940 = vmatprep.mubr.msk.f32.mxu1 %vm329_vm1, %v176_v22  ;;  %6796 = vmatprep.mubr.msk.f32.mxu0 %vm329_vm1, %v176_v22 }
 0x42f   :  { %13431 = vst [vmem:[#allocation100_spill] sm:$0xff] %v9152_v26  ;;  %v3434_v16 = vmul.f32 %v9152_v26, %v9152_v26 }
 0x431   :  { %v3620_v14 = vsel %vm1547_vm0, %v3434_v16, 0.0  ;;  %v1100_v16 = vpop.f32.mrf.mxu0 }
 0x432   :  { %v2672_v16 = vpop.permute.xlu1 %2671 }
 0x433   :  { %v9193_v26 = vsub.f32 %v8687_v20, %v2672_v16  ;;  %v178_v20 = vld [vmem:[%s13194_s1 + $0x448] sm:$0xff] }
 0x435   :  { %2816 = vperm.xlu0 %7020, %v2458_v19   ;;  %13436 = vst [vmem:[#allocation105_spill] sm:$0xff] %v9193_v26 }
 0x43e   :  { %v9162_v19 = vpop.f32.mrf.mxu1 }
 0x440   :  { %v1983_v2 = vpop.f32.mrf.mxu1 }
 0x441   :  { %v9184_v2 = vpop.f32.mrf.mxu0 }
 0x442   :  { %13434 = vst [vmem:[#allocation103_spill] sm:$0xff] %v9184_v2 }
 0x451   :  { %3621 = vadd.xlane.f32.xlu1 %v3620_v14  ;;  %v175_v14 = vld [vmem:[%s13194_s1 + $0x430] sm:$0xff] }
 0x452   :  { %2020 = vmatmul.mubr.f32.gmra.mxu1 %v175_v14  ;;  %1162 = vmatmul.mubr.f32.gmra.mxu0 %v175_v14  ;;  %v3437_v14 = vmul.f32 %v9193_v26, %v9193_v26 }
 0x453   :  { %6941 = vmatprep.mubr.msk.f32.mxu1 %vm329_vm1, %v178_v20  ;;  %6797 = vmatprep.mubr.msk.f32.mxu0 %vm329_vm1, %v178_v20  ;;  %v2677_v20 = vpop.permute.xlu0 %2676 }
 0x454   :  { %3624 = vadd.xlane.f32.xlu0 %v3623_v13  ;;  %v1105_v13 = vpop.f32.mrf.mxu0 }
 0x456   :  { %v9212_v16 = vpop.f32.mrf.mxu0 }
 0x457   :  { %v9187_v43 = vpop.f32.mrf.mxu1  ;;  %13437 = vst [vmem:[#allocation106_spill] sm:$0xff] %v9212_v16 }
 0x459   :  { %v1988_v57 = vpop.f32.mrf.mxu1 }
 0x45a   :  { %v177_v57 = vld [vmem:[%s13194_s1 + $0x440] sm:$0xff] }
 0x45b   :  { %2025 = vmatmul.mubr.f32.gmra.mxu1 %v177_v57  ;;  %1167 = vmatmul.mubr.f32.gmra.mxu0 %v177_v57 }
 0x462   :  { %2821 = vperm.xlu1 %7019, %v2459_v29   ;;  %v9190_v29 = vsub.f32 %v8681_v23, %v2667_v44  ;;  %v3629_v23 = vsel %vm1547_vm0, %v3437_v14, 0.0  ;;  %v2461_v44 = vmul.f32 0.020408163, %v9111_v42  ;;  %v180_v14 = vld [vmem:[%s13194_s1 + $0x458] sm:$0xff]  ;;  %v2462_v42 = vmul.f32 0.020408163, %v9124_v45 }
 0x463   :  { %6942 = vmatprep.mubr.msk.f32.mxu1 %vm329_vm1, %v180_v14  ;;  %6798 = vmatprep.mubr.msk.f32.mxu0 %vm329_vm1, %v180_v14 }
 0x464   :  { %13435 = vst [vmem:[#allocation104_spill] sm:$0xff] %v9190_v29  ;;  %v3436_v22 = vmul.f32 %v9190_v29, %v9190_v29 }
 0x466   :  { %v3626_v41 = vsel %vm1547_vm0, %v3436_v22, 0.0  ;;  %v1110_v22 = vpop.f32.mrf.mxu0 }
 0x467   :  { %v2682_v22 = vpop.permute.xlu1 %2681 }
 0x468   :  { %v9231_v29 = vsub.f32 %v8695_v4, %v2682_v22  ;;  %v182_v4 = vld [vmem:[%s13194_s1 + $0x468] sm:$0xff] }
 0x46a   :  { %2826 = vperm.xlu0 %7020, %v2460_v51   ;;  %13440 = vst [vmem:[#allocation109_spill] sm:$0xff] %v9231_v29 }
 0x473   :  { %v9200_v51 = vpop.f32.mrf.mxu1 }
 0x475   :  { %v1993_v13 = vpop.f32.mrf.mxu1 }
 0x476   :  { %v9222_v13 = vpop.f32.mrf.mxu0 }
 0x477   :  { %13438 = vst [vmem:[#allocation107_spill] sm:$0xff] %v9222_v13  ;;  %v9225_v57 = vpop.f32.mrf.mxu1 }
 0x479   :  { %v1998_v26 = vpop.f32.mrf.mxu1 }
 0x47a   :  { %v181_v26 = vld [vmem:[%s13194_s1 + $0x460] sm:$0xff] }
 0x486   :  { %3627 = vadd.xlane.f32.xlu1 %v3626_v41  ;;  %v179_v41 = vld [vmem:[%s13194_s1 + $0x450] sm:$0xff] }
 0x487   :  { %2030 = vmatmul.mubr.f32.gmra.mxu1 %v179_v41  ;;  %1172 = vmatmul.mubr.f32.gmra.mxu0 %v179_v41  ;;  %v3439_v41 = vmul.f32 %v9231_v29, %v9231_v29 }
 0x488   :  { %6943 = vmatprep.mubr.msk.f32.mxu1 %vm329_vm1, %v182_v4  ;;  %6799 = vmatprep.mubr.msk.f32.mxu0 %vm329_vm1, %v182_v4  ;;  %v2687_v4 = vpop.permute.xlu0 %2686 }
 0x489   :  { %3630 = vadd.xlane.f32.xlu0 %v3629_v23  ;;  %v1115_v23 = vpop.f32.mrf.mxu0 }
 0x48b   :  { %2035 = vmatmul.mubr.f32.gmra.mxu1 %v181_v26  ;;  %1177 = vmatmul.mubr.f32.gmra.mxu0 %v181_v26  ;;  %v9250_v22 = vpop.f32.mrf.mxu0 }
 0x48c   :  { %13441 = vst [vmem:[#allocation110_spill] sm:$0xff] %v9250_v22 }
 0x497   :  { %2831 = vperm.xlu1 %7019, %v2461_v44   ;;  %v9228_v44 = vsub.f32 %v8691_v18, %v2677_v20  ;;  %v3635_v18 = vsel %vm1547_vm0, %v3439_v41, 0.0  ;;  %v2463_v20 = vmul.f32 0.020408163, %v9149_v63  ;;  %v184_v41 = vld [vmem:[%s13194_s1 + $0x478] sm:$0xff]  ;;  %v2464_v63 = vmul.f32 0.020408163, %v9162_v19 }
 0x498   :  { %6944 = vmatprep.mubr.msk.f32.mxu1 %vm329_vm1, %v184_v41  ;;  %6800 = vmatprep.mubr.msk.f32.mxu0 %vm329_vm1, %v184_v41 }
 0x499   :  { %13439 = vst [vmem:[#allocation108_spill] sm:$0xff] %v9228_v44  ;;  %v3438_v14 = vmul.f32 %v9228_v44, %v9228_v44 }
 0x49b   :  { %v3632_v45 = vsel %vm1547_vm0, %v3438_v14, 0.0  ;;  %v1120_v14 = vpop.f32.mrf.mxu0 }
 0x49c   :  { %v2692_v14 = vpop.permute.xlu1 %2691 }
 0x49d   :  { %v9269_v44 = vsub.f32 %v8705_v11, %v2692_v14  ;;  %v186_v11 = vld [vmem:[%s13194_s1 + $0x488] sm:$0xff] }
 0x49f   :  { %2836 = vperm.xlu0 %7020, %v2462_v42   ;;  %13444 = vst [vmem:[#allocation113_spill] sm:$0xff] %v9269_v44 }
 0x4a8   :  { %v9238_v42 = vpop.f32.mrf.mxu1 }
 0x4aa   :  { %v2003_v23 = vpop.f32.mrf.mxu1 }
 0x4ab   :  { %v9260_v23 = vpop.f32.mrf.mxu0 }
 0x4ac   :  { %13442 = vst [vmem:[#allocation111_spill] sm:$0xff] %v9260_v23 }
 0x4ae   :  { %v9263_v26 = vpop.f32.mrf.mxu1 }
 0x4b0   :  { %v2008_v29 = vpop.f32.mrf.mxu1 }
 0x4b1   :  { %v185_v29 = vld [vmem:[%s13194_s1 + $0x480] sm:$0xff] }
 0x4bb   :  { %3633 = vadd.xlane.f32.xlu1 %v3632_v45  ;;  %v183_v45 = vld [vmem:[%s13194_s1 + $0x470] sm:$0xff] }
 0x4bc   :  { %2040 = vmatmul.mubr.f32.gmra.mxu1 %v183_v45  ;;  %1182 = vmatmul.mubr.f32.gmra.mxu0 %v183_v45  ;;  %v3441_v45 = vmul.f32 %v9269_v44, %v9269_v44 }
 0x4bd   :  { %6945 = vmatprep.mubr.msk.f32.mxu1 %vm329_vm1, %v186_v11  ;;  %6801 = vmatprep.mubr.msk.f32.mxu0 %vm329_vm1, %v186_v11  ;;  %v187_v11 = vld [vmem:[%s13194_s1 + $0x490] sm:$0xff] }
 0x4be   :  { %3636 = vadd.xlane.f32.xlu0 %v3635_v18  ;;  %v1125_v18 = vpop.f32.mrf.mxu0 }
 0x4c0   :  { %2045 = vmatmul.mubr.f32.gmra.mxu1 %v185_v29  ;;  %1187 = vmatmul.mubr.f32.gmra.mxu0 %v185_v29  ;;  %v9288_v14 = vpop.f32.mrf.mxu0 }
 0x4c1   :  { %13445 = vst [vmem:[#allocation114_spill] sm:$0xff] %v9288_v14 }
 0x4cc   :  { %2841 = vperm.xlu1 %7019, %v2463_v20   ;;  %v9266_v20 = vsub.f32 %v8701_v17, %v2687_v4  ;;  %v3641_v17 = vsel %vm1547_vm0, %v3441_v45, 0.0  ;;  %v2465_v4 = vmul.f32 0.020408163, %v9187_v43  ;;  %v2697_v43 = vpop.permute.xlu0 %2696 }
 0x4ce   :  { %13443 = vst [vmem:[#allocation112_spill] sm:$0xff] %v9266_v20  ;;  %v3440_v41 = vmul.f32 %v9266_v20, %v9266_v20 }
 0x4d0   :  { %v3638_v19 = vsel %vm1547_vm0, %v3440_v41, 0.0  ;;  %v1130_v41 = vpop.f32.mrf.mxu0 }
 0x4d2   :  { %v9290_v45 = vpop.f32.mrf.mxu0 }
 0x4d3   :  { %13446 = vst [vmem:[#allocation115_spill] sm:$0xff] %v9290_v45 }
 0x4d4   :  { %2846 = vperm.xlu0 %7020, %v2464_v63  }
 0x4dd   :  { %v9276_v63 = vpop.f32.mrf.mxu1 }
 0x4df   :  { %v2013_v18 = vpop.f32.mrf.mxu1 }
 0x4e0   :  { %v188_v18 = vld [vmem:[%s13194_s1 + $0x498] sm:$0xff] }
 0x4e1   :  { %6946 = vmatprep.mubr.msk.f32.mxu1 %vm329_vm1, %v188_v18  ;;  %6802 = vmatprep.mubr.msk.f32.mxu0 %vm329_vm1, %v188_v18 }
 0x4e2   :  { %2050 = vmatmul.mubr.f32.gmra.mxu1 %v187_v11  ;;  %1192 = vmatmul.mubr.f32.gmra.mxu0 %v187_v11 }
 0x4e9   :  { %v9301_v29 = vpop.f32.mrf.mxu1 }
 0x4eb   :  { %v2018_v41 = vpop.f32.mrf.mxu1 }
 0x4f0   :  { %3639 = vadd.xlane.f32.xlu1 %v3638_v19  ;;  %v2466_v19 = vmul.f32 0.020408163, %v9200_v51  ;;  %v9304_v51 = vsub.f32 %v8709_v10, %v2697_v43  ;;  %v2467_v43 = vmul.f32 0.020408163, %v9225_v57  ;;  %v2468_v57 = vmul.f32 0.020408163, %v9238_v42 }
 0x4f2   :  { %13447 = vst [vmem:[#allocation116_spill] sm:$0xff] %v9304_v51  ;;  %v3442_v44 = vmul.f32 %v9304_v51, %v9304_v51 }
 0x4f3   :  { %3642 = vadd.xlane.f32.xlu0 %v3641_v17  ;;  %v1135_v17 = vpop.f32.mrf.mxu0 }
 0x4f4   :  { %v3644_v11 = vsel %vm1547_vm0, %v3442_v44, 0.0  ;;  %v189_v44 = vld [vmem:[%s13194_s1 + $0x4a0] sm:$0xff] }
 0x4f5   :  { %v9318_v41 = vpop.f32.mrf.mxu0 }
 0x4f6   :  { %13449 = vst [vmem:[#allocation118_spill] sm:$0xff] %v9318_v41 }
 0x501   :  { %2851 = vperm.xlu1 %7019, %v2465_v4   ;;  %v2702_v4 = vpop.permute.xlu1 %2701 }
 0x502   :  { %v9307_v17 = vsub.f32 %v8715_v15, %v2702_v4  ;;  %v1140_v15 = vpop.f32.mrf.mxu0  ;;  %v190_v4 = vld [vmem:[%s13194_s1 + $0x4a8] sm:$0xff] }
 0x503   :  { %6947 = vmatprep.mubr.msk.f32.mxu1 %vm329_vm1, %v190_v4  ;;  %6803 = vmatprep.mubr.msk.f32.mxu0 %vm329_vm1, %v190_v4 }
 0x504   :  { %13448 = vst [vmem:[#allocation117_spill] sm:$0xff] %v9307_v17  ;;  %v3443_v18 = vmul.f32 %v9307_v17, %v9307_v17  ;;  %2055 = vmatmul.mubr.f32.gmra.mxu1 %v189_v44  ;;  %1197 = vmatmul.mubr.f32.gmra.mxu0 %v189_v44 }
 0x505   :  { %v2712_v4 = vpop.permute.xlu1 %2711 }
 0x506   :  { %v3647_v10 = vsel %vm1547_vm0, %v3443_v18, 0.0 }
 0x509   :  { %2856 = vperm.xlu0 %7020, %v2466_v19  }
 0x512   :  { %v9314_v19 = vpop.f32.mrf.mxu1 }
 0x514   :  { %v2023_v20 = vpop.f32.mrf.mxu1 }
 0x515   :  { %v9328_v20 = vpop.f32.mrf.mxu0 }
 0x516   :  { %13450 = vst [vmem:[#allocation119_spill] sm:$0xff] %v9328_v20 }
 0x517   :  { %v1145_v18 = vpop.f32.mrf.mxu0 }
 0x518   :  { %v9345_v18 = vsub.f32 %v8733_v50, %v2712_v4 }
 0x51a   :  { %13452 = vst [vmem:[#allocation121_spill] sm:$0xff] %v9345_v18 }
 0x51b   :  { %v9339_v15 = vpop.f32.mrf.mxu1 }
 0x51d   :  { %v2028_v44 = vpop.f32.mrf.mxu1 }
 0x51e   :  { %v9356_v44 = vpop.f32.mrf.mxu0 }
 0x51f   :  { %13453 = vst [vmem:[#allocation122_spill] sm:$0xff] %v9356_v44 }
 0x520   :  { %v1150_v50 = vpop.f32.mrf.mxu0 }
 0x522   :  { %v9358_v4 = vpop.f32.mrf.mxu0 }
 0x523   :  { %13454 = vst [vmem:[#allocation123_spill] sm:$0xff] %v9358_v4 }
 0x525   :  { %3645 = vadd.xlane.f32.xlu1 %v3644_v11  ;;  %v192_v11 = vld [vmem:[%s13194_s1 + $0x4b8] sm:$0xff] }
 0x526   :  { %6948 = vmatprep.mubr.msk.f32.mxu1 %vm329_vm1, %v192_v11  ;;  %6804 = vmatprep.mubr.msk.f32.mxu0 %vm329_vm1, %v192_v11  ;;  %v3445_v11 = vmul.f32 %v9345_v18, %v9345_v18  ;;  %v194_v18 = vld [vmem:[%s13194_s1 + $0x4c8] sm:$0xff] }
 0x528   :  { %3648 = vadd.xlane.f32.xlu0 %v3647_v10  ;;  %v191_v10 = vld [vmem:[%s13194_s1 + $0x4b0] sm:$0xff] }
 0x529   :  { %2060 = vmatmul.mubr.f32.gmra.mxu1 %v191_v10  ;;  %1202 = vmatmul.mubr.f32.gmra.mxu0 %v191_v10 }
 0x52a   :  { %6949 = vmatprep.mubr.msk.f32.mxu1 %vm329_vm1, %v194_v18  ;;  %6805 = vmatprep.mubr.msk.f32.mxu0 %vm329_vm1, %v194_v18 }
 0x536   :  { %2861 = vperm.xlu1 %7019, %v2467_v43   ;;  %v2707_v43 = vpop.permute.xlu0 %2706 }
 0x537   :  { %v9342_v42 = vsub.f32 %v8719_v5, %v2707_v43  ;;  %v3653_v5 = vsel %vm1547_vm0, %v3445_v11, 0.0  ;;  %v2469_v43 = vmul.f32 0.020408163, %v9263_v26  ;;  %v1155_v26 = vpop.f32.mrf.mxu0  ;;  %v196_v11 = vld [vmem:[%s13194_s1 + $0x4d8] sm:$0xff] }
 0x539   :  { %13451 = vst [vmem:[#allocation120_spill] sm:$0xff] %v9342_v42  ;;  %v3444_v17 = vmul.f32 %v9342_v42, %v9342_v42 }
 0x53a   :  { %v2717_v18 = vpop.permute.xlu0 %2716 }
 0x53e   :  { %2866 = vperm.xlu0 %7020, %v2468_v57   ;;  %v3650_v57 = vsel %vm1547_vm0, %v3444_v17, 0.0  ;;  %v2470_v17 = vmul.f32 0.020408163, %v9276_v63  ;;  %v195_v63 = vld [vmem:[%s13194_s1 + $0x4d0] sm:$0xff] }
 0x547   :  { %v9352_v10 = vpop.f32.mrf.mxu1 }
 0x549   :  { %v2033_v51 = vpop.f32.mrf.mxu1 }
 0x54a   :  { %v193_v51 = vld [vmem:[%s13194_s1 + $0x4c0] sm:$0xff] }
 0x54b   :  { %2065 = vmatmul.mubr.f32.gmra.mxu1 %v193_v51  ;;  %1207 = vmatmul.mubr.f32.gmra.mxu0 %v193_v51 }
 0x54c   :  { %6950 = vmatprep.mubr.msk.f32.mxu1 %vm329_vm1, %v196_v11  ;;  %6806 = vmatprep.mubr.msk.f32.mxu0 %vm329_vm1, %v196_v11 }
 0x54f   :  { %2070 = vmatmul.mubr.f32.gmra.mxu1 %v195_v63  ;;  %1212 = vmatmul.mubr.f32.gmra.mxu0 %v195_v63 }
 0x55a   :  { %3651 = vadd.xlane.f32.xlu1 %v3650_v57  ;;  %v9377_v57 = vpop.xlane.xlu1 %3558 }
 0x55d   :  { %3654 = vadd.xlane.f32.xlu0 %v3653_v5  ;;  %v9379_v5 = vpop.f32.mrf.mxu1 }
 0x55e   :  { %v2722_v50 = vpop.permute.xlu1 %2721 }
 0x55f   :  { %v2038_v51 = vpop.f32.mrf.mxu1  ;;  %v9385_v26 = vsub.f32 %v8795_v60, %v2722_v50 }
 0x560   :  { %v9396_v51 = vpop.f32.mrf.mxu0 }
 0x561   :  { %13456 = vst [vmem:[#allocation125_spill] sm:$0xff] %v9385_v26  ;;  %v3447_v11 = vmul.f32 %v9385_v26, %v9385_v26  ;;  %13457 = vst [vmem:[#allocation126_spill] sm:$0xff] %v9396_v51 }
 0x562   :  { %v1160_v60 = vpop.f32.mrf.mxu0 }
 0x564   :  { %v9398_v50 = vpop.f32.mrf.mxu0 }
 0x565   :  { %13458 = vst [vmem:[#allocation127_spill] sm:$0xff] %v9398_v50 }
 0x566   :  { %v1165_v26 = vpop.f32.mrf.mxu0 }
 0x567   :  { %v199_v26 = vld [vmem:[%s13194_s1 + $0x4f0] sm:$0xff] }
 0x56b   :  { %2871 = vperm.xlu1 %7019, %v2469_v43   ;;  %v9382_v43 = vsub.f32 %v8737_v46, %v2717_v18  ;;  %v3659_v46 = vsel %vm1547_vm0, %v3447_v11, 0.0  ;;  %v2471_v18 = vmul.f32 0.020408163, %v9301_v29  ;;  %v9409_v29 = vpop.xlane.xlu0 %3561 }
 0x56c   :  { %v3990_v41 = vmul.f32 0.020408163, %v9409_v29 }
 0x56d   :  { %13455 = vst [vmem:[#allocation124_spill] sm:$0xff] %v9382_v43 }
 0x56f   :  { %v9419_v11 = vpop.xlane.xlu0 %3564 }
 0x573   :  { %2876 = vperm.xlu0 %7020, %v2470_v17   ;;  %v3446_v17 = vmul.f32 %v9382_v43, %v9382_v43  ;;  %v2472_v43 = vmul.f32 0.020408163, %v9314_v19  ;;  %v200_v19 = vld [vmem:[%s13194_s1 + $0x4f8] sm:$0xff] }
 0x575   :  { %v3656_v63 = vsel %vm1547_vm0, %v3446_v17, 0.0  ;;  %v198_v17 = vld [vmem:[%s13194_s1 + $0x4e8] sm:$0xff] }
 0x576   :  { %6951 = vmatprep.mubr.msk.f32.mxu1 %vm329_vm1, %v198_v17  ;;  %6807 = vmatprep.mubr.msk.f32.mxu0 %vm329_vm1, %v198_v17 }
 0x57c   :  { %v9392_v42 = vpop.f32.mrf.mxu1 }
 0x57e   :  { %v2043_v4 = vpop.f32.mrf.mxu1 }
 0x57f   :  { %v197_v4 = vld [vmem:[%s13194_s1 + $0x4e0] sm:$0xff] }
 0x580   :  { %2075 = vmatmul.mubr.f32.gmra.mxu1 %v197_v4  ;;  %1217 = vmatmul.mubr.f32.gmra.mxu0 %v197_v4 }
 0x581   :  { %6952 = vmatprep.mubr.msk.f32.mxu1 %vm329_vm1, %v200_v19  ;;  %6808 = vmatprep.mubr.msk.f32.mxu0 %vm329_vm1, %v200_v19 }
 0x584   :  { %2080 = vmatmul.mubr.f32.gmra.mxu1 %v199_v26  ;;  %1222 = vmatmul.mubr.f32.gmra.mxu0 %v199_v26 }
 0x58f   :  { %3657 = vadd.xlane.f32.xlu1 %v3656_v63  ;;  %v2727_v63 = vpop.permute.xlu0 %2726 }
 0x592   :  { %3660 = vadd.xlane.f32.xlu0 %v3659_v46  ;;  %v9423_v46 = vpop.f32.mrf.mxu1 }
 0x594   :  { %v2048_v17 = vpop.f32.mrf.mxu1 }
 0x595   :  { %v9440_v17 = vpop.f32.mrf.mxu0 }
 0x596   :  { %13461 = vst [vmem:[#allocation130_spill] sm:$0xff] %v9440_v17 }
 0x5a0   :  { %2881 = vperm.xlu1 %7019, %v2471_v18   ;;  %v9426_v18 = vsub.f32 %v8805_v12, %v2727_v63  ;;  %v2473_v63 = vmul.f32 0.020408163, %v9339_v15  ;;  %v9453_v15 = vpop.xlane.xlu0 %3570 }
 0x5a2   :  { %13459 = vst [vmem:[#allocation128_spill] sm:$0xff] %v9426_v18  ;;  %v3448_v19 = vmul.f32 %v9426_v18, %v9426_v18  ;;  %v9437_v44 = vpop.f32.mrf.mxu1  ;;  %v2474_v18 = vmul.f32 0.020408163, %v9352_v10  ;;  %v204_v10 = vld [vmem:[%s13194_s1 + $0x518] sm:$0xff] }
 0x5a4   :  { %v3662_v50 = vsel %vm1547_vm0, %v3448_v19, 0.0  ;;  %v2053_v12 = vpop.f32.mrf.mxu1 }
 0x5a8   :  { %2886 = vperm.xlu0 %7020, %v2472_v43   ;;  %v9421_v43 = vpop.xlane.xlu1 %3567 }
 0x5ac   :  { %v2732_v60 = vpop.permute.xlu1 %2731 }
 0x5ad   :  { %v9429_v4 = vsub.f32 %v8832_v9, %v2732_v60  ;;  %v1170_v9 = vpop.f32.mrf.mxu0 }
 0x5af   :  { %13460 = vst [vmem:[#allocation129_spill] sm:$0xff] %v9429_v4  ;;  %v3449_v26 = vmul.f32 %v9429_v4, %v9429_v4  ;;  %v9442_v60 = vpop.f32.mrf.mxu0 }
 0x5b0   :  { %13462 = vst [vmem:[#allocation131_spill] sm:$0xff] %v9442_v60  ;;  %v9455_v19 = vpop.xlane.xlu1 %3573 }
 0x5b1   :  { %v3665_v51 = vsel %vm1547_vm0, %v3449_v26, 0.0  ;;  %v1175_v4 = vpop.f32.mrf.mxu0 }
 0x5b2   :  { %v203_v4 = vld [vmem:[%s13194_s1 + $0x510] sm:$0xff] }
 0x5b3   :  { %v9483_v17 = vpop.f32.mrf.mxu0 }
 0x5b4   :  { %v2742_v12 = vpop.permute.xlu1 %2741  ;;  %13465 = vst [vmem:[#allocation134_spill] sm:$0xff] %v9483_v17 }
 0x5c4   :  { %3663 = vadd.xlane.f32.xlu1 %v3662_v50  ;;  %v202_v50 = vld [vmem:[%s13194_s1 + $0x508] sm:$0xff] }
 0x5c5   :  { %6953 = vmatprep.mubr.msk.f32.mxu1 %vm329_vm1, %v202_v50  ;;  %6809 = vmatprep.mubr.msk.f32.mxu0 %vm329_vm1, %v202_v50 }
 0x5c7   :  { %3666 = vadd.xlane.f32.xlu0 %v3665_v51  ;;  %v201_v51 = vld [vmem:[%s13194_s1 + $0x500] sm:$0xff] }
 0x5c8   :  { %2085 = vmatmul.mubr.f32.gmra.mxu1 %v201_v51  ;;  %1227 = vmatmul.mubr.f32.gmra.mxu0 %v201_v51  ;;  %v9475_v51 = vpop.f32.mrf.mxu1 }
 0x5c9   :  { %6954 = vmatprep.mubr.msk.f32.mxu1 %vm329_vm1, %v204_v10  ;;  %6810 = vmatprep.mubr.msk.f32.mxu0 %vm329_vm1, %v204_v10 }
 0x5cc   :  { %2090 = vmatmul.mubr.f32.gmra.mxu1 %v203_v4  ;;  %1232 = vmatmul.mubr.f32.gmra.mxu0 %v203_v4  ;;  %v2058_v4 = vpop.f32.mrf.mxu1 }
 0x5d5   :  { %2891 = vperm.xlu1 %7019, %v2473_v63   ;;  %v9469_v63 = vsub.f32 %v8870_v52, %v2742_v12 }
 0x5d7   :  { %13464 = vst [vmem:[#allocation133_spill] sm:$0xff] %v9469_v63  ;;  %v3451_v50 = vmul.f32 %v9469_v63, %v9469_v63  ;;  %v1180_v63 = vpop.f32.mrf.mxu0 }
 0x5d8   :  { %v9497_v63 = vpop.xlane.xlu1 %3579 }
 0x5d9   :  { %v3671_v60 = vsel %vm1547_vm0, %v3451_v50, 0.0  ;;  %v2476_v50 = vmul.f32 0.020408163, %v9392_v42  ;;  %v205_v42 = vld [vmem:[%s13194_s1 + $0x520] sm:$0xff] }
 0x5dd   :  { %2896 = vperm.xlu0 %7020, %v2474_v18   ;;  %v2737_v18 = vpop.permute.xlu0 %2736 }
 0x5de   :  { %v9466_v26 = vsub.f32 %v8842_v1, %v2737_v18  ;;  %v3989_v1 = vmul.f32 0.020408163, %v9377_v57 }
 0x5e0   :  { %13463 = vst [vmem:[#allocation132_spill] sm:$0xff] %v9466_v26  ;;  %v3450_v9 = vmul.f32 %v9466_v26, %v9466_v26  ;;  %v4133_v18 = vadd.f32 1e-05, %v3989_v1  ;;  %v2475_v26 = vmul.f32 0.020408163, %v9379_v5  ;;  %v4421_v1 = vld [vmem:[%s13195_s2] sm:$0xff] }
 0x5e1   :  { %v9485_v20 = vpop.xlane.xlu0 %3576 }
 0x5e2   :  { %v3668_v10 = vsel %vm1547_vm0, %v3450_v9, 0.0  ;;  %7021 = vrsqrt.f32 %v4133_v18 }
 0x5e5   :  { %v2747_v9 = vpop.permute.xlu0 %2746 }
 0x5e9   :  { %v9480_v52 = vpop.f32.mrf.mxu1  ;;  %v9490_v4 = vpop.xlane.xlu0 %3582 }
 0x5eb   :  { %v2063_v12 = vpop.f32.mrf.mxu1 }
 0x5ed   :  { %v9495_v18 = vpop.permute.xlu0 %2756 }
 0x5f1   :  { %v9507_v12 = vpop.xlane.xlu0 %3588 }
 0x5f9   :  { %3669 = vadd.xlane.f32.xlu1 %v3668_v10  ;;  %v9487_v10 = vpop.f32.mrf.mxu0 }
 0x5fa   :  { %13466 = vst [vmem:[#allocation135_spill] sm:$0xff] %v9487_v10  ;;  %v207_v10 = vld [vmem:[%s13194_s1 + $0x530] sm:$0xff] }
 0x5fb   :  { %v1185_v57 = vpop.f32.mrf.mxu0 }
 0x5fc   :  { %3672 = vadd.xlane.f32.xlu0 %v3671_v60  ;;  %v7022_v60 = vpop.eup %7021  ;;  %v9509_v57 = vpop.permute.xlu0 %2766 }
 0x5fd   :  { %v4565_v5 = vmul.f32 %v7022_v60, %v4421_v1  ;;  %v9563_v3 = vpop.f32.mrf.mxu0 }
 0x5fe   :  { %13473 = vst [vmem:[#allocation142_spill] sm:$0xff] %v9563_v3 }
 0x600   :  { %v9513_v1 = vpop.xlane.xlu0 %3594 }
 0x60a   :  { %2901 = vperm.xlu1 %7019, %v2475_v26   ;;  %v206_v26 = vld [vmem:[%s13194_s1 + $0x528] sm:$0xff] }
 0x60b   :  { %6955 = vmatprep.mubr.msk.f32.mxu1 %vm329_vm1, %v206_v26  ;;  %6811 = vmatprep.mubr.msk.f32.mxu0 %vm329_vm1, %v206_v26  ;;  %v9524_v26 = vsub.f32 %v8880_v48, %v2747_v9  ;;  %v4134_v48 = vadd.f32 1e-05, %v3990_v41  ;;  %v9547_v13 = vpop.f32.mrf.mxu1 }
 0x60c   :  { %2095 = vmatmul.mubr.f32.gmra.mxu1 %v205_v42  ;;  %1237 = vmatmul.mubr.f32.gmra.mxu0 %v205_v42  ;;  %v9526_v42 = vpop.permute.xlu0 %2776 }
 0x60d   :  { %13467 = vst [vmem:[#allocation136_spill] sm:$0xff] %v9524_v26  ;;  %v3452_v45 = vmul.f32 %v9524_v26, %v9524_v26  ;;  %7023 = vrsqrt.f32 %v4134_v48  ;;  %v2068_v16 = vpop.f32.mrf.mxu1 }
 0x60e   :  { %v1190_v16 = vpop.f32.mrf.mxu0 }
 0x60f   :  { %v3674_v22 = vsel %vm1547_vm0, %v3452_v45, 0.0  ;;  %v2478_v16 = vmul.f32 0.020408163, %v9437_v44 }
 0x610   :  { %v9533_v14 = vpop.xlane.xlu0 %3600 }
 0x611   :  { %13468 = vst [vmem:[#allocation137_spill] sm:$0xff] %v9533_v14 }
 0x612   :  { %2906 = vperm.xlu0 %7020, %v2476_v50   ;;  %v2752_v50 = vpop.permute.xlu1 %2751 }
 0x614   :  { %v9540_v9 = vpop.permute.xlu0 %2786 }
 0x616   :  { %4711 = vperm.xlu0 %7020, %v4565_v5   ;;  %v9511_v60 = vpop.xlane.xlu1 %3585  ;;  %v208_v5 = vld [vmem:[%s13194_s1 + $0x538] sm:$0xff] }
 0x617   :  { %6956 = vmatprep.mubr.msk.f32.mxu1 %vm329_vm1, %v208_v5  ;;  %6812 = vmatprep.mubr.msk.f32.mxu0 %vm329_vm1, %v208_v5  ;;  %v9538_v5 = vsub.f32 %v8908_v0, %v2752_v50  ;;  %v9560_v50 = vpop.f32.mrf.mxu1 }
 0x618   :  { %2100 = vmatmul.mubr.f32.gmra.mxu1 %v207_v10  ;;  %1242 = vmatmul.mubr.f32.gmra.mxu0 %v207_v10  ;;  %v9549_v26 = vpop.xlane.xlu0 %3606 }
 0x619   :  { %13469 = vst [vmem:[#allocation138_spill] sm:$0xff] %v9538_v5  ;;  %v3453_v10 = vmul.f32 %v9538_v5, %v9538_v5  ;;  %13470 = vst [vmem:[#allocation139_spill] sm:$0xff] %v9549_v26  ;;  %v2477_v5 = vmul.f32 0.020408163, %v9423_v46  ;;  %v2073_v48 = vpop.f32.mrf.mxu1 }
 0x61a   :  { %v9528_v17 = vpop.permute.xlu1 %2761  ;;  %v7024_v53 = vpop.eup %7023 }
 0x61b   :  { %v3677_v0 = vsel %vm1547_vm0, %v3453_v10, 0.0  ;;  %v4422_v10 = vld [vmem:[%s13195_s2 + $0x8] sm:$0xff]  ;;  %v9578_v48 = vpop.f32.mrf.mxu0 }
 0x61c   :  { %v9554_v41 = vpop.permute.xlu0 %2796  ;;  %13476 = vst [vmem:[#allocation145_spill] sm:$0xff] %v9578_v48 }
 0x61e   :  { %v9535_v23 = vpop.xlane.xlu1 %3591 }
 0x620   :  { %v9556_v45 = vpop.xlane.xlu0 %3612 }
 0x621   :  { %13472 = vst [vmem:[#allocation141_spill] sm:$0xff] %v9556_v45  ;;  %v4566_v45 = vmul.f32 %v7024_v53, %v4422_v10  ;;  %v209_v53 = vld [vmem:[%s13194_s1 + $0x540] sm:$0xff] }
 0x622   :  { %v9545_v29 = vpop.permute.xlu1 %2771 }
 0x624   :  { %v9565_v26 = vpop.permute.xlu0 %2806 }
 0x626   :  { %v9551_v2 = vpop.xlane.xlu1 %3597 }
 0x627   :  { %13471 = vst [vmem:[#allocation140_spill] sm:$0xff] %v9551_v2 }
 0x62e   :  { %3675 = vadd.xlane.f32.xlu1 %v3674_v22  ;;  %v9558_v22 = vpop.permute.xlu1 %2781 }
 0x632   :  { %v9567_v14 = vpop.xlane.xlu1 %3603 }
 0x633   :  { %13474 = vst [vmem:[#allocation143_spill] sm:$0xff] %v9567_v14  ;;  %v1195_v14 = vpop.f32.mrf.mxu0 }
 0x635   :  { %3678 = vadd.xlane.f32.xlu0 %v3677_v0  ;;  %v9572_v0 = vpop.xlane.xlu0 %3618 }
 0x636   :  { %13475 = vst [vmem:[#allocation144_spill] sm:$0xff] %v9572_v0  ;;  %v9574_v2 = vpop.permute.xlu1 %2791 }
 0x639   :  { %v9576_v46 = vpop.permute.xlu0 %2816 }
 0x63a   :  { %v9581_v3 = vpop.xlane.xlu1 %3609 }
 0x63b   :  { %13477 = vst [vmem:[#allocation146_spill] sm:$0xff] %v9581_v3 }
 0x63d   :  { %v9583_v33 = vpop.xlane.xlu0 %3624 }
 0x63e   :  { %13478 = vst [vmem:[#allocation147_spill] sm:$0xff] %v9583_v33  ;;  %v9595_v14 = vpop.permute.xlu1 %2801 }
 0x63f   :  { %2911 = vperm.xlu1 %7019, %v2477_v5   ;;  %v210_v5 = vld [vmem:[%s13194_s1 + $0x548] sm:$0xff] }
 0x640   :  { %6957 = vmatprep.mubr.msk.f32.mxu1 %vm329_vm1, %v210_v5  ;;  %6813 = vmatprep.mubr.msk.f32.mxu0 %vm329_vm1, %v210_v5  ;;  %v211_v5 = vld [vmem:[%s13194_s1 + $0x550] sm:$0xff] }
 0x641   :  { %2105 = vmatmul.mubr.f32.gmra.mxu1 %v209_v53  ;;  %1247 = vmatmul.mubr.f32.gmra.mxu0 %v209_v53  ;;  %v9593_v44 = vpop.permute.xlu0 %2826 }
 0x642   :  { %13479 = vst [vmem:[#allocation148_spill] sm:$0xff] %v9593_v44  ;;  %v9599_v10 = vpop.xlane.xlu1 %3615 }
 0x643   :  { %4716 = vperm.xlu1 %7019, %v4566_v45   ;;  %13481 = vst [vmem:[#allocation150_spill] sm:$0xff] %v9599_v10 }
 0x645   :  { %v9597_v45 = vpop.xlane.xlu0 %3630 }
 0x646   :  { %13480 = vst [vmem:[#allocation149_spill] sm:$0xff] %v9597_v45  ;;  %v9603_v33 = vpop.permute.xlu1 %2811  ;;  %v3991_v45 = vmul.f32 0.020408163, %v9419_v11 }
 0x649   :  { %v9601_v48 = vpop.permute.xlu0 %2836 }
 0x64a   :  { %13482 = vst [vmem:[#allocation151_spill] sm:$0xff] %v9601_v48  ;;  %v9607_v3 = vpop.xlane.xlu1 %3621  ;;  %v4135_v48 = vadd.f32 1e-05, %v3991_v45 }
 0x64b   :  { %2916 = vperm.xlu0 %7020, %v2478_v16   ;;  %13484 = vst [vmem:[#allocation153_spill] sm:$0xff] %v9607_v3  ;;  %v212_v16 = vld [vmem:[%s13194_s1 + $0x558] sm:$0xff]  ;;  %v9626_v3 = vsub.f32 %v8946_v54, %v9528_v17  ;;  %v9642_v17 = vpop.f32.mrf.mxu1 }
 0x64c   :  { %6958 = vmatprep.mubr.msk.f32.mxu1 %vm329_vm1, %v212_v16  ;;  %6814 = vmatprep.mubr.msk.f32.mxu0 %vm329_vm1, %v212_v16  ;;  %7025 = vrsqrt.f32 %v4135_v48 }
 0x64d   :  { %v9605_v0 = vpop.xlane.xlu0 %3636  ;;  %2110 = vmatmul.mubr.f32.gmra.mxu1 %v211_v5  ;;  %1252 = vmatmul.mubr.f32.gmra.mxu0 %v211_v5  ;;  %13487 = vst [vmem:[#allocation156_spill] sm:$0xff] %v9626_v3  ;;  %v3455_v11 = vmul.f32 %v9626_v3, %v9626_v3 }
 0x64e   :  { %13483 = vst [vmem:[#allocation152_spill] sm:$0xff] %v9605_v0  ;;  %v9622_v0 = vsub.f32 %v8918_v7, %v9495_v18  ;;  %v9632_v44 = vpop.permute.xlu1 %2821  ;;  %v3992_v7 = vmul.f32 0.020408163, %v9421_v43 }
 0x64f   :  { %13489 = vst [vmem:[#allocation158_spill] sm:$0xff] %v9632_v44  ;;  %v3683_v5 = vsel %vm1547_vm0, %v3455_v11, 0.0  ;;  %v4424_v44 = vld [vmem:[%s13195_s2 + $0x18] sm:$0xff] }
 0x650   :  { %13486 = vst [vmem:[#allocation155_spill] sm:$0xff] %v9622_v0 }
 0x651   :  { %v9615_v53 = vpop.permute.xlu0 %2846 }
 0x652   :  { %13485 = vst [vmem:[#allocation154_spill] sm:$0xff] %v9615_v53  ;;  %v3454_v53 = vmul.f32 %v9622_v0, %v9622_v0  ;;  %v9639_v18 = vpop.xlane.xlu1 %3627  ;;  %v4136_v0 = vadd.f32 1e-05, %v3992_v7 }
 0x653   :  { %13491 = vst [vmem:[#allocation160_spill] sm:$0xff] %v9639_v18 }
 0x654   :  { %v3680_v54 = vsel %vm1547_vm0, %v3454_v53, 0.0  ;;  %7027 = vrsqrt.f32 %v4136_v0  ;;  %v9665_v0 = vpop.f32.mrf.mxu0 }
 0x655   :  { %v9628_v10 = vpop.xlane.xlu0 %3642  ;;  %13498 = vst [vmem:[#allocation167_spill] sm:$0xff] %v9665_v0 }
 0x656   :  { %13488 = vst [vmem:[#allocation157_spill] sm:$0xff] %v9628_v10  ;;  %v2078_v10 = vpop.f32.mrf.mxu1  ;;  %v9647_v3 = vpop.permute.xlu1 %2831 }
 0x657   :  { %13493 = vst [vmem:[#allocation162_spill] sm:$0xff] %v9647_v3  ;;  %v1200_v18 = vpop.f32.mrf.mxu0 }
 0x658   :  { %v214_v18 = vld [vmem:[%s13194_s1 + $0x568] sm:$0xff] }
 0x659   :  { %v9636_v16 = vpop.permute.xlu0 %2856  ;;  %v7026_v53 = vpop.eup %7025  ;;  %6959 = vmatprep.mubr.msk.f32.mxu1 %vm329_vm1, %v214_v18  ;;  %6815 = vmatprep.mubr.msk.f32.mxu0 %vm329_vm1, %v214_v18 }
 0x65a   :  { %13490 = vst [vmem:[#allocation159_spill] sm:$0xff] %v9636_v16  ;;  %v9651_v43 = vpop.xlane.xlu1 %3633 }
 0x65b   :  { %13495 = vst [vmem:[#allocation164_spill] sm:$0xff] %v9651_v43 }
 0x65d   :  { %v9644_v45 = vpop.xlane.xlu0 %3648 }
 0x65e   :  { %13492 = vst [vmem:[#allocation161_spill] sm:$0xff] %v9644_v45  ;;  %v9658_v45 = vpop.f32.mrf.mxu1  ;;  %v9662_v10 = vpop.permute.xlu1 %2841 }
 0x660   :  { %v2083_v7 = vpop.f32.mrf.mxu1 }
 0x661   :  { %v9649_v16 = vpop.permute.xlu0 %2866  ;;  %v7028_v3 = vpop.eup %7027 }
 0x662   :  { %13494 = vst [vmem:[#allocation163_spill] sm:$0xff] %v9649_v16  ;;  %v2479_v16 = vmul.f32 0.020408163, %v9475_v51 }
 0x665   :  { %v9653_v48 = vpop.xlane.xlu0 %3654 }
 0x666   :  { %13496 = vst [vmem:[#allocation165_spill] sm:$0xff] %v9653_v48  ;;  %v9669_v48 = vpop.xlane.xlu1 %3639 }
 0x667   :  { %3681 = vadd.xlane.f32.xlu1 %v3680_v54  ;;  %v4423_v54 = vld [vmem:[%s13195_s2 + $0x10] sm:$0xff] }
 0x669   :  { %v9660_v11 = vpop.permute.xlu0 %2876 }
 0x66a   :  { %3684 = vadd.xlane.f32.xlu0 %v3683_v5  ;;  %13497 = vst [vmem:[#allocation166_spill] sm:$0xff] %v9660_v11  ;;  %v4567_v5 = vmul.f32 %v7026_v53, %v4423_v54  ;;  %v4568_v11 = vmul.f32 %v7028_v3, %v4424_v44  ;;  %v9676_v53 = vpop.f32.mrf.mxu0  ;;  %v9678_v51 = vpop.permute.xlu1 %2851  ;;  %v2480_v54 = vmul.f32 0.020408163, %v9480_v52 }
 0x66b   :  { %13500 = vst [vmem:[#allocation169_spill] sm:$0xff] %v9676_v53 }
 0x66c   :  { %v1205_v0 = vpop.f32.mrf.mxu0 }
 0x66d   :  { %v9667_v43 = vpop.xlane.xlu0 %3660 }
 0x66e   :  { %13499 = vst [vmem:[#allocation168_spill] sm:$0xff] %v9667_v43  ;;  %v9691_v3 = vpop.xlane.xlu1 %3645 }
 0x66f   :  { %13502 = vst [vmem:[#allocation171_spill] sm:$0xff] %v9691_v3 }
 0x671   :  { %v9674_v7 = vpop.permute.xlu0 %2886 }
 0x678   :  { %4721 = vperm.xlu1 %7019, %v4567_v5   ;;  %v9681_v5 = vpop.xlane.xlu0 %3666 }
 0x679   :  { %13501 = vst [vmem:[#allocation170_spill] sm:$0xff] %v9681_v5 }
 0x67c   :  { %2921 = vperm.xlu1 %7019, %v2479_v16   ;;  %v213_v16 = vld [vmem:[%s13194_s1 + $0x560] sm:$0xff]  ;;  %v9693_v52 = vpop.permute.xlu0 %2896 }
 0x67d   :  { %2115 = vmatmul.mubr.f32.gmra.mxu1 %v213_v16  ;;  %13503 = vst [vmem:[#allocation172_spill] sm:$0xff] %v9693_v52  ;;  %1257 = vmatmul.mubr.f32.gmra.mxu0 %v213_v16  ;;  %v216_v52 = vld [vmem:[%s13194_s1 + $0x578] sm:$0xff]  ;;  %v215_v16 = vld [vmem:[%s13194_s1 + $0x570] sm:$0xff] }
 0x67e   :  { %6960 = vmatprep.mubr.msk.f32.mxu1 %vm329_vm1, %v216_v52  ;;  %6816 = vmatprep.mubr.msk.f32.mxu0 %vm329_vm1, %v216_v52 }
 0x680   :  { %4726 = vperm.xlu0 %7020, %v4568_v11   ;;  %v9697_v11 = vpop.permute.xlu1 %2861 }
 0x681   :  { %2120 = vmatmul.mubr.f32.gmra.mxu1 %v215_v16  ;;  %1262 = vmatmul.mubr.f32.gmra.mxu0 %v215_v16 }
 0x684   :  { %2926 = vperm.xlu0 %7020, %v2480_v54   ;;  %v9701_v53 = vpop.xlane.xlu1 %3651 }
 0x685   :  { %v9695_v44 = vpop.xlane.xlu0 %3672  ;;  %13506 = vst [vmem:[#allocation175_spill] sm:$0xff] %v9701_v53 }
 0x686   :  { %13504 = vst [vmem:[#allocation173_spill] sm:$0xff] %v9695_v44 }
 0x688   :  { %v9705_v54 = vpop.permute.xlu1 %2871 }
 0x68d   :  { %v9699_v0 = vpop.permute.xlu0 %2906 }
 0x68e   :  { %13505 = vst [vmem:[#allocation174_spill] sm:$0xff] %v9699_v0  ;;  %v9732_v0 = vpop.f32.mrf.mxu1 }
 0x690   :  { %v2088_v16 = vpop.f32.mrf.mxu1 }
 0x691   :  { %v4712_v5 = vpop.permute.xlu0 %4711 }
 0x692   :  { %v5429_v43 = vmul.f32 %v4712_v5, %v8771_v56  ;;  %v9722_v56 = vsub.f32 %v8956_v37, %v9509_v57  ;;  %v9728_v5 = vsub.f32 %v8984_v21, %v9545_v29  ;;  %v3994_v37 = vmul.f32 0.020408163, %v9455_v19  ;;  %v4425_v19 = vld [vmem:[%s13195_s2 + $0x20] sm:$0xff] }
 0x694   :  { %v6437_v18 = vadd.f32 %v8377_v28, %v5429_v43  ;;  %v3993_v28 = vmul.f32 0.020408163, %v9453_v15  ;;  %13507 = vst [vmem:[#allocation176_spill] sm:$0xff] %v9722_v56  ;;  %v9724_v43 = vpop.xlane.xlu1 %3657  ;;  %13509 = vst [vmem:[#allocation178_spill] sm:$0xff] %v9728_v5  ;;  %v3457_v15 = vmul.f32 %v9728_v5, %v9728_v5  ;;  %v4138_v29 = vadd.f32 1e-05, %v3994_v37  ;;  %v9753_v37 = vpop.f32.mrf.mxu0 }
 0x695   :  { %13508 = vst [vmem:[#allocation177_spill] sm:$0xff] %v9724_v43 }
 0x696   :  { %6581 = vst.msk [vmem:[%s13196_s4] sm:$0xff] %vm1547_vm0, %v6437_v18  ;;  %v4137_v44 = vadd.f32 1e-05, %v3993_v28  ;;  %v3456_v18 = vmul.f32 %v9722_v56, %v9722_v56  ;;  %v3689_v21 = vsel %vm1547_vm0, %v3457_v15, 0.0  ;;  %v2481_v15 = vmul.f32 0.020408163, %v9547_v13 }
 0x697   :  { %v2482_v13 = vmul.f32 0.020408163, %v9560_v50 }
 0x698   :  { %7029 = vrsqrt.f32 %v4137_v44  ;;  %v9737_v57 = vpop.permute.xlu1 %2881  ;;  %v3686_v52 = vsel %vm1547_vm0, %v3456_v18, 0.0  ;;  %v9748_v44 = vpop.f32.mrf.mxu1 }
 0x699   :  { %7031 = vrsqrt.f32 %v4138_v29 }
 0x69a   :  { %v2093_v18 = vpop.f32.mrf.mxu1 }
 0x69b   :  { %v218_v18 = vld [vmem:[%s13194_s1 + $0x588] sm:$0xff] }
 0x69c   :  { %v9741_v28 = vpop.xlane.xlu1 %3663  ;;  %6961 = vmatprep.mubr.msk.f32.mxu1 %vm329_vm1, %v218_v18  ;;  %6817 = vmatprep.mubr.msk.f32.mxu0 %vm329_vm1, %v218_v18 }
 0x69d   :  { %13510 = vst [vmem:[#allocation179_spill] sm:$0xff] %v9741_v28  ;;  %v4426_v28 = vld [vmem:[%s13195_s2 + $0x28] sm:$0xff] }
 0x6a0   :  { %3687 = vadd.xlane.f32.xlu1 %v3686_v52  ;;  %v9743_v56 = vpop.permute.xlu1 %2891 }
 0x6a3   :  { %3690 = vadd.xlane.f32.xlu0 %v3689_v21  ;;  %v1210_v21 = vpop.f32.mrf.mxu0 }
 0x6a4   :  { %v9750_v5 = vpop.xlane.xlu1 %3669  ;;  %v219_v21 = vld [vmem:[%s13194_s1 + $0x590] sm:$0xff] }
 0x6a5   :  { %v7030_v43 = vpop.eup %7029  ;;  %13511 = vst [vmem:[#allocation180_spill] sm:$0xff] %v9750_v5  ;;  %v9762_v5 = vpop.f32.mrf.mxu0 }
 0x6a6   :  { %v4569_v52 = vmul.f32 %v7030_v43, %v4425_v19  ;;  %v7032_v29 = vpop.eup %7031 }
 0x6a7   :  { %v4570_v3 = vmul.f32 %v7032_v29, %v4426_v28  ;;  %v1215_v43 = vpop.f32.mrf.mxu0  ;;  %v9796_v29 = vsub.f32 %v9022_v25, %v9558_v22 }
 0x6a8   :  { %v9755_v16 = vpop.permute.xlu1 %2901 }
 0x6a9   :  { %13513 = vst [vmem:[#allocation182_spill] sm:$0xff] %v9796_v29  ;;  %v3459_v18 = vmul.f32 %v9796_v29, %v9796_v29 }
 0x6b1   :  { %4731 = vperm.xlu1 %7019, %v4569_v52   ;;  %v217_v52 = vld [vmem:[%s13194_s1 + $0x580] sm:$0xff] }
 0x6b2   :  { %2125 = vmatmul.mubr.f32.gmra.mxu1 %v217_v52  ;;  %1267 = vmatmul.mubr.f32.gmra.mxu0 %v217_v52 }
 0x6b5   :  { %2931 = vperm.xlu1 %7019, %v2481_v15   ;;  %v220_v15 = vld [vmem:[%s13194_s1 + $0x598] sm:$0xff] }
 0x6b6   :  { %6962 = vmatprep.mubr.msk.f32.mxu1 %vm329_vm1, %v220_v15  ;;  %6818 = vmatprep.mubr.msk.f32.mxu0 %vm329_vm1, %v220_v15 }
 0x6b7   :  { %v9760_v53 = vpop.xlane.xlu1 %3675  ;;  %2130 = vmatmul.mubr.f32.gmra.mxu1 %v219_v21  ;;  %1272 = vmatmul.mubr.f32.gmra.mxu0 %v219_v21  ;;  %v2483_v21 = vmul.f32 0.020408163, %v9642_v17  ;;  %v2484_v17 = vmul.f32 0.020408163, %v9658_v45 }
 0x6b9   :  { %4736 = vperm.xlu0 %7020, %v4570_v3  }
 0x6bb   :  { %v9765_v19 = vpop.permute.xlu1 %2911 }
 0x6bd   :  { %2936 = vperm.xlu0 %7020, %v2482_v13  }
 0x6bf   :  { %v4717_v3 = vpop.permute.xlu1 %4716 }
 0x6c0   :  { %v5430_v50 = vmul.f32 %v4717_v3, %v8766_v27  ;;  %v3995_v27 = vmul.f32 0.020408163, %v9485_v20  ;;  %v3996_v20 = vmul.f32 0.020408163, %v9497_v63  ;;  %v3695_v3 = vsel %vm1547_vm0, %v3459_v18, 0.0  ;;  %v4428_v18 = vld [vmem:[%s13195_s2 + $0x38] sm:$0xff] }
 0x6c2   :  { %v6438_v28 = vadd.f32 %v8389_v32, %v5430_v50  ;;  %v9792_v32 = vsub.f32 %v8994_v24, %v9526_v42  ;;  %v4139_v13 = vadd.f32 1e-05, %v3995_v27  ;;  %v4140_v25 = vadd.f32 1e-05, %v3996_v20  ;;  %v4427_v50 = vld [vmem:[%s13195_s2 + $0x30] sm:$0xff]  ;;  %v9813_v27 = vpop.f32.mrf.mxu0  ;;  %v9818_v20 = vpop.xlane.xlu0 %3678 }
 0x6c4   :  { %6582 = vst.msk [vmem:[%s13196_s4 + $0x8] sm:$0xff] %vm1547_vm0, %v6438_v28  ;;  %13512 = vst [vmem:[#allocation181_spill] sm:$0xff] %v9792_v32  ;;  %v3458_v43 = vmul.f32 %v9792_v32, %v9792_v32  ;;  %7033 = vrsqrt.f32 %v4139_v13  ;;  %v1220_v13 = vpop.f32.mrf.mxu0 }
 0x6c5   :  { %7035 = vrsqrt.f32 %v4140_v25 }
 0x6c6   :  { %v3692_v52 = vsel %vm1547_vm0, %v3458_v43, 0.0  ;;  %v9825_v25 = vpop.permute.xlu0 %2916 }
 0x6cc   :  { %v9804_v24 = vpop.f32.mrf.mxu1 }
 0x6ce   :  { %v2098_v42 = vpop.f32.mrf.mxu1 }
 0x6d1   :  { %v7034_v22 = vpop.eup %7033 }
 0x6d2   :  { %v4571_v63 = vmul.f32 %v7034_v22, %v4427_v50  ;;  %v7036_v43 = vpop.eup %7035 }
 0x6d3   :  { %v4572_v42 = vmul.f32 %v7036_v43, %v4428_v18 }
 0x6d8   :  { %v9810_v28 = vpop.f32.mrf.mxu1 }
 0x6d9   :  { %3693 = vadd.xlane.f32.xlu1 %v3692_v52 }
 0x6da   :  { %v2103_v15 = vpop.f32.mrf.mxu1 }
 0x6db   :  { %v222_v15 = vld [vmem:[%s13194_s1 + $0x5a8] sm:$0xff] }
 0x6dc   :  { %3696 = vadd.xlane.f32.xlu0 %v3695_v3  ;;  %v9822_v3 = vpop.f32.mrf.mxu0  ;;  %6963 = vmatprep.mubr.msk.f32.mxu1 %vm329_vm1, %v222_v15 }
 0x6dd   :  { %6819 = vmatprep.mubr.msk.f32.mxu0 %vm329_vm1, %v222_v15 }
 0x6de   :  { %v1225_v22 = vpop.f32.mrf.mxu0 }
 0x6df   :  { %v9866_v22 = vsub.f32 %v9060_v59, %v9574_v2  ;;  %v4429_v2 = vld [vmem:[%s13195_s2 + $0x40] sm:$0xff] }
 0x6e1   :  { %13515 = vst [vmem:[#allocation184_spill] sm:$0xff] %v9866_v22 }
 0x6ea   :  { %4741 = vperm.xlu1 %7019, %v4571_v63   ;;  %v221_v63 = vld [vmem:[%s13194_s1 + $0x5a0] sm:$0xff] }
 0x6eb   :  { %2135 = vmatmul.mubr.f32.gmra.mxu1 %v221_v63  ;;  %1277 = vmatmul.mubr.f32.gmra.mxu0 %v221_v63 }
 0x6ee   :  { %2941 = vperm.xlu1 %7019, %v2483_v21  }
 0x6f0   :  { %v9820_v52 = vpop.xlane.xlu1 %3681 }
 0x6f2   :  { %4746 = vperm.xlu0 %7020, %v4572_v42   ;;  %v223_v42 = vld [vmem:[%s13194_s1 + $0x5b0] sm:$0xff] }
 0x6f3   :  { %v9836_v45 = vpop.xlane.xlu0 %3684 }
 0x6f4   :  { %v4722_v50 = vpop.permute.xlu1 %4721 }
 0x6f5   :  { %v5431_v21 = vmul.f32 %v4722_v50, %v8776_v8 }
 0x6f6   :  { %2946 = vperm.xlu0 %7020, %v2484_v17  }
 0x6f7   :  { %v6439_v13 = vadd.f32 %v8384_v30, %v5431_v21  ;;  %v224_v30 = vld [vmem:[%s13194_s1 + $0x5b8] sm:$0xff] }
 0x6f8   :  { %6964 = vmatprep.mubr.msk.f32.mxu1 %vm329_vm1, %v224_v30  ;;  %6820 = vmatprep.mubr.msk.f32.mxu0 %vm329_vm1, %v224_v30  ;;  %v2485_v30 = vmul.f32 0.020408163, %v9732_v0  ;;  %v2486_v0 = vmul.f32 0.020408163, %v9748_v44 }
 0x6f9   :  { %6583 = vst.msk [vmem:[%s13196_s4 + $0x10] sm:$0xff] %vm1547_vm0, %v6439_v13  ;;  %2140 = vmatmul.mubr.f32.gmra.mxu1 %v223_v42  ;;  %1282 = vmatmul.mubr.f32.gmra.mxu0 %v223_v42  ;;  %v9883_v42 = vpop.permute.xlu1 %2921 }
 0x6fb   :  { %v4727_v43 = vpop.permute.xlu0 %4726 }
 0x6fc   :  { %v5432_v18 = vmul.f32 %v4727_v43, %v8810_v39  ;;  %v3997_v39 = vmul.f32 0.020408163, %v9490_v4  ;;  %v3461_v4 = vmul.f32 %v9866_v22, %v9866_v22 }
 0x6fe   :  { %v6440_v8 = vadd.f32 %v8397_v36, %v5432_v18  ;;  %v9860_v36 = vsub.f32 %v9032_v61, %v9540_v9  ;;  %v4141_v50 = vadd.f32 1e-05, %v3997_v39  ;;  %v3998_v61 = vmul.f32 0.020408163, %v9511_v60  ;;  %v9881_v60 = vpop.f32.mrf.mxu0 }
 0x6ff   :  { %v3701_v21 = vsel %vm1547_vm0, %v3461_v4, 0.0 }
 0x700   :  { %6584 = vst.msk [vmem:[%s13196_s4 + $0x18] sm:$0xff] %vm1547_vm0, %v6440_v8  ;;  %13514 = vst [vmem:[#allocation183_spill] sm:$0xff] %v9860_v36  ;;  %v3460_v15 = vmul.f32 %v9860_v36, %v9860_v36  ;;  %7037 = vrsqrt.f32 %v4141_v50  ;;  %v4142_v13 = vadd.f32 1e-05, %v3998_v61  ;;  %v1230_v39 = vpop.f32.mrf.mxu0 }
 0x701   :  { %v9862_v17 = vpop.f32.mrf.mxu1 }
 0x702   :  { %v3698_v9 = vsel %vm1547_vm0, %v3460_v15, 0.0  ;;  %7039 = vrsqrt.f32 %v4142_v13  ;;  %v4430_v15 = vld [vmem:[%s13195_s2 + $0x48] sm:$0xff]  ;;  %v9890_v61 = vpop.f32.mrf.mxu0 }
 0x703   :  { %v2108_v63 = vpop.f32.mrf.mxu1 }
 0x70d   :  { %v7038_v59 = vpop.eup %7037  ;;  %v9878_v43 = vpop.f32.mrf.mxu1 }
 0x70e   :  { %v4573_v8 = vmul.f32 %v7038_v59, %v4429_v2  ;;  %v226_v59 = vld [vmem:[%s13194_s1 + $0x5c8] sm:$0xff]  ;;  %v225_v2 = vld [vmem:[%s13194_s1 + $0x5c0] sm:$0xff] }
 0x70f   :  { %v2113_v18 = vpop.f32.mrf.mxu1  ;;  %v7040_v50 = vpop.eup %7039  ;;  %6965 = vmatprep.mubr.msk.f32.mxu1 %vm329_vm1, %v226_v59  ;;  %6821 = vmatprep.mubr.msk.f32.mxu0 %vm329_vm1, %v226_v59 }
 0x710   :  { %v4574_v4 = vmul.f32 %v7040_v50, %v4430_v15  ;;  %2145 = vmatmul.mubr.f32.gmra.mxu1 %v225_v2  ;;  %1287 = vmatmul.mubr.f32.gmra.mxu0 %v225_v2  ;;  %v227_v50 = vld [vmem:[%s13194_s1 + $0x5d0] sm:$0xff] }
 0x712   :  { %3699 = vadd.xlane.f32.xlu1 %v3698_v9  ;;  %v9893_v9 = vpop.permute.xlu0 %2926 }
 0x715   :  { %3702 = vadd.xlane.f32.xlu0 %v3701_v21  ;;  %v1235_v21 = vpop.f32.mrf.mxu0 }
 0x723   :  { %4751 = vperm.xlu1 %7019, %v4573_v8  }
 0x727   :  { %2951 = vperm.xlu1 %7019, %v2485_v30  }
 0x729   :  { %v9888_v63 = vpop.xlane.xlu1 %3687 }
 0x72b   :  { %4756 = vperm.xlu0 %7020, %v4574_v4   ;;  %v9934_v4 = vsub.f32 %v9098_v62, %v9595_v14  ;;  %v4431_v14 = vld [vmem:[%s13195_s2 + $0x50] sm:$0xff] }
 0x72c   :  { %v9904_v44 = vpop.xlane.xlu0 %3690 }
 0x72d   :  { %v4732_v13 = vpop.permute.xlu1 %4731  ;;  %13517 = vst [vmem:[#allocation186_spill] sm:$0xff] %v9934_v4 }
 0x72e   :  { %v5433_v18 = vmul.f32 %v4732_v13, %v8813_v58 }
 0x72f   :  { %2956 = vperm.xlu0 %7020, %v2486_v0  }
 0x730   :  { %v6441_v8 = vadd.f32 %v8392_v34, %v5433_v18  ;;  %v228_v34 = vld [vmem:[%s13194_s1 + $0x5d8] sm:$0xff] }
 0x731   :  { %6966 = vmatprep.mubr.msk.f32.mxu1 %vm329_vm1, %v228_v34  ;;  %6822 = vmatprep.mubr.msk.f32.mxu0 %vm329_vm1, %v228_v34 }
 0x732   :  { %6585 = vst.msk [vmem:[%s13196_s4 + $0x20] sm:$0xff] %vm1547_vm0, %v6441_v8  ;;  %2150 = vmatmul.mubr.f32.gmra.mxu1 %v227_v50  ;;  %1292 = vmatmul.mubr.f32.gmra.mxu0 %v227_v50 }
 0x734   :  { %v4737_v30 = vpop.permute.xlu0 %4736 }
 0x735   :  { %v5434_v39 = vmul.f32 %v4737_v30, %v8848_v55  ;;  %v3999_v55 = vmul.f32 0.020408163, %v9507_v12  ;;  %v3463_v12 = vmul.f32 %v9934_v4, %v9934_v4 }
 0x737   :  { %v6442_v58 = vadd.f32 %v8406_v40, %v5434_v39  ;;  %v9928_v40 = vsub.f32 %v9070_v47, %v9554_v41  ;;  %v4143_v0 = vadd.f32 1e-05, %v3999_v55  ;;  %v4000_v47 = vmul.f32 0.020408163, %v9535_v23  ;;  %v9949_v23 = vpop.f32.mrf.mxu0  ;;  %v4432_v55 = vld [vmem:[%s13195_s2 + $0x58] sm:$0xff] }
 0x738   :  { %v3707_v59 = vsel %vm1547_vm0, %v3463_v12, 0.0  ;;  %v2487_v39 = vmul.f32 0.020408163, %v9804_v24  ;;  %v2488_v24 = vmul.f32 0.020408163, %v9810_v28  ;;  %v9961_v12 = vpop.permute.xlu0 %2936 }
 0x739   :  { %6586 = vst.msk [vmem:[%s13196_s4 + $0x28] sm:$0xff] %vm1547_vm0, %v6442_v58  ;;  %13516 = vst [vmem:[#allocation185_spill] sm:$0xff] %v9928_v40  ;;  %v3462_v21 = vmul.f32 %v9928_v40, %v9928_v40  ;;  %7041 = vrsqrt.f32 %v4143_v0  ;;  %v4144_v2 = vadd.f32 1e-05, %v4000_v47  ;;  %v9951_v58 = vpop.permute.xlu1 %2931  ;;  %v1240_v34 = vpop.f32.mrf.mxu0 }
 0x73b   :  { %v3704_v41 = vsel %vm1547_vm0, %v3462_v21, 0.0  ;;  %7043 = vrsqrt.f32 %v4144_v2  ;;  %v229_v2 = vld [vmem:[%s13194_s1 + $0x5e0] sm:$0xff] }
 0x73d   :  { %v9930_v15 = vpop.f32.mrf.mxu1 }
 0x73f   :  { %v2118_v13 = vpop.f32.mrf.mxu1 }
 0x740   :  { %v9958_v13 = vpop.f32.mrf.mxu0 }
 0x741   :  { %v9946_v18 = vpop.f32.mrf.mxu1 }
 0x742   :  { %v1245_v47 = vpop.f32.mrf.mxu0 }
 0x743   :  { %v2123_v8 = vpop.f32.mrf.mxu1 }
 0x746   :  { %v7042_v62 = vpop.eup %7041 }
 0x747   :  { %v4575_v30 = vmul.f32 %v7042_v62, %v4431_v14 }
 0x748   :  { %v7044_v50 = vpop.eup %7043 }
 0x749   :  { %v4576_v21 = vmul.f32 %v7044_v50, %v4432_v55  ;;  %v13519_v50 = vld [vmem:[#allocation98_spill] sm:$0xff] }
 0x74a   :  { %v10002_v55 = vsub.f32 %v13519_v50, %v9603_v33 }
 0x74b   :  { %3705 = vadd.xlane.f32.xlu1 %v3704_v41 }
 0x74c   :  { %13520 = vst [vmem:[#allocation98_spill] sm:$0xff] %v10002_v55 }
 0x74e   :  { %3708 = vadd.xlane.f32.xlu0 %v3707_v59  ;;  %v230_v59 = vld [vmem:[%s13194_s1 + $0x5e8] sm:$0xff] }
 0x74f   :  { %6967 = vmatprep.mubr.msk.f32.mxu1 %vm329_vm1, %v230_v59  ;;  %6823 = vmatprep.mubr.msk.f32.mxu0 %vm329_vm1, %v230_v59 }
 0x750   :  { %2155 = vmatmul.mubr.f32.gmra.mxu1 %v229_v2  ;;  %1297 = vmatmul.mubr.f32.gmra.mxu0 %v229_v2 }
 0x75c   :  { %4761 = vperm.xlu1 %7019, %v4575_v30  }
 0x760   :  { %2961 = vperm.xlu1 %7019, %v2487_v39   ;;  %v231_v39 = vld [vmem:[%s13194_s1 + $0x5f0] sm:$0xff] }
 0x762   :  { %v9956_v0 = vpop.xlane.xlu1 %3693 }
 0x764   :  { %4766 = vperm.xlu0 %7020, %v4576_v21  }
 0x765   :  { %v9972_v28 = vpop.xlane.xlu0 %3696 }
 0x766   :  { %v4742_v41 = vpop.permute.xlu1 %4741 }
 0x767   :  { %v5435_v62 = vmul.f32 %v4742_v41, %v8851_v31  ;;  %v13521_v41 = vld [vmem:[#allocation140_spill] sm:$0xff] }
 0x768   :  { %2966 = vperm.xlu0 %7020, %v2488_v24  }
 0x769   :  { %v6443_v14 = vadd.f32 %v8401_v38, %v5435_v62  ;;  %v232_v38 = vld [vmem:[%s13194_s1 + $0x5f8] sm:$0xff]  ;;  %v4433_v62 = vld [vmem:[%s13195_s2 + $0x60] sm:$0xff] }
 0x76a   :  { %6968 = vmatprep.mubr.msk.f32.mxu1 %vm329_vm1, %v232_v38  ;;  %6824 = vmatprep.mubr.msk.f32.mxu0 %vm329_vm1, %v232_v38  ;;  %v10017_v38 = vpop.f32.mrf.mxu0 }
 0x76b   :  { %6587 = vst.msk [vmem:[%s13196_s4 + $0x30] sm:$0xff] %vm1547_vm0, %v6443_v14  ;;  %2160 = vmatmul.mubr.f32.gmra.mxu1 %v231_v39  ;;  %1302 = vmatmul.mubr.f32.gmra.mxu0 %v231_v39  ;;  %v10019_v39 = vpop.permute.xlu1 %2941 }
 0x76d   :  { %v4747_v8 = vpop.permute.xlu0 %4746 }
 0x76e   :  { %v5436_v30 = vmul.f32 %v4747_v8, %v8886_v35  ;;  %v4001_v35 = vmul.f32 0.020408163, %v9513_v1  ;;  %v3465_v1 = vmul.f32 %v10002_v55, %v10002_v55 }
 0x770   :  { %v6444_v31 = vadd.f32 %v8414_v49, %v5436_v30  ;;  %v9996_v49 = vsub.f32 %v9108_v6, %v9565_v26  ;;  %v4145_v21 = vadd.f32 1e-05, %v4001_v35  ;;  %v4002_v6 = vmul.f32 0.020408163, %v13521_v41  ;;  %v1250_v35 = vpop.f32.mrf.mxu0 }
 0x771   :  { %v3713_v59 = vsel %vm1547_vm0, %v3465_v1, 0.0  ;;  %v10029_v41 = vpop.permute.xlu0 %2946  ;;  %v13524_v35 = vld [vmem:[#allocation86_spill] sm:$0xff] }
 0x772   :  { %6588 = vst.msk [vmem:[%s13196_s4 + $0x38] sm:$0xff] %vm1547_vm0, %v6444_v31  ;;  %13518 = vst [vmem:[#allocation187_spill] sm:$0xff] %v9996_v49  ;;  %v9998_v34 = vpop.f32.mrf.mxu1  ;;  %v3464_v24 = vmul.f32 %v9996_v49, %v9996_v49  ;;  %7045 = vrsqrt.f32 %v4145_v21  ;;  %v4146_v2 = vadd.f32 1e-05, %v4002_v6  ;;  %v2489_v31 = vmul.f32 0.020408163, %v9862_v17  ;;  %v10026_v1 = vpop.f32.mrf.mxu0 }
 0x773   :  { %v4434_v21 = vld [vmem:[%s13195_s2 + $0x68] sm:$0xff]  ;;  %v2490_v17 = vmul.f32 0.020408163, %v9878_v43 }
 0x774   :  { %v2128_v47 = vpop.f32.mrf.mxu1  ;;  %v3710_v26 = vsel %vm1547_vm0, %v3464_v24, 0.0  ;;  %7047 = vrsqrt.f32 %v4146_v2  ;;  %v1255_v6 = vpop.f32.mrf.mxu0  ;;  %v233_v2 = vld [vmem:[%s13194_s1 + $0x600] sm:$0xff] }
 0x775   :  { %v235_v6 = vld [vmem:[%s13194_s1 + $0x610] sm:$0xff] }
 0x777   :  { %v10014_v14 = vpop.f32.mrf.mxu1 }
 0x779   :  { %v2133_v8 = vpop.f32.mrf.mxu1 }
 0x77a   :  { %v13523_v8 = vld [vmem:[#allocation8_spill] sm:$0xff] }
 0x77f   :  { %v7046_v33 = vpop.eup %7045 }
 0x780   :  { %v4577_v30 = vmul.f32 %v7046_v33, %v4433_v62  ;;  %v13522_v33 = vld [vmem:[#allocation85_spill] sm:$0xff] }
 0x781   :  { %v7048_v50 = vpop.eup %7047 }
 0x782   :  { %v4578_v47 = vmul.f32 %v7048_v50, %v4434_v21  ;;  %v13525_v21 = vld [vmem:[#allocation3_spill] sm:$0xff] }
 0x784   :  { %3711 = vadd.xlane.f32.xlu1 %v3710_v26 }
 0x787   :  { %3714 = vadd.xlane.f32.xlu0 %v3713_v59  ;;  %v234_v59 = vld [vmem:[%s13194_s1 + $0x608] sm:$0xff] }
 0x788   :  { %6969 = vmatprep.mubr.msk.f32.mxu1 %vm329_vm1, %v234_v59  ;;  %6825 = vmatprep.mubr.msk.f32.mxu0 %vm329_vm1, %v234_v59 }
 0x789   :  { %2165 = vmatmul.mubr.f32.gmra.mxu1 %v233_v2  ;;  %1307 = vmatmul.mubr.f32.gmra.mxu0 %v233_v2  ;;  %v13527_v2 = vld [vmem:[#allocation99_spill] sm:$0xff] }
 0x795   :  { %4771 = vperm.xlu1 %7019, %v4577_v30  }
 0x799   :  { %2971 = vperm.xlu1 %7019, %v2489_v31  }
 0x79b   :  { %v10024_v24 = vpop.xlane.xlu1 %3699 }
 0x79d   :  { %4776 = vperm.xlu0 %7020, %v4578_v47  }
 0x79e   :  { %v10040_v43 = vpop.xlane.xlu0 %3702 }
 0x79f   :  { %v4752_v26 = vpop.permute.xlu1 %4751 }
 0x7a0   :  { %v5437_v62 = vmul.f32 %v4752_v26, %v13522_v33  ;;  %v13526_v26 = vld [vmem:[#allocation137_spill] sm:$0xff]  ;;  %v10064_v33 = vsub.f32 %v13527_v2, %v9576_v46 }
 0x7a1   :  { %2976 = vperm.xlu0 %7020, %v2490_v17   ;;  %v236_v17 = vld [vmem:[%s13194_s1 + $0x618] sm:$0xff]  ;;  %v4003_v59 = vmul.f32 0.020408163, %v13526_v26 }
 0x7a2   :  { %v6445_v30 = vadd.f32 %v13523_v8, %v5437_v62  ;;  %6970 = vmatprep.mubr.msk.f32.mxu1 %vm329_vm1, %v236_v17  ;;  %6826 = vmatprep.mubr.msk.f32.mxu0 %vm329_vm1, %v236_v17  ;;  %13528 = vst [vmem:[#allocation140_spill] sm:$0xff] %v10064_v33  ;;  %v13529_v8 = vld [vmem:[#allocation158_spill] sm:$0xff]  ;;  %v13532_v17 = vld [vmem:[#allocation143_spill] sm:$0xff] }
 0x7a3   :  { %2170 = vmatmul.mubr.f32.gmra.mxu1 %v235_v6  ;;  %1312 = vmatmul.mubr.f32.gmra.mxu0 %v235_v6  ;;  %v4004_v46 = vmul.f32 0.020408163, %v13532_v17  ;;  %v10085_v17 = vpop.f32.mrf.mxu0 }
 0x7a4   :  { %6589 = vst.msk [vmem:[%s13196_s4 + $0x40] sm:$0xff] %vm1547_vm0, %v6445_v30  ;;  %v13530_v30 = vld [vmem:[#allocation102_spill] sm:$0xff] }
 0x7a5   :  { %v4148_v2 = vadd.f32 1e-05, %v4004_v46 }
 0x7a6   :  { %v4757_v31 = vpop.permute.xlu0 %4756 }
 0x7a7   :  { %v5438_v50 = vmul.f32 %v4757_v31, %v13524_v35  ;;  %v10070_v31 = vsub.f32 %v13530_v30, %v13529_v8  ;;  %v4147_v35 = vadd.f32 1e-05, %v4003_v59  ;;  %v4435_v59 = vld [vmem:[%s13195_s2 + $0x70] sm:$0xff] }
 0x7a9   :  { %v6446_v47 = vadd.f32 %v13525_v21, %v5438_v50  ;;  %13531 = vst [vmem:[#allocation85_spill] sm:$0xff] %v10070_v31  ;;  %v3466_v50 = vmul.f32 %v10064_v33, %v10064_v33  ;;  %7049 = vrsqrt.f32 %v4147_v35  ;;  %v2491_v35 = vmul.f32 0.020408163, %v9930_v15 }
 0x7aa   :  { %7051 = vrsqrt.f32 %v4148_v2  ;;  %v2492_v15 = vmul.f32 0.020408163, %v9946_v18 }
 0x7ab   :  { %6590 = vst.msk [vmem:[%s13196_s4 + $0x48] sm:$0xff] %vm1547_vm0, %v6446_v47  ;;  %v10066_v62 = vpop.f32.mrf.mxu1  ;;  %v3467_v47 = vmul.f32 %v10070_v31, %v10070_v31  ;;  %v3716_v26 = vsel %vm1547_vm0, %v3466_v50, 0.0  ;;  %v10087_v50 = vpop.permute.xlu1 %2951 }
 0x7ad   :  { %v2138_v21 = vpop.f32.mrf.mxu1  ;;  %v3719_v6 = vsel %vm1547_vm0, %v3467_v47, 0.0  ;;  %v1260_v47 = vpop.f32.mrf.mxu0 }
 0x7ae   :  { %v13534_v47 = vld [vmem:[#allocation87_spill] sm:$0xff] }
 0x7af   :  { %v10094_v33 = vpop.f32.mrf.mxu0 }
 0x7b6   :  { %v7050_v8 = vpop.eup %7049 }
 0x7b7   :  { %v4579_v31 = vmul.f32 %v7050_v8, %v4435_v59  ;;  %v7052_v46 = vpop.eup %7051  ;;  %v1265_v8 = vpop.f32.mrf.mxu0 }
 0x7b8   :  { %v13537_v8 = vld [vmem:[#allocation88_spill] sm:$0xff] }
 0x7b9   :  { %v10082_v30 = vpop.f32.mrf.mxu1 }
 0x7bb   :  { %v2143_v21 = vpop.f32.mrf.mxu1 }
 0x7bc   :  { %v238_v21 = vld [vmem:[%s13194_s1 + $0x628] sm:$0xff] }
 0x7bd   :  { %3717 = vadd.xlane.f32.xlu1 %v3716_v26  ;;  %v4436_v26 = vld [vmem:[%s13195_s2 + $0x78] sm:$0xff]  ;;  %6971 = vmatprep.mubr.msk.f32.mxu1 %vm329_vm1, %v238_v21 }
 0x7be   :  { %v4580_v2 = vmul.f32 %v7052_v46, %v4436_v26  ;;  %6827 = vmatprep.mubr.msk.f32.mxu0 %vm329_vm1, %v238_v21  ;;  %v13536_v46 = vld [vmem:[#allocation2_spill] sm:$0xff]  ;;  %v13539_v21 = vld [vmem:[#allocation139_spill] sm:$0xff] }
 0x7c0   :  { %3720 = vadd.xlane.f32.xlu0 %v3719_v6 }
 0x7ce   :  { %4781 = vperm.xlu1 %7019, %v4579_v31   ;;  %v10097_v31 = vpop.permute.xlu0 %2956 }
 0x7d2   :  { %2981 = vperm.xlu1 %7019, %v2491_v35   ;;  %v237_v35 = vld [vmem:[%s13194_s1 + $0x620] sm:$0xff] }
 0x7d3   :  { %2175 = vmatmul.mubr.f32.gmra.mxu1 %v237_v35  ;;  %1317 = vmatmul.mubr.f32.gmra.mxu0 %v237_v35  ;;  %v4005_v35 = vmul.f32 0.020408163, %v13539_v21  ;;  %v13546_v21 = vld [vmem:[#allocation146_spill] sm:$0xff] }
 0x7d4   :  { %v10092_v6 = vpop.xlane.xlu1 %3705 }
 0x7d5   :  { %13533 = vst [vmem:[#allocation8_spill] sm:$0xff] %v10092_v6  ;;  %v4149_v4 = vadd.f32 1e-05, %v4005_v35  ;;  %v4437_v35 = vld [vmem:[%s13195_s2 + $0x80] sm:$0xff] }
 0x7d6   :  { %4786 = vperm.xlu0 %7020, %v4580_v2  }
 0x7d7   :  { %v10108_v18 = vpop.xlane.xlu0 %3708  ;;  %7053 = vrsqrt.f32 %v4149_v4  ;;  %v2493_v4 = vmul.f32 0.020408163, %v9998_v34  ;;  %v2494_v34 = vmul.f32 0.020408163, %v10014_v14 }
 0x7d8   :  { %v4762_v59 = vpop.permute.xlu1 %4761  ;;  %13535 = vst [vmem:[#allocation86_spill] sm:$0xff] %v10108_v18 }
 0x7d9   :  { %v5439_v55 = vmul.f32 %v4762_v59, %v13534_v47  ;;  %v13538_v59 = vld [vmem:[#allocation5_spill] sm:$0xff] }
 0x7da   :  { %2986 = vperm.xlu0 %7020, %v2492_v15   ;;  %v239_v15 = vld [vmem:[%s13194_s1 + $0x630] sm:$0xff] }
 0x7db   :  { %v6447_v26 = vadd.f32 %v13536_v46, %v5439_v55  ;;  %v240_v55 = vld [vmem:[%s13194_s1 + $0x638] sm:$0xff]  ;;  %v13541_v46 = vld [vmem:[#allocation103_spill] sm:$0xff] }
 0x7dc   :  { %6972 = vmatprep.mubr.msk.f32.mxu1 %vm329_vm1, %v240_v55  ;;  %6828 = vmatprep.mubr.msk.f32.mxu0 %vm329_vm1, %v240_v55 }
 0x7dd   :  { %6591 = vst.msk [vmem:[%s13196_s4 + $0x50] sm:$0xff] %vm1547_vm0, %v6447_v26  ;;  %2180 = vmatmul.mubr.f32.gmra.mxu1 %v239_v15  ;;  %1322 = vmatmul.mubr.f32.gmra.mxu0 %v239_v15 }
 0x7df   :  { %v4767_v2 = vpop.permute.xlu0 %4766 }
 0x7e0   :  { %v5440_v49 = vmul.f32 %v4767_v2, %v13537_v8  ;;  %v10134_v2 = vpop.f32.mrf.mxu1  ;;  %v13543_v8 = vld [vmem:[#allocation162_spill] sm:$0xff] }
 0x7e2   :  { %v6448_v47 = vadd.f32 %v13538_v59, %v5440_v49  ;;  %v13540_v49 = vld [vmem:[#allocation148_spill] sm:$0xff]  ;;  %v13544_v59 = vld [vmem:[#allocation106_spill] sm:$0xff]  ;;  %v2148_v22 = vpop.f32.mrf.mxu1 }
 0x7e3   :  { %v10132_v26 = vsub.f32 %v13541_v46, %v13540_v49  ;;  %v4006_v49 = vmul.f32 0.020408163, %v13546_v21  ;;  %v10153_v21 = vpop.f32.mrf.mxu0 }
 0x7e4   :  { %6592 = vst.msk [vmem:[%s13196_s4 + $0x58] sm:$0xff] %vm1547_vm0, %v6448_v47  ;;  %v10138_v47 = vsub.f32 %v13544_v59, %v13543_v8  ;;  %v7054_v8 = vpop.eup %7053 }
 0x7e5   :  { %13542 = vst [vmem:[#allocation3_spill] sm:$0xff] %v10132_v26  ;;  %v3468_v40 = vmul.f32 %v10132_v26, %v10132_v26  ;;  %v4150_v36 = vadd.f32 1e-05, %v4006_v49 }
 0x7e6   :  { %13545 = vst [vmem:[#allocation137_spill] sm:$0xff] %v10138_v47  ;;  %v3469_v55 = vmul.f32 %v10138_v47, %v10138_v47  ;;  %v4581_v47 = vmul.f32 %v7054_v8, %v4437_v35 }
 0x7e7   :  { %v3722_v46 = vsel %vm1547_vm0, %v3468_v40, 0.0  ;;  %7055 = vrsqrt.f32 %v4150_v36  ;;  %v10155_v40 = vpop.permute.xlu1 %2961  ;;  %v4438_v36 = vld [vmem:[%s13195_s2 + $0x88] sm:$0xff] }
 0x7e8   :  { %v3725_v15 = vsel %vm1547_vm0, %v3469_v55, 0.0  ;;  %v1270_v55 = vpop.f32.mrf.mxu0 }
 0x7e9   :  { %v13549_v55 = vld [vmem:[#allocation89_spill] sm:$0xff] }
 0x7ea   :  { %v10162_v26 = vpop.f32.mrf.mxu0 }
 0x7eb   :  { %13548 = vst [vmem:[#allocation158_spill] sm:$0xff] %v10162_v26 }
 0x7ec   :  { %v1275_v8 = vpop.f32.mrf.mxu0 }
 0x7ed   :  { %v13552_v8 = vld [vmem:[#allocation90_spill] sm:$0xff] }
 0x7f2   :  { %v10150_v22 = vpop.f32.mrf.mxu1 }
 0x7f4   :  { %v2153_v59 = vpop.f32.mrf.mxu1  ;;  %v7056_v49 = vpop.eup %7055 }
 0x7f5   :  { %v242_v59 = vld [vmem:[%s13194_s1 + $0x648] sm:$0xff] }
 0x7f6   :  { %3723 = vadd.xlane.f32.xlu1 %v3722_v46  ;;  %6973 = vmatprep.mubr.msk.f32.mxu1 %vm329_vm1, %v242_v59 }
 0x7f7   :  { %6829 = vmatprep.mubr.msk.f32.mxu0 %vm329_vm1, %v242_v59  ;;  %v13554_v59 = vld [vmem:[#allocation141_spill] sm:$0xff] }
 0x7f9   :  { %3726 = vadd.xlane.f32.xlu0 %v3725_v15  ;;  %v4582_v15 = vmul.f32 %v7056_v49, %v4438_v36  ;;  %v13551_v49 = vld [vmem:[#allocation4_spill] sm:$0xff] }
 0x807   :  { %4791 = vperm.xlu1 %7019, %v4581_v47   ;;  %v10165_v47 = vpop.permute.xlu0 %2966 }
 0x80b   :  { %2991 = vperm.xlu1 %7019, %v2493_v4   ;;  %v241_v4 = vld [vmem:[%s13194_s1 + $0x640] sm:$0xff] }
 0x80c   :  { %2185 = vmatmul.mubr.f32.gmra.mxu1 %v241_v4  ;;  %1327 = vmatmul.mubr.f32.gmra.mxu0 %v241_v4  ;;  %v4007_v4 = vmul.f32 0.020408163, %v13554_v59  ;;  %v13560_v59 = vld [vmem:[#allocation150_spill] sm:$0xff] }
 0x80d   :  { %v10160_v46 = vpop.xlane.xlu1 %3711 }
 0x80e   :  { %13547 = vst [vmem:[#allocation99_spill] sm:$0xff] %v10160_v46 }
 0x80f   :  { %4796 = vperm.xlu0 %7020, %v4582_v15  }
 0x810   :  { %v10176_v14 = vpop.xlane.xlu0 %3714 }
 0x811   :  { %v4772_v35 = vpop.permute.xlu1 %4771  ;;  %13550 = vst [vmem:[#allocation102_spill] sm:$0xff] %v10176_v14 }
 0x812   :  { %v5441_v29 = vmul.f32 %v4772_v35, %v13549_v55  ;;  %v13553_v35 = vld [vmem:[#allocation7_spill] sm:$0xff] }
 0x813   :  { %2996 = vperm.xlu0 %7020, %v2494_v34   ;;  %v243_v34 = vld [vmem:[%s13194_s1 + $0x650] sm:$0xff] }
 0x814   :  { %v6449_v36 = vadd.f32 %v13551_v49, %v5441_v29  ;;  %v244_v29 = vld [vmem:[%s13194_s1 + $0x658] sm:$0xff]  ;;  %v13556_v49 = vld [vmem:[#allocation107_spill] sm:$0xff] }
 0x815   :  { %6974 = vmatprep.mubr.msk.f32.mxu1 %vm329_vm1, %v244_v29  ;;  %6830 = vmatprep.mubr.msk.f32.mxu0 %vm329_vm1, %v244_v29 }
 0x816   :  { %6593 = vst.msk [vmem:[%s13196_s4 + $0x60] sm:$0xff] %vm1547_vm0, %v6449_v36  ;;  %2190 = vmatmul.mubr.f32.gmra.mxu1 %v243_v34  ;;  %1332 = vmatmul.mubr.f32.gmra.mxu0 %v243_v34 }
 0x818   :  { %v4777_v15 = vpop.permute.xlu0 %4776 }
 0x819   :  { %v5442_v46 = vmul.f32 %v4777_v15, %v13552_v8  ;;  %v10202_v15 = vpop.f32.mrf.mxu1  ;;  %v13558_v8 = vld [vmem:[#allocation110_spill] sm:$0xff] }
 0x81b   :  { %v6450_v55 = vadd.f32 %v13553_v35, %v5442_v46  ;;  %v13555_v46 = vld [vmem:[#allocation151_spill] sm:$0xff]  ;;  %v10206_v35 = vsub.f32 %v13558_v8, %v9662_v10  ;;  %v2158_v26 = vpop.f32.mrf.mxu1 }
 0x81c   :  { %v10200_v36 = vsub.f32 %v13556_v49, %v13555_v46  ;;  %v4008_v46 = vmul.f32 0.020408163, %v13560_v59  ;;  %v10221_v59 = vpop.f32.mrf.mxu0 }
 0x81d   :  { %6594 = vst.msk [vmem:[%s13196_s4 + $0x68] sm:$0xff] %vm1547_vm0, %v6450_v55  ;;  %13559 = vst [vmem:[#allocation87_spill] sm:$0xff] %v10206_v35  ;;  %v4151_v55 = vadd.f32 1e-05, %v4007_v4  ;;  %v3471_v29 = vmul.f32 %v10206_v35, %v10206_v35  ;;  %v4439_v4 = vld [vmem:[%s13195_s2 + $0x90] sm:$0xff] }
 0x81e   :  { %13557 = vst [vmem:[#allocation143_spill] sm:$0xff] %v10200_v36  ;;  %v3470_v14 = vmul.f32 %v10200_v36, %v10200_v36  ;;  %v4152_v18 = vadd.f32 1e-05, %v4008_v46  ;;  %13561 = vst [vmem:[#allocation2_spill] sm:$0xff] %v10221_v59 }
 0x81f   :  { %7057 = vrsqrt.f32 %v4151_v55  ;;  %v3731_v34 = vsel %vm1547_vm0, %v3471_v29, 0.0  ;;  %v2495_v55 = vmul.f32 0.020408163, %v10066_v62  ;;  %v1280_v29 = vpop.f32.mrf.mxu0  ;;  %v2496_v62 = vmul.f32 0.020408163, %v10082_v30 }
 0x820   :  { %v3728_v49 = vsel %vm1547_vm0, %v3470_v14, 0.0  ;;  %7059 = vrsqrt.f32 %v4152_v18  ;;  %v10223_v14 = vpop.permute.xlu1 %2971  ;;  %v4440_v18 = vld [vmem:[%s13195_s2 + $0x98] sm:$0xff]  ;;  %v13564_v29 = vld [vmem:[#allocation91_spill] sm:$0xff] }
 0x821   :  { %v10230_v36 = vpop.f32.mrf.mxu0 }
 0x822   :  { %13563 = vst [vmem:[#allocation5_spill] sm:$0xff] %v10230_v36 }
 0x82b   :  { %v10218_v26 = vpop.f32.mrf.mxu1 }
 0x82c   :  { %v7058_v10 = vpop.eup %7057 }
 0x82d   :  { %v2163_v8 = vpop.f32.mrf.mxu1  ;;  %v4583_v35 = vmul.f32 %v7058_v10, %v4439_v4  ;;  %v7060_v46 = vpop.eup %7059 }
 0x82e   :  { %v1285_v10 = vpop.f32.mrf.mxu0  ;;  %v246_v8 = vld [vmem:[%s13194_s1 + $0x668] sm:$0xff] }
 0x82f   :  { %3729 = vadd.xlane.f32.xlu1 %v3728_v49  ;;  %6975 = vmatprep.mubr.msk.f32.mxu1 %vm329_vm1, %v246_v8  ;;  %v13567_v10 = vld [vmem:[#allocation92_spill] sm:$0xff] }
 0x830   :  { %6831 = vmatprep.mubr.msk.f32.mxu0 %vm329_vm1, %v246_v8  ;;  %v13569_v8 = vld [vmem:[#allocation144_spill] sm:$0xff] }
 0x832   :  { %3732 = vadd.xlane.f32.xlu0 %v3731_v34  ;;  %v4584_v34 = vmul.f32 %v7060_v46, %v4440_v18  ;;  %v13566_v46 = vld [vmem:[#allocation6_spill] sm:$0xff] }
 0x840   :  { %4801 = vperm.xlu1 %7019, %v4583_v35   ;;  %v10233_v35 = vpop.permute.xlu0 %2976 }
 0x844   :  { %3001 = vperm.xlu1 %7019, %v2495_v55   ;;  %v245_v55 = vld [vmem:[%s13194_s1 + $0x660] sm:$0xff] }
 0x845   :  { %2195 = vmatmul.mubr.f32.gmra.mxu1 %v245_v55  ;;  %1337 = vmatmul.mubr.f32.gmra.mxu0 %v245_v55  ;;  %v4009_v55 = vmul.f32 0.020408163, %v13569_v8  ;;  %v13575_v8 = vld [vmem:[#allocation153_spill] sm:$0xff] }
 0x846   :  { %v10228_v49 = vpop.xlane.xlu1 %3717 }
 0x847   :  { %13562 = vst [vmem:[#allocation88_spill] sm:$0xff] %v10228_v49 }
 0x848   :  { %4806 = vperm.xlu0 %7020, %v4584_v34  }
 0x849   :  { %v10244_v30 = vpop.xlane.xlu0 %3720 }
 0x84a   :  { %v4782_v4 = vpop.permute.xlu1 %4781  ;;  %13565 = vst [vmem:[#allocation139_spill] sm:$0xff] %v10244_v30 }
 0x84b   :  { %v5443_v49 = vmul.f32 %v4782_v4, %v13564_v29  ;;  %v13568_v4 = vld [vmem:[#allocation10_spill] sm:$0xff] }
 0x84c   :  { %3006 = vperm.xlu0 %7020, %v2496_v62   ;;  %v247_v62 = vld [vmem:[%s13194_s1 + $0x670] sm:$0xff] }
 0x84d   :  { %v6451_v18 = vadd.f32 %v13566_v46, %v5443_v49  ;;  %v248_v49 = vld [vmem:[%s13194_s1 + $0x678] sm:$0xff]  ;;  %v13571_v46 = vld [vmem:[#allocation111_spill] sm:$0xff] }
 0x84e   :  { %6976 = vmatprep.mubr.msk.f32.mxu1 %vm329_vm1, %v248_v49  ;;  %6832 = vmatprep.mubr.msk.f32.mxu0 %vm329_vm1, %v248_v49 }
 0x84f   :  { %6595 = vst.msk [vmem:[%s13196_s4 + $0x70] sm:$0xff] %vm1547_vm0, %v6451_v18  ;;  %2200 = vmatmul.mubr.f32.gmra.mxu1 %v247_v62  ;;  %1342 = vmatmul.mubr.f32.gmra.mxu0 %v247_v62 }
 0x851   :  { %v4787_v34 = vpop.permute.xlu0 %4786 }
 0x852   :  { %v5444_v36 = vmul.f32 %v4787_v34, %v13567_v10  ;;  %v10270_v34 = vpop.f32.mrf.mxu1  ;;  %v13573_v10 = vld [vmem:[#allocation114_spill] sm:$0xff] }
 0x854   :  { %v6452_v29 = vadd.f32 %v13568_v4, %v5444_v36  ;;  %v13570_v36 = vld [vmem:[#allocation154_spill] sm:$0xff]  ;;  %v10274_v4 = vsub.f32 %v13573_v10, %v9678_v51  ;;  %v2168_v59 = vpop.f32.mrf.mxu1 }
 0x855   :  { %v10268_v18 = vsub.f32 %v13571_v46, %v13570_v36  ;;  %v4010_v36 = vmul.f32 0.020408163, %v13575_v8  ;;  %v10289_v8 = vpop.f32.mrf.mxu0 }
 0x856   :  { %6596 = vst.msk [vmem:[%s13196_s4 + $0x78] sm:$0xff] %vm1547_vm0, %v6452_v29  ;;  %13574 = vst [vmem:[#allocation103_spill] sm:$0xff] %v10274_v4  ;;  %v4153_v29 = vadd.f32 1e-05, %v4009_v55  ;;  %v3473_v49 = vmul.f32 %v10274_v4, %v10274_v4  ;;  %v4441_v55 = vld [vmem:[%s13195_s2 + $0xa0] sm:$0xff] }
 0x857   :  { %13572 = vst [vmem:[#allocation148_spill] sm:$0xff] %v10268_v18  ;;  %v3472_v30 = vmul.f32 %v10268_v18, %v10268_v18  ;;  %v4154_v32 = vadd.f32 1e-05, %v4010_v36  ;;  %13576 = vst [vmem:[#allocation162_spill] sm:$0xff] %v10289_v8 }
 0x858   :  { %7061 = vrsqrt.f32 %v4153_v29  ;;  %v3737_v62 = vsel %vm1547_vm0, %v3473_v49, 0.0  ;;  %v2497_v29 = vmul.f32 0.020408163, %v10134_v2  ;;  %v1290_v49 = vpop.f32.mrf.mxu0  ;;  %v2498_v2 = vmul.f32 0.020408163, %v10150_v22 }
 0x859   :  { %v3734_v46 = vsel %vm1547_vm0, %v3472_v30, 0.0  ;;  %7063 = vrsqrt.f32 %v4154_v32  ;;  %v10291_v30 = vpop.permute.xlu1 %2981  ;;  %v4442_v32 = vld [vmem:[%s13195_s2 + $0xa8] sm:$0xff]  ;;  %v13579_v49 = vld [vmem:[#allocation93_spill] sm:$0xff] }
 0x85a   :  { %v10298_v18 = vpop.f32.mrf.mxu0 }
 0x85b   :  { %13578 = vst [vmem:[#allocation146_spill] sm:$0xff] %v10298_v18 }
 0x863   :  { %v10286_v59 = vpop.f32.mrf.mxu1 }
 0x865   :  { %v7062_v51 = vpop.eup %7061  ;;  %v2173_v10 = vpop.f32.mrf.mxu1 }
 0x866   :  { %v4585_v4 = vmul.f32 %v7062_v51, %v4441_v55  ;;  %v7064_v36 = vpop.eup %7063  ;;  %v1295_v51 = vpop.f32.mrf.mxu0  ;;  %v250_v10 = vld [vmem:[%s13194_s1 + $0x688] sm:$0xff] }
 0x867   :  { %6977 = vmatprep.mubr.msk.f32.mxu1 %vm329_vm1, %v250_v10  ;;  %6833 = vmatprep.mubr.msk.f32.mxu0 %vm329_vm1, %v250_v10  ;;  %v13582_v51 = vld [vmem:[#allocation94_spill] sm:$0xff]  ;;  %v13584_v10 = vld [vmem:[#allocation147_spill] sm:$0xff] }
 0x868   :  { %3735 = vadd.xlane.f32.xlu1 %v3734_v46 }
 0x86b   :  { %3738 = vadd.xlane.f32.xlu0 %v3737_v62  ;;  %v4586_v62 = vmul.f32 %v7064_v36, %v4442_v32  ;;  %v13581_v36 = vld [vmem:[#allocation9_spill] sm:$0xff] }
 0x879   :  { %4811 = vperm.xlu1 %7019, %v4585_v4   ;;  %v10301_v4 = vpop.permute.xlu0 %2986 }
 0x87d   :  { %3011 = vperm.xlu1 %7019, %v2497_v29   ;;  %v249_v29 = vld [vmem:[%s13194_s1 + $0x680] sm:$0xff] }
 0x87e   :  { %2205 = vmatmul.mubr.f32.gmra.mxu1 %v249_v29  ;;  %1347 = vmatmul.mubr.f32.gmra.mxu0 %v249_v29  ;;  %v4011_v29 = vmul.f32 0.020408163, %v13584_v10  ;;  %v13590_v10 = vld [vmem:[#allocation160_spill] sm:$0xff] }
 0x87f   :  { %v10296_v46 = vpop.xlane.xlu1 %3723 }
 0x880   :  { %13577 = vst [vmem:[#allocation106_spill] sm:$0xff] %v10296_v46 }
 0x881   :  { %4816 = vperm.xlu0 %7020, %v4586_v62  }
 0x882   :  { %v10312_v22 = vpop.xlane.xlu0 %3726 }
 0x883   :  { %v4792_v55 = vpop.permute.xlu1 %4791  ;;  %13580 = vst [vmem:[#allocation89_spill] sm:$0xff] %v10312_v22 }
 0x884   :  { %v5445_v46 = vmul.f32 %v4792_v55, %v13579_v49  ;;  %v13583_v55 = vld [vmem:[#allocation12_spill] sm:$0xff] }
 0x885   :  { %3016 = vperm.xlu0 %7020, %v2498_v2   ;;  %v251_v2 = vld [vmem:[%s13194_s1 + $0x690] sm:$0xff] }
 0x886   :  { %v6453_v32 = vadd.f32 %v13581_v36, %v5445_v46  ;;  %v252_v46 = vld [vmem:[%s13194_s1 + $0x698] sm:$0xff]  ;;  %v13586_v36 = vld [vmem:[#allocation115_spill] sm:$0xff] }
 0x887   :  { %6978 = vmatprep.mubr.msk.f32.mxu1 %vm329_vm1, %v252_v46  ;;  %6834 = vmatprep.mubr.msk.f32.mxu0 %vm329_vm1, %v252_v46 }
 0x888   :  { %6597 = vst.msk [vmem:[%s13196_s4 + $0x80] sm:$0xff] %vm1547_vm0, %v6453_v32  ;;  %2210 = vmatmul.mubr.f32.gmra.mxu1 %v251_v2  ;;  %1352 = vmatmul.mubr.f32.gmra.mxu0 %v251_v2 }
 0x88a   :  { %v4797_v62 = vpop.permute.xlu0 %4796 }
 0x88b   :  { %v5446_v18 = vmul.f32 %v4797_v62, %v13582_v51  ;;  %v13588_v51 = vld [vmem:[#allocation118_spill] sm:$0xff] }
 0x88d   :  { %v6454_v49 = vadd.f32 %v13583_v55, %v5446_v18  ;;  %v13585_v18 = vld [vmem:[#allocation159_spill] sm:$0xff]  ;;  %v10342_v55 = vsub.f32 %v13588_v51, %v9697_v11 }
 0x88e   :  { %v10336_v32 = vsub.f32 %v13586_v36, %v13585_v18  ;;  %v4012_v18 = vmul.f32 0.020408163, %v13590_v10  ;;  %v10357_v10 = vpop.f32.mrf.mxu0 }
 0x88f   :  { %6598 = vst.msk [vmem:[%s13196_s4 + $0x88] sm:$0xff] %vm1547_vm0, %v6454_v49  ;;  %13589 = vst [vmem:[#allocation90_spill] sm:$0xff] %v10342_v55  ;;  %v4155_v49 = vadd.f32 1e-05, %v4011_v29  ;;  %v3475_v46 = vmul.f32 %v10342_v55, %v10342_v55  ;;  %v4443_v29 = vld [vmem:[%s13195_s2 + $0xb0] sm:$0xff] }
 0x890   :  { %13587 = vst [vmem:[#allocation4_spill] sm:$0xff] %v10336_v32  ;;  %v3474_v22 = vmul.f32 %v10336_v32, %v10336_v32  ;;  %v4156_v6 = vadd.f32 1e-05, %v4012_v18  ;;  %13591 = vst [vmem:[#allocation7_spill] sm:$0xff] %v10357_v10 }
 0x891   :  { %7065 = vrsqrt.f32 %v4155_v49  ;;  %v3743_v2 = vsel %vm1547_vm0, %v3475_v46, 0.0  ;;  %v2499_v49 = vmul.f32 0.020408163, %v10202_v15  ;;  %v1300_v46 = vpop.f32.mrf.mxu0  ;;  %v2500_v15 = vmul.f32 0.020408163, %v10218_v26 }
 0x892   :  { %v3740_v36 = vsel %vm1547_vm0, %v3474_v22, 0.0  ;;  %7067 = vrsqrt.f32 %v4156_v6  ;;  %v10359_v22 = vpop.permute.xlu1 %2991  ;;  %v4444_v6 = vld [vmem:[%s13195_s2 + $0xb8] sm:$0xff]  ;;  %v13595_v46 = vld [vmem:[#allocation95_spill] sm:$0xff] }
 0x893   :  { %v10338_v62 = vpop.f32.mrf.mxu1  ;;  %v10366_v32 = vpop.f32.mrf.mxu0 }
 0x894   :  { %13593 = vst [vmem:[#allocation151_spill] sm:$0xff] %v10366_v32 }
 0x895   :  { %v2178_v8 = vpop.f32.mrf.mxu1 }
 0x89d   :  { %v10354_v8 = vpop.f32.mrf.mxu1 }
 0x89e   :  { %v7066_v11 = vpop.eup %7065 }
 0x89f   :  { %v2183_v51 = vpop.f32.mrf.mxu1  ;;  %v4587_v55 = vmul.f32 %v7066_v11, %v4443_v29  ;;  %v7068_v18 = vpop.eup %7067 }
 0x8a0   :  { %v1305_v11 = vpop.f32.mrf.mxu0  ;;  %v254_v51 = vld [vmem:[%s13194_s1 + $0x6a8] sm:$0xff] }
 0x8a1   :  { %3741 = vadd.xlane.f32.xlu1 %v3740_v36  ;;  %6979 = vmatprep.mubr.msk.f32.mxu1 %vm329_vm1, %v254_v51  ;;  %v13598_v11 = vld [vmem:[#allocation96_spill] sm:$0xff] }
 0x8a2   :  { %6835 = vmatprep.mubr.msk.f32.mxu0 %vm329_vm1, %v254_v51  ;;  %v13600_v51 = vld [vmem:[#allocation149_spill] sm:$0xff] }
 0x8a4   :  { %3744 = vadd.xlane.f32.xlu0 %v3743_v2  ;;  %v4588_v2 = vmul.f32 %v7068_v18, %v4444_v6  ;;  %v13597_v18 = vld [vmem:[#allocation11_spill] sm:$0xff] }
 0x8b2   :  { %4821 = vperm.xlu1 %7019, %v4587_v55   ;;  %v10369_v55 = vpop.permute.xlu0 %2996 }
 0x8b3   :  { %13594 = vst [vmem:[#allocation107_spill] sm:$0xff] %v10369_v55 }
 0x8b6   :  { %3021 = vperm.xlu1 %7019, %v2499_v49   ;;  %v253_v49 = vld [vmem:[%s13194_s1 + $0x6a0] sm:$0xff] }
 0x8b7   :  { %2215 = vmatmul.mubr.f32.gmra.mxu1 %v253_v49  ;;  %1357 = vmatmul.mubr.f32.gmra.mxu0 %v253_v49  ;;  %v4013_v49 = vmul.f32 0.020408163, %v13600_v51  ;;  %v13606_v51 = vld [vmem:[#allocation164_spill] sm:$0xff] }
 0x8b8   :  { %v10364_v36 = vpop.xlane.xlu1 %3729 }
 0x8b9   :  { %13592 = vst [vmem:[#allocation141_spill] sm:$0xff] %v10364_v36 }
 0x8ba   :  { %4826 = vperm.xlu0 %7020, %v4588_v2  }
 0x8bb   :  { %v10380_v26 = vpop.xlane.xlu0 %3732 }
 0x8bc   :  { %v4802_v29 = vpop.permute.xlu1 %4801  ;;  %13596 = vst [vmem:[#allocation110_spill] sm:$0xff] %v10380_v26 }
 0x8bd   :  { %v5447_v36 = vmul.f32 %v4802_v29, %v13595_v46  ;;  %v13599_v29 = vld [vmem:[#allocation14_spill] sm:$0xff] }
 0x8be   :  { %3026 = vperm.xlu0 %7020, %v2500_v15   ;;  %v255_v15 = vld [vmem:[%s13194_s1 + $0x6b0] sm:$0xff] }
 0x8bf   :  { %v6455_v6 = vadd.f32 %v13597_v18, %v5447_v36  ;;  %v256_v36 = vld [vmem:[%s13194_s1 + $0x6b8] sm:$0xff]  ;;  %v13602_v18 = vld [vmem:[#allocation119_spill] sm:$0xff] }
 0x8c0   :  { %6980 = vmatprep.mubr.msk.f32.mxu1 %vm329_vm1, %v256_v36  ;;  %6836 = vmatprep.mubr.msk.f32.mxu0 %vm329_vm1, %v256_v36 }
 0x8c1   :  { %6599 = vst.msk [vmem:[%s13196_s4 + $0x90] sm:$0xff] %vm1547_vm0, %v6455_v6  ;;  %2220 = vmatmul.mubr.f32.gmra.mxu1 %v255_v15  ;;  %1362 = vmatmul.mubr.f32.gmra.mxu0 %v255_v15 }
 0x8c3   :  { %v4807_v2 = vpop.permute.xlu0 %4806 }
 0x8c4   :  { %v5448_v32 = vmul.f32 %v4807_v2, %v13598_v11  ;;  %v13604_v11 = vld [vmem:[#allocation122_spill] sm:$0xff] }
 0x8c6   :  { %v6456_v46 = vadd.f32 %v13599_v29, %v5448_v32  ;;  %v13601_v32 = vld [vmem:[#allocation163_spill] sm:$0xff]  ;;  %v10410_v29 = vsub.f32 %v13604_v11, %v9705_v54 }
 0x8c7   :  { %v10404_v6 = vsub.f32 %v13602_v18, %v13601_v32  ;;  %v4014_v32 = vmul.f32 0.020408163, %v13606_v51  ;;  %v10425_v51 = vpop.f32.mrf.mxu0 }
 0x8c8   :  { %6600 = vst.msk [vmem:[%s13196_s4 + $0x98] sm:$0xff] %vm1547_vm0, %v6456_v46  ;;  %13605 = vst [vmem:[#allocation91_spill] sm:$0xff] %v10410_v29  ;;  %v4157_v46 = vadd.f32 1e-05, %v4013_v49  ;;  %v3477_v36 = vmul.f32 %v10410_v29, %v10410_v29  ;;  %v4445_v49 = vld [vmem:[%s13195_s2 + $0xc0] sm:$0xff] }
 0x8c9   :  { %13603 = vst [vmem:[#allocation150_spill] sm:$0xff] %v10404_v6  ;;  %v3476_v26 = vmul.f32 %v10404_v6, %v10404_v6  ;;  %v4158_v55 = vadd.f32 1e-05, %v4014_v32  ;;  %13607 = vst [vmem:[#allocation6_spill] sm:$0xff] %v10425_v51 }
 0x8ca   :  { %7069 = vrsqrt.f32 %v4157_v46  ;;  %v3749_v15 = vsel %vm1547_vm0, %v3477_v36, 0.0  ;;  %v2501_v46 = vmul.f32 0.020408163, %v10270_v34  ;;  %v1310_v36 = vpop.f32.mrf.mxu0  ;;  %v2502_v34 = vmul.f32 0.020408163, %v10286_v59 }
 0x8cb   :  { %v3746_v18 = vsel %vm1547_vm0, %v3476_v26, 0.0  ;;  %7071 = vrsqrt.f32 %v4158_v55  ;;  %v10427_v26 = vpop.permute.xlu1 %3001  ;;  %v4446_v55 = vld [vmem:[%s13195_s2 + $0xc8] sm:$0xff]  ;;  %v13610_v36 = vld [vmem:[#allocation97_spill] sm:$0xff] }
 0x8cc   :  { %v10406_v2 = vpop.f32.mrf.mxu1  ;;  %v10434_v6 = vpop.f32.mrf.mxu0 }
 0x8cd   :  { %13609 = vst [vmem:[#allocation10_spill] sm:$0xff] %v10434_v6 }
 0x8ce   :  { %v2188_v10 = vpop.f32.mrf.mxu1 }
 0x8d6   :  { %v10422_v10 = vpop.f32.mrf.mxu1 }
 0x8d7   :  { %v7070_v54 = vpop.eup %7069 }
 0x8d8   :  { %v2193_v11 = vpop.f32.mrf.mxu1  ;;  %v4589_v29 = vmul.f32 %v7070_v54, %v4445_v49  ;;  %v7072_v32 = vpop.eup %7071 }
 0x8d9   :  { %v1315_v54 = vpop.f32.mrf.mxu0  ;;  %v258_v11 = vld [vmem:[%s13194_s1 + $0x6c8] sm:$0xff] }
 0x8da   :  { %3747 = vadd.xlane.f32.xlu1 %v3746_v18  ;;  %6981 = vmatprep.mubr.msk.f32.mxu1 %vm329_vm1, %v258_v11  ;;  %v13613_v54 = vld [vmem:[#allocation100_spill] sm:$0xff] }
 0x8db   :  { %6837 = vmatprep.mubr.msk.f32.mxu0 %vm329_vm1, %v258_v11  ;;  %v13615_v11 = vld [vmem:[#allocation152_spill] sm:$0xff] }
 0x8dd   :  { %3750 = vadd.xlane.f32.xlu0 %v3749_v15  ;;  %v4590_v15 = vmul.f32 %v7072_v32, %v4446_v55  ;;  %v13612_v32 = vld [vmem:[#allocation13_spill] sm:$0xff] }
 0x8eb   :  { %4831 = vperm.xlu1 %7019, %v4589_v29   ;;  %v10437_v29 = vpop.permute.xlu0 %3006 }
 0x8ef   :  { %3031 = vperm.xlu1 %7019, %v2501_v46   ;;  %v257_v46 = vld [vmem:[%s13194_s1 + $0x6c0] sm:$0xff] }
 0x8f0   :  { %2225 = vmatmul.mubr.f32.gmra.mxu1 %v257_v46  ;;  %1367 = vmatmul.mubr.f32.gmra.mxu0 %v257_v46  ;;  %v4015_v46 = vmul.f32 0.020408163, %v13615_v11  ;;  %v4016_v11 = vmul.f32 0.020408163, %v9669_v48  ;;  %v10493_v48 = vpop.f32.mrf.mxu0 }
 0x8f1   :  { %v10432_v18 = vpop.xlane.xlu1 %3735  ;;  %13621 = vst [vmem:[#allocation114_spill] sm:$0xff] %v10493_v48 }
 0x8f2   :  { %13608 = vst [vmem:[#allocation92_spill] sm:$0xff] %v10432_v18 }
 0x8f3   :  { %4836 = vperm.xlu0 %7020, %v4590_v15  }
 0x8f4   :  { %v10448_v59 = vpop.xlane.xlu0 %3738 }
 0x8f5   :  { %v4812_v49 = vpop.permute.xlu1 %4811  ;;  %13611 = vst [vmem:[#allocation144_spill] sm:$0xff] %v10448_v59 }
 0x8f6   :  { %v5449_v18 = vmul.f32 %v4812_v49, %v13610_v36  ;;  %v13614_v49 = vld [vmem:[#allocation16_spill] sm:$0xff] }
 0x8f7   :  { %3036 = vperm.xlu0 %7020, %v2502_v34   ;;  %v259_v34 = vld [vmem:[%s13194_s1 + $0x6d0] sm:$0xff] }
 0x8f8   :  { %v6457_v55 = vadd.f32 %v13612_v32, %v5449_v18  ;;  %v260_v18 = vld [vmem:[%s13194_s1 + $0x6d8] sm:$0xff]  ;;  %v13617_v32 = vld [vmem:[#allocation123_spill] sm:$0xff] }
 0x8f9   :  { %6982 = vmatprep.mubr.msk.f32.mxu1 %vm329_vm1, %v260_v18  ;;  %6838 = vmatprep.mubr.msk.f32.mxu0 %vm329_vm1, %v260_v18 }
 0x8fa   :  { %6601 = vst.msk [vmem:[%s13196_s4 + $0xa0] sm:$0xff] %vm1547_vm0, %v6457_v55  ;;  %2230 = vmatmul.mubr.f32.gmra.mxu1 %v259_v34  ;;  %1372 = vmatmul.mubr.f32.gmra.mxu0 %v259_v34 }
 0x8fc   :  { %v4817_v15 = vpop.permute.xlu0 %4816 }
 0x8fd   :  { %v5450_v6 = vmul.f32 %v4817_v15, %v13613_v54  ;;  %v13619_v54 = vld [vmem:[#allocation126_spill] sm:$0xff] }
 0x8ff   :  { %v6458_v36 = vadd.f32 %v13614_v49, %v5450_v6  ;;  %v13616_v6 = vld [vmem:[#allocation166_spill] sm:$0xff]  ;;  %v10478_v49 = vsub.f32 %v13619_v54, %v9737_v57 }
 0x900   :  { %v10472_v55 = vsub.f32 %v13617_v32, %v13616_v6  ;;  %v4160_v32 = vadd.f32 1e-05, %v4016_v11 }
 0x901   :  { %6602 = vst.msk [vmem:[%s13196_s4 + $0xa8] sm:$0xff] %vm1547_vm0, %v6458_v36  ;;  %13620 = vst [vmem:[#allocation111_spill] sm:$0xff] %v10478_v49  ;;  %v4159_v36 = vadd.f32 1e-05, %v4015_v46  ;;  %v3479_v18 = vmul.f32 %v10478_v49, %v10478_v49  ;;  %v4447_v46 = vld [vmem:[%s13195_s2 + $0xd0] sm:$0xff] }
 0x902   :  { %13618 = vst [vmem:[#allocation154_spill] sm:$0xff] %v10472_v55  ;;  %v3478_v59 = vmul.f32 %v10472_v55, %v10472_v55 }
 0x903   :  { %7073 = vrsqrt.f32 %v4159_v36  ;;  %v3755_v34 = vsel %vm1547_vm0, %v3479_v18, 0.0  ;;  %v2503_v36 = vmul.f32 0.020408163, %v10338_v62  ;;  %v1320_v18 = vpop.f32.mrf.mxu0  ;;  %v2504_v62 = vmul.f32 0.020408163, %v10354_v8 }
 0x904   :  { %v3752_v6 = vsel %vm1547_vm0, %v3478_v59, 0.0  ;;  %7075 = vrsqrt.f32 %v4160_v32  ;;  %v10495_v59 = vpop.permute.xlu1 %3011  ;;  %v13624_v18 = vld [vmem:[#allocation101_spill] sm:$0xff] }
 0x905   :  { %v10474_v15 = vpop.f32.mrf.mxu1  ;;  %v10502_v55 = vpop.f32.mrf.mxu0 }
 0x906   :  { %13623 = vst [vmem:[#allocation93_spill] sm:$0xff] %v10502_v55 }
 0x907   :  { %v2198_v51 = vpop.f32.mrf.mxu1 }
 0x90f   :  { %v10490_v51 = vpop.f32.mrf.mxu1 }
 0x910   :  { %v7074_v57 = vpop.eup %7073 }
 0x911   :  { %v2203_v54 = vpop.f32.mrf.mxu1  ;;  %v4591_v49 = vmul.f32 %v7074_v57, %v4447_v46  ;;  %v7076_v11 = vpop.eup %7075 }
 0x912   :  { %v1325_v57 = vpop.f32.mrf.mxu0  ;;  %v262_v54 = vld [vmem:[%s13194_s1 + $0x6e8] sm:$0xff] }
 0x913   :  { %3753 = vadd.xlane.f32.xlu1 %v3752_v6  ;;  %v4448_v6 = vld [vmem:[%s13195_s2 + $0xd8] sm:$0xff]  ;;  %6983 = vmatprep.mubr.msk.f32.mxu1 %vm329_vm1, %v262_v54  ;;  %v13627_v57 = vld [vmem:[#allocation104_spill] sm:$0xff] }
 0x914   :  { %v4592_v32 = vmul.f32 %v7076_v11, %v4448_v6  ;;  %6839 = vmatprep.mubr.msk.f32.mxu0 %vm329_vm1, %v262_v54  ;;  %v13626_v11 = vld [vmem:[#allocation15_spill] sm:$0xff]  ;;  %v13629_v54 = vld [vmem:[#allocation157_spill] sm:$0xff] }
 0x916   :  { %3756 = vadd.xlane.f32.xlu0 %v3755_v34 }
 0x924   :  { %4841 = vperm.xlu1 %7019, %v4591_v49   ;;  %v10505_v49 = vpop.permute.xlu0 %3016 }
 0x928   :  { %3041 = vperm.xlu1 %7019, %v2503_v36   ;;  %v261_v36 = vld [vmem:[%s13194_s1 + $0x6e0] sm:$0xff] }
 0x929   :  { %2235 = vmatmul.mubr.f32.gmra.mxu1 %v261_v36  ;;  %1377 = vmatmul.mubr.f32.gmra.mxu0 %v261_v36  ;;  %v4017_v36 = vmul.f32 0.020408163, %v13629_v54  ;;  %v13634_v54 = vld [vmem:[#allocation171_spill] sm:$0xff] }
 0x92a   :  { %v10500_v34 = vpop.xlane.xlu1 %3741 }
 0x92b   :  { %13622 = vst [vmem:[#allocation153_spill] sm:$0xff] %v10500_v34 }
 0x92c   :  { %4846 = vperm.xlu0 %7020, %v4592_v32  }
 0x92d   :  { %v10516_v8 = vpop.xlane.xlu0 %3744 }
 0x92e   :  { %v4822_v46 = vpop.permute.xlu1 %4821  ;;  %13625 = vst [vmem:[#allocation9_spill] sm:$0xff] %v10516_v8 }
 0x92f   :  { %v5451_v34 = vmul.f32 %v4822_v46, %v13624_v18  ;;  %v13628_v46 = vld [vmem:[#allocation18_spill] sm:$0xff] }
 0x930   :  { %3046 = vperm.xlu0 %7020, %v2504_v62   ;;  %v263_v62 = vld [vmem:[%s13194_s1 + $0x6f0] sm:$0xff] }
 0x931   :  { %v6459_v6 = vadd.f32 %v13626_v11, %v5451_v34  ;;  %v264_v34 = vld [vmem:[%s13194_s1 + $0x6f8] sm:$0xff] }
 0x932   :  { %6984 = vmatprep.mubr.msk.f32.mxu1 %vm329_vm1, %v264_v34  ;;  %6840 = vmatprep.mubr.msk.f32.mxu0 %vm329_vm1, %v264_v34 }
 0x933   :  { %6603 = vst.msk [vmem:[%s13196_s4 + $0xb0] sm:$0xff] %vm1547_vm0, %v6459_v6  ;;  %2240 = vmatmul.mubr.f32.gmra.mxu1 %v263_v62  ;;  %1382 = vmatmul.mubr.f32.gmra.mxu0 %v263_v62 }
 0x935   :  { %v4827_v32 = vpop.permute.xlu0 %4826 }
 0x936   :  { %v5452_v55 = vmul.f32 %v4827_v32, %v13627_v57  ;;  %v13632_v32 = vld [vmem:[#allocation130_spill] sm:$0xff] }
 0x937   :  { %v10546_v57 = vsub.f32 %v13632_v32, %v9743_v56 }
 0x938   :  { %v6460_v18 = vadd.f32 %v13628_v46, %v5452_v55  ;;  %v13630_v55 = vld [vmem:[#allocation127_spill] sm:$0xff]  ;;  %v4161_v46 = vadd.f32 1e-05, %v4017_v36  ;;  %v4449_v36 = vld [vmem:[%s13195_s2 + $0xe0] sm:$0xff] }
 0x939   :  { %v10540_v11 = vsub.f32 %v13630_v55, %v9674_v7  ;;  %13633 = vst [vmem:[#allocation12_spill] sm:$0xff] %v10546_v57  ;;  %v3481_v34 = vmul.f32 %v10546_v57, %v10546_v57  ;;  %v4018_v7 = vmul.f32 0.020408163, %v13634_v54  ;;  %v10561_v54 = vpop.f32.mrf.mxu0 }
 0x93a   :  { %6604 = vst.msk [vmem:[%s13196_s4 + $0xb8] sm:$0xff] %vm1547_vm0, %v6460_v18  ;;  %7077 = vrsqrt.f32 %v4161_v46  ;;  %v2505_v46 = vmul.f32 0.020408163, %v10406_v2  ;;  %13635 = vst [vmem:[#allocation147_spill] sm:$0xff] %v10561_v54  ;;  %v2506_v2 = vmul.f32 0.020408163, %v10422_v10 }
 0x93b   :  { %13631 = vst [vmem:[#allocation94_spill] sm:$0xff] %v10540_v11  ;;  %v3480_v18 = vmul.f32 %v10540_v11, %v10540_v11  ;;  %v3761_v62 = vsel %vm1547_vm0, %v3481_v34, 0.0  ;;  %v4162_v48 = vadd.f32 1e-05, %v4018_v7  ;;  %v1330_v34 = vpop.f32.mrf.mxu0 }
 0x93c   :  { %v13639_v34 = vld [vmem:[#allocation105_spill] sm:$0xff] }
 0x93d   :  { %v3758_v55 = vsel %vm1547_vm0, %v3480_v18, 0.0  ;;  %7079 = vrsqrt.f32 %v4162_v48  ;;  %v10563_v18 = vpop.permute.xlu1 %3021  ;;  %v4450_v48 = vld [vmem:[%s13195_s2 + $0xe8] sm:$0xff]  ;;  %v10570_v11 = vpop.f32.mrf.mxu0 }
 0x93e   :  { %v10542_v6 = vpop.f32.mrf.mxu1  ;;  %13637 = vst [vmem:[#allocation115_spill] sm:$0xff] %v10570_v11 }
 0x940   :  { %v2208_v8 = vpop.f32.mrf.mxu1 }
 0x947   :  { %v7078_v56 = vpop.eup %7077 }
 0x948   :  { %v10558_v8 = vpop.f32.mrf.mxu1  ;;  %v4593_v57 = vmul.f32 %v7078_v56, %v4449_v36  ;;  %v1335_v56 = vpop.f32.mrf.mxu0 }
 0x949   :  { %v13642_v56 = vld [vmem:[#allocation108_spill] sm:$0xff] }
 0x94a   :  { %v2213_v32 = vpop.f32.mrf.mxu1  ;;  %v7080_v7 = vpop.eup %7079 }
 0x94b   :  { %v266_v32 = vld [vmem:[%s13194_s1 + $0x708] sm:$0xff] }
 0x94c   :  { %3759 = vadd.xlane.f32.xlu1 %v3758_v55  ;;  %6985 = vmatprep.mubr.msk.f32.mxu1 %vm329_vm1, %v266_v32 }
 0x94d   :  { %6841 = vmatprep.mubr.msk.f32.mxu0 %vm329_vm1, %v266_v32  ;;  %v13644_v32 = vld [vmem:[#allocation161_spill] sm:$0xff] }
 0x94f   :  { %3762 = vadd.xlane.f32.xlu0 %v3761_v62  ;;  %v4594_v62 = vmul.f32 %v7080_v7, %v4450_v48  ;;  %v13641_v7 = vld [vmem:[#allocation17_spill] sm:$0xff] }
 0x95d   :  { %4851 = vperm.xlu1 %7019, %v4593_v57   ;;  %v10573_v57 = vpop.permute.xlu0 %3026 }
 0x95e   :  { %13638 = vst [vmem:[#allocation118_spill] sm:$0xff] %v10573_v57 }
 0x961   :  { %3051 = vperm.xlu1 %7019, %v2505_v46   ;;  %v265_v46 = vld [vmem:[%s13194_s1 + $0x700] sm:$0xff] }
 0x962   :  { %2245 = vmatmul.mubr.f32.gmra.mxu1 %v265_v46  ;;  %1387 = vmatmul.mubr.f32.gmra.mxu0 %v265_v46  ;;  %v4019_v46 = vmul.f32 0.020408163, %v13644_v32  ;;  %v13650_v32 = vld [vmem:[#allocation175_spill] sm:$0xff] }
 0x963   :  { %v10568_v55 = vpop.xlane.xlu1 %3747 }
 0x964   :  { %13636 = vst [vmem:[#allocation159_spill] sm:$0xff] %v10568_v55 }
 0x965   :  { %4856 = vperm.xlu0 %7020, %v4594_v62  }
 0x966   :  { %v10584_v10 = vpop.xlane.xlu0 %3750 }
 0x967   :  { %v4832_v36 = vpop.permute.xlu1 %4831  ;;  %13640 = vst [vmem:[#allocation160_spill] sm:$0xff] %v10584_v10 }
 0x968   :  { %v5453_v55 = vmul.f32 %v4832_v36, %v13639_v34  ;;  %v13643_v36 = vld [vmem:[#allocation20_spill] sm:$0xff] }
 0x969   :  { %3056 = vperm.xlu0 %7020, %v2506_v2   ;;  %v267_v2 = vld [vmem:[%s13194_s1 + $0x710] sm:$0xff] }
 0x96a   :  { %v6461_v48 = vadd.f32 %v13641_v7, %v5453_v55  ;;  %v268_v55 = vld [vmem:[%s13194_s1 + $0x718] sm:$0xff]  ;;  %v13646_v7 = vld [vmem:[#allocation131_spill] sm:$0xff] }
 0x96b   :  { %6986 = vmatprep.mubr.msk.f32.mxu1 %vm329_vm1, %v268_v55  ;;  %6842 = vmatprep.mubr.msk.f32.mxu0 %vm329_vm1, %v268_v55 }
 0x96c   :  { %6605 = vst.msk [vmem:[%s13196_s4 + $0xc0] sm:$0xff] %vm1547_vm0, %v6461_v48  ;;  %2250 = vmatmul.mubr.f32.gmra.mxu1 %v267_v2  ;;  %1392 = vmatmul.mubr.f32.gmra.mxu0 %v267_v2 }
 0x96e   :  { %v4837_v62 = vpop.permute.xlu0 %4836 }
 0x96f   :  { %v5454_v11 = vmul.f32 %v4837_v62, %v13642_v56  ;;  %v13648_v56 = vld [vmem:[#allocation134_spill] sm:$0xff] }
 0x971   :  { %v6462_v34 = vadd.f32 %v13643_v36, %v5454_v11  ;;  %v13645_v11 = vld [vmem:[#allocation172_spill] sm:$0xff]  ;;  %v10614_v36 = vsub.f32 %v13648_v56, %v9755_v16 }
 0x972   :  { %v10608_v48 = vsub.f32 %v13646_v7, %v13645_v11  ;;  %v4020_v11 = vmul.f32 0.020408163, %v13650_v32  ;;  %v10629_v32 = vpop.f32.mrf.mxu0 }
 0x973   :  { %6606 = vst.msk [vmem:[%s13196_s4 + $0xc8] sm:$0xff] %vm1547_vm0, %v6462_v34  ;;  %13649 = vst [vmem:[#allocation11_spill] sm:$0xff] %v10614_v36  ;;  %v4163_v34 = vadd.f32 1e-05, %v4019_v46  ;;  %v3483_v55 = vmul.f32 %v10614_v36, %v10614_v36  ;;  %v4451_v46 = vld [vmem:[%s13195_s2 + $0xf0] sm:$0xff] }
 0x974   :  { %13647 = vst [vmem:[#allocation95_spill] sm:$0xff] %v10608_v48  ;;  %v3482_v10 = vmul.f32 %v10608_v48, %v10608_v48  ;;  %v4164_v57 = vadd.f32 1e-05, %v4020_v11  ;;  %13651 = vst [vmem:[#allocation96_spill] sm:$0xff] %v10629_v32 }
 0x975   :  { %7081 = vrsqrt.f32 %v4163_v34  ;;  %v3767_v2 = vsel %vm1547_vm0, %v3483_v55, 0.0  ;;  %v2507_v34 = vmul.f32 0.020408163, %v10474_v15  ;;  %v1340_v55 = vpop.f32.mrf.mxu0  ;;  %v2508_v15 = vmul.f32 0.020408163, %v10490_v51 }
 0x976   :  { %v3764_v7 = vsel %vm1547_vm0, %v3482_v10, 0.0  ;;  %7083 = vrsqrt.f32 %v4164_v57  ;;  %v10631_v10 = vpop.permute.xlu1 %3031  ;;  %v4452_v57 = vld [vmem:[%s13195_s2 + $0xf8] sm:$0xff] }
 0x977   :  { %v10610_v62 = vpop.f32.mrf.mxu1  ;;  %v10638_v48 = vpop.f32.mrf.mxu0  ;;  %v13655_v55 = vld [vmem:[#allocation109_spill] sm:$0xff] }
 0x978   :  { %13653 = vst [vmem:[#allocation149_spill] sm:$0xff] %v10638_v48 }
 0x979   :  { %v2218_v54 = vpop.f32.mrf.mxu1 }
 0x981   :  { %v10626_v54 = vpop.f32.mrf.mxu1 }
 0x982   :  { %v7082_v16 = vpop.eup %7081 }
 0x983   :  { %v2223_v56 = vpop.f32.mrf.mxu1  ;;  %v4595_v36 = vmul.f32 %v7082_v16, %v4451_v46  ;;  %v7084_v11 = vpop.eup %7083 }
 0x984   :  { %v1345_v16 = vpop.f32.mrf.mxu0  ;;  %v270_v56 = vld [vmem:[%s13194_s1 + $0x728] sm:$0xff] }
 0x985   :  { %3765 = vadd.xlane.f32.xlu1 %v3764_v7  ;;  %6987 = vmatprep.mubr.msk.f32.mxu1 %vm329_vm1, %v270_v56  ;;  %v13658_v16 = vld [vmem:[#allocation112_spill] sm:$0xff] }
 0x986   :  { %6843 = vmatprep.mubr.msk.f32.mxu0 %vm329_vm1, %v270_v56  ;;  %v13660_v56 = vld [vmem:[#allocation165_spill] sm:$0xff] }
 0x988   :  { %3768 = vadd.xlane.f32.xlu0 %v3767_v2  ;;  %v4596_v2 = vmul.f32 %v7084_v11, %v4452_v57  ;;  %v13657_v11 = vld [vmem:[#allocation19_spill] sm:$0xff] }
 0x996   :  { %4861 = vperm.xlu1 %7019, %v4595_v36   ;;  %v10641_v36 = vpop.permute.xlu0 %3036 }
 0x997   :  { %13654 = vst [vmem:[#allocation163_spill] sm:$0xff] %v10641_v36 }
 0x99a   :  { %3061 = vperm.xlu1 %7019, %v2507_v34   ;;  %v269_v34 = vld [vmem:[%s13194_s1 + $0x720] sm:$0xff] }
 0x99b   :  { %2255 = vmatmul.mubr.f32.gmra.mxu1 %v269_v34  ;;  %1397 = vmatmul.mubr.f32.gmra.mxu0 %v269_v34  ;;  %v4021_v34 = vmul.f32 0.020408163, %v13660_v56  ;;  %v13666_v56 = vld [vmem:[#allocation177_spill] sm:$0xff] }
 0x99c   :  { %v10636_v7 = vpop.xlane.xlu1 %3753 }
 0x99d   :  { %13652 = vst [vmem:[#allocation14_spill] sm:$0xff] %v10636_v7 }
 0x99e   :  { %4866 = vperm.xlu0 %7020, %v4596_v2  }
 0x99f   :  { %v10652_v51 = vpop.xlane.xlu0 %3756 }
 0x9a0   :  { %v4842_v46 = vpop.permute.xlu1 %4841  ;;  %13656 = vst [vmem:[#allocation119_spill] sm:$0xff] %v10652_v51 }
 0x9a1   :  { %v5455_v7 = vmul.f32 %v4842_v46, %v13655_v55  ;;  %v13659_v46 = vld [vmem:[#allocation22_spill] sm:$0xff] }
 0x9a2   :  { %3066 = vperm.xlu0 %7020, %v2508_v15   ;;  %v271_v15 = vld [vmem:[%s13194_s1 + $0x730] sm:$0xff] }
 0x9a3   :  { %v6463_v57 = vadd.f32 %v13657_v11, %v5455_v7  ;;  %v272_v7 = vld [vmem:[%s13194_s1 + $0x738] sm:$0xff]  ;;  %v13662_v11 = vld [vmem:[#allocation135_spill] sm:$0xff] }
 0x9a4   :  { %6988 = vmatprep.mubr.msk.f32.mxu1 %vm329_vm1, %v272_v7  ;;  %6844 = vmatprep.mubr.msk.f32.mxu0 %vm329_vm1, %v272_v7 }
 0x9a5   :  { %6607 = vst.msk [vmem:[%s13196_s4 + $0xd0] sm:$0xff] %vm1547_vm0, %v6463_v57  ;;  %2260 = vmatmul.mubr.f32.gmra.mxu1 %v271_v15  ;;  %1402 = vmatmul.mubr.f32.gmra.mxu0 %v271_v15 }
 0x9a7   :  { %v4847_v2 = vpop.permute.xlu0 %4846 }
 0x9a8   :  { %v5456_v48 = vmul.f32 %v4847_v2, %v13658_v16  ;;  %v13664_v16 = vld [vmem:[#allocation142_spill] sm:$0xff] }
 0x9aa   :  { %v6464_v55 = vadd.f32 %v13659_v46, %v5456_v48  ;;  %v13661_v48 = vld [vmem:[#allocation174_spill] sm:$0xff]  ;;  %v10682_v46 = vsub.f32 %v13664_v16, %v9765_v19 }
 0x9ab   :  { %v10676_v57 = vsub.f32 %v13662_v11, %v13661_v48  ;;  %v4022_v48 = vmul.f32 0.020408163, %v13666_v56  ;;  %v10697_v56 = vpop.f32.mrf.mxu0 }
 0x9ac   :  { %6608 = vst.msk [vmem:[%s13196_s4 + $0xd8] sm:$0xff] %vm1547_vm0, %v6464_v55  ;;  %13665 = vst [vmem:[#allocation164_spill] sm:$0xff] %v10682_v46  ;;  %v4165_v55 = vadd.f32 1e-05, %v4021_v34  ;;  %v3485_v7 = vmul.f32 %v10682_v46, %v10682_v46  ;;  %v4453_v34 = vld [vmem:[%s13195_s2 + $0x100] sm:$0xff] }
 0x9ad   :  { %13663 = vst [vmem:[#allocation122_spill] sm:$0xff] %v10676_v57  ;;  %v3484_v51 = vmul.f32 %v10676_v57, %v10676_v57  ;;  %v4166_v36 = vadd.f32 1e-05, %v4022_v48  ;;  %13667 = vst [vmem:[#allocation97_spill] sm:$0xff] %v10697_v56 }
 0x9ae   :  { %7085 = vrsqrt.f32 %v4165_v55  ;;  %v3773_v15 = vsel %vm1547_vm0, %v3485_v7, 0.0  ;;  %v2509_v55 = vmul.f32 0.020408163, %v10542_v6  ;;  %v1350_v7 = vpop.f32.mrf.mxu0  ;;  %v2510_v6 = vmul.f32 0.020408163, %v10558_v8 }
 0x9af   :  { %v3770_v11 = vsel %vm1547_vm0, %v3484_v51, 0.0  ;;  %7087 = vrsqrt.f32 %v4166_v36  ;;  %v10699_v51 = vpop.permute.xlu1 %3041  ;;  %v4454_v36 = vld [vmem:[%s13195_s2 + $0x108] sm:$0xff]  ;;  %v13670_v7 = vld [vmem:[#allocation113_spill] sm:$0xff] }
 0x9b0   :  { %v10678_v2 = vpop.f32.mrf.mxu1  ;;  %v10706_v57 = vpop.f32.mrf.mxu0 }
 0x9b1   :  { %13669 = vst [vmem:[#allocation100_spill] sm:$0xff] %v10706_v57 }
 0x9b2   :  { %v2228_v32 = vpop.f32.mrf.mxu1 }
 0x9ba   :  { %v10694_v32 = vpop.f32.mrf.mxu1 }
 0x9bb   :  { %v7086_v19 = vpop.eup %7085 }
 0x9bc   :  { %v2233_v16 = vpop.f32.mrf.mxu1  ;;  %v4597_v46 = vmul.f32 %v7086_v19, %v4453_v34  ;;  %v7088_v48 = vpop.eup %7087 }
 0x9bd   :  { %v1355_v19 = vpop.f32.mrf.mxu0  ;;  %v274_v16 = vld [vmem:[%s13194_s1 + $0x748] sm:$0xff] }
 0x9be   :  { %3771 = vadd.xlane.f32.xlu1 %v3770_v11  ;;  %6989 = vmatprep.mubr.msk.f32.mxu1 %vm329_vm1, %v274_v16  ;;  %v13673_v19 = vld [vmem:[#allocation116_spill] sm:$0xff] }
 0x9bf   :  { %6845 = vmatprep.mubr.msk.f32.mxu0 %vm329_vm1, %v274_v16  ;;  %v13675_v16 = vld [vmem:[#allocation168_spill] sm:$0xff] }
 0x9c1   :  { %3774 = vadd.xlane.f32.xlu0 %v3773_v15  ;;  %v4598_v15 = vmul.f32 %v7088_v48, %v4454_v36  ;;  %v13672_v48 = vld [vmem:[#allocation21_spill] sm:$0xff] }
 0x9cf   :  { %4871 = vperm.xlu1 %7019, %v4597_v46   ;;  %v10709_v46 = vpop.permute.xlu0 %3046 }
 0x9d3   :  { %3071 = vperm.xlu1 %7019, %v2509_v55   ;;  %v273_v55 = vld [vmem:[%s13194_s1 + $0x740] sm:$0xff] }
 0x9d4   :  { %2265 = vmatmul.mubr.f32.gmra.mxu1 %v273_v55  ;;  %1407 = vmatmul.mubr.f32.gmra.mxu0 %v273_v55  ;;  %v4023_v55 = vmul.f32 0.020408163, %v13675_v16  ;;  %v13680_v16 = vld [vmem:[#allocation179_spill] sm:$0xff] }
 0x9d5   :  { %v10704_v11 = vpop.xlane.xlu1 %3759 }
 0x9d6   :  { %13668 = vst [vmem:[#allocation13_spill] sm:$0xff] %v10704_v11 }
 0x9d7   :  { %4876 = vperm.xlu0 %7020, %v4598_v15  }
 0x9d8   :  { %v10720_v8 = vpop.xlane.xlu0 %3762 }
 0x9d9   :  { %v4852_v34 = vpop.permute.xlu1 %4851  ;;  %13671 = vst [vmem:[#allocation16_spill] sm:$0xff] %v10720_v8 }
 0x9da   :  { %v5457_v11 = vmul.f32 %v4852_v34, %v13670_v7  ;;  %v13674_v34 = vld [vmem:[#allocation24_spill] sm:$0xff] }
 0x9db   :  { %3076 = vperm.xlu0 %7020, %v2510_v6   ;;  %v275_v6 = vld [vmem:[%s13194_s1 + $0x750] sm:$0xff] }
 0x9dc   :  { %v6465_v36 = vadd.f32 %v13672_v48, %v5457_v11  ;;  %v276_v11 = vld [vmem:[%s13194_s1 + $0x758] sm:$0xff] }
 0x9dd   :  { %6990 = vmatprep.mubr.msk.f32.mxu1 %vm329_vm1, %v276_v11  ;;  %6846 = vmatprep.mubr.msk.f32.mxu0 %vm329_vm1, %v276_v11 }
 0x9de   :  { %6609 = vst.msk [vmem:[%s13196_s4 + $0xe0] sm:$0xff] %vm1547_vm0, %v6465_v36  ;;  %2270 = vmatmul.mubr.f32.gmra.mxu1 %v275_v6  ;;  %1412 = vmatmul.mubr.f32.gmra.mxu0 %v275_v6 }
 0x9e0   :  { %v4857_v15 = vpop.permute.xlu0 %4856 }
 0x9e1   :  { %v5458_v57 = vmul.f32 %v4857_v15, %v13673_v19  ;;  %v13678_v15 = vld [vmem:[#allocation167_spill] sm:$0xff] }
 0x9e2   :  { %v10750_v19 = vsub.f32 %v13678_v15, %v9883_v42 }
 0x9e3   :  { %v6466_v7 = vadd.f32 %v13674_v34, %v5458_v57  ;;  %v13676_v57 = vld [vmem:[#allocation145_spill] sm:$0xff]  ;;  %v4167_v34 = vadd.f32 1e-05, %v4023_v55  ;;  %v4455_v55 = vld [vmem:[%s13195_s2 + $0x110] sm:$0xff] }
 0x9e4   :  { %v10744_v48 = vsub.f32 %v13676_v57, %v9825_v25  ;;  %13679 = vst [vmem:[#allocation166_spill] sm:$0xff] %v10750_v19  ;;  %v3487_v11 = vmul.f32 %v10750_v19, %v10750_v19  ;;  %v4024_v25 = vmul.f32 0.020408163, %v13680_v16  ;;  %v10765_v16 = vpop.f32.mrf.mxu0 }
 0x9e5   :  { %6610 = vst.msk [vmem:[%s13196_s4 + $0xe8] sm:$0xff] %vm1547_vm0, %v6466_v7  ;;  %7089 = vrsqrt.f32 %v4167_v34  ;;  %v2511_v34 = vmul.f32 0.020408163, %v10610_v62  ;;  %v2512_v62 = vmul.f32 0.020408163, %v10626_v54 }
 0x9e6   :  { %13677 = vst [vmem:[#allocation152_spill] sm:$0xff] %v10744_v48  ;;  %v3486_v7 = vmul.f32 %v10744_v48, %v10744_v48  ;;  %v3779_v6 = vsel %vm1547_vm0, %v3487_v11, 0.0  ;;  %v4168_v56 = vadd.f32 1e-05, %v4024_v25  ;;  %v1360_v11 = vpop.f32.mrf.mxu0 }
 0x9e7   :  { %v13683_v11 = vld [vmem:[#allocation117_spill] sm:$0xff] }
 0x9e8   :  { %v3776_v57 = vsel %vm1547_vm0, %v3486_v7, 0.0  ;;  %7091 = vrsqrt.f32 %v4168_v56  ;;  %v10767_v7 = vpop.permute.xlu1 %3051  ;;  %v4456_v56 = vld [vmem:[%s13195_s2 + $0x118] sm:$0xff]  ;;  %v10774_v48 = vpop.f32.mrf.mxu0 }
 0x9e9   :  { %v10746_v36 = vpop.f32.mrf.mxu1  ;;  %13682 = vst [vmem:[#allocation126_spill] sm:$0xff] %v10774_v48 }
 0x9eb   :  { %v2238_v8 = vpop.f32.mrf.mxu1 }
 0x9f2   :  { %v7090_v42 = vpop.eup %7089 }
 0x9f3   :  { %v10762_v8 = vpop.f32.mrf.mxu1  ;;  %v4599_v19 = vmul.f32 %v7090_v42, %v4455_v55  ;;  %v1365_v42 = vpop.f32.mrf.mxu0 }
 0x9f4   :  { %v13686_v42 = vld [vmem:[#allocation120_spill] sm:$0xff] }
 0x9f5   :  { %v2243_v15 = vpop.f32.mrf.mxu1  ;;  %v7092_v25 = vpop.eup %7091 }
 0x9f6   :  { %v278_v15 = vld [vmem:[%s13194_s1 + $0x768] sm:$0xff] }
 0x9f7   :  { %3777 = vadd.xlane.f32.xlu1 %v3776_v57  ;;  %6991 = vmatprep.mubr.msk.f32.mxu1 %vm329_vm1, %v278_v15 }
 0x9f8   :  { %6847 = vmatprep.mubr.msk.f32.mxu0 %vm329_vm1, %v278_v15  ;;  %v13688_v15 = vld [vmem:[#allocation170_spill] sm:$0xff] }
 0x9fa   :  { %3780 = vadd.xlane.f32.xlu0 %v3779_v6  ;;  %v4600_v6 = vmul.f32 %v7092_v25, %v4456_v56  ;;  %v13685_v25 = vld [vmem:[#allocation23_spill] sm:$0xff] }
 0xa08   :  { %4881 = vperm.xlu1 %7019, %v4599_v19   ;;  %v10777_v19 = vpop.permute.xlu0 %3056 }
 0xa0c   :  { %3081 = vperm.xlu1 %7019, %v2511_v34   ;;  %v277_v34 = vld [vmem:[%s13194_s1 + $0x760] sm:$0xff] }
 0xa0d   :  { %2275 = vmatmul.mubr.f32.gmra.mxu1 %v277_v34  ;;  %1417 = vmatmul.mubr.f32.gmra.mxu0 %v277_v34  ;;  %v4025_v34 = vmul.f32 0.020408163, %v13688_v15  ;;  %v13692_v15 = vld [vmem:[#allocation180_spill] sm:$0xff] }
 0xa0e   :  { %v10772_v57 = vpop.xlane.xlu1 %3765 }
 0xa0f   :  { %13681 = vst [vmem:[#allocation123_spill] sm:$0xff] %v10772_v57 }
 0xa10   :  { %4886 = vperm.xlu0 %7020, %v4600_v6  }
 0xa11   :  { %v10788_v54 = vpop.xlane.xlu0 %3768 }
 0xa12   :  { %v4862_v55 = vpop.permute.xlu1 %4861  ;;  %13684 = vst [vmem:[#allocation101_spill] sm:$0xff] %v10788_v54 }
 0xa13   :  { %v5459_v57 = vmul.f32 %v4862_v55, %v13683_v11  ;;  %v13687_v55 = vld [vmem:[#allocation26_spill] sm:$0xff] }
 0xa14   :  { %3086 = vperm.xlu0 %7020, %v2512_v62   ;;  %v279_v62 = vld [vmem:[%s13194_s1 + $0x770] sm:$0xff] }
 0xa15   :  { %v6467_v56 = vadd.f32 %v13685_v25, %v5459_v57  ;;  %v280_v57 = vld [vmem:[%s13194_s1 + $0x778] sm:$0xff] }
 0xa16   :  { %6992 = vmatprep.mubr.msk.f32.mxu1 %vm329_vm1, %v280_v57  ;;  %6848 = vmatprep.mubr.msk.f32.mxu0 %vm329_vm1, %v280_v57 }
 0xa17   :  { %6611 = vst.msk [vmem:[%s13196_s4 + $0xf0] sm:$0xff] %vm1547_vm0, %v6467_v56  ;;  %2280 = vmatmul.mubr.f32.gmra.mxu1 %v279_v62  ;;  %1422 = vmatmul.mubr.f32.gmra.mxu0 %v279_v62 }
 0xa19   :  { %v4867_v6 = vpop.permute.xlu0 %4866 }
 0xa1a   :  { %v5460_v48 = vmul.f32 %v4867_v6, %v13686_v42  ;;  %v10818_v6 = vsub.f32 %v9753_v37, %v9951_v58  ;;  %v4169_v42 = vadd.f32 1e-05, %v4025_v34  ;;  %v4457_v58 = vld [vmem:[%s13195_s2 + $0x120] sm:$0xff] }
 0xa1c   :  { %v6468_v11 = vadd.f32 %v13687_v55, %v5460_v48  ;;  %v13689_v48 = vld [vmem:[#allocation169_spill] sm:$0xff]  ;;  %13691 = vst [vmem:[#allocation104_spill] sm:$0xff] %v10818_v6  ;;  %v3489_v57 = vmul.f32 %v10818_v6, %v10818_v6  ;;  %7093 = vrsqrt.f32 %v4169_v42  ;;  %v2513_v42 = vmul.f32 0.020408163, %v10678_v2 }
 0xa1d   :  { %v10812_v25 = vsub.f32 %v13689_v48, %v9893_v9  ;;  %v4026_v9 = vmul.f32 0.020408163, %v13692_v15  ;;  %v10833_v15 = vpop.f32.mrf.mxu0  ;;  %v2514_v2 = vmul.f32 0.020408163, %v10694_v32 }
 0xa1e   :  { %6612 = vst.msk [vmem:[%s13196_s4 + $0xf8] sm:$0xff] %vm1547_vm0, %v6468_v11  ;;  %v3785_v62 = vsel %vm1547_vm0, %v3489_v57, 0.0 }
 0xa1f   :  { %13690 = vst [vmem:[#allocation15_spill] sm:$0xff] %v10812_v25  ;;  %v3488_v55 = vmul.f32 %v10812_v25, %v10812_v25  ;;  %v4170_v54 = vadd.f32 1e-05, %v4026_v9  ;;  %v1370_v57 = vpop.f32.mrf.mxu0 }
 0xa20   :  { %v13695_v57 = vld [vmem:[#allocation121_spill] sm:$0xff] }
 0xa21   :  { %v3782_v48 = vsel %vm1547_vm0, %v3488_v55, 0.0  ;;  %7095 = vrsqrt.f32 %v4170_v54  ;;  %v10835_v55 = vpop.permute.xlu1 %3061  ;;  %v4458_v54 = vld [vmem:[%s13195_s2 + $0x128] sm:$0xff]  ;;  %v10842_v25 = vpop.f32.mrf.mxu0 }
 0xa22   :  { %v10814_v56 = vpop.f32.mrf.mxu1  ;;  %13694 = vst [vmem:[#allocation157_spill] sm:$0xff] %v10842_v25 }
 0xa24   :  { %v2248_v11 = vpop.f32.mrf.mxu1 }
 0xa29   :  { %v7094_v37 = vpop.eup %7093 }
 0xa2a   :  { %v4601_v6 = vmul.f32 %v7094_v37, %v4457_v58  ;;  %v1375_v37 = vpop.f32.mrf.mxu0 }
 0xa2b   :  { %v13697_v37 = vld [vmem:[#allocation124_spill] sm:$0xff] }
 0xa2c   :  { %v10830_v34 = vpop.f32.mrf.mxu1 }
 0xa2e   :  { %v2253_v11 = vpop.f32.mrf.mxu1  ;;  %v7096_v9 = vpop.eup %7095 }
 0xa2f   :  { %v282_v11 = vld [vmem:[%s13194_s1 + $0x788] sm:$0xff] }
 0xa30   :  { %3783 = vadd.xlane.f32.xlu1 %v3782_v48  ;;  %6993 = vmatprep.mubr.msk.f32.mxu1 %vm329_vm1, %v282_v11 }
 0xa31   :  { %6849 = vmatprep.mubr.msk.f32.mxu0 %vm329_vm1, %v282_v11  ;;  %v13699_v11 = vld [vmem:[#allocation173_spill] sm:$0xff] }
 0xa33   :  { %3786 = vadd.xlane.f32.xlu0 %v3785_v62  ;;  %v4602_v62 = vmul.f32 %v7096_v9, %v4458_v54  ;;  %v13696_v9 = vld [vmem:[#allocation25_spill] sm:$0xff] }
 0xa41   :  { %4891 = vperm.xlu1 %7019, %v4601_v6   ;;  %v10845_v6 = vpop.permute.xlu0 %3066 }
 0xa45   :  { %3091 = vperm.xlu1 %7019, %v2513_v42   ;;  %v281_v42 = vld [vmem:[%s13194_s1 + $0x780] sm:$0xff] }
 0xa46   :  { %2285 = vmatmul.mubr.f32.gmra.mxu1 %v281_v42  ;;  %1427 = vmatmul.mubr.f32.gmra.mxu0 %v281_v42  ;;  %v4027_v42 = vmul.f32 0.020408163, %v13699_v11 }
 0xa47   :  { %v10840_v48 = vpop.xlane.xlu1 %3771 }
 0xa48   :  { %13693 = vst [vmem:[#allocation18_spill] sm:$0xff] %v10840_v48 }
 0xa49   :  { %4896 = vperm.xlu0 %7020, %v4602_v62  }
 0xa4a   :  { %v10856_v32 = vpop.xlane.xlu0 %3774 }
 0xa4b   :  { %v4872_v58 = vpop.permute.xlu1 %4871 }
 0xa4c   :  { %v5461_v48 = vmul.f32 %v4872_v58, %v13695_v57  ;;  %v13698_v58 = vld [vmem:[#allocation28_spill] sm:$0xff] }
 0xa4d   :  { %3096 = vperm.xlu0 %7020, %v2514_v2   ;;  %v283_v2 = vld [vmem:[%s13194_s1 + $0x790] sm:$0xff] }
 0xa4e   :  { %v6469_v54 = vadd.f32 %v13696_v9, %v5461_v48  ;;  %v284_v48 = vld [vmem:[%s13194_s1 + $0x798] sm:$0xff] }
 0xa4f   :  { %6994 = vmatprep.mubr.msk.f32.mxu1 %vm329_vm1, %v284_v48  ;;  %6850 = vmatprep.mubr.msk.f32.mxu0 %vm329_vm1, %v284_v48 }
 0xa50   :  { %6613 = vst.msk [vmem:[%s13196_s4 + $0x100] sm:$0xff] %vm1547_vm0, %v6469_v54  ;;  %2290 = vmatmul.mubr.f32.gmra.mxu1 %v283_v2  ;;  %1432 = vmatmul.mubr.f32.gmra.mxu0 %v283_v2  ;;  %v10886_v54 = vsub.f32 %v9813_v27, %v10019_v39  ;;  %v4459_v39 = vld [vmem:[%s13195_s2 + $0x130] sm:$0xff] }
 0xa52   :  { %v4877_v62 = vpop.permute.xlu0 %4876  ;;  %13701 = vst [vmem:[#allocation130_spill] sm:$0xff] %v10886_v54 }
 0xa53   :  { %v5462_v25 = vmul.f32 %v4877_v62, %v13697_v37  ;;  %v4171_v62 = vadd.f32 1e-05, %v4027_v42 }
 0xa55   :  { %v6470_v57 = vadd.f32 %v13698_v58, %v5462_v25  ;;  %v10880_v25 = vsub.f32 %v9762_v5, %v9961_v12  ;;  %7097 = vrsqrt.f32 %v4171_v62  ;;  %v4028_v5 = vmul.f32 0.020408163, %v9760_v53  ;;  %v10901_v53 = vpop.f32.mrf.mxu0 }
 0xa56   :  { %v2515_v62 = vmul.f32 0.020408163, %v10746_v36  ;;  %v2516_v36 = vmul.f32 0.020408163, %v10762_v8 }
 0xa57   :  { %6614 = vst.msk [vmem:[%s13196_s4 + $0x108] sm:$0xff] %vm1547_vm0, %v6470_v57  ;;  %13700 = vst [vmem:[#allocation127_spill] sm:$0xff] %v10880_v25  ;;  %v3490_v37 = vmul.f32 %v10880_v25, %v10880_v25  ;;  %v3491_v57 = vmul.f32 %v10886_v54, %v10886_v54  ;;  %v4172_v2 = vadd.f32 1e-05, %v4028_v5 }
 0xa59   :  { %v3788_v12 = vsel %vm1547_vm0, %v3490_v37, 0.0  ;;  %v3791_v48 = vsel %vm1547_vm0, %v3491_v57, 0.0  ;;  %7099 = vrsqrt.f32 %v4172_v2  ;;  %v10903_v37 = vpop.permute.xlu1 %3071  ;;  %v1380_v57 = vpop.f32.mrf.mxu0 }
 0xa5a   :  { %v13703_v57 = vld [vmem:[#allocation125_spill] sm:$0xff] }
 0xa5b   :  { %v10882_v9 = vpop.f32.mrf.mxu1  ;;  %v10910_v54 = vpop.f32.mrf.mxu0 }
 0xa5d   :  { %v2258_v58 = vpop.f32.mrf.mxu1 }
 0xa62   :  { %v7098_v27 = vpop.eup %7097 }
 0xa63   :  { %v4603_v58 = vmul.f32 %v7098_v27, %v4459_v39  ;;  %v10913_v27 = vpop.permute.xlu0 %3076  ;;  %v1385_v39 = vpop.f32.mrf.mxu0 }
 0xa64   :  { %v13705_v39 = vld [vmem:[#allocation128_spill] sm:$0xff] }
 0xa65   :  { %v10898_v11 = vpop.f32.mrf.mxu1 }
 0xa66   :  { %v7100_v5 = vpop.eup %7099 }
 0xa67   :  { %v2263_v42 = vpop.f32.mrf.mxu1 }
 0xa69   :  { %3789 = vadd.xlane.f32.xlu1 %v3788_v12  ;;  %v4460_v12 = vld [vmem:[%s13195_s2 + $0x138] sm:$0xff] }
 0xa6a   :  { %v4604_v2 = vmul.f32 %v7100_v5, %v4460_v12  ;;  %v13704_v5 = vld [vmem:[#allocation27_spill] sm:$0xff] }
 0xa6c   :  { %3792 = vadd.xlane.f32.xlu0 %v3791_v48 }
 0xa7a   :  { %4901 = vperm.xlu1 %7019, %v4603_v58   ;;  %v286_v58 = vld [vmem:[%s13194_s1 + $0x7a8] sm:$0xff] }
 0xa7b   :  { %6995 = vmatprep.mubr.msk.f32.mxu1 %vm329_vm1, %v286_v58  ;;  %6851 = vmatprep.mubr.msk.f32.mxu0 %vm329_vm1, %v286_v58  ;;  %v4029_v58 = vmul.f32 0.020408163, %v9818_v20 }
 0xa7e   :  { %3101 = vperm.xlu1 %7019, %v2515_v62   ;;  %v285_v62 = vld [vmem:[%s13194_s1 + $0x7a0] sm:$0xff] }
 0xa7f   :  { %2295 = vmatmul.mubr.f32.gmra.mxu1 %v285_v62  ;;  %1437 = vmatmul.mubr.f32.gmra.mxu0 %v285_v62 }
 0xa80   :  { %v10908_v48 = vpop.xlane.xlu1 %3777 }
 0xa81   :  { %13702 = vst [vmem:[#allocation171_spill] sm:$0xff] %v10908_v48 }
 0xa82   :  { %4906 = vperm.xlu0 %7020, %v4604_v2  }
 0xa83   :  { %v10924_v8 = vpop.xlane.xlu0 %3780 }
 0xa84   :  { %v4882_v42 = vpop.permute.xlu1 %4881 }
 0xa85   :  { %v5463_v25 = vmul.f32 %v4882_v42, %v13703_v57  ;;  %v13706_v42 = vld [vmem:[#allocation30_spill] sm:$0xff] }
 0xa86   :  { %3106 = vperm.xlu0 %7020, %v2516_v36   ;;  %v287_v36 = vld [vmem:[%s13194_s1 + $0x7b0] sm:$0xff] }
 0xa87   :  { %v6471_v12 = vadd.f32 %v13704_v5, %v5463_v25  ;;  %v288_v25 = vld [vmem:[%s13194_s1 + $0x7b8] sm:$0xff]  ;;  %v10954_v5 = vsub.f32 %v9881_v60, %v10087_v50  ;;  %v4461_v50 = vld [vmem:[%s13195_s2 + $0x140] sm:$0xff] }
 0xa88   :  { %6996 = vmatprep.mubr.msk.f32.mxu1 %vm329_vm1, %v288_v25  ;;  %6852 = vmatprep.mubr.msk.f32.mxu0 %vm329_vm1, %v288_v25 }
 0xa89   :  { %6615 = vst.msk [vmem:[%s13196_s4 + $0x110] sm:$0xff] %vm1547_vm0, %v6471_v12  ;;  %2300 = vmatmul.mubr.f32.gmra.mxu1 %v287_v36  ;;  %1442 = vmatmul.mubr.f32.gmra.mxu0 %v287_v36  ;;  %13708 = vst [vmem:[#allocation17_spill] sm:$0xff] %v10954_v5  ;;  %v4173_v12 = vadd.f32 1e-05, %v4029_v58  ;;  %v3493_v20 = vmul.f32 %v10954_v5, %v10954_v5 }
 0xa8b   :  { %v4887_v2 = vpop.permute.xlu0 %4886  ;;  %7101 = vrsqrt.f32 %v4173_v12  ;;  %v2517_v12 = vmul.f32 0.020408163, %v10814_v56  ;;  %v2518_v56 = vmul.f32 0.020408163, %v10830_v34 }
 0xa8c   :  { %v5464_v48 = vmul.f32 %v4887_v2, %v13705_v39 }
 0xa8e   :  { %v6472_v57 = vadd.f32 %v13706_v42, %v5464_v48  ;;  %v10948_v48 = vsub.f32 %v9822_v3, %v10029_v41  ;;  %v4030_v3 = vmul.f32 0.020408163, %v9820_v52  ;;  %v3797_v42 = vsel %vm1547_vm0, %v3493_v20, 0.0  ;;  %v10969_v52 = vpop.f32.mrf.mxu0 }
 0xa90   :  { %6616 = vst.msk [vmem:[%s13196_s4 + $0x118] sm:$0xff] %vm1547_vm0, %v6472_v57  ;;  %13707 = vst [vmem:[#allocation105_spill] sm:$0xff] %v10948_v48  ;;  %v3492_v2 = vmul.f32 %v10948_v48, %v10948_v48  ;;  %v4174_v57 = vadd.f32 1e-05, %v4030_v3  ;;  %v4462_v3 = vld [vmem:[%s13195_s2 + $0x148] sm:$0xff] }
 0xa92   :  { %v3794_v41 = vsel %vm1547_vm0, %v3492_v2, 0.0  ;;  %7103 = vrsqrt.f32 %v4174_v57  ;;  %v10971_v2 = vpop.permute.xlu1 %3081 }
 0xa94   :  { %v10950_v62 = vpop.f32.mrf.mxu1 }
 0xa96   :  { %v2268_v39 = vpop.f32.mrf.mxu1 }
 0xa97   :  { %v1390_v39 = vpop.f32.mrf.mxu0 }
 0xa98   :  { %v7102_v60 = vpop.eup %7101  ;;  %v13709_v39 = vld [vmem:[#allocation129_spill] sm:$0xff] }
 0xa99   :  { %v4605_v58 = vmul.f32 %v7102_v60, %v4461_v50  ;;  %v10978_v57 = vpop.f32.mrf.mxu0  ;;  %v10981_v60 = vpop.permute.xlu0 %3086 }
 0xa9b   :  { %v1395_v50 = vpop.f32.mrf.mxu0 }
 0xa9c   :  { %v13711_v50 = vld [vmem:[#allocation132_spill] sm:$0xff] }
 0xa9e   :  { %v10966_v25 = vpop.f32.mrf.mxu1 }
 0xa9f   :  { %v7104_v20 = vpop.eup %7103 }
 0xaa0   :  { %v2273_v36 = vpop.f32.mrf.mxu1 }
 0xaa2   :  { %3795 = vadd.xlane.f32.xlu1 %v3794_v41 }
 0xaa5   :  { %3798 = vadd.xlane.f32.xlu0 %v3797_v42  ;;  %v4606_v42 = vmul.f32 %v7104_v20, %v4462_v3  ;;  %v13710_v20 = vld [vmem:[#allocation29_spill] sm:$0xff] }
 0xab3   :  { %4911 = vperm.xlu1 %7019, %v4605_v58   ;;  %v290_v58 = vld [vmem:[%s13194_s1 + $0x7c8] sm:$0xff] }
 0xab4   :  { %6997 = vmatprep.mubr.msk.f32.mxu1 %vm329_vm1, %v290_v58  ;;  %6853 = vmatprep.mubr.msk.f32.mxu0 %vm329_vm1, %v290_v58  ;;  %v4031_v58 = vmul.f32 0.020408163, %v9836_v45 }
 0xab7   :  { %3111 = vperm.xlu1 %7019, %v2517_v12   ;;  %v289_v12 = vld [vmem:[%s13194_s1 + $0x7c0] sm:$0xff] }
 0xab8   :  { %2305 = vmatmul.mubr.f32.gmra.mxu1 %v289_v12  ;;  %1447 = vmatmul.mubr.f32.gmra.mxu0 %v289_v12 }
 0xab9   :  { %v10976_v41 = vpop.xlane.xlu1 %3783 }
 0xabb   :  { %4916 = vperm.xlu0 %7020, %v4606_v42  }
 0xabc   :  { %v10992_v34 = vpop.xlane.xlu0 %3786 }
 0xabd   :  { %v4892_v36 = vpop.permute.xlu1 %4891 }
 0xabe   :  { %v5465_v5 = vmul.f32 %v4892_v36, %v13709_v39  ;;  %v13712_v36 = vld [vmem:[#allocation32_spill] sm:$0xff] }
 0xabf   :  { %3116 = vperm.xlu0 %7020, %v2518_v56   ;;  %v291_v56 = vld [vmem:[%s13194_s1 + $0x7d0] sm:$0xff] }
 0xac0   :  { %v6473_v3 = vadd.f32 %v13710_v20, %v5465_v5  ;;  %v292_v5 = vld [vmem:[%s13194_s1 + $0x7d8] sm:$0xff]  ;;  %v11022_v20 = vsub.f32 %v9949_v23, %v10155_v40  ;;  %v4463_v40 = vld [vmem:[%s13195_s2 + $0x150] sm:$0xff] }
 0xac1   :  { %6998 = vmatprep.mubr.msk.f32.mxu1 %vm329_vm1, %v292_v5  ;;  %6854 = vmatprep.mubr.msk.f32.mxu0 %vm329_vm1, %v292_v5 }
 0xac2   :  { %6617 = vst.msk [vmem:[%s13196_s4 + $0x120] sm:$0xff] %vm1547_vm0, %v6473_v3  ;;  %2310 = vmatmul.mubr.f32.gmra.mxu1 %v291_v56  ;;  %1452 = vmatmul.mubr.f32.gmra.mxu0 %v291_v56  ;;  %13714 = vst [vmem:[#allocation20_spill] sm:$0xff] %v11022_v20  ;;  %v4175_v3 = vadd.f32 1e-05, %v4031_v58  ;;  %v3495_v45 = vmul.f32 %v11022_v20, %v11022_v20 }
 0xac4   :  { %v4897_v42 = vpop.permute.xlu0 %4896  ;;  %7105 = vrsqrt.f32 %v4175_v3  ;;  %v2519_v3 = vmul.f32 0.020408163, %v10882_v9  ;;  %v2520_v9 = vmul.f32 0.020408163, %v10898_v11 }
 0xac5   :  { %v5466_v48 = vmul.f32 %v4897_v42, %v13711_v50 }
 0xac7   :  { %v6474_v39 = vadd.f32 %v13712_v36, %v5466_v48  ;;  %v11016_v48 = vsub.f32 %v9890_v61, %v10097_v31  ;;  %v4032_v61 = vmul.f32 0.020408163, %v9888_v63  ;;  %v3803_v36 = vsel %vm1547_vm0, %v3495_v45, 0.0  ;;  %v11037_v63 = vpop.f32.mrf.mxu0 }
 0xac9   :  { %6618 = vst.msk [vmem:[%s13196_s4 + $0x128] sm:$0xff] %vm1547_vm0, %v6474_v39  ;;  %13713 = vst [vmem:[#allocation108_spill] sm:$0xff] %v11016_v48  ;;  %v3494_v42 = vmul.f32 %v11016_v48, %v11016_v48  ;;  %v4176_v39 = vadd.f32 1e-05, %v4032_v61  ;;  %v4464_v61 = vld [vmem:[%s13195_s2 + $0x158] sm:$0xff] }
 0xacb   :  { %v3800_v31 = vsel %vm1547_vm0, %v3494_v42, 0.0  ;;  %7107 = vrsqrt.f32 %v4176_v39  ;;  %v11039_v42 = vpop.permute.xlu1 %3091 }
 0xacd   :  { %v11018_v12 = vpop.f32.mrf.mxu1 }
 0xacf   :  { %v2278_v50 = vpop.f32.mrf.mxu1 }
 0xad0   :  { %v1400_v50 = vpop.f32.mrf.mxu0 }
 0xad1   :  { %v7106_v23 = vpop.eup %7105  ;;  %v13715_v50 = vld [vmem:[#allocation133_spill] sm:$0xff] }
 0xad2   :  { %v4607_v58 = vmul.f32 %v7106_v23, %v4463_v40  ;;  %v11046_v39 = vpop.f32.mrf.mxu0  ;;  %v11049_v23 = vpop.permute.xlu0 %3096 }
 0xad4   :  { %v1405_v40 = vpop.f32.mrf.mxu0 }
 0xad5   :  { %v13717_v40 = vld [vmem:[#allocation136_spill] sm:$0xff] }
 0xad7   :  { %v11034_v5 = vpop.f32.mrf.mxu1 }
 0xad8   :  { %v7108_v45 = vpop.eup %7107 }
 0xad9   :  { %v2283_v56 = vpop.f32.mrf.mxu1 }
 0xadb   :  { %3801 = vadd.xlane.f32.xlu1 %v3800_v31 }
 0xade   :  { %3804 = vadd.xlane.f32.xlu0 %v3803_v36  ;;  %v4608_v36 = vmul.f32 %v7108_v45, %v4464_v61  ;;  %v13716_v45 = vld [vmem:[#allocation31_spill] sm:$0xff] }
 0xaec   :  { %4921 = vperm.xlu1 %7019, %v4607_v58   ;;  %v294_v58 = vld [vmem:[%s13194_s1 + $0x7e8] sm:$0xff] }
 0xaed   :  { %6999 = vmatprep.mubr.msk.f32.mxu1 %vm329_vm1, %v294_v58  ;;  %6855 = vmatprep.mubr.msk.f32.mxu0 %vm329_vm1, %v294_v58  ;;  %v4033_v58 = vmul.f32 0.020408163, %v9904_v44 }
 0xaf0   :  { %3121 = vperm.xlu1 %7019, %v2519_v3   ;;  %v293_v3 = vld [vmem:[%s13194_s1 + $0x7e0] sm:$0xff] }
 0xaf1   :  { %2315 = vmatmul.mubr.f32.gmra.mxu1 %v293_v3  ;;  %1457 = vmatmul.mubr.f32.gmra.mxu0 %v293_v3 }
 0xaf2   :  { %v11044_v31 = vpop.xlane.xlu1 %3789 }
 0xaf4   :  { %4926 = vperm.xlu0 %7020, %v4608_v36  }
 0xaf5   :  { %v11060_v11 = vpop.xlane.xlu0 %3792 }
 0xaf6   :  { %v4902_v56 = vpop.permute.xlu1 %4901 }
 0xaf7   :  { %v5467_v20 = vmul.f32 %v4902_v56, %v13715_v50  ;;  %v13718_v56 = vld [vmem:[#allocation34_spill] sm:$0xff] }
 0xaf8   :  { %3126 = vperm.xlu0 %7020, %v2520_v9   ;;  %v295_v9 = vld [vmem:[%s13194_s1 + $0x7f0] sm:$0xff] }
 0xaf9   :  { %v6475_v61 = vadd.f32 %v13716_v45, %v5467_v20  ;;  %v296_v20 = vld [vmem:[%s13194_s1 + $0x7f8] sm:$0xff]  ;;  %v11090_v45 = vsub.f32 %v10017_v38, %v10223_v14  ;;  %v4465_v14 = vld [vmem:[%s13195_s2 + $0x160] sm:$0xff] }
 0xafa   :  { %7000 = vmatprep.mubr.msk.f32.mxu1 %vm329_vm1, %v296_v20  ;;  %6856 = vmatprep.mubr.msk.f32.mxu0 %vm329_vm1, %v296_v20 }
 0xafb   :  { %6619 = vst.msk [vmem:[%s13196_s4 + $0x130] sm:$0xff] %vm1547_vm0, %v6475_v61  ;;  %2320 = vmatmul.mubr.f32.gmra.mxu1 %v295_v9  ;;  %1462 = vmatmul.mubr.f32.gmra.mxu0 %v295_v9  ;;  %13720 = vst [vmem:[#allocation172_spill] sm:$0xff] %v11090_v45  ;;  %v4177_v61 = vadd.f32 1e-05, %v4033_v58  ;;  %v3497_v44 = vmul.f32 %v11090_v45, %v11090_v45 }
 0xafd   :  { %v4907_v36 = vpop.permute.xlu0 %4906  ;;  %7109 = vrsqrt.f32 %v4177_v61  ;;  %v2521_v61 = vmul.f32 0.020408163, %v10950_v62  ;;  %v2522_v62 = vmul.f32 0.020408163, %v10966_v25 }
 0xafe   :  { %v5468_v48 = vmul.f32 %v4907_v36, %v13717_v40 }
 0xb00   :  { %v6476_v50 = vadd.f32 %v13718_v56, %v5468_v48  ;;  %v11084_v48 = vsub.f32 %v9958_v13, %v10165_v47  ;;  %v4034_v13 = vmul.f32 0.020408163, %v9956_v0  ;;  %v3809_v56 = vsel %vm1547_vm0, %v3497_v44, 0.0  ;;  %v11105_v0 = vpop.f32.mrf.mxu0 }
 0xb02   :  { %6620 = vst.msk [vmem:[%s13196_s4 + $0x138] sm:$0xff] %vm1547_vm0, %v6476_v50  ;;  %13719 = vst [vmem:[#allocation161_spill] sm:$0xff] %v11084_v48  ;;  %v3496_v36 = vmul.f32 %v11084_v48, %v11084_v48  ;;  %v4178_v50 = vadd.f32 1e-05, %v4034_v13  ;;  %v4466_v13 = vld [vmem:[%s13195_s2 + $0x168] sm:$0xff] }
 0xb04   :  { %v3806_v47 = vsel %vm1547_vm0, %v3496_v36, 0.0  ;;  %7111 = vrsqrt.f32 %v4178_v50  ;;  %v11107_v36 = vpop.permute.xlu1 %3101 }
 0xb06   :  { %v11086_v3 = vpop.f32.mrf.mxu1 }
 0xb08   :  { %v2288_v40 = vpop.f32.mrf.mxu1 }
 0xb09   :  { %v1410_v40 = vpop.f32.mrf.mxu0 }
 0xb0a   :  { %v7110_v38 = vpop.eup %7109  ;;  %v13721_v40 = vld [vmem:[#allocation138_spill] sm:$0xff] }
 0xb0b   :  { %v4609_v58 = vmul.f32 %v7110_v38, %v4465_v14  ;;  %v11114_v50 = vpop.f32.mrf.mxu0  ;;  %v11117_v38 = vpop.permute.xlu0 %3106 }
 0xb0d   :  { %v1415_v14 = vpop.f32.mrf.mxu0 }
 0xb0e   :  { %v13723_v14 = vld [vmem:[#allocation155_spill] sm:$0xff] }
 0xb10   :  { %v11102_v20 = vpop.f32.mrf.mxu1 }
 0xb11   :  { %v7112_v44 = vpop.eup %7111 }
 0xb12   :  { %v2293_v9 = vpop.f32.mrf.mxu1 }
 0xb14   :  { %3807 = vadd.xlane.f32.xlu1 %v3806_v47 }
 0xb17   :  { %3810 = vadd.xlane.f32.xlu0 %v3809_v56  ;;  %v4610_v56 = vmul.f32 %v7112_v44, %v4466_v13  ;;  %v13722_v44 = vld [vmem:[#allocation33_spill] sm:$0xff] }
 0xb25   :  { %4931 = vperm.xlu1 %7019, %v4609_v58   ;;  %v298_v58 = vld [vmem:[%s13194_s1 + $0x808] sm:$0xff] }
 0xb26   :  { %7001 = vmatprep.mubr.msk.f32.mxu1 %vm329_vm1, %v298_v58  ;;  %6857 = vmatprep.mubr.msk.f32.mxu0 %vm329_vm1, %v298_v58  ;;  %v4035_v58 = vmul.f32 0.020408163, %v9972_v28 }
 0xb29   :  { %3131 = vperm.xlu1 %7019, %v2521_v61   ;;  %v297_v61 = vld [vmem:[%s13194_s1 + $0x800] sm:$0xff] }
 0xb2a   :  { %2325 = vmatmul.mubr.f32.gmra.mxu1 %v297_v61  ;;  %1467 = vmatmul.mubr.f32.gmra.mxu0 %v297_v61 }
 0xb2b   :  { %v11112_v47 = vpop.xlane.xlu1 %3795 }
 0xb2d   :  { %4936 = vperm.xlu0 %7020, %v4610_v56  }
 0xb2e   :  { %v11128_v25 = vpop.xlane.xlu0 %3798 }
 0xb2f   :  { %v4912_v9 = vpop.permute.xlu1 %4911 }
 0xb30   :  { %v5469_v45 = vmul.f32 %v4912_v9, %v13721_v40  ;;  %v13724_v9 = vld [vmem:[#allocation36_spill] sm:$0xff] }
 0xb31   :  { %3136 = vperm.xlu0 %7020, %v2522_v62   ;;  %v299_v62 = vld [vmem:[%s13194_s1 + $0x810] sm:$0xff] }
 0xb32   :  { %v6477_v13 = vadd.f32 %v13722_v44, %v5469_v45  ;;  %v300_v45 = vld [vmem:[%s13194_s1 + $0x818] sm:$0xff]  ;;  %v11158_v44 = vsub.f32 %v10085_v17, %v10291_v30  ;;  %v4467_v30 = vld [vmem:[%s13195_s2 + $0x170] sm:$0xff] }
 0xb33   :  { %7002 = vmatprep.mubr.msk.f32.mxu1 %vm329_vm1, %v300_v45  ;;  %6858 = vmatprep.mubr.msk.f32.mxu0 %vm329_vm1, %v300_v45 }
 0xb34   :  { %6621 = vst.msk [vmem:[%s13196_s4 + $0x140] sm:$0xff] %vm1547_vm0, %v6477_v13  ;;  %2330 = vmatmul.mubr.f32.gmra.mxu1 %v299_v62  ;;  %1472 = vmatmul.mubr.f32.gmra.mxu0 %v299_v62  ;;  %13726 = vst [vmem:[#allocation134_spill] sm:$0xff] %v11158_v44  ;;  %v4179_v13 = vadd.f32 1e-05, %v4035_v58  ;;  %v3499_v28 = vmul.f32 %v11158_v44, %v11158_v44 }
 0xb36   :  { %v4917_v56 = vpop.permute.xlu0 %4916  ;;  %7113 = vrsqrt.f32 %v4179_v13  ;;  %v2523_v13 = vmul.f32 0.020408163, %v11018_v12  ;;  %v2524_v12 = vmul.f32 0.020408163, %v11034_v5 }
 0xb37   :  { %v5470_v48 = vmul.f32 %v4917_v56, %v13723_v14 }
 0xb39   :  { %v6478_v40 = vadd.f32 %v13724_v9, %v5470_v48  ;;  %v11152_v48 = vsub.f32 %v10026_v1, %v10233_v35  ;;  %v4036_v1 = vmul.f32 0.020408163, %v10024_v24  ;;  %v3815_v9 = vsel %vm1547_vm0, %v3499_v28, 0.0  ;;  %v11173_v24 = vpop.f32.mrf.mxu0 }
 0xb3b   :  { %6622 = vst.msk [vmem:[%s13196_s4 + $0x148] sm:$0xff] %vm1547_vm0, %v6478_v40  ;;  %13725 = vst [vmem:[#allocation131_spill] sm:$0xff] %v11152_v48  ;;  %v3498_v56 = vmul.f32 %v11152_v48, %v11152_v48  ;;  %v4180_v40 = vadd.f32 1e-05, %v4036_v1  ;;  %v4468_v1 = vld [vmem:[%s13195_s2 + $0x178] sm:$0xff] }
 0xb3d   :  { %v3812_v35 = vsel %vm1547_vm0, %v3498_v56, 0.0  ;;  %7115 = vrsqrt.f32 %v4180_v40  ;;  %v11175_v56 = vpop.permute.xlu1 %3111 }
 0xb3f   :  { %v11154_v61 = vpop.f32.mrf.mxu1 }
 0xb41   :  { %v2298_v14 = vpop.f32.mrf.mxu1 }
 0xb42   :  { %v1420_v14 = vpop.f32.mrf.mxu0 }
 0xb43   :  { %v7114_v17 = vpop.eup %7113  ;;  %v13727_v14 = vld [vmem:[#allocation156_spill] sm:$0xff] }
 0xb44   :  { %v4611_v58 = vmul.f32 %v7114_v17, %v4467_v30  ;;  %v11182_v40 = vpop.f32.mrf.mxu0  ;;  %v11185_v17 = vpop.permute.xlu0 %3116 }
 0xb46   :  { %v1425_v30 = vpop.f32.mrf.mxu0 }
 0xb47   :  { %v13730_v30 = vld [vmem:[#allocation176_spill] sm:$0xff] }
 0xb49   :  { %v11170_v45 = vpop.f32.mrf.mxu1 }
 0xb4a   :  { %v7116_v28 = vpop.eup %7115 }
 0xb4b   :  { %v2303_v62 = vpop.f32.mrf.mxu1 }
 0xb4d   :  { %3813 = vadd.xlane.f32.xlu1 %v3812_v35 }
 0xb50   :  { %3816 = vadd.xlane.f32.xlu0 %v3815_v9  ;;  %v4612_v9 = vmul.f32 %v7116_v28, %v4468_v1  ;;  %v13729_v28 = vld [vmem:[#allocation35_spill] sm:$0xff] }
 0xb5e   :  { %4941 = vperm.xlu1 %7019, %v4611_v58   ;;  %v302_v58 = vld [vmem:[%s13194_s1 + $0x828] sm:$0xff] }
 0xb5f   :  { %7003 = vmatprep.mubr.msk.f32.mxu1 %vm329_vm1, %v302_v58  ;;  %6859 = vmatprep.mubr.msk.f32.mxu0 %vm329_vm1, %v302_v58  ;;  %v4037_v58 = vmul.f32 0.020408163, %v10040_v43 }
 0xb62   :  { %3141 = vperm.xlu1 %7019, %v2523_v13   ;;  %v301_v13 = vld [vmem:[%s13194_s1 + $0x820] sm:$0xff] }
 0xb63   :  { %2335 = vmatmul.mubr.f32.gmra.mxu1 %v301_v13  ;;  %1477 = vmatmul.mubr.f32.gmra.mxu0 %v301_v13 }
 0xb64   :  { %v11180_v35 = vpop.xlane.xlu1 %3801 }
 0xb66   :  { %4946 = vperm.xlu0 %7020, %v4612_v9  }
 0xb67   :  { %v11196_v5 = vpop.xlane.xlu0 %3804 }
 0xb68   :  { %v4922_v62 = vpop.permute.xlu1 %4921  ;;  %13728 = vst [vmem:[#allocation175_spill] sm:$0xff] %v11196_v5 }
 0xb69   :  { %v5471_v44 = vmul.f32 %v4922_v62, %v13727_v14  ;;  %v13731_v62 = vld [vmem:[#allocation38_spill] sm:$0xff] }
 0xb6a   :  { %3146 = vperm.xlu0 %7020, %v2524_v12   ;;  %v303_v12 = vld [vmem:[%s13194_s1 + $0x830] sm:$0xff] }
 0xb6b   :  { %v6479_v1 = vadd.f32 %v13729_v28, %v5471_v44  ;;  %v304_v44 = vld [vmem:[%s13194_s1 + $0x838] sm:$0xff]  ;;  %v11226_v28 = vsub.f32 %v10153_v21, %v10359_v22  ;;  %v4469_v22 = vld [vmem:[%s13195_s2 + $0x180] sm:$0xff] }
 0xb6c   :  { %7004 = vmatprep.mubr.msk.f32.mxu1 %vm329_vm1, %v304_v44  ;;  %6860 = vmatprep.mubr.msk.f32.mxu0 %vm329_vm1, %v304_v44 }
 0xb6d   :  { %6623 = vst.msk [vmem:[%s13196_s4 + $0x150] sm:$0xff] %vm1547_vm0, %v6479_v1  ;;  %2340 = vmatmul.mubr.f32.gmra.mxu1 %v303_v12  ;;  %1482 = vmatmul.mubr.f32.gmra.mxu0 %v303_v12  ;;  %13733 = vst [vmem:[#allocation19_spill] sm:$0xff] %v11226_v28  ;;  %v4181_v1 = vadd.f32 1e-05, %v4037_v58  ;;  %v3501_v43 = vmul.f32 %v11226_v28, %v11226_v28 }
 0xb6f   :  { %v4927_v9 = vpop.permute.xlu0 %4926  ;;  %7117 = vrsqrt.f32 %v4181_v1  ;;  %v2525_v1 = vmul.f32 0.020408163, %v11086_v3  ;;  %v2526_v3 = vmul.f32 0.020408163, %v11102_v20 }
 0xb70   :  { %v5472_v48 = vmul.f32 %v4927_v9, %v13730_v30 }
 0xb72   :  { %v6480_v14 = vadd.f32 %v13731_v62, %v5472_v48  ;;  %v11220_v48 = vsub.f32 %v10094_v33, %v10301_v4  ;;  %v13734_v62 = vld [vmem:[#allocation8_spill] sm:$0xff] }
 0xb73   :  { %v4038_v33 = vmul.f32 0.020408163, %v13734_v62  ;;  %v11241_v62 = vpop.f32.mrf.mxu0 }
 0xb74   :  { %6624 = vst.msk [vmem:[%s13196_s4 + $0x158] sm:$0xff] %vm1547_vm0, %v6480_v14  ;;  %13732 = vst [vmem:[#allocation109_spill] sm:$0xff] %v11220_v48  ;;  %v3500_v9 = vmul.f32 %v11220_v48, %v11220_v48  ;;  %v3821_v14 = vsel %vm1547_vm0, %v3501_v43, 0.0 }
 0xb75   :  { %v4182_v44 = vadd.f32 1e-05, %v4038_v33  ;;  %v1430_v43 = vpop.f32.mrf.mxu0 }
 0xb76   :  { %v3818_v4 = vsel %vm1547_vm0, %v3500_v9, 0.0  ;;  %v11243_v9 = vpop.permute.xlu1 %3121  ;;  %v13737_v43 = vld [vmem:[#allocation178_spill] sm:$0xff] }
 0xb77   :  { %7119 = vrsqrt.f32 %v4182_v44  ;;  %v11250_v28 = vpop.f32.mrf.mxu0 }
 0xb78   :  { %v11222_v13 = vpop.f32.mrf.mxu1  ;;  %13736 = vst [vmem:[#allocation22_spill] sm:$0xff] %v11250_v28 }
 0xb7a   :  { %v2308_v30 = vpop.f32.mrf.mxu1 }
 0xb7c   :  { %v7118_v21 = vpop.eup %7117 }
 0xb7d   :  { %v4613_v30 = vmul.f32 %v7118_v21, %v4469_v22  ;;  %v11253_v21 = vpop.permute.xlu0 %3126  ;;  %v1435_v22 = vpop.f32.mrf.mxu0 }
 0xb7e   :  { %v13740_v22 = vld [vmem:[#allocation181_spill] sm:$0xff] }
 0xb82   :  { %v11238_v12 = vpop.f32.mrf.mxu1 }
 0xb84   :  { %v2313_v58 = vpop.f32.mrf.mxu1  ;;  %v7120_v33 = vpop.eup %7119 }
 0xb86   :  { %3819 = vadd.xlane.f32.xlu1 %v3818_v4  ;;  %v4470_v4 = vld [vmem:[%s13195_s2 + $0x188] sm:$0xff] }
 0xb87   :  { %v4614_v44 = vmul.f32 %v7120_v33, %v4470_v4  ;;  %v13739_v33 = vld [vmem:[#allocation37_spill] sm:$0xff] }
 0xb89   :  { %3822 = vadd.xlane.f32.xlu0 %v3821_v14 }
 0xb97   :  { %4951 = vperm.xlu1 %7019, %v4613_v30   ;;  %v306_v30 = vld [vmem:[%s13194_s1 + $0x848] sm:$0xff] }
 0xb98   :  { %7005 = vmatprep.mubr.msk.f32.mxu1 %vm329_vm1, %v306_v30  ;;  %6861 = vmatprep.mubr.msk.f32.mxu0 %vm329_vm1, %v306_v30  ;;  %v13742_v30 = vld [vmem:[#allocation86_spill] sm:$0xff] }
 0xb9b   :  { %3151 = vperm.xlu1 %7019, %v2525_v1   ;;  %v305_v1 = vld [vmem:[%s13194_s1 + $0x840] sm:$0xff] }
 0xb9c   :  { %2345 = vmatmul.mubr.f32.gmra.mxu1 %v305_v1  ;;  %1487 = vmatmul.mubr.f32.gmra.mxu0 %v305_v1  ;;  %v4039_v1 = vmul.f32 0.020408163, %v13742_v30  ;;  %v13748_v30 = vld [vmem:[#allocation99_spill] sm:$0xff] }
 0xb9d   :  { %v11248_v14 = vpop.xlane.xlu1 %3807 }
 0xb9e   :  { %13735 = vst [vmem:[#allocation112_spill] sm:$0xff] %v11248_v14 }
 0xb9f   :  { %4956 = vperm.xlu0 %7020, %v4614_v44  }
 0xba0   :  { %v11264_v20 = vpop.xlane.xlu0 %3810 }
 0xba1   :  { %v4932_v58 = vpop.permute.xlu1 %4931  ;;  %13738 = vst [vmem:[#allocation165_spill] sm:$0xff] %v11264_v20 }
 0xba2   :  { %v5473_v48 = vmul.f32 %v4932_v58, %v13737_v43  ;;  %v13741_v58 = vld [vmem:[#allocation40_spill] sm:$0xff] }
 0xba3   :  { %3156 = vperm.xlu0 %7020, %v2526_v3   ;;  %v307_v3 = vld [vmem:[%s13194_s1 + $0x850] sm:$0xff] }
 0xba4   :  { %v6481_v4 = vadd.f32 %v13739_v33, %v5473_v48  ;;  %v308_v48 = vld [vmem:[%s13194_s1 + $0x858] sm:$0xff]  ;;  %v13744_v33 = vld [vmem:[#allocation158_spill] sm:$0xff] }
 0xba5   :  { %7006 = vmatprep.mubr.msk.f32.mxu1 %vm329_vm1, %v308_v48  ;;  %6862 = vmatprep.mubr.msk.f32.mxu0 %vm329_vm1, %v308_v48 }
 0xba6   :  { %6625 = vst.msk [vmem:[%s13196_s4 + $0x160] sm:$0xff] %vm1547_vm0, %v6481_v4  ;;  %2350 = vmatmul.mubr.f32.gmra.mxu1 %v307_v3  ;;  %1492 = vmatmul.mubr.f32.gmra.mxu0 %v307_v3 }
 0xba8   :  { %v4937_v44 = vpop.permute.xlu0 %4936 }
 0xba9   :  { %v5474_v14 = vmul.f32 %v4937_v44, %v13740_v22  ;;  %v13746_v22 = vld [vmem:[#allocation2_spill] sm:$0xff] }
 0xbab   :  { %v6482_v43 = vadd.f32 %v13741_v58, %v5474_v14  ;;  %v13743_v14 = vld [vmem:[#allocation107_spill] sm:$0xff]  ;;  %v11294_v58 = vsub.f32 %v13746_v22, %v10427_v26 }
 0xbac   :  { %v11288_v4 = vsub.f32 %v13744_v33, %v13743_v14  ;;  %v4040_v14 = vmul.f32 0.020408163, %v13748_v30  ;;  %v11309_v30 = vpop.f32.mrf.mxu0 }
 0xbad   :  { %6626 = vst.msk [vmem:[%s13196_s4 + $0x168] sm:$0xff] %vm1547_vm0, %v6482_v43  ;;  %13747 = vst [vmem:[#allocation135_spill] sm:$0xff] %v11294_v58  ;;  %v4183_v43 = vadd.f32 1e-05, %v4039_v1  ;;  %v3503_v48 = vmul.f32 %v11294_v58, %v11294_v58  ;;  %v4471_v1 = vld [vmem:[%s13195_s2 + $0x190] sm:$0xff] }
 0xbae   :  { %13745 = vst [vmem:[#allocation174_spill] sm:$0xff] %v11288_v4  ;;  %v3502_v20 = vmul.f32 %v11288_v4, %v11288_v4  ;;  %v4184_v5 = vadd.f32 1e-05, %v4040_v14  ;;  %13749 = vst [vmem:[#allocation142_spill] sm:$0xff] %v11309_v30 }
 0xbaf   :  { %7121 = vrsqrt.f32 %v4183_v43  ;;  %v3827_v3 = vsel %vm1547_vm0, %v3503_v48, 0.0  ;;  %v2527_v43 = vmul.f32 0.020408163, %v11154_v61  ;;  %v1440_v48 = vpop.f32.mrf.mxu0  ;;  %v2528_v61 = vmul.f32 0.020408163, %v11170_v45 }
 0xbb0   :  { %v3824_v33 = vsel %vm1547_vm0, %v3502_v20, 0.0  ;;  %7123 = vrsqrt.f32 %v4184_v5  ;;  %v11311_v20 = vpop.permute.xlu1 %3131  ;;  %v4472_v5 = vld [vmem:[%s13195_s2 + $0x198] sm:$0xff]  ;;  %v13752_v48 = vld [vmem:[#allocation182_spill] sm:$0xff] }
 0xbb1   :  { %v11290_v44 = vpop.f32.mrf.mxu1  ;;  %v11318_v4 = vpop.f32.mrf.mxu0 }
 0xbb2   :  { %13751 = vst [vmem:[#allocation113_spill] sm:$0xff] %v11318_v4 }
 0xbb3   :  { %v2318_v28 = vpop.f32.mrf.mxu1 }
 0xbbb   :  { %v11306_v28 = vpop.f32.mrf.mxu1 }
 0xbbc   :  { %v7122_v26 = vpop.eup %7121 }
 0xbbd   :  { %v2323_v22 = vpop.f32.mrf.mxu1  ;;  %v4615_v58 = vmul.f32 %v7122_v26, %v4471_v1  ;;  %v7124_v14 = vpop.eup %7123 }
 0xbbe   :  { %v1445_v26 = vpop.f32.mrf.mxu0  ;;  %v310_v22 = vld [vmem:[%s13194_s1 + $0x868] sm:$0xff] }
 0xbbf   :  { %3825 = vadd.xlane.f32.xlu1 %v3824_v33  ;;  %7007 = vmatprep.mubr.msk.f32.mxu1 %vm329_vm1, %v310_v22  ;;  %v13755_v26 = vld [vmem:[#allocation183_spill] sm:$0xff] }
 0xbc0   :  { %6863 = vmatprep.mubr.msk.f32.mxu0 %vm329_vm1, %v310_v22  ;;  %v13757_v22 = vld [vmem:[#allocation102_spill] sm:$0xff] }
 0xbc2   :  { %3828 = vadd.xlane.f32.xlu0 %v3827_v3  ;;  %v4616_v3 = vmul.f32 %v7124_v14, %v4472_v5  ;;  %v13754_v14 = vld [vmem:[#allocation39_spill] sm:$0xff] }
 0xbd0   :  { %4961 = vperm.xlu1 %7019, %v4615_v58   ;;  %v11321_v58 = vpop.permute.xlu0 %3136 }
 0xbd4   :  { %3161 = vperm.xlu1 %7019, %v2527_v43   ;;  %v309_v43 = vld [vmem:[%s13194_s1 + $0x860] sm:$0xff] }
 0xbd5   :  { %2355 = vmatmul.mubr.f32.gmra.mxu1 %v309_v43  ;;  %1497 = vmatmul.mubr.f32.gmra.mxu0 %v309_v43  ;;  %v4041_v43 = vmul.f32 0.020408163, %v13757_v22  ;;  %v13762_v22 = vld [vmem:[#allocation88_spill] sm:$0xff] }
 0xbd6   :  { %v11316_v33 = vpop.xlane.xlu1 %3813 }
 0xbd7   :  { %13750 = vst [vmem:[#allocation177_spill] sm:$0xff] %v11316_v33 }
 0xbd8   :  { %4966 = vperm.xlu0 %7020, %v4616_v3  }
 0xbd9   :  { %v11332_v45 = vpop.xlane.xlu0 %3816 }
 0xbda   :  { %v4942_v1 = vpop.permute.xlu1 %4941  ;;  %13753 = vst [vmem:[#allocation21_spill] sm:$0xff] %v11332_v45 }
 0xbdb   :  { %v5475_v33 = vmul.f32 %v4942_v1, %v13752_v48  ;;  %v13756_v1 = vld [vmem:[#allocation42_spill] sm:$0xff] }
 0xbdc   :  { %3166 = vperm.xlu0 %7020, %v2528_v61   ;;  %v311_v61 = vld [vmem:[%s13194_s1 + $0x870] sm:$0xff] }
 0xbdd   :  { %v6483_v5 = vadd.f32 %v13754_v14, %v5475_v33  ;;  %v312_v33 = vld [vmem:[%s13194_s1 + $0x878] sm:$0xff] }
 0xbde   :  { %7008 = vmatprep.mubr.msk.f32.mxu1 %vm329_vm1, %v312_v33  ;;  %6864 = vmatprep.mubr.msk.f32.mxu0 %vm329_vm1, %v312_v33 }
 0xbdf   :  { %6627 = vst.msk [vmem:[%s13196_s4 + $0x170] sm:$0xff] %vm1547_vm0, %v6483_v5  ;;  %2360 = vmatmul.mubr.f32.gmra.mxu1 %v311_v61  ;;  %1502 = vmatmul.mubr.f32.gmra.mxu0 %v311_v61 }
 0xbe1   :  { %v4947_v3 = vpop.permute.xlu0 %4946 }
 0xbe2   :  { %v5476_v4 = vmul.f32 %v4947_v3, %v13755_v26  ;;  %v13760_v3 = vld [vmem:[#allocation162_spill] sm:$0xff] }
 0xbe3   :  { %v11362_v26 = vsub.f32 %v13760_v3, %v10495_v59 }
 0xbe4   :  { %v6484_v48 = vadd.f32 %v13756_v1, %v5476_v4  ;;  %v13758_v4 = vld [vmem:[#allocation5_spill] sm:$0xff]  ;;  %v4185_v1 = vadd.f32 1e-05, %v4041_v43  ;;  %v4473_v43 = vld [vmem:[%s13195_s2 + $0x1a0] sm:$0xff] }
 0xbe5   :  { %v11356_v14 = vsub.f32 %v13758_v4, %v10437_v29  ;;  %13761 = vst [vmem:[#allocation24_spill] sm:$0xff] %v11362_v26  ;;  %v3505_v33 = vmul.f32 %v11362_v26, %v11362_v26  ;;  %v4042_v29 = vmul.f32 0.020408163, %v13762_v22  ;;  %v11377_v22 = vpop.f32.mrf.mxu0 }
 0xbe6   :  { %6628 = vst.msk [vmem:[%s13196_s4 + $0x178] sm:$0xff] %vm1547_vm0, %v6484_v48  ;;  %7125 = vrsqrt.f32 %v4185_v1  ;;  %v2529_v1 = vmul.f32 0.020408163, %v11222_v13  ;;  %13763 = vst [vmem:[#allocation168_spill] sm:$0xff] %v11377_v22  ;;  %v2530_v13 = vmul.f32 0.020408163, %v11238_v12 }
 0xbe7   :  { %13759 = vst [vmem:[#allocation116_spill] sm:$0xff] %v11356_v14  ;;  %v3504_v48 = vmul.f32 %v11356_v14, %v11356_v14  ;;  %v3833_v61 = vsel %vm1547_vm0, %v3505_v33, 0.0  ;;  %v4186_v30 = vadd.f32 1e-05, %v4042_v29  ;;  %v1450_v33 = vpop.f32.mrf.mxu0 }
 0xbe8   :  { %v13766_v33 = vld [vmem:[#allocation184_spill] sm:$0xff] }
 0xbe9   :  { %v3830_v4 = vsel %vm1547_vm0, %v3504_v48, 0.0  ;;  %7127 = vrsqrt.f32 %v4186_v30  ;;  %v11379_v48 = vpop.permute.xlu1 %3141  ;;  %v4474_v30 = vld [vmem:[%s13195_s2 + $0x1a8] sm:$0xff]  ;;  %v11386_v14 = vpop.f32.mrf.mxu0 }
 0xbea   :  { %v11358_v5 = vpop.f32.mrf.mxu1  ;;  %13765 = vst [vmem:[#allocation167_spill] sm:$0xff] %v11386_v14 }
 0xbec   :  { %v2328_v45 = vpop.f32.mrf.mxu1 }
 0xbf3   :  { %v7126_v59 = vpop.eup %7125 }
 0xbf4   :  { %v11374_v45 = vpop.f32.mrf.mxu1  ;;  %v4617_v26 = vmul.f32 %v7126_v59, %v4473_v43  ;;  %v1455_v59 = vpop.f32.mrf.mxu0 }
 0xbf5   :  { %v13769_v59 = vld [vmem:[#allocation185_spill] sm:$0xff] }
 0xbf6   :  { %v2333_v3 = vpop.f32.mrf.mxu1  ;;  %v7128_v29 = vpop.eup %7127 }
 0xbf7   :  { %v314_v3 = vld [vmem:[%s13194_s1 + $0x888] sm:$0xff] }
 0xbf8   :  { %3831 = vadd.xlane.f32.xlu1 %v3830_v4  ;;  %7009 = vmatprep.mubr.msk.f32.mxu1 %vm329_vm1, %v314_v3 }
 0xbf9   :  { %6865 = vmatprep.mubr.msk.f32.mxu0 %vm329_vm1, %v314_v3  ;;  %v13771_v3 = vld [vmem:[#allocation139_spill] sm:$0xff] }
 0xbfb   :  { %3834 = vadd.xlane.f32.xlu0 %v3833_v61  ;;  %v4618_v61 = vmul.f32 %v7128_v29, %v4474_v30  ;;  %v13768_v29 = vld [vmem:[#allocation41_spill] sm:$0xff] }
 0xc09   :  { %4971 = vperm.xlu1 %7019, %v4617_v26   ;;  %v11389_v26 = vpop.permute.xlu0 %3146 }
 0xc0d   :  { %3171 = vperm.xlu1 %7019, %v2529_v1   ;;  %v313_v1 = vld [vmem:[%s13194_s1 + $0x880] sm:$0xff] }
 0xc0e   :  { %2365 = vmatmul.mubr.f32.gmra.mxu1 %v313_v1  ;;  %1507 = vmatmul.mubr.f32.gmra.mxu0 %v313_v1  ;;  %v4043_v1 = vmul.f32 0.020408163, %v13771_v3  ;;  %v13776_v3 = vld [vmem:[#allocation106_spill] sm:$0xff] }
 0xc0f   :  { %v11384_v4 = vpop.xlane.xlu1 %3819 }
 0xc10   :  { %13764 = vst [vmem:[#allocation145_spill] sm:$0xff] %v11384_v4 }
 0xc11   :  { %4976 = vperm.xlu0 %7020, %v4618_v61  }
 0xc12   :  { %v11400_v12 = vpop.xlane.xlu0 %3822 }
 0xc13   :  { %v4952_v43 = vpop.permute.xlu1 %4951  ;;  %13767 = vst [vmem:[#allocation179_spill] sm:$0xff] %v11400_v12 }
 0xc14   :  { %v5477_v4 = vmul.f32 %v4952_v43, %v13766_v33  ;;  %v13770_v43 = vld [vmem:[#allocation44_spill] sm:$0xff] }
 0xc15   :  { %3176 = vperm.xlu0 %7020, %v2530_v13   ;;  %v315_v13 = vld [vmem:[%s13194_s1 + $0x890] sm:$0xff] }
 0xc16   :  { %v6485_v30 = vadd.f32 %v13768_v29, %v5477_v4  ;;  %v316_v4 = vld [vmem:[%s13194_s1 + $0x898] sm:$0xff] }
 0xc17   :  { %7010 = vmatprep.mubr.msk.f32.mxu1 %vm329_vm1, %v316_v4  ;;  %6866 = vmatprep.mubr.msk.f32.mxu0 %vm329_vm1, %v316_v4 }
 0xc18   :  { %6629 = vst.msk [vmem:[%s13196_s4 + $0x180] sm:$0xff] %vm1547_vm0, %v6485_v30  ;;  %2370 = vmatmul.mubr.f32.gmra.mxu1 %v315_v13  ;;  %1512 = vmatmul.mubr.f32.gmra.mxu0 %v315_v13 }
 0xc1a   :  { %v4957_v61 = vpop.permute.xlu0 %4956 }
 0xc1b   :  { %v5478_v14 = vmul.f32 %v4957_v61, %v13769_v59  ;;  %v13774_v61 = vld [vmem:[#allocation7_spill] sm:$0xff] }
 0xc1c   :  { %v11430_v59 = vsub.f32 %v13774_v61, %v10563_v18 }
 0xc1d   :  { %v6486_v33 = vadd.f32 %v13770_v43, %v5478_v14  ;;  %v13772_v14 = vld [vmem:[#allocation146_spill] sm:$0xff]  ;;  %v4187_v43 = vadd.f32 1e-05, %v4043_v1  ;;  %v4475_v1 = vld [vmem:[%s13195_s2 + $0x1b0] sm:$0xff] }
 0xc1e   :  { %v11424_v29 = vsub.f32 %v13772_v14, %v10505_v49  ;;  %13775 = vst [vmem:[#allocation23_spill] sm:$0xff] %v11430_v59  ;;  %v3507_v4 = vmul.f32 %v11430_v59, %v11430_v59  ;;  %v4044_v49 = vmul.f32 0.020408163, %v13776_v3  ;;  %v11445_v3 = vpop.f32.mrf.mxu0 }
 0xc1f   :  { %6630 = vst.msk [vmem:[%s13196_s4 + $0x188] sm:$0xff] %vm1547_vm0, %v6486_v33  ;;  %7129 = vrsqrt.f32 %v4187_v43  ;;  %v2531_v43 = vmul.f32 0.020408163, %v11290_v44  ;;  %13777 = vst [vmem:[#allocation120_spill] sm:$0xff] %v11445_v3  ;;  %v2532_v44 = vmul.f32 0.020408163, %v11306_v28 }
 0xc20   :  { %13773 = vst [vmem:[#allocation117_spill] sm:$0xff] %v11424_v29  ;;  %v3506_v33 = vmul.f32 %v11424_v29, %v11424_v29  ;;  %v3839_v13 = vsel %vm1547_vm0, %v3507_v4, 0.0  ;;  %v4188_v22 = vadd.f32 1e-05, %v4044_v49  ;;  %v1460_v4 = vpop.f32.mrf.mxu0 }
 0xc21   :  { %v13781_v4 = vld [vmem:[#allocation186_spill] sm:$0xff] }
 0xc22   :  { %v3836_v14 = vsel %vm1547_vm0, %v3506_v33, 0.0  ;;  %7131 = vrsqrt.f32 %v4188_v22  ;;  %v11447_v33 = vpop.permute.xlu1 %3151  ;;  %v4476_v22 = vld [vmem:[%s13195_s2 + $0x1b8] sm:$0xff]  ;;  %v11454_v29 = vpop.f32.mrf.mxu0 }
 0xc23   :  { %v11426_v30 = vpop.f32.mrf.mxu1  ;;  %13779 = vst [vmem:[#allocation170_spill] sm:$0xff] %v11454_v29 }
 0xc25   :  { %v2338_v12 = vpop.f32.mrf.mxu1 }
 0xc2c   :  { %v7130_v18 = vpop.eup %7129 }
 0xc2d   :  { %v11442_v12 = vpop.f32.mrf.mxu1  ;;  %v4619_v59 = vmul.f32 %v7130_v18, %v4475_v1  ;;  %v1465_v18 = vpop.f32.mrf.mxu0 }
 0xc2e   :  { %v13784_v18 = vld [vmem:[#allocation187_spill] sm:$0xff] }
 0xc2f   :  { %v2343_v61 = vpop.f32.mrf.mxu1  ;;  %v7132_v49 = vpop.eup %7131 }
 0xc30   :  { %v318_v61 = vld [vmem:[%s13194_s1 + $0x8a8] sm:$0xff] }
 0xc31   :  { %3837 = vadd.xlane.f32.xlu1 %v3836_v14  ;;  %7011 = vmatprep.mubr.msk.f32.mxu1 %vm329_vm1, %v318_v61 }
 0xc32   :  { %6867 = vmatprep.mubr.msk.f32.mxu0 %vm329_vm1, %v318_v61  ;;  %v13786_v61 = vld [vmem:[#allocation89_spill] sm:$0xff] }
 0xc34   :  { %3840 = vadd.xlane.f32.xlu0 %v3839_v13  ;;  %v4620_v13 = vmul.f32 %v7132_v49, %v4476_v22  ;;  %v13783_v49 = vld [vmem:[#allocation43_spill] sm:$0xff] }
 0xc42   :  { %4981 = vperm.xlu1 %7019, %v4619_v59   ;;  %v11457_v59 = vpop.permute.xlu0 %3156 }
 0xc43   :  { %13780 = vst [vmem:[#allocation169_spill] sm:$0xff] %v11457_v59 }
 0xc46   :  { %3181 = vperm.xlu1 %7019, %v2531_v43   ;;  %v317_v43 = vld [vmem:[%s13194_s1 + $0x8a0] sm:$0xff] }
 0xc47   :  { %2375 = vmatmul.mubr.f32.gmra.mxu1 %v317_v43  ;;  %1517 = vmatmul.mubr.f32.gmra.mxu0 %v317_v43  ;;  %v4045_v43 = vmul.f32 0.020408163, %v13786_v61  ;;  %v13792_v61 = vld [vmem:[#allocation141_spill] sm:$0xff] }
 0xc48   :  { %v11452_v14 = vpop.xlane.xlu1 %3825 }
 0xc49   :  { %13778 = vst [vmem:[#allocation26_spill] sm:$0xff] %v11452_v14 }
 0xc4a   :  { %4986 = vperm.xlu0 %7020, %v4620_v13  }
 0xc4b   :  { %v11468_v28 = vpop.xlane.xlu0 %3828 }
 0xc4c   :  { %v4962_v1 = vpop.permute.xlu1 %4961  ;;  %13782 = vst [vmem:[#allocation180_spill] sm:$0xff] %v11468_v28 }
 0xc4d   :  { %v5479_v14 = vmul.f32 %v4962_v1, %v13781_v4  ;;  %v13785_v1 = vld [vmem:[#allocation46_spill] sm:$0xff] }
 0xc4e   :  { %3186 = vperm.xlu0 %7020, %v2532_v44   ;;  %v319_v44 = vld [vmem:[%s13194_s1 + $0x8b0] sm:$0xff] }
 0xc4f   :  { %v6487_v22 = vadd.f32 %v13783_v49, %v5479_v14  ;;  %v320_v14 = vld [vmem:[%s13194_s1 + $0x8b8] sm:$0xff]  ;;  %v13788_v49 = vld [vmem:[#allocation151_spill] sm:$0xff] }
 0xc50   :  { %7012 = vmatprep.mubr.msk.f32.mxu1 %vm329_vm1, %v320_v14  ;;  %6868 = vmatprep.mubr.msk.f32.mxu0 %vm329_vm1, %v320_v14 }
 0xc51   :  { %6631 = vst.msk [vmem:[%s13196_s4 + $0x190] sm:$0xff] %vm1547_vm0, %v6487_v22  ;;  %2380 = vmatmul.mubr.f32.gmra.mxu1 %v319_v44  ;;  %1522 = vmatmul.mubr.f32.gmra.mxu0 %v319_v44 }
 0xc53   :  { %v4967_v13 = vpop.permute.xlu0 %4966 }
 0xc54   :  { %v5480_v29 = vmul.f32 %v4967_v13, %v13784_v18  ;;  %v13790_v18 = vld [vmem:[#allocation6_spill] sm:$0xff] }
 0xc56   :  { %v6488_v4 = vadd.f32 %v13785_v1, %v5480_v29  ;;  %v13787_v29 = vld [vmem:[#allocation118_spill] sm:$0xff]  ;;  %v11498_v1 = vsub.f32 %v13790_v18, %v10631_v10 }
 0xc57   :  { %v11492_v22 = vsub.f32 %v13788_v49, %v13787_v29  ;;  %v4046_v29 = vmul.f32 0.020408163, %v13792_v61  ;;  %v11513_v61 = vpop.f32.mrf.mxu0 }
 0xc58   :  { %6632 = vst.msk [vmem:[%s13196_s4 + $0x198] sm:$0xff] %vm1547_vm0, %v6488_v4  ;;  %13791 = vst [vmem:[#allocation25_spill] sm:$0xff] %v11498_v1  ;;  %v4189_v4 = vadd.f32 1e-05, %v4045_v43  ;;  %v3509_v14 = vmul.f32 %v11498_v1, %v11498_v1  ;;  %v4477_v43 = vld [vmem:[%s13195_s2 + $0x1c0] sm:$0xff] }
 0xc59   :  { %13789 = vst [vmem:[#allocation121_spill] sm:$0xff] %v11492_v22  ;;  %v3508_v28 = vmul.f32 %v11492_v22, %v11492_v22  ;;  %v4190_v59 = vadd.f32 1e-05, %v4046_v29  ;;  %13793 = vst [vmem:[#allocation124_spill] sm:$0xff] %v11513_v61 }
 0xc5a   :  { %7133 = vrsqrt.f32 %v4189_v4  ;;  %v3845_v44 = vsel %vm1547_vm0, %v3509_v14, 0.0  ;;  %v2533_v4 = vmul.f32 0.020408163, %v11358_v5  ;;  %v1470_v14 = vpop.f32.mrf.mxu0  ;;  %v2534_v5 = vmul.f32 0.020408163, %v11374_v45 }
 0xc5b   :  { %v3842_v49 = vsel %vm1547_vm0, %v3508_v28, 0.0  ;;  %7135 = vrsqrt.f32 %v4190_v59  ;;  %v11515_v28 = vpop.permute.xlu1 %3161  ;;  %v4478_v59 = vld [vmem:[%s13195_s2 + $0x1c8] sm:$0xff]  ;;  %v13797_v14 = vld [vmem:[#allocation98_spill] sm:$0xff] }
 0xc5c   :  { %v11494_v13 = vpop.f32.mrf.mxu1  ;;  %v11522_v22 = vpop.f32.mrf.mxu0 }
 0xc5d   :  { %13795 = vst [vmem:[#allocation173_spill] sm:$0xff] %v11522_v22 }
 0xc5e   :  { %v2348_v3 = vpop.f32.mrf.mxu1 }
 0xc66   :  { %v11510_v3 = vpop.f32.mrf.mxu1 }
 0xc67   :  { %v7134_v10 = vpop.eup %7133 }
 0xc68   :  { %v2353_v18 = vpop.f32.mrf.mxu1  ;;  %v4621_v1 = vmul.f32 %v7134_v10, %v4477_v43  ;;  %v7136_v29 = vpop.eup %7135 }
 0xc69   :  { %v1475_v10 = vpop.f32.mrf.mxu0  ;;  %v322_v18 = vld [vmem:[%s13194_s1 + $0x8c8] sm:$0xff] }
 0xc6a   :  { %3843 = vadd.xlane.f32.xlu1 %v3842_v49  ;;  %7013 = vmatprep.mubr.msk.f32.mxu1 %vm329_vm1, %v322_v18  ;;  %v13800_v10 = vld [vmem:[#allocation140_spill] sm:$0xff] }
 0xc6b   :  { %6869 = vmatprep.mubr.msk.f32.mxu0 %vm329_vm1, %v322_v18  ;;  %v13802_v18 = vld [vmem:[#allocation110_spill] sm:$0xff] }
 0xc6d   :  { %3846 = vadd.xlane.f32.xlu0 %v3845_v44  ;;  %v4622_v44 = vmul.f32 %v7136_v29, %v4478_v59  ;;  %v13799_v29 = vld [vmem:[#allocation45_spill] sm:$0xff] }
 0xc7b   :  { %4991 = vperm.xlu1 %7019, %v4621_v1   ;;  %v11525_v1 = vpop.permute.xlu0 %3166 }
 0xc7c   :  { %13796 = vst [vmem:[#allocation125_spill] sm:$0xff] %v11525_v1 }
 0xc7f   :  { %3191 = vperm.xlu1 %7019, %v2533_v4   ;;  %v321_v4 = vld [vmem:[%s13194_s1 + $0x8c0] sm:$0xff] }
 0xc80   :  { %2385 = vmatmul.mubr.f32.gmra.mxu1 %v321_v4  ;;  %1527 = vmatmul.mubr.f32.gmra.mxu0 %v321_v4  ;;  %v4047_v4 = vmul.f32 0.020408163, %v13802_v18  ;;  %v13808_v18 = vld [vmem:[#allocation92_spill] sm:$0xff] }
 0xc81   :  { %v11520_v49 = vpop.xlane.xlu1 %3831 }
 0xc82   :  { %13794 = vst [vmem:[#allocation28_spill] sm:$0xff] %v11520_v49 }
 0xc83   :  { %4996 = vperm.xlu0 %7020, %v4622_v44  }
 0xc84   :  { %v11536_v45 = vpop.xlane.xlu0 %3834 }
 0xc85   :  { %v4972_v43 = vpop.permute.xlu1 %4971  ;;  %13798 = vst [vmem:[#allocation27_spill] sm:$0xff] %v11536_v45 }
 0xc86   :  { %v5481_v49 = vmul.f32 %v4972_v43, %v13797_v14  ;;  %v13801_v43 = vld [vmem:[#allocation48_spill] sm:$0xff] }
 0xc87   :  { %3196 = vperm.xlu0 %7020, %v2534_v5   ;;  %v323_v5 = vld [vmem:[%s13194_s1 + $0x8d0] sm:$0xff] }
 0xc88   :  { %v6489_v59 = vadd.f32 %v13799_v29, %v5481_v49  ;;  %v324_v49 = vld [vmem:[%s13194_s1 + $0x8d8] sm:$0xff]  ;;  %v13804_v29 = vld [vmem:[#allocation10_spill] sm:$0xff] }
 0xc89   :  { %7014 = vmatprep.mubr.msk.f32.mxu1 %vm329_vm1, %v324_v49  ;;  %6870 = vmatprep.mubr.msk.f32.mxu0 %vm329_vm1, %v324_v49 }
 0xc8a   :  { %6633 = vst.msk [vmem:[%s13196_s4 + $0x1a0] sm:$0xff] %vm1547_vm0, %v6489_v59  ;;  %2390 = vmatmul.mubr.f32.gmra.mxu1 %v323_v5  ;;  %1532 = vmatmul.mubr.f32.gmra.mxu0 %v323_v5 }
 0xc8c   :  { %v4977_v44 = vpop.permute.xlu0 %4976 }
 0xc8d   :  { %v5482_v22 = vmul.f32 %v4977_v44, %v13800_v10  ;;  %v13806_v10 = vld [vmem:[#allocation114_spill] sm:$0xff] }
 0xc8f   :  { %v6490_v14 = vadd.f32 %v13801_v43, %v5482_v22  ;;  %v13803_v22 = vld [vmem:[#allocation163_spill] sm:$0xff]  ;;  %v11566_v43 = vsub.f32 %v13806_v10, %v10699_v51 }
 0xc90   :  { %v11560_v59 = vsub.f32 %v13804_v29, %v13803_v22  ;;  %v4048_v22 = vmul.f32 0.020408163, %v13808_v18  ;;  %v11581_v18 = vpop.f32.mrf.mxu0 }
 0xc91   :  { %6634 = vst.msk [vmem:[%s13196_s4 + $0x1a8] sm:$0xff] %vm1547_vm0, %v6490_v14  ;;  %13807 = vst [vmem:[#allocation30_spill] sm:$0xff] %v11566_v43  ;;  %v4191_v14 = vadd.f32 1e-05, %v4047_v4  ;;  %v3511_v49 = vmul.f32 %v11566_v43, %v11566_v43  ;;  %v4479_v4 = vld [vmem:[%s13195_s2 + $0x1d0] sm:$0xff] }
 0xc92   :  { %13805 = vst [vmem:[#allocation128_spill] sm:$0xff] %v11560_v59  ;;  %v3510_v45 = vmul.f32 %v11560_v59, %v11560_v59  ;;  %v4192_v1 = vadd.f32 1e-05, %v4048_v22  ;;  %13809 = vst [vmem:[#allocation129_spill] sm:$0xff] %v11581_v18 }
 0xc93   :  { %7137 = vrsqrt.f32 %v4191_v14  ;;  %v3851_v5 = vsel %vm1547_vm0, %v3511_v49, 0.0  ;;  %v2535_v14 = vmul.f32 0.020408163, %v11426_v30  ;;  %v1480_v49 = vpop.f32.mrf.mxu0  ;;  %v2536_v30 = vmul.f32 0.020408163, %v11442_v12 }
 0xc94   :  { %v3848_v29 = vsel %vm1547_vm0, %v3510_v45, 0.0  ;;  %7139 = vrsqrt.f32 %v4192_v1  ;;  %v11583_v45 = vpop.permute.xlu1 %3171  ;;  %v4480_v1 = vld [vmem:[%s13195_s2 + $0x1d8] sm:$0xff] }
 0xc95   :  { %v11562_v44 = vpop.f32.mrf.mxu1  ;;  %v11590_v59 = vpop.f32.mrf.mxu0  ;;  %v13813_v49 = vld [vmem:[#allocation85_spill] sm:$0xff] }
 0xc96   :  { %13811 = vst [vmem:[#allocation132_spill] sm:$0xff] %v11590_v59 }
 0xc97   :  { %v2358_v61 = vpop.f32.mrf.mxu1 }
 0xc9f   :  { %v11578_v61 = vpop.f32.mrf.mxu1 }
 0xca0   :  { %v7138_v51 = vpop.eup %7137 }
 0xca1   :  { %v2363_v10 = vpop.f32.mrf.mxu1  ;;  %v4623_v43 = vmul.f32 %v7138_v51, %v4479_v4  ;;  %v7140_v22 = vpop.eup %7139 }
 0xca2   :  { %v1485_v51 = vpop.f32.mrf.mxu0  ;;  %v326_v10 = vld [vmem:[%s13194_s1 + $0x8e8] sm:$0xff] }
 0xca3   :  { %3849 = vadd.xlane.f32.xlu1 %v3848_v29  ;;  %7015 = vmatprep.mubr.msk.f32.mxu1 %vm329_vm1, %v326_v10  ;;  %v13816_v51 = vld [vmem:[#allocation3_spill] sm:$0xff] }
 0xca4   :  { %6871 = vmatprep.mubr.msk.f32.mxu0 %vm329_vm1, %v326_v10  ;;  %v13818_v10 = vld [vmem:[#allocation144_spill] sm:$0xff] }
 0xca6   :  { %3852 = vadd.xlane.f32.xlu0 %v3851_v5  ;;  %v4624_v5 = vmul.f32 %v7140_v22, %v4480_v1  ;;  %v13815_v22 = vld [vmem:[#allocation47_spill] sm:$0xff] }
 0xcb4   :  { %5001 = vperm.xlu1 %7019, %v4623_v43   ;;  %v11593_v43 = vpop.permute.xlu0 %3176 }
 0xcb5   :  { %13812 = vst [vmem:[#allocation32_spill] sm:$0xff] %v11593_v43 }
 0xcb8   :  { %3201 = vperm.xlu1 %7019, %v2535_v14   ;;  %v325_v14 = vld [vmem:[%s13194_s1 + $0x8e0] sm:$0xff] }
 0xcb9   :  { %2395 = vmatmul.mubr.f32.gmra.mxu1 %v325_v14  ;;  %1537 = vmatmul.mubr.f32.gmra.mxu0 %v325_v14  ;;  %v4049_v14 = vmul.f32 0.020408163, %v13818_v10  ;;  %v13823_v10 = vld [vmem:[#allocation153_spill] sm:$0xff] }
 0xcba   :  { %v11588_v29 = vpop.xlane.xlu1 %3837 }
 0xcbb   :  { %13810 = vst [vmem:[#allocation29_spill] sm:$0xff] %v11588_v29 }
 0xcbc   :  { %5006 = vperm.xlu0 %7020, %v4624_v5  }
 0xcbd   :  { %v11604_v12 = vpop.xlane.xlu0 %3840 }
 0xcbe   :  { %v4982_v4 = vpop.permute.xlu1 %4981  ;;  %13814 = vst [vmem:[#allocation133_spill] sm:$0xff] %v11604_v12 }
 0xcbf   :  { %v5483_v29 = vmul.f32 %v4982_v4, %v13813_v49  ;;  %v13817_v4 = vld [vmem:[#allocation50_spill] sm:$0xff] }
 0xcc0   :  { %3206 = vperm.xlu0 %7020, %v2536_v30   ;;  %v327_v30 = vld [vmem:[%s13194_s1 + $0x8f0] sm:$0xff] }
 0xcc1   :  { %v6491_v1 = vadd.f32 %v13815_v22, %v5483_v29  ;;  %v328_v29 = vld [vmem:[%s13194_s1 + $0x8f8] sm:$0xff] }
 0xcc2   :  { %7016 = vmatprep.mubr.msk.f32.mxu1 %vm329_vm1, %v328_v29  ;;  %6872 = vmatprep.mubr.msk.f32.mxu0 %vm329_vm1, %v328_v29 }
 0xcc3   :  { %6635 = vst.msk [vmem:[%s13196_s4 + $0x1b0] sm:$0xff] %vm1547_vm0, %v6491_v1  ;;  %2400 = vmatmul.mubr.f32.gmra.mxu1 %v327_v30  ;;  %1542 = vmatmul.mubr.f32.gmra.mxu0 %v327_v30 }
 0xcc5   :  { %v4987_v5 = vpop.permute.xlu0 %4986 }
 0xcc6   :  { %v5484_v59 = vmul.f32 %v4987_v5, %v13816_v51  ;;  %v13821_v5 = vld [vmem:[#allocation147_spill] sm:$0xff] }
 0xcc7   :  { %v11634_v51 = vsub.f32 %v13821_v5, %v10767_v7 }
 0xcc8   :  { %v6492_v49 = vadd.f32 %v13817_v4, %v5484_v59  ;;  %v13819_v59 = vld [vmem:[#allocation93_spill] sm:$0xff]  ;;  %v4193_v4 = vadd.f32 1e-05, %v4049_v14  ;;  %v4481_v14 = vld [vmem:[%s13195_s2 + $0x1e0] sm:$0xff] }
 0xcc9   :  { %v11628_v22 = vsub.f32 %v13819_v59, %v10709_v46  ;;  %13822 = vst [vmem:[#allocation136_spill] sm:$0xff] %v11634_v51  ;;  %v3513_v29 = vmul.f32 %v11634_v51, %v11634_v51  ;;  %v4050_v46 = vmul.f32 0.020408163, %v13823_v10  ;;  %v11649_v10 = vpop.f32.mrf.mxu0 }
 0xcca   :  { %6636 = vst.msk [vmem:[%s13196_s4 + $0x1b8] sm:$0xff] %vm1547_vm0, %v6492_v49  ;;  %7141 = vrsqrt.f32 %v4193_v4  ;;  %v2537_v4 = vmul.f32 0.020408163, %v11494_v13  ;;  %13824 = vst [vmem:[#allocation34_spill] sm:$0xff] %v11649_v10  ;;  %v2538_v13 = vmul.f32 0.020408163, %v11510_v3 }
 0xccb   :  { %13820 = vst [vmem:[#allocation31_spill] sm:$0xff] %v11628_v22  ;;  %v3512_v49 = vmul.f32 %v11628_v22, %v11628_v22  ;;  %v3857_v30 = vsel %vm1547_vm0, %v3513_v29, 0.0  ;;  %v4194_v18 = vadd.f32 1e-05, %v4050_v46  ;;  %v1490_v29 = vpop.f32.mrf.mxu0  ;;  %v13832_v3 = vld [vmem:[#allocation52_spill] sm:$0xff] }
 0xccd   :  { %v3854_v59 = vsel %vm1547_vm0, %v3512_v49, 0.0  ;;  %7143 = vrsqrt.f32 %v4194_v18  ;;  %v11651_v49 = vpop.permute.xlu1 %3181  ;;  %v4482_v18 = vld [vmem:[%s13195_s2 + $0x1e8] sm:$0xff]  ;;  %v11658_v22 = vpop.f32.mrf.mxu0 }
 0xcce   :  { %v11630_v1 = vpop.f32.mrf.mxu1  ;;  %13825 = vst [vmem:[#allocation138_spill] sm:$0xff] %v11651_v49  ;;  %13827 = vst [vmem:[#allocation155_spill] sm:$0xff] %v11658_v22  ;;  %v13830_v49 = vld [vmem:[#allocation49_spill] sm:$0xff] }
 0xcd0   :  { %v2368_v12 = vpop.f32.mrf.mxu1 }
 0xcd7   :  { %v7142_v7 = vpop.eup %7141 }
 0xcd8   :  { %v11646_v12 = vpop.f32.mrf.mxu1  ;;  %v4625_v51 = vmul.f32 %v7142_v7, %v4481_v14  ;;  %v1495_v7 = vpop.f32.mrf.mxu0 }
 0xcda   :  { %v2373_v5 = vpop.f32.mrf.mxu1  ;;  %v7144_v46 = vpop.eup %7143 }
 0xcdb   :  { %v13828_v5 = vld [vmem:[#allocation137_spill] sm:$0xff] }
 0xcdc   :  { %3855 = vadd.xlane.f32.xlu1 %v3854_v59 }
 0xcdf   :  { %3858 = vadd.xlane.f32.xlu0 %v3857_v30  ;;  %v4626_v30 = vmul.f32 %v7144_v46, %v4482_v18  ;;  %v13831_v46 = vld [vmem:[#allocation143_spill] sm:$0xff] }
 0xced   :  { %5011 = vperm.xlu1 %7019, %v4625_v51   ;;  %v11661_v51 = vpop.permute.xlu0 %3186 }
 0xcf1   :  { %3211 = vperm.xlu1 %7019, %v2537_v4  }
 0xcf3   :  { %v11656_v59 = vpop.xlane.xlu1 %3843 }
 0xcf4   :  { %13826 = vst [vmem:[#allocation33_spill] sm:$0xff] %v11656_v59 }
 0xcf5   :  { %5016 = vperm.xlu0 %7020, %v4626_v30  }
 0xcf6   :  { %v11664_v10 = vpop.xlane.xlu0 %3846 }
 0xcf7   :  { %v4992_v14 = vpop.permute.xlu1 %4991  ;;  %13829 = vst [vmem:[#allocation36_spill] sm:$0xff] %v11664_v10 }
 0xcf8   :  { %v5485_v29 = vmul.f32 %v4992_v14, %v13828_v5  ;;  %v13834_v14 = vld [vmem:[#allocation115_spill] sm:$0xff] }
 0xcf9   :  { %3216 = vperm.xlu0 %7020, %v2538_v13   ;;  %v13833_v13 = vld [vmem:[#allocation9_spill] sm:$0xff] }
 0xcfa   :  { %v6493_v43 = vadd.f32 %v13830_v49, %v5485_v29  ;;  %v4051_v7 = vmul.f32 0.020408163, %v13833_v13  ;;  %v11680_v49 = vsub.f32 %v13834_v14, %v10777_v19 }
 0xcfc   :  { %6637 = vst.msk [vmem:[%s13196_s4 + $0x1c0] sm:$0xff] %vm1547_vm0, %v6493_v43  ;;  %13835 = vst [vmem:[#allocation156_spill] sm:$0xff] %v11680_v49  ;;  %v13836_v43 = vld [vmem:[#allocation96_spill] sm:$0xff] }
 0xcfd   :  { %v11686_v29 = vsub.f32 %v13836_v43, %v10835_v55 }
 0xcfe   :  { %v4997_v4 = vpop.permute.xlu0 %4996 }
 0xcff   :  { %v5486_v18 = vmul.f32 %v4997_v4, %v13831_v46  ;;  %13837 = vst [vmem:[#allocation35_spill] sm:$0xff] %v11686_v29  ;;  %v4195_v4 = vadd.f32 1e-05, %v4051_v7  ;;  %v3514_v46 = vmul.f32 %v11680_v49, %v11680_v49  ;;  %v4483_v7 = vld [vmem:[%s13195_s2 + $0x1f0] sm:$0xff] }
 0xd01   :  { %v6494_v30 = vadd.f32 %v13832_v3, %v5486_v18  ;;  %v3515_v3 = vmul.f32 %v11686_v29, %v11686_v29  ;;  %7145 = vrsqrt.f32 %v4195_v4  ;;  %v3860_v19 = vsel %vm1547_vm0, %v3514_v46, 0.0  ;;  %v11703_v46 = vpop.permute.xlu1 %3191 }
 0xd02   :  { %v2539_v4 = vmul.f32 0.020408163, %v11562_v44  ;;  %v2540_v44 = vmul.f32 0.020408163, %v11578_v61  ;;  %v13846_v61 = vld [vmem:[#allocation54_spill] sm:$0xff] }
 0xd03   :  { %6638 = vst.msk [vmem:[%s13196_s4 + $0x1c8] sm:$0xff] %vm1547_vm0, %v6494_v30  ;;  %v13838_v30 = vld [vmem:[#allocation159_spill] sm:$0xff]  ;;  %v3863_v14 = vsel %vm1547_vm0, %v3515_v3, 0.0 }
 0xd04   :  { %v4052_v13 = vmul.f32 0.020408163, %v13838_v30  ;;  %v11701_v30 = vpop.f32.mrf.mxu0 }
 0xd05   :  { %13839 = vst [vmem:[#allocation176_spill] sm:$0xff] %v11701_v30  ;;  %v13844_v30 = vld [vmem:[#allocation51_spill] sm:$0xff] }
 0xd06   :  { %v4196_v10 = vadd.f32 1e-05, %v4052_v13  ;;  %v1500_v3 = vpop.f32.mrf.mxu0 }
 0xd07   :  { %v11682_v5 = vpop.f32.mrf.mxu1 }
 0xd08   :  { %7147 = vrsqrt.f32 %v4196_v10  ;;  %v4484_v10 = vld [vmem:[%s13195_s2 + $0x1f8] sm:$0xff]  ;;  %v11710_v49 = vpop.f32.mrf.mxu0 }
 0xd09   :  { %v2378_v18 = vpop.f32.mrf.mxu1  ;;  %13841 = vst [vmem:[#allocation8_spill] sm:$0xff] %v11710_v49 }
 0xd0e   :  { %v7146_v55 = vpop.eup %7145 }
 0xd0f   :  { %v4627_v29 = vmul.f32 %v7146_v55, %v4483_v7  ;;  %v1505_v55 = vpop.f32.mrf.mxu0 }
 0xd11   :  { %v11698_v43 = vpop.f32.mrf.mxu1 }
 0xd13   :  { %v2383_v18 = vpop.f32.mrf.mxu1 }
 0xd14   :  { %v13842_v18 = vld [vmem:[#allocation87_spill] sm:$0xff] }
 0xd15   :  { %3861 = vadd.xlane.f32.xlu1 %v3860_v19  ;;  %v7148_v13 = vpop.eup %7147 }
 0xd18   :  { %3864 = vadd.xlane.f32.xlu0 %v3863_v14  ;;  %v4628_v14 = vmul.f32 %v7148_v13, %v4484_v10  ;;  %v13845_v13 = vld [vmem:[#allocation148_spill] sm:$0xff] }
 0xd26   :  { %5021 = vperm.xlu1 %7019, %v4627_v29   ;;  %v11713_v29 = vpop.permute.xlu0 %3196 }
 0xd2a   :  { %3221 = vperm.xlu1 %7019, %v2539_v4  }
 0xd2c   :  { %v11708_v19 = vpop.xlane.xlu1 %3849 }
 0xd2d   :  { %13840 = vst [vmem:[#allocation38_spill] sm:$0xff] %v11708_v19 }
 0xd2e   :  { %5026 = vperm.xlu0 %7020, %v4628_v14  }
 0xd2f   :  { %v11716_v59 = vpop.xlane.xlu0 %3852 }
 0xd30   :  { %v5002_v7 = vpop.permute.xlu1 %5001  ;;  %13843 = vst [vmem:[#allocation178_spill] sm:$0xff] %v11716_v59 }
 0xd31   :  { %v5487_v3 = vmul.f32 %v5002_v7, %v13842_v18  ;;  %v13848_v7 = vld [vmem:[#allocation149_spill] sm:$0xff] }
 0xd32   :  { %3226 = vperm.xlu0 %7020, %v2540_v44   ;;  %v13847_v44 = vld [vmem:[#allocation160_spill] sm:$0xff] }
 0xd33   :  { %v6495_v22 = vadd.f32 %v13844_v30, %v5487_v3  ;;  %v4053_v55 = vmul.f32 0.020408163, %v13847_v44  ;;  %v11732_v30 = vsub.f32 %v13848_v7, %v10845_v6 }
 0xd35   :  { %6639 = vst.msk [vmem:[%s13196_s4 + $0x1d0] sm:$0xff] %vm1547_vm0, %v6495_v22  ;;  %13849 = vst [vmem:[#allocation37_spill] sm:$0xff] %v11732_v30  ;;  %v13850_v22 = vld [vmem:[#allocation97_spill] sm:$0xff] }
 0xd36   :  { %v11738_v3 = vsub.f32 %v13850_v22, %v10903_v37 }
 0xd37   :  { %v5007_v4 = vpop.permute.xlu0 %5006 }
 0xd38   :  { %v5488_v10 = vmul.f32 %v5007_v4, %v13845_v13  ;;  %13851 = vst [vmem:[#allocation181_spill] sm:$0xff] %v11738_v3  ;;  %v4197_v4 = vadd.f32 1e-05, %v4053_v55  ;;  %v3516_v13 = vmul.f32 %v11732_v30, %v11732_v30  ;;  %v4485_v55 = vld [vmem:[%s13195_s2 + $0x200] sm:$0xff] }
 0xd3a   :  { %v6496_v14 = vadd.f32 %v13846_v61, %v5488_v10  ;;  %v3517_v61 = vmul.f32 %v11738_v3, %v11738_v3  ;;  %7149 = vrsqrt.f32 %v4197_v4  ;;  %v3866_v6 = vsel %vm1547_vm0, %v3516_v13, 0.0  ;;  %v11755_v13 = vpop.permute.xlu1 %3201 }
 0xd3b   :  { %v2541_v4 = vmul.f32 0.020408163, %v11630_v1  ;;  %v2542_v1 = vmul.f32 0.020408163, %v11646_v12  ;;  %v13859_v12 = vld [vmem:[#allocation56_spill] sm:$0xff] }
 0xd3c   :  { %6640 = vst.msk [vmem:[%s13196_s4 + $0x1d8] sm:$0xff] %vm1547_vm0, %v6496_v14  ;;  %v13852_v14 = vld [vmem:[#allocation14_spill] sm:$0xff]  ;;  %v3869_v7 = vsel %vm1547_vm0, %v3517_v61, 0.0 }
 0xd3d   :  { %v4054_v44 = vmul.f32 0.020408163, %v13852_v14  ;;  %v11753_v14 = vpop.f32.mrf.mxu0 }
 0xd3e   :  { %13853 = vst [vmem:[#allocation40_spill] sm:$0xff] %v11753_v14  ;;  %v13857_v14 = vld [vmem:[#allocation53_spill] sm:$0xff] }
 0xd3f   :  { %v4198_v59 = vadd.f32 1e-05, %v4054_v44  ;;  %v1510_v61 = vpop.f32.mrf.mxu0 }
 0xd40   :  { %v11734_v18 = vpop.f32.mrf.mxu1 }
 0xd41   :  { %7151 = vrsqrt.f32 %v4198_v59  ;;  %v4486_v59 = vld [vmem:[%s13195_s2 + $0x208] sm:$0xff]  ;;  %v11762_v30 = vpop.f32.mrf.mxu0 }
 0xd42   :  { %v2388_v10 = vpop.f32.mrf.mxu1 }
 0xd47   :  { %v7150_v37 = vpop.eup %7149 }
 0xd48   :  { %v4629_v3 = vmul.f32 %v7150_v37, %v4485_v55  ;;  %v1515_v37 = vpop.f32.mrf.mxu0 }
 0xd4a   :  { %v11750_v22 = vpop.f32.mrf.mxu1 }
 0xd4c   :  { %v2393_v10 = vpop.f32.mrf.mxu1 }
 0xd4d   :  { %v13855_v10 = vld [vmem:[#allocation103_spill] sm:$0xff] }
 0xd4e   :  { %3867 = vadd.xlane.f32.xlu1 %v3866_v6  ;;  %v7152_v44 = vpop.eup %7151 }
 0xd51   :  { %3870 = vadd.xlane.f32.xlu0 %v3869_v7  ;;  %v4630_v7 = vmul.f32 %v7152_v44, %v4486_v59  ;;  %v13858_v44 = vld [vmem:[#allocation4_spill] sm:$0xff] }
 0xd5f   :  { %5031 = vperm.xlu1 %7019, %v4629_v3   ;;  %v11765_v3 = vpop.permute.xlu0 %3206 }
 0xd63   :  { %3231 = vperm.xlu1 %7019, %v2541_v4  }
 0xd65   :  { %v11760_v6 = vpop.xlane.xlu1 %3855 }
 0xd66   :  { %13854 = vst [vmem:[#allocation86_spill] sm:$0xff] %v11760_v6  ;;  %v13868_v6 = vld [vmem:[#allocation55_spill] sm:$0xff] }
 0xd67   :  { %5036 = vperm.xlu0 %7020, %v4630_v7  }
 0xd68   :  { %v11768_v19 = vpop.xlane.xlu0 %3858 }
 0xd69   :  { %v5012_v55 = vpop.permute.xlu1 %5011  ;;  %13856 = vst [vmem:[#allocation107_spill] sm:$0xff] %v11768_v19 }
 0xd6a   :  { %v5489_v61 = vmul.f32 %v5012_v55, %v13855_v10  ;;  %v13861_v55 = vld [vmem:[#allocation100_spill] sm:$0xff] }
 0xd6b   :  { %3236 = vperm.xlu0 %7020, %v2542_v1   ;;  %v13860_v1 = vld [vmem:[#allocation119_spill] sm:$0xff] }
 0xd6c   :  { %v6497_v49 = vadd.f32 %v13857_v14, %v5489_v61  ;;  %v4055_v37 = vmul.f32 0.020408163, %v13860_v1  ;;  %v11784_v14 = vsub.f32 %v13861_v55, %v10913_v27 }
 0xd6e   :  { %6641 = vst.msk [vmem:[%s13196_s4 + $0x1e0] sm:$0xff] %vm1547_vm0, %v6497_v49  ;;  %13862 = vst [vmem:[#allocation158_spill] sm:$0xff] %v11784_v14  ;;  %v11790_v49 = vsub.f32 %v10765_v16, %v10971_v2  ;;  %v4199_v61 = vadd.f32 1e-05, %v4055_v37  ;;  %v4487_v2 = vld [vmem:[%s13195_s2 + $0x210] sm:$0xff] }
 0xd70   :  { %v5017_v4 = vpop.permute.xlu0 %5016  ;;  %13863 = vst [vmem:[#allocation2_spill] sm:$0xff] %v11790_v49  ;;  %7153 = vrsqrt.f32 %v4199_v61  ;;  %v2543_v61 = vmul.f32 0.020408163, %v11682_v5  ;;  %v2544_v5 = vmul.f32 0.020408163, %v11698_v43  ;;  %v13870_v43 = vld [vmem:[#allocation58_spill] sm:$0xff] }
 0xd71   :  { %v5490_v59 = vmul.f32 %v5017_v4, %v13858_v44  ;;  %v3518_v4 = vmul.f32 %v11784_v14, %v11784_v14 }
 0xd73   :  { %v6498_v7 = vadd.f32 %v13859_v12, %v5490_v59  ;;  %v3519_v59 = vmul.f32 %v11790_v49, %v11790_v49  ;;  %v13864_v12 = vld [vmem:[#allocation13_spill] sm:$0xff]  ;;  %v3872_v27 = vsel %vm1547_vm0, %v3518_v4, 0.0  ;;  %v11807_v4 = vpop.permute.xlu1 %3211 }
 0xd75   :  { %6642 = vst.msk [vmem:[%s13196_s4 + $0x1e8] sm:$0xff] %vm1547_vm0, %v6498_v7  ;;  %v4056_v7 = vmul.f32 0.020408163, %v13864_v12  ;;  %v3875_v1 = vsel %vm1547_vm0, %v3519_v59, 0.0  ;;  %v11805_v12 = vpop.f32.mrf.mxu0 }
 0xd76   :  { %13865 = vst [vmem:[#allocation99_spill] sm:$0xff] %v11805_v12 }
 0xd77   :  { %v4200_v55 = vadd.f32 1e-05, %v4056_v7  ;;  %v1520_v59 = vpop.f32.mrf.mxu0 }
 0xd79   :  { %v11786_v10 = vpop.f32.mrf.mxu1  ;;  %7155 = vrsqrt.f32 %v4200_v55  ;;  %v11814_v14 = vpop.f32.mrf.mxu0 }
 0xd7b   :  { %v2398_v44 = vpop.f32.mrf.mxu1 }
 0xd7d   :  { %v7154_v16 = vpop.eup %7153 }
 0xd7e   :  { %v4631_v49 = vmul.f32 %v7154_v16, %v4487_v2  ;;  %v1525_v16 = vpop.f32.mrf.mxu0 }
 0xd83   :  { %v11802_v37 = vpop.f32.mrf.mxu1 }
 0xd85   :  { %v2403_v44 = vpop.f32.mrf.mxu1 }
 0xd86   :  { %v7156_v7 = vpop.eup %7155  ;;  %v13866_v44 = vld [vmem:[#allocation90_spill] sm:$0xff] }
 0xd87   :  { %3873 = vadd.xlane.f32.xlu1 %v3872_v27  ;;  %v4488_v27 = vld [vmem:[%s13195_s2 + $0x218] sm:$0xff] }
 0xd88   :  { %v4632_v55 = vmul.f32 %v7156_v7, %v4488_v27  ;;  %v13869_v7 = vld [vmem:[#allocation150_spill] sm:$0xff] }
 0xd8a   :  { %3876 = vadd.xlane.f32.xlu0 %v3875_v1 }
 0xd98   :  { %5041 = vperm.xlu1 %7019, %v4631_v49   ;;  %v11817_v49 = vpop.permute.xlu0 %3216 }
 0xd9c   :  { %3241 = vperm.xlu1 %7019, %v2543_v61  }
 0xd9e   :  { %v11812_v1 = vpop.xlane.xlu1 %3861 }
 0xda0   :  { %5046 = vperm.xlu0 %7020, %v4632_v55  }
 0xda1   :  { %v11820_v19 = vpop.xlane.xlu0 %3864 }
 0xda2   :  { %v5022_v2 = vpop.permute.xlu1 %5021  ;;  %13867 = vst [vmem:[#allocation182_spill] sm:$0xff] %v11820_v19 }
 0xda3   :  { %v5491_v59 = vmul.f32 %v5022_v2, %v13866_v44  ;;  %v13872_v2 = vld [vmem:[#allocation126_spill] sm:$0xff]  ;;  %v11840_v44 = vsub.f32 %v10833_v15, %v11039_v42 }
 0xda4   :  { %3246 = vperm.xlu0 %7020, %v2544_v5   ;;  %v13871_v5 = vld [vmem:[#allocation16_spill] sm:$0xff]  ;;  %v4489_v42 = vld [vmem:[%s13195_s2 + $0x220] sm:$0xff] }
 0xda5   :  { %v6499_v12 = vadd.f32 %v13868_v6, %v5491_v59  ;;  %v4057_v16 = vmul.f32 0.020408163, %v13871_v5  ;;  %v11836_v6 = vsub.f32 %v13872_v2, %v10981_v60  ;;  %13874 = vst [vmem:[#allocation183_spill] sm:$0xff] %v11840_v44  ;;  %v11853_v2 = vpop.f32.mrf.mxu0 }
 0xda7   :  { %6643 = vst.msk [vmem:[%s13196_s4 + $0x1f0] sm:$0xff] %vm1547_vm0, %v6499_v12  ;;  %13873 = vst [vmem:[#allocation39_spill] sm:$0xff] %v11836_v6  ;;  %v4201_v12 = vadd.f32 1e-05, %v4057_v16  ;;  %v3520_v59 = vmul.f32 %v11836_v6, %v11836_v6  ;;  %v2545_v16 = vmul.f32 0.020408163, %v11734_v18 }
 0xda8   :  { %v2546_v18 = vmul.f32 0.020408163, %v11750_v22  ;;  %v13878_v6 = vld [vmem:[#allocation57_spill] sm:$0xff]  ;;  %v13880_v22 = vld [vmem:[#allocation60_spill] sm:$0xff] }
 0xda9   :  { %v5027_v61 = vpop.permute.xlu0 %5026  ;;  %7157 = vrsqrt.f32 %v4201_v12  ;;  %v11855_v12 = vpop.permute.xlu1 %3221 }
 0xdaa   :  { %v5492_v27 = vmul.f32 %v5027_v61, %v13869_v7  ;;  %v3521_v61 = vmul.f32 %v11840_v44, %v11840_v44  ;;  %v13875_v7 = vld [vmem:[#allocation123_spill] sm:$0xff] }
 0xdac   :  { %v6500_v55 = vadd.f32 %v13870_v43, %v5492_v27  ;;  %v4058_v27 = vmul.f32 0.020408163, %v13875_v7  ;;  %v3878_v43 = vsel %vm1547_vm0, %v3520_v59, 0.0  ;;  %v3881_v60 = vsel %vm1547_vm0, %v3521_v61, 0.0  ;;  %v1530_v59 = vpop.f32.mrf.mxu0  ;;  %v4490_v61 = vld [vmem:[%s13195_s2 + $0x228] sm:$0xff] }
 0xdae   :  { %6644 = vst.msk [vmem:[%s13196_s4 + $0x1f8] sm:$0xff] %vm1547_vm0, %v6500_v55  ;;  %v4202_v55 = vadd.f32 1e-05, %v4058_v27 }
 0xdb0   :  { %7159 = vrsqrt.f32 %v4202_v55  ;;  %v11865_v55 = vpop.permute.xlu0 %3226 }
 0xdb6   :  { %v7158_v15 = vpop.eup %7157 }
 0xdb7   :  { %v4633_v5 = vmul.f32 %v7158_v15, %v4489_v42 }
 0xdbd   :  { %v7160_v7 = vpop.eup %7159 }
 0xdc0   :  { %3879 = vadd.xlane.f32.xlu1 %v3878_v43  ;;  %v4634_v43 = vmul.f32 %v7160_v7, %v4490_v61  ;;  %v13879_v7 = vld [vmem:[#allocation154_spill] sm:$0xff] }
 0xdc3   :  { %3882 = vadd.xlane.f32.xlu0 %v3881_v60  ;;  %v11862_v60 = vpop.f32.mrf.mxu0 }
 0xdc5   :  { %v1535_v15 = vpop.f32.mrf.mxu0 }
 0xdd1   :  { %5051 = vperm.xlu1 %7019, %v4633_v5   ;;  %v13876_v5 = vld [vmem:[#allocation91_spill] sm:$0xff] }
 0xdd5   :  { %3251 = vperm.xlu1 %7019, %v2545_v16  }
 0xdd7   :  { %v11860_v27 = vpop.xlane.xlu1 %3867 }
 0xdd9   :  { %5056 = vperm.xlu0 %7020, %v4634_v43  }
 0xdda   :  { %v11868_v44 = vpop.xlane.xlu0 %3870 }
 0xddb   :  { %v5032_v42 = vpop.permute.xlu1 %5031  ;;  %13877 = vst [vmem:[#allocation42_spill] sm:$0xff] %v11868_v44 }
 0xddc   :  { %v5493_v59 = vmul.f32 %v5032_v42, %v13876_v5  ;;  %v13882_v42 = vld [vmem:[#allocation157_spill] sm:$0xff]  ;;  %v11888_v5 = vsub.f32 %v10901_v53, %v11107_v36  ;;  %v4491_v36 = vld [vmem:[%s13195_s2 + $0x230] sm:$0xff] }
 0xddd   :  { %3256 = vperm.xlu0 %7020, %v2546_v18   ;;  %v13881_v18 = vld [vmem:[#allocation101_spill] sm:$0xff] }
 0xdde   :  { %v6501_v19 = vadd.f32 %v13878_v6, %v5493_v59  ;;  %v4059_v15 = vmul.f32 0.020408163, %v13881_v18  ;;  %v11884_v6 = vsub.f32 %v13882_v42, %v11049_v23  ;;  %13884 = vst [vmem:[#allocation5_spill] sm:$0xff] %v11888_v5  ;;  %v11901_v42 = vpop.f32.mrf.mxu0 }
 0xde0   :  { %6645 = vst.msk [vmem:[%s13196_s4 + $0x200] sm:$0xff] %vm1547_vm0, %v6501_v19  ;;  %13883 = vst [vmem:[#allocation102_spill] sm:$0xff] %v11884_v6  ;;  %v4203_v19 = vadd.f32 1e-05, %v4059_v15  ;;  %v3522_v59 = vmul.f32 %v11884_v6, %v11884_v6  ;;  %v2547_v15 = vmul.f32 0.020408163, %v11786_v10 }
 0xde1   :  { %v2548_v10 = vmul.f32 0.020408163, %v11802_v37  ;;  %v13887_v6 = vld [vmem:[#allocation59_spill] sm:$0xff]  ;;  %v13889_v37 = vld [vmem:[#allocation62_spill] sm:$0xff] }
 0xde2   :  { %v5037_v16 = vpop.permute.xlu0 %5036  ;;  %7161 = vrsqrt.f32 %v4203_v19  ;;  %v11903_v19 = vpop.permute.xlu1 %3231 }
 0xde3   :  { %v5494_v61 = vmul.f32 %v5037_v16, %v13879_v7  ;;  %v3523_v16 = vmul.f32 %v11888_v5, %v11888_v5  ;;  %v13885_v7 = vld [vmem:[#allocation18_spill] sm:$0xff] }
 0xde5   :  { %v6502_v43 = vadd.f32 %v13880_v22, %v5494_v61  ;;  %v4060_v61 = vmul.f32 0.020408163, %v13885_v7  ;;  %v3884_v22 = vsel %vm1547_vm0, %v3522_v59, 0.0  ;;  %v3887_v23 = vsel %vm1547_vm0, %v3523_v16, 0.0  ;;  %v1540_v59 = vpop.f32.mrf.mxu0  ;;  %v4492_v16 = vld [vmem:[%s13195_s2 + $0x238] sm:$0xff] }
 0xde7   :  { %6646 = vst.msk [vmem:[%s13196_s4 + $0x208] sm:$0xff] %vm1547_vm0, %v6502_v43  ;;  %v4204_v43 = vadd.f32 1e-05, %v4060_v61 }
 0xde9   :  { %7163 = vrsqrt.f32 %v4204_v43  ;;  %v11913_v43 = vpop.permute.xlu0 %3236 }
 0xdef   :  { %v7162_v53 = vpop.eup %7161 }
 0xdf0   :  { %v4635_v18 = vmul.f32 %v7162_v53, %v4491_v36 }
 0xdf6   :  { %v7164_v7 = vpop.eup %7163 }
 0xdf9   :  { %3885 = vadd.xlane.f32.xlu1 %v3884_v22  ;;  %v4636_v22 = vmul.f32 %v7164_v7, %v4492_v16  ;;  %v13888_v7 = vld [vmem:[#allocation94_spill] sm:$0xff] }
 0xdfc   :  { %3888 = vadd.xlane.f32.xlu0 %v3887_v23  ;;  %v11910_v23 = vpop.f32.mrf.mxu0 }
 0xdfe   :  { %v1545_v53 = vpop.f32.mrf.mxu0 }
 0xdff   :  { %v11936_v53 = vsub.f32 %v10969_v52, %v11175_v56  ;;  %v4493_v56 = vld [vmem:[%s13195_s2 + $0x240] sm:$0xff] }
 0xe01   :  { %13890 = vst [vmem:[#allocation162_spill] sm:$0xff] %v11936_v53 }
 0xe0a   :  { %5061 = vperm.xlu1 %7019, %v4635_v18   ;;  %v13886_v18 = vld [vmem:[#allocation111_spill] sm:$0xff] }
 0xe0e   :  { %3261 = vperm.xlu1 %7019, %v2547_v15  }
 0xe10   :  { %v11908_v61 = vpop.xlane.xlu1 %3873 }
 0xe12   :  { %5066 = vperm.xlu0 %7020, %v4636_v22  }
 0xe13   :  { %v11916_v5 = vpop.xlane.xlu0 %3876 }
 0xe14   :  { %v5042_v36 = vpop.permute.xlu1 %5041 }
 0xe15   :  { %v5495_v59 = vmul.f32 %v5042_v36, %v13886_v18  ;;  %v3525_v18 = vmul.f32 %v11936_v53, %v11936_v53  ;;  %v13895_v53 = vld [vmem:[#allocation64_spill] sm:$0xff] }
 0xe16   :  { %3266 = vperm.xlu0 %7020, %v2548_v10   ;;  %v4061_v10 = vmul.f32 0.020408163, %v10856_v32 }
 0xe17   :  { %v6503_v44 = vadd.f32 %v13887_v6, %v5495_v59  ;;  %v11932_v6 = vsub.f32 %v10910_v54, %v11117_v38  ;;  %v13891_v59 = vld [vmem:[#allocation171_spill] sm:$0xff]  ;;  %v3893_v54 = vsel %vm1547_vm0, %v3525_v18, 0.0 }
 0xe19   :  { %6647 = vst.msk [vmem:[%s13196_s4 + $0x210] sm:$0xff] %vm1547_vm0, %v6503_v44  ;;  %v4205_v44 = vadd.f32 1e-05, %v4061_v10  ;;  %v3524_v36 = vmul.f32 %v11932_v6, %v11932_v6 }
 0xe1b   :  { %v5047_v15 = vpop.permute.xlu0 %5046  ;;  %7165 = vrsqrt.f32 %v4205_v44  ;;  %v3890_v32 = vsel %vm1547_vm0, %v3524_v36, 0.0 }
 0xe1c   :  { %v5496_v16 = vmul.f32 %v5047_v15, %v13888_v7  ;;  %v4062_v15 = vmul.f32 0.020408163, %v13891_v59  ;;  %v13892_v59 = vld [vmem:[#allocation12_spill] sm:$0xff] }
 0xe1e   :  { %v6504_v22 = vadd.f32 %v13889_v37, %v5496_v16  ;;  %v4206_v38 = vadd.f32 1e-05, %v4062_v15  ;;  %v11948_v16 = vpop.permute.xlu1 %3241 }
 0xe1f   :  { %v11955_v36 = vpop.permute.xlu0 %3246 }
 0xe20   :  { %6648 = vst.msk [vmem:[%s13196_s4 + $0x218] sm:$0xff] %vm1547_vm0, %v6504_v22  ;;  %7167 = vrsqrt.f32 %v4206_v38  ;;  %v4494_v22 = vld [vmem:[%s13195_s2 + $0x248] sm:$0xff] }
 0xe28   :  { %v7166_v52 = vpop.eup %7165 }
 0xe29   :  { %v4637_v7 = vmul.f32 %v7166_v52, %v4493_v56  ;;  %v13894_v56 = vld [vmem:[#allocation95_spill] sm:$0xff] }
 0xe2d   :  { %v7168_v37 = vpop.eup %7167 }
 0xe2e   :  { %v4638_v44 = vmul.f32 %v7168_v37, %v4494_v22  ;;  %v4063_v22 = vmul.f32 0.020408163, %v10924_v8 }
 0xe32   :  { %3891 = vadd.xlane.f32.xlu1 %v3890_v32 }
 0xe35   :  { %3894 = vadd.xlane.f32.xlu0 %v3893_v54  ;;  %v13893_v54 = vld [vmem:[#allocation61_spill] sm:$0xff] }
 0xe43   :  { %5071 = vperm.xlu1 %7019, %v4637_v7  }
 0xe49   :  { %v11953_v10 = vpop.xlane.xlu1 %3879 }
 0xe4b   :  { %5076 = vperm.xlu0 %7020, %v4638_v44   ;;  %v11974_v44 = vsub.f32 %v10978_v57, %v11185_v17 }
 0xe4c   :  { %v11958_v32 = vpop.xlane.xlu0 %3882 }
 0xe4d   :  { %v5052_v18 = vpop.permute.xlu1 %5051 }
 0xe4e   :  { %v5497_v15 = vmul.f32 %v5052_v18, %v13892_v59  ;;  %v11978_v18 = vsub.f32 %v11037_v63, %v11243_v9  ;;  %v4207_v59 = vadd.f32 1e-05, %v4063_v22  ;;  %v4495_v9 = vld [vmem:[%s13195_s2 + $0x250] sm:$0xff] }
 0xe50   :  { %v6505_v38 = vadd.f32 %v13893_v54, %v5497_v15  ;;  %13896 = vst [vmem:[#allocation88_spill] sm:$0xff] %v11978_v18  ;;  %v3526_v15 = vmul.f32 %v11974_v44, %v11974_v44  ;;  %7169 = vrsqrt.f32 %v4207_v59  ;;  %v4064_v54 = vmul.f32 0.020408163, %v10976_v41  ;;  %v4496_v41 = vld [vmem:[%s13195_s2 + $0x258] sm:$0xff] }
 0xe52   :  { %6649 = vst.msk [vmem:[%s13196_s4 + $0x220] sm:$0xff] %vm1547_vm0, %v6505_v38  ;;  %v3896_v8 = vsel %vm1547_vm0, %v3526_v15, 0.0  ;;  %v4208_v17 = vadd.f32 1e-05, %v4064_v54  ;;  %v13897_v15 = vld [vmem:[#allocation11_spill] sm:$0xff] }
 0xe54   :  { %v5057_v52 = vpop.permute.xlu0 %5056  ;;  %7171 = vrsqrt.f32 %v4208_v17 }
 0xe55   :  { %v5498_v7 = vmul.f32 %v5057_v52, %v13894_v56  ;;  %v11993_v56 = vpop.permute.xlu1 %3251 }
 0xe57   :  { %v6506_v37 = vadd.f32 %v13895_v53, %v5498_v7  ;;  %v3527_v53 = vmul.f32 %v11978_v18, %v11978_v18 }
 0xe58   :  { %v11997_v22 = vpop.permute.xlu0 %3256 }
 0xe59   :  { %6650 = vst.msk [vmem:[%s13196_s4 + $0x228] sm:$0xff] %vm1547_vm0, %v6506_v37  ;;  %v3899_v57 = vsel %vm1547_vm0, %v3527_v53, 0.0 }
 0xe5d   :  { %v7170_v63 = vpop.eup %7169 }
 0xe5e   :  { %v4639_v38 = vmul.f32 %v7170_v63, %v4495_v9  ;;  %v13899_v63 = vld [vmem:[#allocation122_spill] sm:$0xff] }
 0xe61   :  { %v7172_v52 = vpop.eup %7171 }
 0xe62   :  { %v4640_v7 = vmul.f32 %v7172_v52, %v4496_v41  ;;  %v4065_v41 = vmul.f32 0.020408163, %v10992_v34 }
 0xe67   :  { %3897 = vadd.xlane.f32.xlu1 %v3896_v8  ;;  %v13898_v8 = vld [vmem:[#allocation63_spill] sm:$0xff] }
 0xe6a   :  { %3900 = vadd.xlane.f32.xlu0 %v3899_v57 }
 0xe78   :  { %5081 = vperm.xlu1 %7019, %v4639_v38   ;;  %v13900_v38 = vld [vmem:[#allocation66_spill] sm:$0xff] }
 0xe80   :  { %5086 = vperm.xlu0 %7020, %v4640_v7   ;;  %v12016_v7 = vsub.f32 %v11046_v39, %v11253_v21 }
 0xe82   :  { %v11995_v37 = vpop.xlane.xlu1 %3885 }
 0xe85   :  { %v12000_v54 = vpop.xlane.xlu0 %3888 }
 0xe86   :  { %v5062_v59 = vpop.permute.xlu1 %5061 }
 0xe87   :  { %v5499_v53 = vmul.f32 %v5062_v59, %v13897_v15  ;;  %v12020_v59 = vsub.f32 %v11105_v0, %v11311_v20  ;;  %v4209_v15 = vadd.f32 1e-05, %v4065_v41  ;;  %v4497_v20 = vld [vmem:[%s13195_s2 + $0x260] sm:$0xff] }
 0xe89   :  { %v6507_v57 = vadd.f32 %v13898_v8, %v5499_v53  ;;  %13901 = vst [vmem:[#allocation184_spill] sm:$0xff] %v12020_v59  ;;  %v3528_v53 = vmul.f32 %v12016_v7, %v12016_v7  ;;  %v3529_v8 = vmul.f32 %v12020_v59, %v12020_v59  ;;  %7173 = vrsqrt.f32 %v4209_v15  ;;  %v13941_v59 = vld [vmem:[#allocation120_spill] sm:$0xff] }
 0xe8b   :  { %6651 = vst.msk [vmem:[%s13196_s4 + $0x230] sm:$0xff] %vm1547_vm0, %v6507_v57  ;;  %v4066_v57 = vmul.f32 0.020408163, %v11044_v31  ;;  %v3902_v34 = vsel %vm1547_vm0, %v3528_v53, 0.0  ;;  %v3905_v39 = vsel %vm1547_vm0, %v3529_v8, 0.0  ;;  %v4498_v31 = vld [vmem:[%s13195_s2 + $0x268] sm:$0xff] }
 0xe8c   :  { %v13902_v53 = vld [vmem:[#allocation164_spill] sm:$0xff] }
 0xe8d   :  { %v5067_v17 = vpop.permute.xlu0 %5066  ;;  %v4210_v21 = vadd.f32 1e-05, %v4066_v57 }
 0xe8e   :  { %v5500_v9 = vmul.f32 %v5067_v17, %v13899_v63 }
 0xe8f   :  { %7175 = vrsqrt.f32 %v4210_v21 }
 0xe90   :  { %v6508_v52 = vadd.f32 %v13900_v38, %v5500_v9  ;;  %v12035_v38 = vpop.permute.xlu1 %3261 }
 0xe91   :  { %v12039_v41 = vpop.permute.xlu0 %3266 }
 0xe92   :  { %6652 = vst.msk [vmem:[%s13196_s4 + $0x238] sm:$0xff] %vm1547_vm0, %v6508_v52 }
 0xe96   :  { %v7174_v0 = vpop.eup %7173 }
 0xe97   :  { %v4641_v17 = vmul.f32 %v7174_v0, %v4497_v20  ;;  %v13904_v0 = vld [vmem:[#allocation152_spill] sm:$0xff] }
 0xe9c   :  { %3903 = vadd.xlane.f32.xlu1 %v3902_v34  ;;  %v7176_v63 = vpop.eup %7175  ;;  %v13903_v34 = vld [vmem:[#allocation65_spill] sm:$0xff] }
 0xe9d   :  { %v4642_v9 = vmul.f32 %v7176_v63, %v4498_v31  ;;  %v12053_v63 = vsub.f32 %v11114_v50, %v11321_v58  ;;  %v13905_v31 = vld [vmem:[#allocation68_spill] sm:$0xff]  ;;  %v4068_v50 = vmul.f32 0.020408163, %v11112_v47  ;;  %v4500_v47 = vld [vmem:[%s13195_s2 + $0x278] sm:$0xff] }
 0xe9f   :  { %3906 = vadd.xlane.f32.xlu0 %v3905_v39 }
 0xead   :  { %5091 = vperm.xlu1 %7019, %v4641_v17   ;;  %v4067_v17 = vmul.f32 0.020408163, %v11060_v11 }
 0xeb5   :  { %5096 = vperm.xlu0 %7020, %v4642_v9  }
 0xebb   :  { %v12037_v52 = vpop.xlane.xlu1 %3891 }
 0xebe   :  { %v12042_v57 = vpop.xlane.xlu0 %3894 }
 0xebf   :  { %v5072_v15 = vpop.permute.xlu1 %5071 }
 0xec0   :  { %v5501_v8 = vmul.f32 %v5072_v15, %v13902_v53  ;;  %v12058_v15 = vsub.f32 %v11173_v24, %v11379_v48  ;;  %v4211_v53 = vadd.f32 1e-05, %v4067_v17  ;;  %v4212_v48 = vadd.f32 1e-05, %v4068_v50 }
 0xec2   :  { %v6509_v39 = vadd.f32 %v13903_v34, %v5501_v8  ;;  %13906 = vst [vmem:[#allocation41_spill] sm:$0xff] %v12058_v15  ;;  %v3530_v8 = vmul.f32 %v12053_v63, %v12053_v63  ;;  %v3531_v11 = vmul.f32 %v12058_v15, %v12058_v15  ;;  %7177 = vrsqrt.f32 %v4211_v53  ;;  %v13939_v15 = vld [vmem:[#allocation76_spill] sm:$0xff] }
 0xec3   :  { %7179 = vrsqrt.f32 %v4212_v48 }
 0xec4   :  { %6653 = vst.msk [vmem:[%s13196_s4 + $0x240] sm:$0xff] %vm1547_vm0, %v6509_v39  ;;  %v3908_v58 = vsel %vm1547_vm0, %v3530_v8, 0.0  ;;  %v3911_v24 = vsel %vm1547_vm0, %v3531_v11, 0.0  ;;  %v4499_v39 = vld [vmem:[%s13195_s2 + $0x270] sm:$0xff]  ;;  %v13908_v11 = vld [vmem:[#allocation67_spill] sm:$0xff] }
 0xec6   :  { %v5077_v21 = vpop.permute.xlu0 %5076 }
 0xec7   :  { %v5502_v20 = vmul.f32 %v5077_v21, %v13904_v0 }
 0xec9   :  { %v6510_v9 = vadd.f32 %v13905_v31, %v5502_v20 }
 0xecb   :  { %6654 = vst.msk [vmem:[%s13196_s4 + $0x248] sm:$0xff] %vm1547_vm0, %v6510_v9  ;;  %v13907_v9 = vld [vmem:[#allocation166_spill] sm:$0xff] }
 0xecf   :  { %v7178_v34 = vpop.eup %7177 }
 0xed0   :  { %v4643_v21 = vmul.f32 %v7178_v34, %v4499_v39  ;;  %v7180_v0 = vpop.eup %7179  ;;  %v4069_v34 = vmul.f32 0.020408163, %v11128_v25  ;;  %v12091_v39 = vsub.f32 %v11182_v40, %v11389_v26  ;;  %v4070_v40 = vmul.f32 0.020408163, %v11180_v35  ;;  %v4502_v35 = vld [vmem:[%s13195_s2 + $0x288] sm:$0xff] }
 0xed1   :  { %3909 = vadd.xlane.f32.xlu1 %v3908_v58  ;;  %v4644_v20 = vmul.f32 %v7180_v0, %v4500_v47  ;;  %v12096_v47 = vsub.f32 %v11241_v62, %v11447_v33 }
 0xed2   :  { %v4214_v33 = vadd.f32 1e-05, %v4070_v40  ;;  %v13914_v40 = vld [vmem:[#allocation127_spill] sm:$0xff] }
 0xed3   :  { %13911 = vst [vmem:[#allocation185_spill] sm:$0xff] %v12096_v47  ;;  %v3533_v25 = vmul.f32 %v12096_v47, %v12096_v47 }
 0xed4   :  { %3912 = vadd.xlane.f32.xlu0 %v3911_v24  ;;  %v13909_v24 = vld [vmem:[#allocation15_spill] sm:$0xff] }
 0xed5   :  { %v3917_v62 = vsel %vm1547_vm0, %v3533_v25, 0.0 }
 0xee2   :  { %5101 = vperm.xlu1 %7019, %v4643_v21   ;;  %v13910_v21 = vld [vmem:[#allocation70_spill] sm:$0xff] }
 0xeea   :  { %5106 = vperm.xlu0 %7020, %v4644_v20   ;;  %v4213_v20 = vadd.f32 1e-05, %v4069_v34  ;;  %v13912_v34 = vld [vmem:[#allocation104_spill] sm:$0xff] }
 0xeec   :  { %7181 = vrsqrt.f32 %v4213_v20  ;;  %v13913_v20 = vld [vmem:[#allocation69_spill] sm:$0xff] }
 0xeed   :  { %7183 = vrsqrt.f32 %v4214_v33 }
 0xef0   :  { %v12077_v17 = vpop.xlane.xlu1 %3897 }
 0xef3   :  { %v12080_v8 = vpop.xlane.xlu0 %3900 }
 0xef4   :  { %v5082_v31 = vpop.permute.xlu1 %5081 }
 0xef5   :  { %v5503_v53 = vmul.f32 %v5082_v31, %v13907_v9  ;;  %v3532_v31 = vmul.f32 %v12091_v39, %v12091_v39 }
 0xef7   :  { %v6511_v50 = vadd.f32 %v13908_v11, %v5503_v53  ;;  %v3914_v26 = vsel %vm1547_vm0, %v3532_v31, 0.0  ;;  %v4501_v53 = vld [vmem:[%s13195_s2 + $0x280] sm:$0xff] }
 0xef9   :  { %6655 = vst.msk [vmem:[%s13196_s4 + $0x250] sm:$0xff] %vm1547_vm0, %v6511_v50  ;;  %v7182_v9 = vpop.eup %7181 }
 0xefa   :  { %v4645_v11 = vmul.f32 %v7182_v9, %v4501_v53  ;;  %v7184_v50 = vpop.eup %7183  ;;  %v13916_v9 = vld [vmem:[#allocation169_spill] sm:$0xff]  ;;  %v13917_v53 = vld [vmem:[#allocation22_spill] sm:$0xff] }
 0xefb   :  { %v5087_v58 = vpop.permute.xlu0 %5086 }
 0xefc   :  { %v5504_v48 = vmul.f32 %v5087_v58, %v13909_v24  ;;  %v4646_v58 = vmul.f32 %v7184_v50, %v4502_v35  ;;  %v13918_v50 = vld [vmem:[#allocation72_spill] sm:$0xff] }
 0xefe   :  { %v6512_v0 = vadd.f32 %v13910_v21, %v5504_v48 }
 0xf00   :  { %6656 = vst.msk [vmem:[%s13196_s4 + $0x258] sm:$0xff] %vm1547_vm0, %v6512_v0 }
 0xf06   :  { %3915 = vadd.xlane.f32.xlu1 %v3914_v26 }
 0xf09   :  { %3918 = vadd.xlane.f32.xlu0 %v3917_v62  ;;  %v13915_v62 = vld [vmem:[#allocation175_spill] sm:$0xff] }
 0xf0a   :  { %v4071_v33 = vmul.f32 0.020408163, %v13915_v62 }
 0xf17   :  { %5111 = vperm.xlu1 %7019, %v4645_v11   ;;  %v12129_v11 = vsub.f32 %v13917_v53, %v13916_v9 }
 0xf1f   :  { %5116 = vperm.xlu0 %7020, %v4646_v58   ;;  %v13919_v58 = vld [vmem:[#allocation142_spill] sm:$0xff] }
 0xf25   :  { %v12115_v24 = vpop.xlane.xlu1 %3903 }
 0xf28   :  { %v12118_v0 = vpop.xlane.xlu0 %3906 }
 0xf29   :  { %v5092_v48 = vpop.permute.xlu1 %5091 }
 0xf2a   :  { %v5505_v21 = vmul.f32 %v5092_v48, %v13912_v34  ;;  %v12134_v48 = vsub.f32 %v13919_v58, %v11515_v28  ;;  %v4215_v34 = vadd.f32 1e-05, %v4071_v33  ;;  %v4503_v33 = vld [vmem:[%s13195_s2 + $0x290] sm:$0xff] }
 0xf2c   :  { %v6513_v31 = vadd.f32 %v13913_v20, %v5505_v21  ;;  %13920 = vst [vmem:[#allocation44_spill] sm:$0xff] %v12134_v48  ;;  %v3534_v21 = vmul.f32 %v12129_v11, %v12129_v11  ;;  %v3535_v20 = vmul.f32 %v12134_v48, %v12134_v48  ;;  %7185 = vrsqrt.f32 %v4215_v34  ;;  %v13928_v48 = vld [vmem:[#allocation74_spill] sm:$0xff] }
 0xf2e   :  { %6657 = vst.msk [vmem:[%s13196_s4 + $0x260] sm:$0xff] %vm1547_vm0, %v6513_v31  ;;  %v13921_v31 = vld [vmem:[#allocation112_spill] sm:$0xff]  ;;  %v3923_v28 = vsel %vm1547_vm0, %v3535_v20, 0.0 }
 0xf30   :  { %v5097_v25 = vpop.permute.xlu0 %5096 }
 0xf31   :  { %v5506_v26 = vmul.f32 %v5097_v25, %v13914_v40  ;;  %v4072_v25 = vmul.f32 0.020408163, %v13921_v31  ;;  %v3920_v40 = vsel %vm1547_vm0, %v3534_v21, 0.0  ;;  %v13922_v21 = vld [vmem:[#allocation130_spill] sm:$0xff] }
 0xf33   :  { %v6514_v35 = vadd.f32 %v13918_v50, %v5506_v26  ;;  %v4216_v26 = vadd.f32 1e-05, %v4072_v25  ;;  %v4504_v50 = vld [vmem:[%s13195_s2 + $0x298] sm:$0xff]  ;;  %v13923_v25 = vld [vmem:[#allocation71_spill] sm:$0xff] }
 0xf35   :  { %6658 = vst.msk [vmem:[%s13196_s4 + $0x268] sm:$0xff] %vm1547_vm0, %v6514_v35  ;;  %7187 = vrsqrt.f32 %v4216_v26  ;;  %v13924_v26 = vld [vmem:[#allocation105_spill] sm:$0xff] }
 0xf39   :  { %v7186_v62 = vpop.eup %7185 }
 0xf3a   :  { %v4647_v9 = vmul.f32 %v7186_v62, %v4503_v33  ;;  %v13925_v33 = vld [vmem:[#allocation165_spill] sm:$0xff] }
 0xf3b   :  { %3921 = vadd.xlane.f32.xlu1 %v3920_v40 }
 0xf3e   :  { %3924 = vadd.xlane.f32.xlu0 %v3923_v28 }
 0xf42   :  { %v7188_v53 = vpop.eup %7187 }
 0xf43   :  { %v4648_v35 = vmul.f32 %v7188_v53, %v4504_v50  ;;  %v13926_v53 = vld [vmem:[#allocation125_spill] sm:$0xff] }
 0xf44   :  { %v13927_v50 = vld [vmem:[#allocation113_spill] sm:$0xff] }
 0xf4c   :  { %5121 = vperm.xlu1 %7019, %v4647_v9   ;;  %v4073_v9 = vmul.f32 0.020408163, %v13925_v33 }
 0xf54   :  { %5126 = vperm.xlu0 %7020, %v4648_v35   ;;  %v12167_v35 = vsub.f32 %v13927_v50, %v13926_v53 }
 0xf5a   :  { %v12153_v58 = vpop.xlane.xlu1 %3909 }
 0xf5d   :  { %v12156_v31 = vpop.xlane.xlu0 %3912 }
 0xf5e   :  { %v5102_v34 = vpop.permute.xlu1 %5101 }
 0xf5f   :  { %v5507_v20 = vmul.f32 %v5102_v34, %v13922_v21  ;;  %v13929_v21 = vld [vmem:[#allocation168_spill] sm:$0xff] }
 0xf60   :  { %v12172_v47 = vsub.f32 %v13929_v21, %v11583_v45 }
 0xf61   :  { %v6515_v40 = vadd.f32 %v13923_v25, %v5507_v20  ;;  %v4217_v20 = vadd.f32 1e-05, %v4073_v9  ;;  %v3536_v25 = vmul.f32 %v12167_v35, %v12167_v35  ;;  %v4505_v9 = vld [vmem:[%s13195_s2 + $0x2a0] sm:$0xff] }
 0xf62   :  { %13930 = vst [vmem:[#allocation139_spill] sm:$0xff] %v12172_v47 }
 0xf63   :  { %6659 = vst.msk [vmem:[%s13196_s4 + $0x270] sm:$0xff] %vm1547_vm0, %v6515_v40  ;;  %v3537_v40 = vmul.f32 %v12172_v47, %v12172_v47  ;;  %7189 = vrsqrt.f32 %v4217_v20 }
 0xf65   :  { %v5107_v28 = vpop.permute.xlu0 %5106  ;;  %v3929_v45 = vsel %vm1547_vm0, %v3537_v40, 0.0  ;;  %v13932_v40 = vld [vmem:[#allocation17_spill] sm:$0xff] }
 0xf66   :  { %v5508_v62 = vmul.f32 %v5107_v28, %v13924_v26  ;;  %v13931_v28 = vld [vmem:[#allocation177_spill] sm:$0xff] }
 0xf67   :  { %v4074_v26 = vmul.f32 0.020408163, %v13931_v28 }
 0xf68   :  { %v6516_v34 = vadd.f32 %v13928_v48, %v5508_v62  ;;  %v3926_v48 = vsel %vm1547_vm0, %v3536_v25, 0.0 }
 0xf69   :  { %v4218_v62 = vadd.f32 1e-05, %v4074_v26 }
 0xf6a   :  { %6660 = vst.msk [vmem:[%s13196_s4 + $0x278] sm:$0xff] %vm1547_vm0, %v6516_v34  ;;  %v4506_v34 = vld [vmem:[%s13195_s2 + $0x2a8] sm:$0xff] }
 0xf6b   :  { %7191 = vrsqrt.f32 %v4218_v62 }
 0xf70   :  { %3927 = vadd.xlane.f32.xlu1 %v3926_v48  ;;  %v7190_v33 = vpop.eup %7189  ;;  %v13933_v48 = vld [vmem:[#allocation73_spill] sm:$0xff] }
 0xf71   :  { %v4649_v53 = vmul.f32 %v7190_v33, %v4505_v9  ;;  %v13934_v33 = vld [vmem:[#allocation108_spill] sm:$0xff] }
 0xf73   :  { %3930 = vadd.xlane.f32.xlu0 %v3929_v45 }
 0xf78   :  { %v7192_v50 = vpop.eup %7191 }
 0xf79   :  { %v4650_v21 = vmul.f32 %v7192_v50, %v4506_v34  ;;  %v13936_v34 = vld [vmem:[#allocation32_spill] sm:$0xff] }
 0xf81   :  { %5131 = vperm.xlu1 %7019, %v4649_v53   ;;  %v13935_v53 = vld [vmem:[#allocation21_spill] sm:$0xff] }
 0xf82   :  { %v4075_v50 = vmul.f32 0.020408163, %v13935_v53 }
 0xf89   :  { %5136 = vperm.xlu0 %7020, %v4650_v21   ;;  %v13937_v21 = vld [vmem:[#allocation167_spill] sm:$0xff] }
 0xf8a   :  { %v12205_v47 = vsub.f32 %v13937_v21, %v13936_v34 }
 0xf8c   :  { %13938 = vst [vmem:[#allocation146_spill] sm:$0xff] %v12205_v47 }
 0xf8f   :  { %v12191_v20 = vpop.xlane.xlu1 %3915 }
 0xf92   :  { %v12194_v26 = vpop.xlane.xlu0 %3918 }
 0xf93   :  { %v5112_v25 = vpop.permute.xlu1 %5111 }
 0xf94   :  { %v5509_v28 = vmul.f32 %v5112_v25, %v13932_v40  ;;  %v13940_v40 = vld [vmem:[#allocation138_spill] sm:$0xff] }
 0xf95   :  { %v12210_v18 = vsub.f32 %v13941_v59, %v13940_v40 }
 0xf96   :  { %v6517_v45 = vadd.f32 %v13933_v48, %v5509_v28  ;;  %v4219_v28 = vadd.f32 1e-05, %v4075_v50  ;;  %v3538_v48 = vmul.f32 %v12205_v47, %v12205_v47  ;;  %v4507_v50 = vld [vmem:[%s13195_s2 + $0x2b0] sm:$0xff] }
 0xf97   :  { %13942 = vst [vmem:[#allocation7_spill] sm:$0xff] %v12210_v18 }
 0xf98   :  { %6661 = vst.msk [vmem:[%s13196_s4 + $0x280] sm:$0xff] %vm1547_vm0, %v6517_v45  ;;  %v3539_v45 = vmul.f32 %v12210_v18, %v12210_v18  ;;  %7193 = vrsqrt.f32 %v4219_v28  ;;  %v13950_v18 = vld [vmem:[#allocation78_spill] sm:$0xff] }
 0xf9a   :  { %v5117_v62 = vpop.permute.xlu0 %5116  ;;  %v3935_v59 = vsel %vm1547_vm0, %v3539_v45, 0.0  ;;  %v13944_v45 = vld [vmem:[#allocation20_spill] sm:$0xff] }
 0xf9b   :  { %v5510_v9 = vmul.f32 %v5117_v62, %v13934_v33  ;;  %v13943_v62 = vld [vmem:[#allocation145_spill] sm:$0xff] }
 0xf9c   :  { %v4076_v33 = vmul.f32 0.020408163, %v13943_v62 }
 0xf9d   :  { %v6518_v25 = vadd.f32 %v13939_v15, %v5510_v9  ;;  %v3932_v15 = vsel %vm1547_vm0, %v3538_v48, 0.0 }
 0xf9e   :  { %v4220_v9 = vadd.f32 1e-05, %v4076_v33 }
 0xf9f   :  { %6662 = vst.msk [vmem:[%s13196_s4 + $0x288] sm:$0xff] %vm1547_vm0, %v6518_v25  ;;  %v4508_v25 = vld [vmem:[%s13195_s2 + $0x2b8] sm:$0xff] }
 0xfa0   :  { %7195 = vrsqrt.f32 %v4220_v9 }
 0xfa5   :  { %3933 = vadd.xlane.f32.xlu1 %v3932_v15  ;;  %v7194_v53 = vpop.eup %7193  ;;  %v13945_v15 = vld [vmem:[#allocation75_spill] sm:$0xff] }
 0xfa6   :  { %v4651_v34 = vmul.f32 %v7194_v53, %v4507_v50  ;;  %v13946_v53 = vld [vmem:[#allocation161_spill] sm:$0xff] }
 0xfa8   :  { %3936 = vadd.xlane.f32.xlu0 %v3935_v59 }
 0xfad   :  { %v7196_v21 = vpop.eup %7195 }
 0xfae   :  { %v4652_v40 = vmul.f32 %v7196_v21, %v4508_v25  ;;  %v13948_v25 = vld [vmem:[#allocation170_spill] sm:$0xff] }
 0xfb6   :  { %5141 = vperm.xlu1 %7019, %v4651_v34   ;;  %v13947_v34 = vld [vmem:[#allocation179_spill] sm:$0xff] }
 0xfb7   :  { %v4077_v21 = vmul.f32 0.020408163, %v13947_v34  ;;  %v4509_v34 = vld [vmem:[%s13195_s2 + $0x2c0] sm:$0xff] }
 0xfbe   :  { %5146 = vperm.xlu0 %7020, %v4652_v40   ;;  %v12243_v40 = vsub.f32 %v13948_v25, %v11661_v51  ;;  %v13953_v51 = vld [vmem:[#allocation26_spill] sm:$0xff] }
 0xfc0   :  { %13949 = vst [vmem:[#allocation106_spill] sm:$0xff] %v12243_v40 }
 0xfc4   :  { %v12229_v28 = vpop.xlane.xlu1 %3921 }
 0xfc7   :  { %v12232_v33 = vpop.xlane.xlu0 %3924 }
 0xfc8   :  { %v5122_v48 = vpop.permute.xlu1 %5121 }
 0xfc9   :  { %v5511_v62 = vmul.f32 %v5122_v48, %v13944_v45  ;;  %v13951_v45 = vld [vmem:[#allocation124_spill] sm:$0xff] }
 0xfca   :  { %v12248_v47 = vsub.f32 %v13951_v45, %v11703_v46 }
 0xfcb   :  { %v6519_v59 = vadd.f32 %v13945_v15, %v5511_v62  ;;  %v4221_v62 = vadd.f32 1e-05, %v4077_v21  ;;  %v3540_v15 = vmul.f32 %v12243_v40, %v12243_v40 }
 0xfcc   :  { %13952 = vst [vmem:[#allocation186_spill] sm:$0xff] %v12248_v47 }
 0xfcd   :  { %6663 = vst.msk [vmem:[%s13196_s4 + $0x290] sm:$0xff] %vm1547_vm0, %v6519_v59  ;;  %v3541_v59 = vmul.f32 %v12248_v47, %v12248_v47  ;;  %7197 = vrsqrt.f32 %v4221_v62  ;;  %v13960_v47 = vld [vmem:[#allocation80_spill] sm:$0xff] }
 0xfcf   :  { %v5127_v9 = vpop.permute.xlu0 %5126  ;;  %v3941_v46 = vsel %vm1547_vm0, %v3541_v59, 0.0  ;;  %v13954_v59 = vld [vmem:[#allocation172_spill] sm:$0xff] }
 0xfd0   :  { %v5512_v50 = vmul.f32 %v5127_v9, %v13946_v53  ;;  %v4078_v9 = vmul.f32 0.020408163, %v13953_v51 }
 0xfd2   :  { %v6520_v48 = vadd.f32 %v13950_v18, %v5512_v50  ;;  %v3938_v18 = vsel %vm1547_vm0, %v3540_v15, 0.0  ;;  %v4222_v53 = vadd.f32 1e-05, %v4078_v9 }
 0xfd4   :  { %6664 = vst.msk [vmem:[%s13196_s4 + $0x298] sm:$0xff] %vm1547_vm0, %v6520_v48  ;;  %7199 = vrsqrt.f32 %v4222_v53  ;;  %v4510_v48 = vld [vmem:[%s13195_s2 + $0x2c8] sm:$0xff] }
 0xfda   :  { %3939 = vadd.xlane.f32.xlu1 %v3938_v18  ;;  %v7198_v50 = vpop.eup %7197  ;;  %v13955_v18 = vld [vmem:[#allocation77_spill] sm:$0xff] }
 0xfdb   :  { %v4653_v21 = vmul.f32 %v7198_v50, %v4509_v34  ;;  %v13956_v50 = vld [vmem:[#allocation131_spill] sm:$0xff] }
 0xfdd   :  { %3942 = vadd.xlane.f32.xlu0 %v3941_v46 }
 0xfe1   :  { %v7200_v25 = vpop.eup %7199 }
 0xfe2   :  { %v4654_v45 = vmul.f32 %v7200_v25, %v4510_v48  ;;  %v13958_v48 = vld [vmem:[#allocation173_spill] sm:$0xff] }
 0xfeb   :  { %5151 = vperm.xlu1 %7019, %v4653_v21   ;;  %v13957_v21 = vld [vmem:[#allocation180_spill] sm:$0xff] }
 0xfec   :  { %v4079_v25 = vmul.f32 0.020408163, %v13957_v21  ;;  %v4511_v21 = vld [vmem:[%s13195_s2 + $0x2d0] sm:$0xff] }
 0xff3   :  { %5156 = vperm.xlu0 %7020, %v4654_v45   ;;  %v12281_v45 = vsub.f32 %v13958_v48, %v11713_v29  ;;  %v13963_v29 = vld [vmem:[#allocation28_spill] sm:$0xff] }
 0xff5   :  { %13959 = vst [vmem:[#allocation43_spill] sm:$0xff] %v12281_v45 }
 0xff9   :  { %v12267_v62 = vpop.xlane.xlu1 %3927 }
 0xffc   :  { %v12270_v9 = vpop.xlane.xlu0 %3930 }
 0xffd   :  { %v5132_v15 = vpop.permute.xlu1 %5131 }
 0xffe   :  { %v5513_v51 = vmul.f32 %v5132_v15, %v13954_v59  ;;  %v13961_v59 = vld [vmem:[#allocation129_spill] sm:$0xff] }
 0xfff   :  { %v12286_v40 = vsub.f32 %v13961_v59, %v11755_v13 }
0x1000   :  { %v6521_v46 = vadd.f32 %v13955_v18, %v5513_v51  ;;  %v4223_v51 = vadd.f32 1e-05, %v4079_v25  ;;  %v3542_v18 = vmul.f32 %v12281_v45, %v12281_v45 }
0x1001   :  { %13962 = vst [vmem:[#allocation187_spill] sm:$0xff] %v12286_v40 }
0x1002   :  { %6665 = vst.msk [vmem:[%s13196_s4 + $0x2a0] sm:$0xff] %vm1547_vm0, %v6521_v46  ;;  %v3543_v46 = vmul.f32 %v12286_v40, %v12286_v40  ;;  %7201 = vrsqrt.f32 %v4223_v51  ;;  %v13970_v40 = vld [vmem:[#allocation82_spill] sm:$0xff] }
0x1004   :  { %v5137_v53 = vpop.permute.xlu0 %5136  ;;  %v3947_v13 = vsel %vm1547_vm0, %v3543_v46, 0.0  ;;  %v13964_v46 = vld [vmem:[#allocation134_spill] sm:$0xff] }
0x1005   :  { %v5514_v34 = vmul.f32 %v5137_v53, %v13956_v50  ;;  %v4080_v53 = vmul.f32 0.020408163, %v13963_v29 }
0x1007   :  { %v6522_v15 = vadd.f32 %v13960_v47, %v5514_v34  ;;  %v3944_v47 = vsel %vm1547_vm0, %v3542_v18, 0.0  ;;  %v4224_v50 = vadd.f32 1e-05, %v4080_v53 }
0x1009   :  { %6666 = vst.msk [vmem:[%s13196_s4 + $0x2a8] sm:$0xff] %vm1547_vm0, %v6522_v15  ;;  %7203 = vrsqrt.f32 %v4224_v50  ;;  %v4512_v15 = vld [vmem:[%s13195_s2 + $0x2d8] sm:$0xff] }
0x100f   :  { %3945 = vadd.xlane.f32.xlu1 %v3944_v47  ;;  %v7202_v34 = vpop.eup %7201  ;;  %v13965_v47 = vld [vmem:[#allocation79_spill] sm:$0xff] }
0x1010   :  { %v4655_v25 = vmul.f32 %v7202_v34, %v4511_v21  ;;  %v13966_v34 = vld [vmem:[#allocation109_spill] sm:$0xff] }
0x1012   :  { %3948 = vadd.xlane.f32.xlu0 %v3947_v13 }
0x1016   :  { %v7204_v48 = vpop.eup %7203 }
0x1017   :  { %v4656_v59 = vmul.f32 %v7204_v48, %v4512_v15  ;;  %v13968_v15 = vld [vmem:[#allocation132_spill] sm:$0xff] }
0x1020   :  { %5161 = vperm.xlu1 %7019, %v4655_v25   ;;  %v13967_v25 = vld [vmem:[#allocation27_spill] sm:$0xff] }
0x1021   :  { %v4081_v48 = vmul.f32 0.020408163, %v13967_v25  ;;  %v4513_v25 = vld [vmem:[%s13195_s2 + $0x2e0] sm:$0xff] }
0x1028   :  { %5166 = vperm.xlu0 %7020, %v4656_v59   ;;  %v12319_v59 = vsub.f32 %v13968_v15, %v11765_v3  ;;  %v13973_v3 = vld [vmem:[#allocation29_spill] sm:$0xff] }
0x102a   :  { %13969 = vst [vmem:[#allocation46_spill] sm:$0xff] %v12319_v59 }
0x102e   :  { %v12305_v51 = vpop.xlane.xlu1 %3933 }
0x1031   :  { %v12308_v53 = vpop.xlane.xlu0 %3936 }
0x1032   :  { %v5142_v18 = vpop.permute.xlu1 %5141 }
0x1033   :  { %v5515_v29 = vmul.f32 %v5142_v18, %v13964_v46  ;;  %v13971_v46 = vld [vmem:[#allocation34_spill] sm:$0xff] }
0x1034   :  { %v12324_v45 = vsub.f32 %v13971_v46, %v11807_v4 }
0x1035   :  { %v6523_v13 = vadd.f32 %v13965_v47, %v5515_v29  ;;  %v4225_v29 = vadd.f32 1e-05, %v4081_v48  ;;  %v3544_v47 = vmul.f32 %v12319_v59, %v12319_v59 }
0x1036   :  { %13972 = vst [vmem:[#allocation89_spill] sm:$0xff] %v12324_v45 }
0x1037   :  { %6667 = vst.msk [vmem:[%s13196_s4 + $0x2b0] sm:$0xff] %vm1547_vm0, %v6523_v13  ;;  %v3545_v13 = vmul.f32 %v12324_v45, %v12324_v45  ;;  %7205 = vrsqrt.f32 %v4225_v29  ;;  %v13979_v45 = vld [vmem:[#allocation84_spill] sm:$0xff] }
0x1039   :  { %v5147_v50 = vpop.permute.xlu0 %5146  ;;  %v3953_v4 = vsel %vm1547_vm0, %v3545_v13, 0.0  ;;  %v13974_v13 = vld [vmem:[#allocation19_spill] sm:$0xff] }
0x103a   :  { %v5516_v21 = vmul.f32 %v5147_v50, %v13966_v34  ;;  %v4082_v50 = vmul.f32 0.020408163, %v13973_v3 }
0x103c   :  { %v6524_v18 = vadd.f32 %v13970_v40, %v5516_v21  ;;  %v3950_v40 = vsel %vm1547_vm0, %v3544_v47, 0.0  ;;  %v4226_v34 = vadd.f32 1e-05, %v4082_v50 }
0x103e   :  { %6668 = vst.msk [vmem:[%s13196_s4 + $0x2b8] sm:$0xff] %vm1547_vm0, %v6524_v18  ;;  %7207 = vrsqrt.f32 %v4226_v34  ;;  %v4514_v18 = vld [vmem:[%s13195_s2 + $0x2e8] sm:$0xff] }
0x1044   :  { %3951 = vadd.xlane.f32.xlu1 %v3950_v40  ;;  %v7206_v21 = vpop.eup %7205  ;;  %v13975_v40 = vld [vmem:[#allocation81_spill] sm:$0xff] }
0x1045   :  { %v4657_v48 = vmul.f32 %v7206_v21, %v4513_v25  ;;  %v13976_v21 = vld [vmem:[#allocation174_spill] sm:$0xff] }
0x1047   :  { %3954 = vadd.xlane.f32.xlu0 %v3953_v4 }
0x104b   :  { %v7208_v15 = vpop.eup %7207 }
0x104c   :  { %v4658_v46 = vmul.f32 %v7208_v15, %v4514_v18  ;;  %v13978_v18 = vld [vmem:[#allocation155_spill] sm:$0xff] }
0x1055   :  { %5171 = vperm.xlu1 %7019, %v4657_v48   ;;  %v13977_v48 = vld [vmem:[#allocation133_spill] sm:$0xff] }
0x1056   :  { %v4083_v15 = vmul.f32 0.020408163, %v13977_v48  ;;  %v4515_v48 = vld [vmem:[%s13195_s2 + $0x2f0] sm:$0xff] }
0x105d   :  { %5176 = vperm.xlu0 %7020, %v4658_v46   ;;  %v12357_v46 = vsub.f32 %v13978_v18, %v11817_v49  ;;  %v13981_v49 = vld [vmem:[#allocation33_spill] sm:$0xff] }
0x1063   :  { %v12343_v29 = vpop.xlane.xlu1 %3939 }
0x1066   :  { %v12346_v50 = vpop.xlane.xlu0 %3942 }
0x1067   :  { %v5152_v47 = vpop.permute.xlu1 %5151 }
0x1068   :  { %v5517_v3 = vmul.f32 %v5152_v47, %v13974_v13  ;;  %v13980_v13 = vld [vmem:[#allocation176_spill] sm:$0xff] }
0x1069   :  { %v12362_v59 = vsub.f32 %v13980_v13, %v11855_v12 }
0x106a   :  { %v6525_v4 = vadd.f32 %v13975_v40, %v5517_v3  ;;  %v4227_v3 = vadd.f32 1e-05, %v4083_v15  ;;  %v3546_v40 = vmul.f32 %v12357_v46, %v12357_v46 }
0x106c   :  { %6669 = vst.msk [vmem:[%s13196_s4 + $0x2c0] sm:$0xff] %vm1547_vm0, %v6525_v4  ;;  %v3547_v4 = vmul.f32 %v12362_v59, %v12362_v59  ;;  %7209 = vrsqrt.f32 %v4227_v3 }
0x106e   :  { %v5157_v34 = vpop.permute.xlu0 %5156  ;;  %v3959_v12 = vsel %vm1547_vm0, %v3547_v4, 0.0  ;;  %v13982_v4 = vld [vmem:[#allocation135_spill] sm:$0xff] }
0x106f   :  { %v5518_v25 = vmul.f32 %v5157_v34, %v13976_v21  ;;  %v4084_v34 = vmul.f32 0.020408163, %v13981_v49 }
0x1071   :  { %v6526_v47 = vadd.f32 %v13979_v45, %v5518_v25  ;;  %v3956_v45 = vsel %vm1547_vm0, %v3546_v40, 0.0  ;;  %v4228_v21 = vadd.f32 1e-05, %v4084_v34  ;;  %v13983_v34 = vld [vmem:[#allocation83_spill] sm:$0xff] }
0x1073   :  { %6670 = vst.msk [vmem:[%s13196_s4 + $0x2c8] sm:$0xff] %vm1547_vm0, %v6526_v47  ;;  %7211 = vrsqrt.f32 %v4228_v21  ;;  %v4516_v47 = vld [vmem:[%s13195_s2 + $0x2f8] sm:$0xff] }
0x1079   :  { %3957 = vadd.xlane.f32.xlu1 %v3956_v45  ;;  %v7210_v25 = vpop.eup %7209 }
0x107a   :  { %v4659_v15 = vmul.f32 %v7210_v25, %v4515_v48  ;;  %v13985_v25 = vld [vmem:[#allocation8_spill] sm:$0xff] }
0x107b   :  { %v12392_v48 = vsub.f32 %v13985_v25, %v11865_v55 }
0x107c   :  { %3960 = vadd.xlane.f32.xlu0 %v3959_v12  ;;  %v13984_v12 = vld [vmem:[#allocation36_spill] sm:$0xff] }
0x107d   :  { %v4085_v21 = vmul.f32 0.020408163, %v13984_v12  ;;  %v4517_v12 = vld [vmem:[%s13195_s2 + $0x300] sm:$0xff] }
0x1080   :  { %v7212_v18 = vpop.eup %7211 }
0x1081   :  { %v4660_v13 = vmul.f32 %v7212_v18, %v4516_v47  ;;  %v4229_v47 = vadd.f32 1e-05, %v4085_v21 }
0x1083   :  { %7213 = vrsqrt.f32 %v4229_v47 }
0x108a   :  { %5181 = vperm.xlu1 %7019, %v4659_v15   ;;  %v13986_v15 = vld [vmem:[#allocation40_spill] sm:$0xff] }
0x108b   :  { %v12396_v18 = vsub.f32 %v13986_v15, %v11903_v19  ;;  %v4518_v15 = vld [vmem:[%s13195_s2 + $0x308] sm:$0xff] }
0x1090   :  { %v7214_v19 = vpop.eup %7213 }
0x1091   :  { %v4661_v21 = vmul.f32 %v7214_v19, %v4517_v12  ;;  %v13990_v12 = vld [vmem:[#allocation86_spill] sm:$0xff] }
0x1092   :  { %5186 = vperm.xlu0 %7020, %v4660_v13   ;;  %v3548_v13 = vmul.f32 %v12392_v48, %v12392_v48 }
0x1098   :  { %v12381_v3 = vpop.xlane.xlu1 %3945 }
0x109c   :  { %v5162_v40 = vpop.permute.xlu1 %5161 }
0x109d   :  { %v5519_v49 = vmul.f32 %v5162_v40, %v13982_v4  ;;  %v3549_v40 = vmul.f32 %v12396_v18, %v12396_v18  ;;  %v13987_v4 = vld [vmem:[#allocation38_spill] sm:$0xff] }
0x109f   :  { %v6527_v45 = vadd.f32 %v13983_v34, %v5519_v49  ;;  %v4086_v49 = vmul.f32 0.020408163, %v13987_v4  ;;  %v3962_v34 = vsel %vm1547_vm0, %v3548_v13, 0.0  ;;  %v3965_v55 = vsel %vm1547_vm0, %v3549_v40, 0.0  ;;  %v13988_v13 = vld [vmem:[#allocation178_spill] sm:$0xff] }
0x10a0   :  { %v4087_v4 = vmul.f32 0.020408163, %v13988_v13  ;;  %v12414_v40 = vsub.f32 %v11762_v30, %v11913_v43 }
0x10a1   :  { %6671 = vst.msk [vmem:[%s13196_s4 + $0x2d0] sm:$0xff] %vm1547_vm0, %v6527_v45  ;;  %v4230_v45 = vadd.f32 1e-05, %v4086_v49  ;;  %v13989_v49 = vld [vmem:[#allocation99_spill] sm:$0xff] }
0x10a3   :  { %7215 = vrsqrt.f32 %v4230_v45  ;;  %v3550_v45 = vmul.f32 %v12414_v40, %v12414_v40 }
0x10ae   :  { %3963 = vadd.xlane.f32.xlu1 %v3962_v34  ;;  %v12418_v34 = vsub.f32 %v13989_v49, %v11948_v16 }
0x10b0   :  { %v7216_v25 = vpop.eup %7215  ;;  %v3551_v19 = vmul.f32 %v12418_v34, %v12418_v34 }
0x10b1   :  { %3966 = vadd.xlane.f32.xlu0 %v3965_v55  ;;  %v4662_v47 = vmul.f32 %v7216_v25, %v4518_v15  ;;  %v4231_v55 = vadd.f32 1e-05, %v4087_v4  ;;  %v3968_v25 = vsel %vm1547_vm0, %v3550_v45, 0.0  ;;  %v4519_v15 = vld [vmem:[%s13195_s2 + $0x310] sm:$0xff]  ;;  %v4520_v4 = vld [vmem:[%s13195_s2 + $0x318] sm:$0xff] }
0x10b2   :  { %v3971_v30 = vsel %vm1547_vm0, %v3551_v19, 0.0  ;;  %v12436_v19 = vsub.f32 %v11814_v14, %v11955_v36 }
0x10b3   :  { %7217 = vrsqrt.f32 %v4231_v55  ;;  %v13991_v55 = vld [vmem:[#allocation107_spill] sm:$0xff] }
0x10b4   :  { %v4089_v45 = vmul.f32 0.020408163, %v13991_v55  ;;  %v12458_v55 = vsub.f32 %v11862_v60, %v11997_v22 }
0x10bf   :  { %5191 = vperm.xlu1 %7019, %v4661_v21   ;;  %v4088_v21 = vmul.f32 0.020408163, %v13990_v12  ;;  %v12440_v12 = vsub.f32 %v11853_v2, %v11993_v56  ;;  %v4521_v56 = vld [vmem:[%s13195_s2 + $0x320] sm:$0xff] }
0x10c0   :  { %v7218_v16 = vpop.eup %7217 }
0x10c1   :  { %v4232_v43 = vadd.f32 1e-05, %v4088_v21  ;;  %v4233_v21 = vadd.f32 1e-05, %v4089_v45  ;;  %v12462_v45 = vsub.f32 %v11901_v42, %v12035_v38  ;;  %v4094_v42 = vmul.f32 0.020408163, %v11908_v61 }
0x10c2   :  { %v4098_v61 = vmul.f32 0.020408163, %v11995_v37  ;;  %v5666_v37 = vld [vmem:[%s13193_s3 + $0x2e8] sm:$0xff] }
0x10c3   :  { %7219 = vrsqrt.f32 %v4232_v43  ;;  %v4090_v43 = vmul.f32 0.020408163, %v11812_v1  ;;  %v4522_v1 = vld [vmem:[%s13195_s2 + $0x328] sm:$0xff]  ;;  %v4238_v38 = vadd.f32 1e-05, %v4094_v42 }
0x10c4   :  { %7221 = vrsqrt.f32 %v4233_v21 }
0x10c5   :  { %v4234_v36 = vadd.f32 1e-05, %v4090_v43  ;;  %v4092_v43 = vmul.f32 0.020408163, %v11860_v27 }
0x10c7   :  { %5196 = vperm.xlu0 %7020, %v4662_v47   ;;  %v4663_v47 = vmul.f32 %v7218_v16, %v4519_v15  ;;  %7223 = vrsqrt.f32 %v4234_v36  ;;  %v4236_v22 = vadd.f32 1e-05, %v4092_v43  ;;  %v4523_v36 = vld [vmem:[%s13195_s2 + $0x330] sm:$0xff] }
0x10d0   :  { %v7220_v13 = vpop.eup %7219 }
0x10d1   :  { %v4664_v49 = vmul.f32 %v7220_v13, %v4520_v4  ;;  %v7222_v2 = vpop.eup %7221  ;;  %v13992_v4 = vld [vmem:[#allocation182_spill] sm:$0xff] }
0x10d2   :  { %v4665_v15 = vmul.f32 %v7222_v2, %v4521_v56  ;;  %v4096_v2 = vmul.f32 0.020408163, %v11953_v10  ;;  %v4526_v10 = vld [vmem:[%s13195_s2 + $0x348] sm:$0xff] }
0x10d4   :  { %v4240_v56 = vadd.f32 1e-05, %v4096_v2  ;;  %v12500_v2 = vsub.f32 %v11910_v23, %v12039_v41 }
0x10e3   :  { %3969 = vadd.xlane.f32.xlu1 %v3968_v25  ;;  %v3552_v25 = vmul.f32 %v12436_v19, %v12436_v19 }
0x10e5   :  { %v3974_v16 = vsel %vm1547_vm0, %v3552_v25, 0.0  ;;  %v3554_v25 = vmul.f32 %v12458_v55, %v12458_v55 }
0x10e6   :  { %3972 = vadd.xlane.f32.xlu0 %v3971_v30  ;;  %v3553_v30 = vmul.f32 %v12440_v12, %v12440_v12 }
0x10e8   :  { %v3977_v14 = vsel %vm1547_vm0, %v3553_v30, 0.0  ;;  %v3555_v30 = vmul.f32 %v12462_v45, %v12462_v45 }
0x10ea   :  { %v3983_v60 = vsel %vm1547_vm0, %v3555_v30, 0.0 }
0x10f4   :  { %5201 = vperm.xlu1 %7019, %v4663_v47   ;;  %v7224_v47 = vpop.eup %7223 }
0x10f5   :  { %v4666_v13 = vmul.f32 %v7224_v47, %v4522_v1  ;;  %v4524_v47 = vld [vmem:[%s13195_s2 + $0x338] sm:$0xff] }
0x10fc   :  { %5206 = vperm.xlu0 %7020, %v4664_v49   ;;  %v4091_v49 = vmul.f32 0.020408163, %v13992_v4  ;;  %v4242_v4 = vadd.f32 1e-05, %v4098_v61  ;;  %v5670_v61 = vld [vmem:[%s13193_s3 + $0x308] sm:$0xff] }
0x10fe   :  { %v4235_v21 = vadd.f32 1e-05, %v4091_v49 }
0x1100   :  { %7225 = vrsqrt.f32 %v4235_v21  ;;  %v4100_v21 = vmul.f32 0.020408163, %v12037_v52  ;;  %v5668_v52 = vld [vmem:[%s13193_s3 + $0x2f8] sm:$0xff] }
0x1101   :  { %7227 = vrsqrt.f32 %v4236_v22 }
0x1102   :  { %7229 = vrsqrt.f32 %v4238_v38  ;;  %v4244_v30 = vadd.f32 1e-05, %v4100_v21  ;;  %v5672_v21 = vld [vmem:[%s13193_s3 + $0x318] sm:$0xff] }
0x1103   :  { %7231 = vrsqrt.f32 %v4240_v56 }
0x1104   :  { %7233 = vrsqrt.f32 %v4242_v4  ;;  %v4106_v4 = vmul.f32 0.020408163, %v12153_v58  ;;  %v4108_v58 = vmul.f32 0.020408163, %v12191_v20  ;;  %v4536_v20 = vld [vmem:[%s13195_s2 + $0x398] sm:$0xff] }
0x1105   :  { %7235 = vrsqrt.f32 %v4244_v30  ;;  %v4534_v30 = vld [vmem:[%s13195_s2 + $0x388] sm:$0xff] }
0x1118   :  { %3975 = vadd.xlane.f32.xlu1 %v3974_v16  ;;  %v3980_v16 = vsel %vm1547_vm0, %v3554_v25, 0.0 }
0x111b   :  { %3978 = vadd.xlane.f32.xlu0 %v3977_v14  ;;  %v7226_v14 = vpop.eup %7225 }
0x111c   :  { %v4667_v27 = vmul.f32 %v7226_v14, %v4523_v36  ;;  %v13993_v14 = vld [vmem:[#allocation42_spill] sm:$0xff] }
0x111d   :  { %v4093_v36 = vmul.f32 0.020408163, %v13993_v14 }
0x1129   :  { %5211 = vperm.xlu1 %7019, %v4665_v15   ;;  %v7228_v15 = vpop.eup %7227 }
0x112a   :  { %v4668_v1 = vmul.f32 %v7228_v15, %v4524_v47  ;;  %v7230_v49 = vpop.eup %7229  ;;  %v4237_v15 = vadd.f32 1e-05, %v4093_v36  ;;  %v3556_v47 = vmul.f32 %v12500_v2, %v12500_v2  ;;  %v4110_v36 = vmul.f32 0.020408163, %v12229_v28 }
0x112b   :  { %v4670_v25 = vmul.f32 %v7230_v49, %v4526_v10  ;;  %v7232_v43 = vpop.eup %7231  ;;  %v4101_v28 = vmul.f32 0.020408163, %v12042_v57  ;;  %v4529_v57 = vld [vmem:[%s13195_s2 + $0x360] sm:$0xff] }
0x112c   :  { %v7234_v38 = vpop.eup %7233 }
0x112d   :  { %v7236_v41 = vpop.eup %7235 }
0x1131   :  { %5216 = vperm.xlu0 %7020, %v4666_v13   ;;  %v5664_v13 = vld [vmem:[%s13193_s3 + $0x2d8] sm:$0xff] }
0x114d   :  { %3981 = vadd.xlane.f32.xlu1 %v3980_v16  ;;  %v4528_v16 = vld [vmem:[%s13195_s2 + $0x358] sm:$0xff] }
0x114e   :  { %v4672_v22 = vmul.f32 %v7232_v43, %v4528_v16 }
0x1150   :  { %3984 = vadd.xlane.f32.xlu0 %v3983_v60  ;;  %v4102_v60 = vmul.f32 0.020408163, %v12077_v17  ;;  %v4104_v17 = vmul.f32 0.020408163, %v12115_v24  ;;  %v4532_v24 = vld [vmem:[%s13195_s2 + $0x378] sm:$0xff] }
0x1151   :  { %v4676_v49 = vmul.f32 %v7236_v41, %v4532_v24 }
0x1152   :  { %v4246_v42 = vadd.f32 1e-05, %v4102_v60  ;;  %v4248_v23 = vadd.f32 1e-05, %v4104_v17  ;;  %v5665_v17 = vld [vmem:[%s13193_s3 + $0x2e0] sm:$0xff] }
0x1154   :  { %7237 = vrsqrt.f32 %v4246_v42 }
0x1155   :  { %7239 = vrsqrt.f32 %v4237_v15 }
0x1156   :  { %7241 = vrsqrt.f32 %v4248_v23 }
0x115e   :  { %5221 = vperm.xlu1 %7019, %v4667_v27   ;;  %v4530_v27 = vld [vmem:[%s13195_s2 + $0x368] sm:$0xff] }
0x115f   :  { %v4674_v56 = vmul.f32 %v7234_v38, %v4530_v27  ;;  %v4099_v38 = vmul.f32 0.020408163, %v12000_v54  ;;  %v4527_v54 = vld [vmem:[%s13195_s2 + $0x350] sm:$0xff] }
0x1166   :  { %5226 = vperm.xlu0 %7020, %v4668_v1   ;;  %v4095_v1 = vmul.f32 0.020408163, %v11916_v5  ;;  %v7238_v5 = vpop.eup %7237 }
0x1167   :  { %v4678_v43 = vmul.f32 %v7238_v5, %v4534_v30  ;;  %v7240_v60 = vpop.eup %7239  ;;  %v4540_v30 = vld [vmem:[%s13195_s2 + $0x3b8] sm:$0xff] }
0x1168   :  { %v4239_v10 = vadd.f32 1e-05, %v4095_v1  ;;  %v7242_v42 = vpop.eup %7241  ;;  %v4538_v1 = vld [vmem:[%s13195_s2 + $0x3a8] sm:$0xff] }
0x1169   :  { %v4680_v27 = vmul.f32 %v7242_v42, %v4536_v20  ;;  %v4116_v20 = vmul.f32 0.020408163, %v12343_v29  ;;  %v5682_v29 = vld [vmem:[%s13193_s3 + $0x368] sm:$0xff] }
0x116a   :  { %6174 = vperm.xlu0 %7020, %v5664_v13   ;;  %v3986_v13 = vsel %vm1547_vm0, %v3556_v47, 0.0  ;;  %7243 = vrsqrt.f32 %v4239_v10  ;;  %v5676_v47 = vld [vmem:[%s13193_s3 + $0x338] sm:$0xff] }
0x116e   :  { %5236 = vperm.xlu0 %7020, %v4670_v25   ;;  %v4250_v25 = vadd.f32 1e-05, %v4106_v4  ;;  %v5667_v4 = vld [vmem:[%s13193_s3 + $0x2f0] sm:$0xff] }
0x1170   :  { %7245 = vrsqrt.f32 %v4250_v25 }
0x1172   :  { %6184 = vperm.xlu0 %7020, %v5666_v37   ;;  %v4097_v37 = vmul.f32 0.020408163, %v11958_v32  ;;  %v5674_v32 = vld [vmem:[%s13193_s3 + $0x328] sm:$0xff] }
0x1174   :  { %v4241_v16 = vadd.f32 1e-05, %v4097_v37 }
0x1176   :  { %5246 = vperm.xlu0 %7020, %v4672_v22   ;;  %v4525_v22 = vld [vmem:[%s13195_s2 + $0x340] sm:$0xff]  ;;  %7247 = vrsqrt.f32 %v4241_v16 }
0x1177   :  { %v4669_v14 = vmul.f32 %v7240_v60, %v4525_v22  ;;  %v7244_v15 = vpop.eup %7243  ;;  %v5669_v16 = vld [vmem:[%s13193_s3 + $0x300] sm:$0xff] }
0x1178   :  { %v4671_v41 = vmul.f32 %v7244_v15, %v4527_v54  ;;  %v3952_v54 = vpop.xlane.xlu1 %3951 }
0x117a   :  { %6194 = vperm.xlu0 %7020, %v5668_v52   ;;  %v4252_v52 = vadd.f32 1e-05, %v4108_v58  ;;  %v4114_v58 = vmul.f32 0.020408163, %v12305_v51  ;;  %v4105_v51 = vmul.f32 0.020408163, %v12118_v0 }
0x117b   :  { %v4533_v0 = vld [vmem:[%s13195_s2 + $0x380] sm:$0xff] }
0x117c   :  { %7249 = vrsqrt.f32 %v4252_v52  ;;  %v4258_v52 = vadd.f32 1e-05, %v4114_v58 }
0x117d   :  { %v7246_v23 = vpop.eup %7245 }
0x117e   :  { %5256 = vperm.xlu0 %7020, %v4674_v56   ;;  %v4243_v56 = vadd.f32 1e-05, %v4099_v38  ;;  %v4682_v24 = vmul.f32 %v7246_v23, %v4538_v1  ;;  %v4107_v23 = vmul.f32 0.020408163, %v12156_v31  ;;  %v4544_v1 = vld [vmem:[%s13195_s2 + $0x3d8] sm:$0xff]  ;;  %v12601_v31 = vpop.permute.xlu1 %5171 }
0x1180   :  { %7251 = vrsqrt.f32 %v4243_v56  ;;  %v12581_v56 = vpop.xlane.xlu0 %3948 }
0x1182   :  { %6204 = vperm.xlu0 %7020, %v5670_v61   ;;  %3987 = vadd.xlane.f32.xlu1 %v3986_v13  ;;  %v4254_v61 = vadd.f32 1e-05, %v4110_v36  ;;  %v4112_v13 = vmul.f32 0.020408163, %v12267_v62  ;;  %v4103_v62 = vmul.f32 0.020408163, %v12080_v8 }
0x1183   :  { %v7248_v10 = vpop.eup %7247  ;;  %v4531_v8 = vld [vmem:[%s13195_s2 + $0x370] sm:$0xff] }
0x1184   :  { %7253 = vrsqrt.f32 %v4254_v61  ;;  %v4256_v25 = vadd.f32 1e-05, %v4112_v13  ;;  %v4673_v37 = vmul.f32 %v7248_v10, %v4529_v57  ;;  %v4247_v60 = vadd.f32 1e-05, %v4103_v62 }
0x1185   :  { %v4118_v13 = vmul.f32 0.020408163, %v12381_v3  ;;  %v5684_v3 = vld [vmem:[%s13193_s3 + $0x378] sm:$0xff]  ;;  %v4109_v62 = vmul.f32 0.020408163, %v12194_v26 }
0x1186   :  { %5266 = vperm.xlu0 %7020, %v4676_v49   ;;  %v4245_v49 = vadd.f32 1e-05, %v4101_v28  ;;  %v12590_v28 = vpop.permute.xlu0 %5166 }
0x1188   :  { %7255 = vrsqrt.f32 %v4245_v49  ;;  %v4251_v49 = vadd.f32 1e-05, %v4107_v23  ;;  %v4539_v23 = vld [vmem:[%s13195_s2 + $0x3b0] sm:$0xff] }
0x1189   :  { %v7250_v5 = vpop.eup %7249  ;;  %7257 = vrsqrt.f32 %v4256_v25  ;;  %v4262_v25 = vadd.f32 1e-05, %v4118_v13 }
0x118a   :  { %6214 = vperm.xlu0 %7020, %v5672_v21   ;;  %v5678_v21 = vld [vmem:[%s13193_s3 + $0x348] sm:$0xff]  ;;  %7259 = vrsqrt.f32 %v4247_v60  ;;  %v12599_v10 = vpop.xlane.xlu0 %3954 }
0x118b   :  { %7261 = vrsqrt.f32 %v4258_v52  ;;  %v4537_v52 = vld [vmem:[%s13195_s2 + $0x3a0] sm:$0xff] }
0x118d   :  { %v7252_v22 = vpop.eup %7251 }
0x118e   :  { %5276 = vperm.xlu0 %7020, %v4678_v43   ;;  %v4684_v43 = vmul.f32 %v7250_v5, %v4540_v30  ;;  %v4675_v38 = vmul.f32 %v7252_v22, %v4531_v8  ;;  %v3958_v30 = vpop.xlane.xlu1 %3957  ;;  %v5675_v22 = vld [vmem:[%s13193_s3 + $0x330] sm:$0xff]  ;;  %v4253_v8 = vadd.f32 1e-05, %v4109_v62 }
0x1191   :  { %v7254_v42 = vpop.eup %7253 }
0x1192   :  { %6224 = vperm.xlu0 %7020, %v5674_v32   ;;  %v5680_v32 = vld [vmem:[%s13193_s3 + $0x358] sm:$0xff] }
0x1193   :  { %5231 = vperm.xlu1 %7019, %v4669_v14   ;;  %v4542_v14 = vld [vmem:[%s13195_s2 + $0x3c8] sm:$0xff] }
0x1194   :  { %v4686_v36 = vmul.f32 %v7254_v42, %v4542_v14  ;;  %v12623_v42 = vpop.permute.xlu1 %5181 }
0x1195   :  { %v7256_v15 = vpop.eup %7255 }
0x1196   :  { %5286 = vperm.xlu0 %7020, %v4680_v27   ;;  %v5671_v27 = vld [vmem:[%s13193_s3 + $0x310] sm:$0xff]  ;;  %v7258_v61 = vpop.eup %7257 }
0x1197   :  { %6179 = vperm.xlu1 %7019, %v5665_v17   ;;  %v4249_v17 = vadd.f32 1e-05, %v4105_v51  ;;  %v7260_v57 = vpop.eup %7259  ;;  %v5686_v51 = vld [vmem:[%s13193_s3 + $0x388] sm:$0xff] }
0x1198   :  { %v7262_v5 = vpop.eup %7261 }
0x1199   :  { %7263 = vrsqrt.f32 %v4249_v17  ;;  %v4548_v17 = vld [vmem:[%s13195_s2 + $0x3f8] sm:$0xff] }
0x119a   :  { %6234 = vperm.xlu0 %7020, %v5676_v47   ;;  %v4260_v47 = vadd.f32 1e-05, %v4116_v20  ;;  %v4111_v20 = vmul.f32 0.020408163, %v12232_v33 }
0x119b   :  { %5241 = vperm.xlu1 %7019, %v4671_v41   ;;  %v4677_v41 = vmul.f32 %v7256_v15, %v4533_v0  ;;  %v3964_v15 = vpop.xlane.xlu1 %3963  ;;  %v4122_v0 = vmul.f32 0.020408163, %v3958_v30 }
0x119c   :  { %7265 = vrsqrt.f32 %v4260_v47  ;;  %v4255_v47 = vadd.f32 1e-05, %v4111_v20 }
0x119d   :  { %7267 = vrsqrt.f32 %v4251_v49 }
0x119e   :  { %5296 = vperm.xlu0 %7020, %v4682_v24   ;;  %v4688_v24 = vmul.f32 %v7258_v61, %v4544_v1  ;;  %7269 = vrsqrt.f32 %v4262_v25  ;;  %v4266_v1 = vadd.f32 1e-05, %v4122_v0  ;;  %v4543_v0 = vld [vmem:[%s13195_s2 + $0x3d0] sm:$0xff] }
0x119f   :  { %6189 = vperm.xlu1 %7019, %v5667_v4   ;;  %v5673_v4 = vld [vmem:[%s13193_s3 + $0x320] sm:$0xff]  ;;  %7271 = vrsqrt.f32 %v4253_v8  ;;  %v4115_v8 = vmul.f32 0.020408163, %v12308_v53 }
0x11a2   :  { %6244 = vperm.xlu0 %7020, %v5678_v21   ;;  %v4535_v21 = vld [vmem:[%s13195_s2 + $0x390] sm:$0xff] }
0x11a3   :  { %5251 = vperm.xlu1 %7019, %v4673_v37   ;;  %v12610_v37 = vpop.permute.xlu0 %5176  ;;  %v4679_v58 = vmul.f32 %v7260_v57, %v4535_v21  ;;  %v4550_v21 = vld [vmem:[%s13195_s2 + $0x408] sm:$0xff] }
0x11a6   :  { %5306 = vperm.xlu0 %7020, %v4684_v43   ;;  %v4546_v43 = vld [vmem:[%s13195_s2 + $0x3e8] sm:$0xff]  ;;  %v7264_v26 = vpop.eup %7263 }
0x11a7   :  { %6199 = vperm.xlu1 %7019, %v5669_v16   ;;  %v4120_v16 = vmul.f32 0.020408163, %v3952_v54  ;;  %v4690_v60 = vmul.f32 %v7262_v5, %v4546_v43  ;;  %v5679_v5 = vld [vmem:[%s13193_s3 + $0x350] sm:$0xff]  ;;  %v4541_v43 = vld [vmem:[%s13195_s2 + $0x3c0] sm:$0xff] }
0x11a9   :  { %v7266_v14 = vpop.eup %7265 }
0x11aa   :  { %6254 = vperm.xlu0 %7020, %v5680_v32   ;;  %v12618_v32 = vpop.xlane.xlu0 %3960  ;;  %v4692_v54 = vmul.f32 %v7266_v14, %v4548_v17  ;;  %v7268_v33 = vpop.eup %7267  ;;  %v4259_v17 = vadd.f32 1e-05, %v4115_v8 }
0x11ab   :  { %5261 = vperm.xlu1 %7019, %v4675_v38   ;;  %v4264_v38 = vadd.f32 1e-05, %v4120_v16  ;;  %v7270_v13 = vpop.eup %7269  ;;  %v4683_v57 = vmul.f32 %v7268_v33, %v4539_v23  ;;  %v5690_v16 = vld [vmem:[%s13193_s3 + $0x3a8] sm:$0xff]  ;;  %v4117_v23 = vmul.f32 0.020408163, %v12346_v50 }
0x11ac   :  { %v4694_v25 = vmul.f32 %v7270_v13, %v4550_v21  ;;  %v4554_v13 = vld [vmem:[%s13195_s2 + $0x428] sm:$0xff]  ;;  %v5683_v21 = vld [vmem:[%s13193_s3 + $0x370] sm:$0xff] }
0x11ad   :  { %7273 = vrsqrt.f32 %v4264_v38 }
0x11ae   :  { %5316 = vperm.xlu0 %7020, %v4686_v36   ;;  %v12629_v36 = vpop.permute.xlu0 %5186  ;;  %7275 = vrsqrt.f32 %v4255_v47 }
0x11af   :  { %6209 = vperm.xlu1 %7019, %v5671_v27   ;;  %v4681_v27 = vmul.f32 %v7264_v26, %v4537_v52  ;;  %7277 = vrsqrt.f32 %v4266_v1 }
0x11b2   :  { %6264 = vperm.xlu0 %7020, %v5682_v29   ;;  %v5677_v29 = vld [vmem:[%s13193_s3 + $0x340] sm:$0xff]  ;;  %v12637_v61 = vpop.xlane.xlu0 %3966 }
0x11b3   :  { %5271 = vperm.xlu1 %7019, %v4677_v41   ;;  %v5688_v41 = vld [vmem:[%s13193_s3 + $0x398] sm:$0xff] }
0x11b6   :  { %5326 = vperm.xlu0 %7020, %v4688_v24   ;;  %v4113_v24 = vmul.f32 0.020408163, %v12270_v9  ;;  %v12648_v49 = vpop.permute.xlu0 %5196 }
0x11b7   :  { %6219 = vperm.xlu1 %7019, %v5673_v4   ;;  %v12646_v4 = vpop.permute.xlu1 %5191 }
0x11b8   :  { %v4257_v62 = vadd.f32 1e-05, %v4113_v24 }
0x11ba   :  { %6274 = vperm.xlu0 %7020, %v5684_v3   ;;  %v4124_v3 = vmul.f32 0.020408163, %v3964_v15  ;;  %v12656_v30 = vpop.xlane.xlu0 %3972  ;;  %7279 = vrsqrt.f32 %v4257_v62  ;;  %v4545_v62 = vld [vmem:[%s13195_s2 + $0x3e0] sm:$0xff] }
0x11bb   :  { %5281 = vperm.xlu1 %7019, %v4679_v58   ;;  %v3970_v9 = vpop.xlane.xlu1 %3969  ;;  %v7272_v58 = vpop.eup %7271 }
0x11bc   :  { %v4685_v52 = vmul.f32 %v7272_v58, %v4541_v43  ;;  %v4126_v14 = vmul.f32 0.020408163, %v3970_v9  ;;  %v5694_v9 = vld [vmem:[%s13193_s3 + $0x3c8] sm:$0xff] }
0x11be   :  { %5336 = vperm.xlu0 %7020, %v4690_v60   ;;  %v4268_v60 = vadd.f32 1e-05, %v4124_v3  ;;  %v12665_v26 = vpop.permute.xlu0 %5206  ;;  %v4270_v47 = vadd.f32 1e-05, %v4126_v14  ;;  %v4261_v3 = vadd.f32 1e-05, %v4117_v23 }
0x11bf   :  { %6229 = vperm.xlu1 %7019, %v5675_v22   ;;  %v7274_v22 = vpop.eup %7273  ;;  %v12670_v38 = vpop.permute.xlu1 %5201  ;;  %v4121_v23 = vmul.f32 0.020408163, %v12599_v10 }
0x11c0   :  { %7281 = vrsqrt.f32 %v4268_v60  ;;  %v7276_v15 = vpop.eup %7275 }
0x11c1   :  { %v7278_v33 = vpop.eup %7277  ;;  %7283 = vrsqrt.f32 %v4259_v17  ;;  %v4687_v1 = vmul.f32 %v7276_v15, %v4543_v0 }
0x11c2   :  { %6284 = vperm.xlu0 %7020, %v5686_v51   ;;  %v4552_v51 = vld [vmem:[%s13195_s2 + $0x418] sm:$0xff]  ;;  %v12675_v53 = vpop.xlane.xlu0 %3978  ;;  %7285 = vrsqrt.f32 %v4270_v47 }
0x11c3   :  { %5291 = vperm.xlu1 %7019, %v4681_v27   ;;  %v4696_v20 = vmul.f32 %v7274_v22, %v4552_v51  ;;  %v5681_v27 = vld [vmem:[%s13193_s3 + $0x360] sm:$0xff]  ;;  %7287 = vrsqrt.f32 %v4261_v3  ;;  %v13994_v51 = vld [vmem:[#allocation116_spill] sm:$0xff] }
0x11c4   :  { %v5520_v14 = vmul.f32 %v12590_v28, %v13994_v51  ;;  %v5696_v28 = vld [vmem:[%s13193_s3 + $0x3d8] sm:$0xff] }
0x11c5   :  { %v4560_v51 = vld [vmem:[%s13195_s2 + $0x458] sm:$0xff] }
0x11c6   :  { %5346 = vperm.xlu0 %7020, %v4692_v54   ;;  %v3976_v54 = vpop.xlane.xlu1 %3975 }
0x11c7   :  { %6239 = vperm.xlu1 %7019, %v5677_v29   ;;  %v5692_v29 = vld [vmem:[%s13193_s3 + $0x3b8] sm:$0xff]  ;;  %v4128_v24 = vmul.f32 0.020408163, %v3976_v54 }
0x11c9   :  { %v4272_v58 = vadd.f32 1e-05, %v4128_v24  ;;  %v4558_v24 = vld [vmem:[%s13195_s2 + $0x448] sm:$0xff] }
0x11ca   :  { %6294 = vperm.xlu0 %7020, %v5688_v41   ;;  %v12684_v41 = vpop.permute.xlu0 %5216 }
0x11cb   :  { %5301 = vperm.xlu1 %7019, %v4683_v57   ;;  %v4698_v57 = vmul.f32 %v7278_v33, %v4554_v13  ;;  %7289 = vrsqrt.f32 %v4272_v58 }
0x11ce   :  { %5356 = vperm.xlu0 %7020, %v4694_v25   ;;  %v12692_v25 = vpop.permute.xlu1 %5211 }
0x11cf   :  { %6249 = vperm.xlu1 %7019, %v5679_v5   ;;  %v7280_v5 = vpop.eup %7279 }
0x11d0   :  { %v7282_v43 = vpop.eup %7281  ;;  %v4689_v8 = vmul.f32 %v7280_v5, %v4545_v62  ;;  %v5687_v5 = vld [vmem:[%s13193_s3 + $0x390] sm:$0xff]  ;;  %v4265_v62 = vadd.f32 1e-05, %v4121_v23  ;;  %v4562_v23 = vld [vmem:[%s13195_s2 + $0x468] sm:$0xff] }
0x11d1   :  { %v7284_v0 = vpop.eup %7283 }
0x11d2   :  { %6304 = vperm.xlu0 %7020, %v5690_v16   ;;  %v4119_v16 = vmul.f32 0.020408163, %v12581_v56  ;;  %v5685_v56 = vld [vmem:[%s13193_s3 + $0x380] sm:$0xff]  ;;  %v7286_v33 = vpop.eup %7285 }
0x11d3   :  { %5311 = vperm.xlu1 %7019, %v4685_v52   ;;  %v4556_v52 = vld [vmem:[%s13195_s2 + $0x438] sm:$0xff]  ;;  %v4702_v3 = vmul.f32 %v7286_v33, %v4558_v24 }
0x11d4   :  { %v4263_v17 = vadd.f32 1e-05, %v4119_v16 }
0x11d6   :  { %5366 = vperm.xlu0 %7020, %v4696_v20   ;;  %v3982_v60 = vpop.xlane.xlu1 %3981  ;;  %7291 = vrsqrt.f32 %v4263_v17 }
0x11d7   :  { %6259 = vperm.xlu1 %7019, %v5681_v27   ;;  %v4130_v20 = vmul.f32 0.020408163, %v3982_v60  ;;  %v4700_v27 = vmul.f32 %v7282_v43, %v4556_v52  ;;  %v4549_v43 = vld [vmem:[%s13195_s2 + $0x400] sm:$0xff]  ;;  %v4123_v60 = vmul.f32 0.020408163, %v12618_v32 }
0x11d9   :  { %v12694_v50 = vpop.xlane.xlu0 %3984  ;;  %v4274_v47 = vadd.f32 1e-05, %v4130_v20  ;;  %v4267_v17 = vadd.f32 1e-05, %v4123_v60  ;;  %v5693_v60 = vld [vmem:[%s13193_s3 + $0x3c0] sm:$0xff] }
0x11da   :  { %6314 = vperm.xlu0 %7020, %v5692_v29   ;;  %v4547_v29 = vld [vmem:[%s13195_s2 + $0x3f0] sm:$0xff] }
0x11db   :  { %5321 = vperm.xlu1 %7019, %v4687_v1   ;;  %v4691_v13 = vmul.f32 %v7284_v0, %v4547_v29  ;;  %7293 = vrsqrt.f32 %v4274_v47  ;;  %v5700_v29 = vld [vmem:[%s13193_s3 + $0x3f8] sm:$0xff] }
0x11dc   :  { %7295 = vrsqrt.f32 %v4265_v62 }
0x11dd   :  { %7297 = vrsqrt.f32 %v4267_v17 }
0x11de   :  { %5376 = vperm.xlu0 %7020, %v4698_v57   ;;  %v13995_v57 = vld [vmem:[#allocation117_spill] sm:$0xff] }
0x11df   :  { %6269 = vperm.xlu1 %7019, %v5683_v21   ;;  %v5522_v21 = vmul.f32 %v12610_v37, %v13995_v57  ;;  %v5698_v37 = vld [vmem:[%s13193_s3 + $0x3e8] sm:$0xff] }
0x11e1   :  { %v12703_v22 = vpop.permute.xlu0 %5226 }
0x11e2   :  { %6324 = vperm.xlu0 %7020, %v5694_v9   ;;  %v7288_v9 = vpop.eup %7287 }
0x11e3   :  { %5331 = vperm.xlu1 %7019, %v4689_v8   ;;  %v7290_v16 = vpop.eup %7289  ;;  %v4693_v52 = vmul.f32 %v7288_v9, %v4549_v43  ;;  %v5702_v9 = vld [vmem:[%s13193_s3 + $0x408] sm:$0xff] }
0x11e4   :  { %v7292_v32 = vpop.eup %7291 }
0x11e5   :  { %v6175_v15 = vpop.permute.xlu0 %6174 }
0x11e6   :  { %v6528_v54 = vadd.f32 %v6175_v15, %v5520_v14  ;;  %5386 = vperm.xlu0 %7020, %v4700_v27   ;;  %v13996_v14 = vld [vmem:[#allocation121_spill] sm:$0xff]  ;;  %v4704_v27 = vmul.f32 %v7290_v16, %v4560_v51 }
0x11e7   :  { %6279 = vperm.xlu1 %7019, %v5685_v56   ;;  %v5524_v20 = vmul.f32 %v12629_v36, %v13996_v14  ;;  %v5689_v56 = vld [vmem:[%s13193_s3 + $0x3a0] sm:$0xff] }
0x11e8   :  { %6672 = vst.msk [vmem:[%s13196_s4 + $0x2d8] sm:$0xff] %vm1547_vm0, %v6528_v54  ;;  %v4551_v54 = vld [vmem:[%s13195_s2 + $0x410] sm:$0xff]  ;;  %v7294_v36 = vpop.eup %7293 }
0x11e9   :  { %v12724_v1 = vpop.permute.xlu0 %5236  ;;  %v4695_v33 = vmul.f32 %v7292_v32, %v4551_v54  ;;  %v4706_v57 = vmul.f32 %v7294_v36, %v4562_v23  ;;  %v13999_v32 = vld [vmem:[#allocation156_spill] sm:$0xff] }
0x11ea   :  { %6334 = vperm.xlu0 %7020, %v5696_v28   ;;  %v4125_v28 = vmul.f32 0.020408163, %v12637_v61  ;;  %v7296_v61 = vpop.eup %7295 }
0x11eb   :  { %5341 = vperm.xlu1 %7019, %v4691_v13   ;;  %v13997_v13 = vld [vmem:[#allocation128_spill] sm:$0xff]  ;;  %v7298_v14 = vpop.eup %7297 }
0x11ec   :  { %v5526_v24 = vmul.f32 %v12648_v49, %v13997_v13  ;;  %v4127_v49 = vmul.f32 0.020408163, %v12656_v30  ;;  %v4555_v30 = vld [vmem:[%s13195_s2 + $0x430] sm:$0xff] }
0x11ed   :  { %v6185_v10 = vpop.permute.xlu0 %6184  ;;  %v4699_v17 = vmul.f32 %v7298_v14, %v4555_v30  ;;  %v4564_v30 = vld [vmem:[%s13195_s2 + $0x478] sm:$0xff] }
0x11ee   :  { %v6530_v58 = vadd.f32 %v6185_v10, %v5522_v21  ;;  %5396 = vperm.xlu0 %7020, %v4702_v3   ;;  %v5691_v21 = vld [vmem:[%s13193_s3 + $0x3b0] sm:$0xff]  ;;  %v4269_v3 = vadd.f32 1e-05, %v4125_v28  ;;  %v4553_v10 = vld [vmem:[%s13195_s2 + $0x420] sm:$0xff] }
0x11ef   :  { %6289 = vperm.xlu1 %7019, %v5687_v5   ;;  %v4697_v43 = vmul.f32 %v7296_v61, %v4553_v10 }
0x11f0   :  { %6674 = vst.msk [vmem:[%s13196_s4 + $0x2e8] sm:$0xff] %vm1547_vm0, %v6530_v58  ;;  %7299 = vrsqrt.f32 %v4269_v3  ;;  %v14000_v3 = vld [vmem:[#allocation24_spill] sm:$0xff] }
0x11f1   :  { %v12745_v8 = vpop.permute.xlu0 %5246 }
0x11f2   :  { %6344 = vperm.xlu0 %7020, %v5698_v37   ;;  %v13998_v37 = vld [vmem:[#allocation31_spill] sm:$0xff] }
0x11f3   :  { %5351 = vperm.xlu1 %7019, %v4693_v52   ;;  %v5528_v16 = vmul.f32 %v12665_v26, %v13998_v37  ;;  %v4271_v52 = vadd.f32 1e-05, %v4127_v49  ;;  %v4129_v26 = vmul.f32 0.020408163, %v12675_v53  ;;  %v4557_v53 = vld [vmem:[%s13195_s2 + $0x440] sm:$0xff] }
0x11f4   :  { %v5697_v49 = vld [vmem:[%s13193_s3 + $0x3e0] sm:$0xff] }
0x11f5   :  { %v6195_v15 = vpop.permute.xlu0 %6194  ;;  %7301 = vrsqrt.f32 %v4271_v52  ;;  %v4273_v36 = vadd.f32 1e-05, %v4129_v26  ;;  %v14003_v26 = vld [vmem:[#allocation158_spill] sm:$0xff] }
0x11f6   :  { %v6532_v0 = vadd.f32 %v6195_v15, %v5524_v20  ;;  %5406 = vperm.xlu0 %7020, %v4704_v27   ;;  %v12797_v27 = vpop.permute.xlu1 %5221 }
0x11f7   :  { %6299 = vperm.xlu1 %7019, %v5689_v56  }
0x11f8   :  { %6676 = vst.msk [vmem:[%s13196_s4 + $0x2f8] sm:$0xff] %vm1547_vm0, %v6532_v0  ;;  %v5530_v0 = vmul.f32 %v12684_v41, %v13999_v32  ;;  %v4131_v41 = vmul.f32 0.020408163, %v12694_v50  ;;  %v5699_v32 = vld [vmem:[%s13193_s3 + $0x3f0] sm:$0xff] }
0x11f9   :  { %v12766_v47 = vpop.permute.xlu0 %5256 }
0x11fa   :  { %6354 = vperm.xlu0 %7020, %v5700_v29   ;;  %v5695_v29 = vld [vmem:[%s13193_s3 + $0x3d0] sm:$0xff] }
0x11fb   :  { %5361 = vperm.xlu1 %7019, %v4695_v33  }
0x11fd   :  { %v6205_v5 = vpop.permute.xlu0 %6204  ;;  %v7300_v33 = vpop.eup %7299 }
0x11fe   :  { %v6534_v62 = vadd.f32 %v6205_v5, %v5526_v24  ;;  %5416 = vperm.xlu0 %7020, %v4706_v57   ;;  %v5521_v5 = vmul.f32 %v12601_v31, %v14000_v3  ;;  %v4559_v31 = vld [vmem:[%s13195_s2 + $0x450] sm:$0xff]  ;;  %v14005_v3 = vld [vmem:[#allocation39_spill] sm:$0xff] }
0x11ff   :  { %6309 = vperm.xlu1 %7019, %v5691_v21   ;;  %v4701_v21 = vmul.f32 %v7300_v33, %v4557_v53  ;;  %v14004_v53 = vld [vmem:[#allocation25_spill] sm:$0xff] }
0x1200   :  { %6678 = vst.msk [vmem:[%s13196_s4 + $0x308] sm:$0xff] %vm1547_vm0, %v6534_v62  ;;  %v14001_v62 = vld [vmem:[#allocation37_spill] sm:$0xff] }
0x1201   :  { %v12787_v58 = vpop.permute.xlu0 %5266  ;;  %v5532_v10 = vmul.f32 %v12703_v22, %v14001_v62  ;;  %v5701_v62 = vld [vmem:[%s13193_s3 + $0x400] sm:$0xff] }
0x1202   :  { %6364 = vperm.xlu0 %7020, %v5702_v9  }
0x1203   :  { %5371 = vperm.xlu1 %7019, %v4697_v43   ;;  %v4275_v43 = vadd.f32 1e-05, %v4131_v41  ;;  %v5525_v41 = vmul.f32 %v12646_v4, %v14004_v53 }
0x1205   :  { %v6215_v51 = vpop.permute.xlu0 %6214 }
0x1206   :  { %v6536_v20 = vadd.f32 %v6215_v51, %v5528_v16  ;;  %v7302_v16 = vpop.eup %7301  ;;  %v14002_v51 = vld [vmem:[#allocation23_spill] sm:$0xff] }
0x1207   :  { %6319 = vperm.xlu1 %7019, %v5693_v60   ;;  %v4703_v52 = vmul.f32 %v7302_v16, %v4559_v31  ;;  %v5523_v14 = vmul.f32 %v12623_v42, %v14002_v51  ;;  %v14006_v31 = vld [vmem:[#allocation30_spill] sm:$0xff] }
0x1208   :  { %6680 = vst.msk [vmem:[%s13196_s4 + $0x318] sm:$0xff] %vm1547_vm0, %v6536_v20 }
0x1209   :  { %v12804_v56 = vpop.permute.xlu0 %5276 }
0x120b   :  { %5381 = vperm.xlu1 %7019, %v4699_v17   ;;  %v3988_v15 = vpop.xlane.xlu1 %3987  ;;  %v5534_v17 = vmul.f32 %v12724_v1, %v14003_v26  ;;  %v5703_v26 = vld [vmem:[%s13193_s3 + $0x410] sm:$0xff] }
0x120c   :  { %v4132_v54 = vmul.f32 0.020408163, %v3988_v15 }
0x120d   :  { %v6225_v28 = vpop.permute.xlu0 %6224 }
0x120e   :  { %v4276_v23 = vadd.f32 1e-05, %v4132_v54  ;;  %v6538_v13 = vadd.f32 %v6225_v28, %v5530_v0  ;;  %v4561_v28 = vld [vmem:[%s13195_s2 + $0x460] sm:$0xff] }
0x120f   :  { %6329 = vperm.xlu1 %7019, %v5695_v29   ;;  %v12814_v24 = vpop.permute.xlu1 %5231 }
0x1210   :  { %7303 = vrsqrt.f32 %v4276_v23  ;;  %6682 = vst.msk [vmem:[%s13196_s4 + $0x328] sm:$0xff] %vm1547_vm0, %v6538_v13  ;;  %v5704_v13 = vld [vmem:[%s13193_s3 + $0x418] sm:$0xff] }
0x1211   :  { %7305 = vrsqrt.f32 %v4273_v36  ;;  %v12821_v57 = vpop.permute.xlu0 %5286 }
0x1212   :  { %7307 = vrsqrt.f32 %v4275_v43 }
0x1213   :  { %5391 = vperm.xlu1 %7019, %v4701_v21   ;;  %v6180_v61 = vpop.permute.xlu1 %6179 }
0x1214   :  { %v6529_v9 = vadd.f32 %v6180_v61, %v5521_v5  ;;  %v5536_v5 = vmul.f32 %v12745_v8, %v14005_v3  ;;  %v4563_v8 = vld [vmem:[%s13195_s2 + $0x470] sm:$0xff]  ;;  %v5716_v3 = vld [vmem:[%s13193_s3 + $0x478] sm:$0xff] }
0x1215   :  { %v6235_v37 = vpop.permute.xlu0 %6234 }
0x1216   :  { %6673 = vst.msk [vmem:[%s13196_s4 + $0x2e0] sm:$0xff] %vm1547_vm0, %v6529_v9  ;;  %v6540_v50 = vadd.f32 %v6235_v37, %v5532_v10  ;;  %v5706_v9 = vld [vmem:[%s13193_s3 + $0x428] sm:$0xff] }
0x1217   :  { %6339 = vperm.xlu1 %7019, %v5697_v49   ;;  %v12837_v22 = vpop.permute.xlu1 %5241 }
0x1218   :  { %6684 = vst.msk [vmem:[%s13196_s4 + $0x338] sm:$0xff] %vm1547_vm0, %v6540_v50  ;;  %v5708_v50 = vld [vmem:[%s13193_s3 + $0x438] sm:$0xff] }
0x1219   :  { %v12843_v60 = vpop.permute.xlu0 %5296 }
0x121b   :  { %5401 = vperm.xlu1 %7019, %v4703_v52   ;;  %v6190_v20 = vpop.permute.xlu1 %6189  ;;  %v5527_v52 = vmul.f32 %v12670_v38, %v14006_v31 }
0x121c   :  { %v6531_v15 = vadd.f32 %v6190_v20, %v5523_v14  ;;  %v14007_v14 = vld [vmem:[#allocation102_spill] sm:$0xff] }
0x121d   :  { %v7304_v0 = vpop.eup %7303  ;;  %v6245_v54 = vpop.permute.xlu0 %6244  ;;  %v5538_v20 = vmul.f32 %v12766_v47, %v14007_v14  ;;  %v5705_v47 = vld [vmem:[%s13193_s3 + $0x420] sm:$0xff]  ;;  %v5715_v14 = vld [vmem:[%s13193_s3 + $0x470] sm:$0xff] }
0x121e   :  { %v7306_v29 = vpop.eup %7305  ;;  %6675 = vst.msk [vmem:[%s13196_s4 + $0x2f0] sm:$0xff] %vm1547_vm0, %v6531_v15  ;;  %v6542_v42 = vadd.f32 %v6245_v54, %v5534_v17  ;;  %v4708_v36 = vmul.f32 %v7304_v0, %v4564_v30  ;;  %v5710_v15 = vld [vmem:[%s13193_s3 + $0x448] sm:$0xff]  ;;  %v5712_v54 = vld [vmem:[%s13193_s3 + $0x458] sm:$0xff] }
0x121f   :  { %6349 = vperm.xlu1 %7019, %v5699_v32   ;;  %v12862_v1 = vpop.permute.xlu1 %5251  ;;  %v4705_v23 = vmul.f32 %v7306_v29, %v4561_v28  ;;  %v7308_v49 = vpop.eup %7307  ;;  %v14008_v29 = vld [vmem:[#allocation136_spill] sm:$0xff]  ;;  %v5540_v28 = vmul.f32 %v12787_v58, %v11932_v6  ;;  %v5709_v6 = vld [vmem:[%s13193_s3 + $0x440] sm:$0xff] }
0x1220   :  { %6686 = vst.msk [vmem:[%s13196_s4 + $0x348] sm:$0xff] %vm1547_vm0, %v6542_v42  ;;  %5426 = vperm.xlu0 %7020, %v4708_v36   ;;  %v4707_v16 = vmul.f32 %v7308_v49, %v4563_v8  ;;  %v5529_v42 = vmul.f32 %v12692_v25, %v14008_v29  ;;  %v5711_v49 = vld [vmem:[%s13193_s3 + $0x450] sm:$0xff] }
0x1221   :  { %v12868_v33 = vpop.permute.xlu0 %5306 }
0x1223   :  { %5411 = vperm.xlu1 %7019, %v4705_v23   ;;  %v6200_v21 = vpop.permute.xlu1 %6199 }
0x1224   :  { %v6533_v61 = vadd.f32 %v6200_v21, %v5525_v41  ;;  %6374 = vperm.xlu0 %7020, %v5704_v13   ;;  %v5707_v13 = vld [vmem:[%s13193_s3 + $0x430] sm:$0xff]  ;;  %v5714_v41 = vld [vmem:[%s13193_s3 + $0x468] sm:$0xff] }
0x1225   :  { %v6255_v10 = vpop.permute.xlu0 %6254 }
0x1226   :  { %6677 = vst.msk [vmem:[%s13196_s4 + $0x300] sm:$0xff] %vm1547_vm0, %v6533_v61  ;;  %v6544_v4 = vadd.f32 %v6255_v10, %v5536_v5  ;;  %v14009_v5 = vld [vmem:[#allocation35_spill] sm:$0xff]  ;;  %v5542_v10 = vmul.f32 %v12804_v56, %v11974_v44  ;;  %v5713_v44 = vld [vmem:[%s13193_s3 + $0x460] sm:$0xff] }
0x1227   :  { %6359 = vperm.xlu1 %7019, %v5701_v62   ;;  %v12890_v43 = vpop.permute.xlu1 %5261  ;;  %v5531_v61 = vmul.f32 %v12797_v27, %v14009_v5 }
0x1228   :  { %6688 = vst.msk [vmem:[%s13196_s4 + $0x358] sm:$0xff] %vm1547_vm0, %v6544_v4  ;;  %6384 = vperm.xlu0 %7020, %v5706_v9  }
0x1229   :  { %v12896_v37 = vpop.permute.xlu0 %5316 }
0x122b   :  { %5421 = vperm.xlu1 %7019, %v4707_v16   ;;  %v6210_v51 = vpop.permute.xlu1 %6209  ;;  %v14010_v16 = vld [vmem:[#allocation181_spill] sm:$0xff] }
0x122c   :  { %v6535_v30 = vadd.f32 %v6210_v51, %v5527_v52  ;;  %6394 = vperm.xlu0 %7020, %v5708_v50   ;;  %v5533_v50 = vmul.f32 %v12814_v24, %v14010_v16  ;;  %v5544_v52 = vmul.f32 %v12821_v57, %v12016_v7  ;;  %v14011_v24 = vld [vmem:[#allocation2_spill] sm:$0xff] }
0x122d   :  { %v6265_v17 = vpop.permute.xlu0 %6264  ;;  %v5535_v57 = vmul.f32 %v12837_v22, %v14011_v24  ;;  %v14012_v22 = vld [vmem:[#allocation183_spill] sm:$0xff]  ;;  %v14018_v24 = vld [vmem:[#allocation106_spill] sm:$0xff] }
0x122e   :  { %6679 = vst.msk [vmem:[%s13196_s4 + $0x310] sm:$0xff] %vm1547_vm0, %v6535_v30  ;;  %v6546_v38 = vadd.f32 %v6265_v17, %v5538_v20 }
0x122f   :  { %6369 = vperm.xlu1 %7019, %v5703_v26   ;;  %v12915_v32 = vpop.permute.xlu1 %5271 }
0x1230   :  { %6690 = vst.msk [vmem:[%s13196_s4 + $0x368] sm:$0xff] %vm1547_vm0, %v6546_v38  ;;  %6404 = vperm.xlu0 %7020, %v5710_v15   ;;  %v5546_v15 = vmul.f32 %v12843_v60, %v12053_v63  ;;  %v5548_v60 = vmul.f32 %v12868_v33, %v12091_v39  ;;  %v5550_v33 = vmul.f32 %v12896_v37, %v12129_v11 }
0x1231   :  { %v12924_v0 = vpop.permute.xlu0 %5326 }
0x1232   :  { %v5552_v37 = vmul.f32 %v12924_v0, %v12167_v35  ;;  %v14016_v0 = vld [vmem:[#allocation146_spill] sm:$0xff] }
0x1233   :  { %6379 = vperm.xlu1 %7019, %v5705_v47   ;;  %v6220_v36 = vpop.permute.xlu1 %6219 }
0x1234   :  { %v6537_v23 = vadd.f32 %v6220_v36, %v5529_v42  ;;  %6414 = vperm.xlu0 %7020, %v5712_v54   ;;  %v5537_v36 = vmul.f32 %v12862_v1, %v14012_v22  ;;  %v14013_v1 = vld [vmem:[#allocation5_spill] sm:$0xff] }
0x1235   :  { %v6275_v53 = vpop.permute.xlu0 %6274 }
0x1236   :  { %6681 = vst.msk [vmem:[%s13196_s4 + $0x320] sm:$0xff] %vm1547_vm0, %v6537_v23  ;;  %v6548_v25 = vadd.f32 %v6275_v53, %v5540_v28 }
0x1237   :  { %6389 = vperm.xlu1 %7019, %v5707_v13   ;;  %v12943_v21 = vpop.permute.xlu1 %5281 }
0x1238   :  { %6692 = vst.msk [vmem:[%s13196_s4 + $0x378] sm:$0xff] %vm1547_vm0, %v6548_v25  ;;  %6424 = vperm.xlu0 %7020, %v5714_v41   ;;  %v5539_v25 = vmul.f32 %v12890_v43, %v14013_v1  ;;  %v14014_v43 = vld [vmem:[#allocation162_spill] sm:$0xff]  ;;  %v14021_v1 = vld [vmem:[#allocation185_spill] sm:$0xff] }
0x1239   :  { %v12952_v58 = vpop.permute.xlu0 %5336 }
0x123b   :  { %6399 = vperm.xlu1 %7019, %v5709_v6   ;;  %v6230_v62 = vpop.permute.xlu1 %6229 }
0x123c   :  { %v6539_v9 = vadd.f32 %v6230_v62, %v5531_v61  ;;  %6434 = vperm.xlu0 %7020, %v5716_v3  }
0x123d   :  { %v6285_v4 = vpop.permute.xlu0 %6284 }
0x123e   :  { %6683 = vst.msk [vmem:[%s13196_s4 + $0x330] sm:$0xff] %vm1547_vm0, %v6539_v9  ;;  %v6550_v8 = vadd.f32 %v6285_v4, %v5542_v10  ;;  %v5541_v10 = vmul.f32 %v12915_v32, %v14014_v43  ;;  %v14015_v32 = vld [vmem:[#allocation88_spill] sm:$0xff] }
0x123f   :  { %6409 = vperm.xlu1 %7019, %v5711_v49   ;;  %v12968_v27 = vpop.permute.xlu1 %5291  ;;  %v5543_v16 = vmul.f32 %v12943_v21, %v14015_v32  ;;  %v14017_v21 = vld [vmem:[#allocation184_spill] sm:$0xff] }
0x1240   :  { %6694 = vst.msk [vmem:[%s13196_s4 + $0x388] sm:$0xff] %vm1547_vm0, %v6550_v8 }
0x1241   :  { %v12977_v56 = vpop.permute.xlu0 %5346 }
0x1243   :  { %6419 = vperm.xlu1 %7019, %v5713_v44   ;;  %v6240_v31 = vpop.permute.xlu1 %6239 }
0x1244   :  { %v6541_v51 = vadd.f32 %v6240_v31, %v5533_v50  ;;  %v5554_v50 = vmul.f32 %v12952_v58, %v14016_v0 }
0x1245   :  { %v6295_v20 = vpop.permute.xlu0 %6294 }
0x1246   :  { %6685 = vst.msk [vmem:[%s13196_s4 + $0x340] sm:$0xff] %vm1547_vm0, %v6541_v51  ;;  %v6552_v30 = vadd.f32 %v6295_v20, %v5544_v52 }
0x1247   :  { %6429 = vperm.xlu1 %7019, %v5715_v14   ;;  %v12990_v26 = vpop.permute.xlu1 %5301 }
0x1248   :  { %6696 = vst.msk [vmem:[%s13196_s4 + $0x398] sm:$0xff] %vm1547_vm0, %v6552_v30  ;;  %v5545_v30 = vmul.f32 %v12968_v27, %v14017_v21  ;;  %v14019_v27 = vld [vmem:[#allocation41_spill] sm:$0xff] }
0x1249   :  { %v12996_v7 = vpop.permute.xlu0 %5356  ;;  %v5547_v22 = vmul.f32 %v12990_v26, %v14019_v27 }
0x124b   :  { %v6250_v17 = vpop.permute.xlu1 %6249 }
0x124c   :  { %v6543_v38 = vadd.f32 %v6250_v17, %v5535_v57  ;;  %v5556_v57 = vmul.f32 %v12977_v56, %v14018_v24  ;;  %v14020_v56 = vld [vmem:[#allocation43_spill] sm:$0xff] }
0x124d   :  { %v6305_v47 = vpop.permute.xlu0 %6304 }
0x124e   :  { %6687 = vst.msk [vmem:[%s13196_s4 + $0x350] sm:$0xff] %vm1547_vm0, %v6543_v38  ;;  %v6554_v54 = vadd.f32 %v6305_v47, %v5546_v15 }
0x124f   :  { %v5312_v29 = vpop.permute.xlu1 %5311 }
0x1250   :  { %6698 = vst.msk [vmem:[%s13196_s4 + $0x3a8] sm:$0xff] %vm1547_vm0, %v6554_v54  ;;  %v5549_v26 = vmul.f32 %v5312_v29, %v14021_v1 }
0x1251   :  { %v13010_v42 = vpop.permute.xlu0 %5366 }
0x1253   :  { %v6260_v63 = vpop.permute.xlu1 %6259 }
0x1254   :  { %v6545_v28 = vadd.f32 %v6260_v63, %v5537_v36  ;;  %v5558_v63 = vmul.f32 %v12996_v7, %v14020_v56 }
0x1255   :  { %v6315_v23 = vpop.permute.xlu0 %6314 }
0x1256   :  { %6689 = vst.msk [vmem:[%s13196_s4 + $0x360] sm:$0xff] %vm1547_vm0, %v6545_v28  ;;  %v6556_v13 = vadd.f32 %v6315_v23, %v5548_v60 }
0x1257   :  { %v5322_v53 = vpop.permute.xlu1 %5321 }
0x1258   :  { %6700 = vst.msk [vmem:[%s13196_s4 + $0x3b8] sm:$0xff] %vm1547_vm0, %v6556_v13 }
0x1259   :  { %v13024_v41 = vpop.permute.xlu0 %5376 }
0x125b   :  { %v6270_v39 = vpop.permute.xlu1 %6269 }
0x125c   :  { %v6547_v6 = vadd.f32 %v6270_v39, %v5539_v25 }
0x125d   :  { %v6325_v3 = vpop.permute.xlu0 %6324 }
0x125e   :  { %6691 = vst.msk [vmem:[%s13196_s4 + $0x370] sm:$0xff] %vm1547_vm0, %v6547_v6  ;;  %v6558_v5 = vadd.f32 %v6325_v3, %v5550_v33  ;;  %v14022_v33 = vld [vmem:[#allocation44_spill] sm:$0xff] }
0x125f   :  { %v5332_v61 = vpop.permute.xlu1 %5331  ;;  %v5551_v6 = vmul.f32 %v5322_v53, %v14022_v33 }
0x1260   :  { %6702 = vst.msk [vmem:[%s13196_s4 + $0x3c8] sm:$0xff] %vm1547_vm0, %v6558_v5 }
0x1261   :  { %v13038_v62 = vpop.permute.xlu0 %5386 }
0x1262   :  { %v5564_v24 = vmul.f32 %v13038_v62, %v12392_v48 }
0x1263   :  { %v6280_v11 = vpop.permute.xlu1 %6279 }
0x1264   :  { %v6549_v9 = vadd.f32 %v6280_v11, %v5541_v10  ;;  %v14023_v10 = vld [vmem:[#allocation139_spill] sm:$0xff] }
0x1265   :  { %v6335_v49 = vpop.permute.xlu0 %6334  ;;  %v5553_v29 = vmul.f32 %v5332_v61, %v14023_v10 }
0x1266   :  { %6693 = vst.msk [vmem:[%s13196_s4 + $0x380] sm:$0xff] %vm1547_vm0, %v6549_v9  ;;  %v6560_v4 = vadd.f32 %v6335_v49, %v5552_v37  ;;  %v14024_v49 = vld [vmem:[#allocation7_spill] sm:$0xff] }
0x1267   :  { %v5342_v8 = vpop.permute.xlu1 %5341 }
0x1268   :  { %6704 = vst.msk [vmem:[%s13196_s4 + $0x3d8] sm:$0xff] %vm1547_vm0, %v6560_v4  ;;  %v5555_v53 = vmul.f32 %v5342_v8, %v14024_v49 }
0x1269   :  { %v13052_v44 = vpop.permute.xlu0 %5396 }
0x126b   :  { %v6290_v35 = vpop.permute.xlu1 %6289 }
0x126c   :  { %v6551_v31 = vadd.f32 %v6290_v35, %v5543_v16  ;;  %v14025_v35 = vld [vmem:[#allocation46_spill] sm:$0xff] }
0x126d   :  { %v6345_v52 = vpop.permute.xlu0 %6344  ;;  %v5560_v0 = vmul.f32 %v13010_v42, %v14025_v35 }
0x126e   :  { %6695 = vst.msk [vmem:[%s13196_s4 + $0x390] sm:$0xff] %vm1547_vm0, %v6551_v31  ;;  %v6562_v51 = vadd.f32 %v6345_v52, %v5554_v50  ;;  %v5562_v52 = vmul.f32 %v13024_v41, %v12357_v46 }
0x126f   :  { %v5352_v14 = vpop.permute.xlu1 %5351 }
0x1270   :  { %6706 = vst.msk [vmem:[%s13196_s4 + $0x3e8] sm:$0xff] %vm1547_vm0, %v6562_v51  ;;  %v14026_v51 = vld [vmem:[#allocation186_spill] sm:$0xff] }
0x1271   :  { %v13066_v20 = vpop.permute.xlu0 %5406  ;;  %v5557_v21 = vmul.f32 %v5352_v14, %v14026_v51 }
0x1273   :  { %v6300_v58 = vpop.permute.xlu1 %6299 }
0x1274   :  { %v6553_v17 = vadd.f32 %v6300_v58, %v5545_v30 }
0x1275   :  { %v6355_v15 = vpop.permute.xlu0 %6354 }
0x1276   :  { %6697 = vst.msk [vmem:[%s13196_s4 + $0x3a0] sm:$0xff] %vm1547_vm0, %v6553_v17  ;;  %v6564_v38 = vadd.f32 %v6355_v15, %v5556_v57  ;;  %v5566_v57 = vmul.f32 %v13052_v44, %v12414_v40  ;;  %v14027_v17 = vld [vmem:[#allocation187_spill] sm:$0xff] }
0x1277   :  { %v5362_v47 = vpop.permute.xlu1 %5361 }
0x1278   :  { %6708 = vst.msk [vmem:[%s13196_s4 + $0x3f8] sm:$0xff] %vm1547_vm0, %v6564_v38  ;;  %v5559_v15 = vmul.f32 %v5362_v47, %v14027_v17 }
0x1279   :  { %v5417_v54 = vpop.permute.xlu0 %5416 }
0x127b   :  { %v6310_v36 = vpop.permute.xlu1 %6309 }
0x127c   :  { %v6555_v60 = vadd.f32 %v6310_v36, %v5547_v22  ;;  %v5568_v22 = vmul.f32 %v13066_v20, %v12436_v19  ;;  %v14028_v36 = vld [vmem:[#allocation89_spill] sm:$0xff] }
0x127d   :  { %v6365_v28 = vpop.permute.xlu0 %6364 }
0x127e   :  { %6699 = vst.msk [vmem:[%s13196_s4 + $0x3b0] sm:$0xff] %vm1547_vm0, %v6555_v60  ;;  %v6566_v23 = vadd.f32 %v6365_v28, %v5558_v63  ;;  %v5570_v60 = vmul.f32 %v5417_v54, %v12458_v55 }
0x127f   :  { %v5372_v13 = vpop.permute.xlu1 %5371 }
0x1280   :  { %6710 = vst.msk [vmem:[%s13196_s4 + $0x408] sm:$0xff] %vm1547_vm0, %v6566_v23  ;;  %v5561_v56 = vmul.f32 %v5372_v13, %v14028_v36 }
0x1283   :  { %v6320_v25 = vpop.permute.xlu1 %6319 }
0x1284   :  { %v6557_v39 = vadd.f32 %v6320_v25, %v5549_v26 }
0x1286   :  { %6701 = vst.msk [vmem:[%s13196_s4 + $0x3c0] sm:$0xff] %vm1547_vm0, %v6557_v39 }
0x1287   :  { %v5382_v7 = vpop.permute.xlu1 %5381 }
0x1288   :  { %v5563_v19 = vmul.f32 %v5382_v7, %v12362_v59 }
0x128b   :  { %v6330_v3 = vpop.permute.xlu1 %6329 }
0x128c   :  { %v6559_v5 = vadd.f32 %v6330_v3, %v5551_v6 }
0x128e   :  { %6703 = vst.msk [vmem:[%s13196_s4 + $0x3d0] sm:$0xff] %vm1547_vm0, %v6559_v5 }
0x128f   :  { %v5392_v43 = vpop.permute.xlu1 %5391 }
0x1290   :  { %v5565_v1 = vmul.f32 %v5392_v43, %v12396_v18 }
0x1293   :  { %v6340_v11 = vpop.permute.xlu1 %6339 }
0x1294   :  { %v6561_v37 = vadd.f32 %v6340_v11, %v5553_v29 }
0x1296   :  { %6705 = vst.msk [vmem:[%s13196_s4 + $0x3e0] sm:$0xff] %vm1547_vm0, %v6561_v37 }
0x1297   :  { %v5402_v9 = vpop.permute.xlu1 %5401 }
0x1298   :  { %v5567_v39 = vmul.f32 %v5402_v9, %v12418_v34 }
0x129b   :  { %v5427_v4 = vpop.permute.xlu0 %5426  ;;  %v6350_v32 = vpop.permute.xlu1 %6349 }
0x129c   :  { %v6563_v16 = vadd.f32 %v6350_v32, %v5555_v53  ;;  %v5572_v55 = vmul.f32 %v5427_v4, %v12500_v2 }
0x129e   :  { %6707 = vst.msk [vmem:[%s13196_s4 + $0x3f0] sm:$0xff] %vm1547_vm0, %v6563_v16 }
0x129f   :  { %v6375_v61 = vpop.permute.xlu0 %6374  ;;  %v5412_v50 = vpop.permute.xlu1 %5411 }
0x12a0   :  { %v6568_v31 = vadd.f32 %v6375_v61, %v5560_v0  ;;  %v5569_v7 = vmul.f32 %v5412_v50, %v12440_v12 }
0x12a2   :  { %6712 = vst.msk [vmem:[%s13196_s4 + $0x418] sm:$0xff] %vm1547_vm0, %v6568_v31 }
0x12a3   :  { %v6385_v8 = vpop.permute.xlu0 %6384  ;;  %v6360_v42 = vpop.permute.xlu1 %6359 }
0x12a4   :  { %v6570_v30 = vadd.f32 %v6385_v8, %v5562_v52  ;;  %v6565_v58 = vadd.f32 %v6360_v42, %v5557_v21 }
0x12a6   :  { %6714 = vst.msk [vmem:[%s13196_s4 + $0x428] sm:$0xff] %vm1547_vm0, %v6570_v30  ;;  %6709 = vst.msk [vmem:[%s13196_s4 + $0x400] sm:$0xff] %vm1547_vm0, %v6565_v58 }
0x12a7   :  { %v6395_v46 = vpop.permute.xlu0 %6394  ;;  %v5422_v41 = vpop.permute.xlu1 %5421 }
0x12a8   :  { %v6572_v14 = vadd.f32 %v6395_v46, %v5564_v24  ;;  %v5571_v6 = vmul.f32 %v5422_v41, %v12462_v45 }
0x12aa   :  { %6716 = vst.msk [vmem:[%s13196_s4 + $0x438] sm:$0xff] %vm1547_vm0, %v6572_v14 }
0x12ab   :  { %v6405_v48 = vpop.permute.xlu0 %6404  ;;  %v6370_v62 = vpop.permute.xlu1 %6369 }
0x12ac   :  { %v6574_v38 = vadd.f32 %v6405_v48, %v5566_v57  ;;  %v6567_v27 = vadd.f32 %v6370_v62, %v5559_v15 }
0x12ae   :  { %6718 = vst.msk [vmem:[%s13196_s4 + $0x448] sm:$0xff] %vm1547_vm0, %v6574_v38  ;;  %6711 = vst.msk [vmem:[%s13196_s4 + $0x410] sm:$0xff] %vm1547_vm0, %v6567_v27 }
0x12af   :  { %v6415_v40 = vpop.permute.xlu0 %6414  ;;  %v6380_v44 = vpop.permute.xlu1 %6379 }
0x12b0   :  { %v6576_v47 = vadd.f32 %v6415_v40, %v5568_v22  ;;  %v6569_v63 = vadd.f32 %v6380_v44, %v5561_v56 }
0x12b2   :  { %6720 = vst.msk [vmem:[%s13196_s4 + $0x458] sm:$0xff] %vm1547_vm0, %v6576_v47  ;;  %6713 = vst.msk [vmem:[%s13196_s4 + $0x420] sm:$0xff] %vm1547_vm0, %v6569_v63 }
0x12b3   :  { %v6425_v20 = vpop.permute.xlu0 %6424  ;;  %v6390_v28 = vpop.permute.xlu1 %6389 }
0x12b4   :  { %v6578_v23 = vadd.f32 %v6425_v20, %v5570_v60  ;;  %v6571_v13 = vadd.f32 %v6390_v28, %v5563_v19 }
0x12b6   :  { %6722 = vst.msk [vmem:[%s13196_s4 + $0x468] sm:$0xff] %vm1547_vm0, %v6578_v23  ;;  %6715 = vst.msk [vmem:[%s13196_s4 + $0x430] sm:$0xff] %vm1547_vm0, %v6571_v13 }
0x12b7   :  { %v6435_v59 = vpop.permute.xlu0 %6434  ;;  %v6400_v54 = vpop.permute.xlu1 %6399 }
0x12b8   :  { %v6580_v26 = vadd.f32 %v6435_v59, %v5572_v55  ;;  %v6573_v25 = vadd.f32 %v6400_v54, %v5565_v1 }
0x12ba   :  { %6724 = vst.msk [vmem:[%s13196_s4 + $0x478] sm:$0xff] %vm1547_vm0, %v6580_v26  ;;  %6717 = vst.msk [vmem:[%s13196_s4 + $0x440] sm:$0xff] %vm1547_vm0, %v6573_v25 }
0x12bb   :  { %v6410_v18 = vpop.permute.xlu1 %6409 }
0x12bc   :  { %v6575_v2 = vadd.f32 %v6410_v18, %v5567_v39 }
0x12be   :  { %6719 = vst.msk [vmem:[%s13196_s4 + $0x450] sm:$0xff] %vm1547_vm0, %v6575_v2 }
0x12bf   :  { %v6420_v34 = vpop.permute.xlu1 %6419 }
0x12c0   :  { %v6577_v33 = vadd.f32 %v6420_v34, %v5569_v7 }
0x12c2   :  { %6721 = vst.msk [vmem:[%s13196_s4 + $0x460] sm:$0xff] %vm1547_vm0, %v6577_v33 }
0x12c3   :  { %v6430_v3 = vpop.permute.xlu1 %6429 }
0x12c4   :  { %v6579_v5 = vadd.f32 %v6430_v3, %v5571_v6 }
0x12c6   :  { %6723 = vst.msk [vmem:[%s13196_s4 + $0x470] sm:$0xff] %vm1547_vm0, %v6579_v5 }

</bundles_post_ra>
